<compile_context>
chip_gen: v6e
topology: v6e:2x2x1
jax: 0.10.0
libtpu: 0.0.40
codegen_flags: <defaults>
</compile_context>

<pallas_src>
import functools

import jax
import jax.numpy as jnp
from jax.experimental import pallas as pl
from jax.experimental.pallas import tpu as pltpu


NUM_FILTERS = [128, 256, 256, 64]
KSIZES = [(1, 4, 4), (1, 4, 4), (1, 3, 3), (4, 4, 4)]
STRIDES = [(1, 2, 2), (1, 2, 2), (1, 1, 1), (2, 2, 2)]

_TM = 256          # M tile (parallel axis)
_MAX_TK = 2048     # cap on K tile; most layers end up with a single K step


def _round_up(x, m):
    return (x + m - 1) // m * m


def _k_tiling(K):
    """Return (Kp, TK, nk) with TK a multiple of 256, TK * nk == Kp >= K."""
    nk = max(1, -(-K // _MAX_TK))            # ceil(K / MAX_TK)
    tk = _round_up(-(-K // nk), 256)         # ceil(K / nk) rounded to 256
    return tk * nk, tk, nk


def _m_tiling(M):
    """Return (Mp, TM, nm)."""
    if M <= _TM:
        mp = _round_up(max(M, 16), 16)
        return mp, mp, 1
    mp = _round_up(M, _TM)
    return mp, _TM, mp // _TM


# ----------------------------------------------------------------------------
# Pallas kernel: (M, K)-tiled GEMM, accumulate in o_ref, fused shift + ReLU
# ----------------------------------------------------------------------------
def gemm_bn_act_kernel(a_ref, w_ref, shift_ref, o_ref, *, relu):
    k = pl.program_id(1)

    @pl.when(k == 0)
    def _():
        o_ref[...] = jnp.zeros_like(o_ref)

    o_ref[...] += jnp.dot(a_ref[...], w_ref[...],
                          preferred_element_type=jnp.float32)

    @pl.when(k == pl.num_programs(1) - 1)
    def _():
        y = o_ref[...] + shift_ref[...]
        if relu:
            y = jnp.maximum(y, 0.0)
        o_ref[...] = y


def fused_gemm(a, w_p, shift_p, *, relu, n_out):
    """out[M, n_out] = act(a[M, K] @ w_p[:K, :n_out] + shift_p[:n_out]).

    `w_p` is a pre-padded (Kp, Np) bf16 weight (BN scale folded in) and
    `shift_p` a pre-padded (1, Np) f32 shift (bias + BN shift folded in).
    """
    M, K = a.shape
    Kp, Np = w_p.shape
    kp_chk, TK, nk = _k_tiling(K)
    assert kp_chk == Kp, (kp_chk, Kp)
    Mp, TM, nm = _m_tiling(M)

    a_p = jnp.zeros((Mp, Kp), jnp.bfloat16).at[:M, :K].set(a.astype(jnp.bfloat16))

    out = pl.pallas_call(
        functools.partial(gemm_bn_act_kernel, relu=relu),
        out_shape=jax.ShapeDtypeStruct((Mp, Np), jnp.float32),
        grid_spec=pltpu.PrefetchScalarGridSpec(
            num_scalar_prefetch=0,
            grid=(nm, nk),
            in_specs=[
                pl.BlockSpec((TM, TK), lambda m, k: (m, k)),
                pl.BlockSpec((TK, Np), lambda m, k: (k, 0)),
                pl.BlockSpec((1, Np), lambda m, k: (0, 0)),
            ],
            out_specs=pl.BlockSpec((TM, Np), lambda m, k: (m, 0)),
        ),
        compiler_params=pltpu.CompilerParams(
            dimension_semantics=("parallel", "arbitrary"),
        ),
    )(a_p, w_p, shift_p)
    return out[:M, :n_out]


# ----------------------------------------------------------------------------
# Channels-last im2col (plain-JAX glue; reduction dim is lane-contiguous)
# ----------------------------------------------------------------------------
def im2col_3d_ndhwc(x, ksize, stride):
    """x: (N, D, H, W, C) -> rows (N*OD*OH*OW, kd*kh*kw*C), (dz,dy,dx,c) order."""
    N, D, H, W, C = x.shape
    kd, kh, kw = ksize
    sd, sh, sw = stride
    OD = (D - kd) // sd + 1
    OH = (H - kh) // sh + 1
    OW = (W - kw) // sw + 1
    cols = []
    for dz in range(kd):
        for dy in range(kh):
            for dx in range(kw):
                patch = x[:,
                          dz:dz + (OD - 1) * sd + 1:sd,
                          dy:dy + (OH - 1) * sh + 1:sh,
                          dx:dx + (OW - 1) * sw + 1:sw, :]
                cols.append(patch)                  # (N, OD, OH, OW, C)
    cols = jnp.stack(cols, axis=4)                  # (N, OD, OH, OW, kpos, C)
    cols = cols.reshape(N * OD * OH * OW, kd * kh * kw * C)
    return cols, (OD, OH, OW)


# ----------------------------------------------------------------------------
# One-time parameter preparation (hoisted out of the forward pass)
# ----------------------------------------------------------------------------
def _prepare_conv_layer(cw, cb, gamma, beta, mean, var, eps=1e-5):
    co, ci, kd, kh, kw = cw.shape
    K = ci * kd * kh * kw
    scale = gamma / jnp.sqrt(var + eps)
    shift = cb * scale + beta - mean * scale
    # (CO, CI, kd, kh, kw) -> rows ordered (dz, dy, dx, ci) to match im2col.
    wmat = cw.transpose(2, 3, 4, 1, 0).reshape(K, co) * scale[None, :]
    Kp, _, _ = _k_tiling(K)
    Np = _round_up(co, 128)
    w_p = jnp.zeros((Kp, Np), jnp.bfloat16).at[:K, :co].set(wmat.astype(jnp.bfloat16))
    s_p = jnp.zeros((1, Np), jnp.float32).at[0, :co].set(shift)
    return {"w": w_p, "shift": s_p}


def _prepare_linear_layer(w, b, col_perm=None):
    out_f, in_f = w.shape
    wmat = w[:, col_perm] if col_perm is not None else w
    wmat = wmat.T                                   # (in_f, out_f)
    Kp, _, _ = _k_tiling(in_f)
    Np = _round_up(out_f, 128)
    w_p = jnp.zeros((Kp, Np), jnp.bfloat16).at[:in_f, :out_f].set(wmat.astype(jnp.bfloat16))
    s_p = jnp.zeros((1, Np), jnp.float32).at[0, :out_f].set(b)
    return {"w": w_p, "shift": s_p}


def _conv_out_dims(state_dim):
    _, _, d, h, w = state_dim
    for ks, st in zip(KSIZES, STRIDES):
        d = (d - ks[0]) // st[0] + 1
        h = (h - ks[1]) // st[1] + 1
        w = (w - ks[2]) // st[2] + 1
    return d, h, w


def prepare_params(params, state_dim):
    prepped = {"convs": []}
    for cp, bp in zip(params["convs"], params["bns"]):
        prepped["convs"].append(
            _prepare_conv_layer(cp["w"], cp["b"], bp["gamma"], bp["beta"],
                                bp["mean"], bp["var"]))
    # Permute fc1 columns from PyTorch's (c, d, h, w) flatten order to our
    # channels-last (d, h, w, c) flatten order (one-time, identical result).
    d4, h4, w4 = _conv_out_dims(state_dim)
    c4 = NUM_FILTERS[-1]
    perm = (jnp.arange(c4 * d4 * h4 * w4)
            .reshape(c4, d4, h4, w4)
            .transpose(1, 2, 3, 0)
            .reshape(-1))
    prepped["fc1"] = _prepare_linear_layer(params["fc1"]["w"], params["fc1"]["b"],
                                           col_perm=perm)
    prepped["fc_out"] = _prepare_linear_layer(params["fc_out"]["w"],
                                              params["fc_out"]["b"])
    return prepped


# ----------------------------------------------------------------------------
# Synthetic torch-style parameter init (matches module shapes)
# ----------------------------------------------------------------------------
def init_params(key, state_dim, num_actions):
    in_channels = state_dim[1]
    cins = [in_channels] + NUM_FILTERS[:-1]
    params = {"convs": [], "bns": []}
    for ci, co, ks in zip(cins, NUM_FILTERS, KSIZES):
        key, kw_, kb_, kg_, kbe_, km_, kv_ = jax.random.split(key, 7)
        fan_in = ci * ks[0] * ks[1] * ks[2]
        params["convs"].append({
            "w": jax.random.normal(kw_, (co, ci, *ks), jnp.float32)
                 * (1.0 / jnp.sqrt(fan_in)),
            "b": 0.01 * jax.random.normal(kb_, (co,), jnp.float32),
        })
        params["bns"].append({
            "gamma": 1.0 + 0.1 * jax.random.normal(kg_, (co,), jnp.float32),
            "beta": 0.1 * jax.random.normal(kbe_, (co,), jnp.float32),
            "mean": 0.1 * jax.random.normal(km_, (co,), jnp.float32),
            "var": 1.0 + 0.1 * jnp.abs(jax.random.normal(kv_, (co,), jnp.float32)),
        })

    d, h, w = _conv_out_dims(state_dim)
    in_fc = NUM_FILTERS[-1] * d * h * w

    key, k1, k2, k3, k4 = jax.random.split(key, 5)
    params["fc1"] = {
        "w": jax.random.normal(k1, (1024, in_fc), jnp.float32)
             * (1.0 / jnp.sqrt(in_fc)),
        "b": 0.01 * jax.random.normal(k2, (1024,), jnp.float32),
    }
    params["fc_out"] = {
        "w": jax.random.normal(k3, (num_actions, 1024), jnp.float32)
             * (1.0 / jnp.sqrt(1024.0)),
        "b": 0.01 * jax.random.normal(k4, (num_actions,), jnp.float32),
    }
    return params


# ----------------------------------------------------------------------------
# Forward pass (ConvQNetwork.forward(x, training=False))
# ----------------------------------------------------------------------------
def conv_q_network_forward(prepped, x, num_actions):
    # TODO(synk): Dropout / train-mode BatchNorm not implemented (inference only).
    x = jnp.transpose(x, (0, 2, 3, 4, 1))            # NCDHW -> NDHWC, once
    n = x.shape[0]
    for layer, ks, st, co in zip(prepped["convs"], KSIZES, STRIDES, NUM_FILTERS):
        patches, (od, oh, ow) = im2col_3d_ndhwc(x, ks, st)
        out = fused_gemm(patches, layer["w"], layer["shift"], relu=True, n_out=co)
        x = out.reshape(n, od, oh, ow, co)
    x = x.reshape(n, -1)                             # (d,h,w,c) order; fc1 pre-permuted
    x = fused_gemm(x, prepped["fc1"]["w"], prepped["fc1"]["shift"],
                   relu=True, n_out=1024)
    x = fused_gemm(x, prepped["fc_out"]["w"], prepped["fc_out"]["shift"],
                   relu=False, n_out=num_actions)
    return x


if __name__ == "__main__":
    state_dim = (2, 4, 4, 32, 32)   # (N, C, D, H, W) — small but valid for the conv stack
    num_actions = 6

    key = jax.random.PRNGKey(0)
    key, kx = jax.random.split(key)
    params = init_params(key, state_dim, num_actions)
    prepped = prepare_params(params, state_dim)       # one-time weight prep
    x = jax.random.normal(kx, state_dim, jnp.float32)

    fwd = jax.jit(functools.partial(conv_q_network_forward, num_actions=num_actions))
    q_values = jax.block_until_ready(fwd(prepped, x))

    assert q_values.shape == (state_dim[0], num_actions), q_values.shape
    assert bool(jnp.all(jnp.isfinite(q_values)))
    print("KERNEL_OK")
</pallas_src>

<mosaic_0001>
module attributes {stable_mosaic.version = 11 : i64} {
  func.func @gemm_bn_act_kernel(%arg0: i32, %arg1: i32, %arg2: memref<256x256xbf16, #tpu.memory_space<vmem>>, %arg3: memref<256x128xbf16, #tpu.memory_space<vmem>>, %arg4: memref<1x128xf32, #tpu.memory_space<vmem>>, %arg5: memref<256x128xf32, #tpu.memory_space<vmem>>) attributes {dimension_semantics = [#tpu.dimension_semantics<parallel>, #tpu.dimension_semantics<arbitrary>], iteration_bounds = array<i64: 8, 1>, scalar_prefetch = 0 : i64, scratch_operands = 0 : i64, tpu.core_type = #tpu.core_type<tc>, window_params = [{transform_indices = @transform_0, window_bounds = array<i64: 256, 256>}, {transform_indices = @transform_1, window_bounds = array<i64: 256, 128>}, {pipeline_mode = #tpu.pipeline_mode<synchronous>, transform_indices = @transform_2, window_bounds = array<i64: 1, 128>}, {transform_indices = @transform_3, window_bounds = array<i64: 256, 128>}]} {
    %c0_i32 = arith.constant 0 : i32
    %0 = arith.cmpi eq, %arg1, %c0_i32 : i32
    %1 = arith.extui %0 : i1 to i32
    %c0_i32_0 = arith.constant 0 : i32
    %2 = arith.cmpi ne, %1, %c0_i32_0 : i32
    scf.if %2 {
      %cst_10 = arith.constant 0.000000e+00 : f32
      %12 = vector.broadcast %cst_10 : f32 to vector<256x128xf32>
      %c0_11 = arith.constant 0 : index
      %c0_12 = arith.constant 0 : index
      %13 = vector.load %arg5[%c0_11, %c0_12] : memref<256x128xf32, #tpu.memory_space<vmem>>, vector<256x128xf32>
      tpu.vector_store %arg5[%c0_11, %c0_12], %12 {strides = array<i32>} : memref<256x128xf32, #tpu.memory_space<vmem>>, vector<256x128xf32>,
    } else {
    }
    %c0 = arith.constant 0 : index
    %c0_1 = arith.constant 0 : index
    %3 = vector.load %arg5[%c0, %c0_1] : memref<256x128xf32, #tpu.memory_space<vmem>>, vector<256x128xf32>
    %c0_2 = arith.constant 0 : index
    %c0_3 = arith.constant 0 : index
    %4 = vector.load %arg2[%c0_2, %c0_3] : memref<256x256xbf16, #tpu.memory_space<vmem>>, vector<256x256xbf16>
    %c0_4 = arith.constant 0 : index
    %c0_5 = arith.constant 0 : index
    %5 = vector.load %arg3[%c0_4, %c0_5] : memref<256x128xbf16, #tpu.memory_space<vmem>>, vector<256x128xbf16>
    %cst = arith.constant dense<0.000000e+00> : vector<256x128xf32>
    %6 = tpu.matmul %4, %5, %cst {dimension_numbers = #tpu.dot_dimension_numbers<[1], [0], [0], [1], [0, 0, 1, 1], [], []>} : vector<256x256xbf16>, vector<256x128xbf16>, vector<256x128xf32> -> vector<256x128xf32>
    %7 = arith.addf %3, %6 : vector<256x128xf32>
    %c0_6 = arith.constant 0 : index
    %c0_7 = arith.constant 0 : index
    %8 = vector.load %arg5[%c0_6, %c0_7] : memref<256x128xf32, #tpu.memory_space<vmem>>, vector<256x128xf32>
    tpu.vector_store %arg5[%c0_6, %c0_7], %7 {strides = array<i32>} : memref<256x128xf32, #tpu.memory_space<vmem>>, vector<256x128xf32>,
    %c0_i32_8 = arith.constant 0 : i32
    %9 = arith.cmpi eq, %arg1, %c0_i32_8 : i32
    %10 = arith.extui %9 : i1 to i32
    %c0_i32_9 = arith.constant 0 : i32
    %11 = arith.cmpi ne, %10, %c0_i32_9 : i32
    scf.if %11 {
      %c0_10 = arith.constant 0 : index
      %c0_11 = arith.constant 0 : index
      %12 = vector.load %arg5[%c0_10, %c0_11] : memref<256x128xf32, #tpu.memory_space<vmem>>, vector<256x128xf32>
      %c0_12 = arith.constant 0 : index
      %c0_13 = arith.constant 0 : index
      %13 = vector.load %arg4[%c0_12, %c0_13] : memref<1x128xf32, #tpu.memory_space<vmem>>, vector<1x128xf32>
      %14 = vector.broadcast %13 : vector<1x128xf32> to vector<256x128xf32>
      %15 = arith.addf %12, %14 : vector<256x128xf32>
      %cst_14 = arith.constant 0.000000e+00 : f32
      %16 = vector.broadcast %cst_14 : f32 to vector<256x128xf32>
      %17 = arith.maximumf %15, %16 : vector<256x128xf32>
      %c0_15 = arith.constant 0 : index
      %c0_16 = arith.constant 0 : index
      %18 = vector.load %arg5[%c0_15, %c0_16] : memref<256x128xf32, #tpu.memory_space<vmem>>, vector<256x128xf32>
      tpu.vector_store %arg5[%c0_15, %c0_16], %17 {strides = array<i32>} : memref<256x128xf32, #tpu.memory_space<vmem>>, vector<256x128xf32>,
    } else {
    }
    return
  }
  func.func @transform_0(%arg0: i32, %arg1: i32) -> (i32, i32) {
    %c0_i32 = arith.constant 0 : i32
    return %arg0, %arg1 : i32, i32
  }
  func.func @transform_1(%arg0: i32, %arg1: i32) -> (i32, i32) {
    %c0_i32 = arith.constant 0 : i32
    %c0_i32_0 = arith.constant 0 : i32
    return %arg1, %c0_i32 : i32, i32
  }
  func.func @transform_2(%arg0: i32, %arg1: i32) -> (i32, i32) {
    %c0_i32 = arith.constant 0 : i32
    %c0_i32_0 = arith.constant 0 : i32
    %c0_i32_1 = arith.constant 0 : i32
    return %c0_i32, %c0_i32_0 : i32, i32
  }
  func.func @transform_3(%arg0: i32, %arg1: i32) -> (i32, i32) {
    %c0_i32 = arith.constant 0 : i32
    %c0_i32_0 = arith.constant 0 : i32
    return %arg0, %c0_i32 : i32, i32
  }
}

module attributes {stable_mosaic.version = 11 : i64} {
  func.func @gemm_bn_act_kernel(%arg0: i32, %arg1: i32, %arg2: memref<256x2048xbf16, #tpu.memory_space<vmem>>, %arg3: memref<2048x256xbf16, #tpu.memory_space<vmem>>, %arg4: memref<1x256xf32, #tpu.memory_space<vmem>>, %arg5: memref<256x256xf32, #tpu.memory_space<vmem>>) attributes {dimension_semantics = [#tpu.dimension_semantics<parallel>, #tpu.dimension_semantics<arbitrary>], iteration_bounds = array<i64: 2, 1>, scalar_prefetch = 0 : i64, scratch_operands = 0 : i64, tpu.core_type = #tpu.core_type<tc>, window_params = [{transform_indices = @transform_0, window_bounds = array<i64: 256, 2048>}, {transform_indices = @transform_1, window_bounds = array<i64: 2048, 256>}, {pipeline_mode = #tpu.pipeline_mode<synchronous>, transform_indices = @transform_2, window_bounds = array<i64: 1, 256>}, {transform_indices = @transform_3, window_bounds = array<i64: 256, 256>}]} {
    %c0_i32 = arith.constant 0 : i32
    %0 = arith.cmpi eq, %arg1, %c0_i32 : i32
    %1 = arith.extui %0 : i1 to i32
    %c0_i32_0 = arith.constant 0 : i32
    %2 = arith.cmpi ne, %1, %c0_i32_0 : i32
    scf.if %2 {
      %cst_10 = arith.constant 0.000000e+00 : f32
      %12 = vector.broadcast %cst_10 : f32 to vector<256x256xf32>
      %c0_11 = arith.constant 0 : index
      %c0_12 = arith.constant 0 : index
      %13 = vector.load %arg5[%c0_11, %c0_12] : memref<256x256xf32, #tpu.memory_space<vmem>>, vector<256x256xf32>
      tpu.vector_store %arg5[%c0_11, %c0_12], %12 {strides = array<i32>} : memref<256x256xf32, #tpu.memory_space<vmem>>, vector<256x256xf32>,
    } else {
    }
    %c0 = arith.constant 0 : index
    %c0_1 = arith.constant 0 : index
    %3 = vector.load %arg5[%c0, %c0_1] : memref<256x256xf32, #tpu.memory_space<vmem>>, vector<256x256xf32>
    %c0_2 = arith.constant 0 : index
    %c0_3 = arith.constant 0 : index
    %4 = vector.load %arg2[%c0_2, %c0_3] : memref<256x2048xbf16, #tpu.memory_space<vmem>>, vector<256x2048xbf16>
    %c0_4 = arith.constant 0 : index
    %c0_5 = arith.constant 0 : index
    %5 = vector.load %arg3[%c0_4, %c0_5] : memref<2048x256xbf16, #tpu.memory_space<vmem>>, vector<2048x256xbf16>
    %cst = arith.constant dense<0.000000e+00> : vector<256x256xf32>
    %6 = tpu.matmul %4, %5, %cst {dimension_numbers = #tpu.dot_dimension_numbers<[1], [0], [0], [1], [0, 0, 1, 1], [], []>} : vector<256x2048xbf16>, vector<2048x256xbf16>, vector<256x256xf32> -> vector<256x256xf32>
    %7 = arith.addf %3, %6 : vector<256x256xf32>
    %c0_6 = arith.constant 0 : index
    %c0_7 = arith.constant 0 : index
    %8 = vector.load %arg5[%c0_6, %c0_7] : memref<256x256xf32, #tpu.memory_space<vmem>>, vector<256x256xf32>
    tpu.vector_store %arg5[%c0_6, %c0_7], %7 {strides = array<i32>} : memref<256x256xf32, #tpu.memory_space<vmem>>, vector<256x256xf32>,
    %c0_i32_8 = arith.constant 0 : i32
    %9 = arith.cmpi eq, %arg1, %c0_i32_8 : i32
    %10 = arith.extui %9 : i1 to i32
    %c0_i32_9 = arith.constant 0 : i32
    %11 = arith.cmpi ne, %10, %c0_i32_9 : i32
    scf.if %11 {
      %c0_10 = arith.constant 0 : index
      %c0_11 = arith.constant 0 : index
      %12 = vector.load %arg5[%c0_10, %c0_11] : memref<256x256xf32, #tpu.memory_space<vmem>>, vector<256x256xf32>
      %c0_12 = arith.constant 0 : index
      %c0_13 = arith.constant 0 : index
      %13 = vector.load %arg4[%c0_12, %c0_13] : memref<1x256xf32, #tpu.memory_space<vmem>>, vector<1x256xf32>
      %14 = vector.broadcast %13 : vector<1x256xf32> to vector<256x256xf32>
      %15 = arith.addf %12, %14 : vector<256x256xf32>
      %cst_14 = arith.constant 0.000000e+00 : f32
      %16 = vector.broadcast %cst_14 : f32 to vector<256x256xf32>
      %17 = arith.maximumf %15, %16 : vector<256x256xf32>
      %c0_15 = arith.constant 0 : index
      %c0_16 = arith.constant 0 : index
      %18 = vector.load %arg5[%c0_15, %c0_16] : memref<256x256xf32, #tpu.memory_space<vmem>>, vector<256x256xf32>
      tpu.vector_store %arg5[%c0_15, %c0_16], %17 {strides = array<i32>} : memref<256x256xf32, #tpu.memory_space<vmem>>, vector<256x256xf32>,
    } else {
    }
    return
  }
  func.func @transform_0(%arg0: i32, %arg1: i32) -> (i32, i32) {
    %c0_i32 = arith.constant 0 : i32
    return %arg0, %arg1 : i32, i32
  }
  func.func @transform_1(%arg0: i32, %arg1: i32) -> (i32, i32) {
    %c0_i32 = arith.constant 0 : i32
    %c0_i32_0 = arith.constant 0 : i32
    return %arg1, %c0_i32 : i32, i32
  }
  func.func @transform_2(%arg0: i32, %arg1: i32) -> (i32, i32) {
    %c0_i32 = arith.constant 0 : i32
    %c0_i32_0 = arith.constant 0 : i32
    %c0_i32_1 = arith.constant 0 : i32
    return %c0_i32, %c0_i32_0 : i32, i32
  }
  func.func @transform_3(%arg0: i32, %arg1: i32) -> (i32, i32) {
    %c0_i32 = arith.constant 0 : i32
    %c0_i32_0 = arith.constant 0 : i32
    return %arg0, %c0_i32 : i32, i32
  }
}

module attributes {stable_mosaic.version = 11 : i64} {
  func.func @gemm_bn_act_kernel(%arg0: i32, %arg1: i32, %arg2: memref<128x1280xbf16, #tpu.memory_space<vmem>>, %arg3: memref<1280x256xbf16, #tpu.memory_space<vmem>>, %arg4: memref<1x256xf32, #tpu.memory_space<vmem>>, %arg5: memref<128x256xf32, #tpu.memory_space<vmem>>) attributes {dimension_semantics = [#tpu.dimension_semantics<parallel>, #tpu.dimension_semantics<arbitrary>], iteration_bounds = array<i64: 1, 2>, scalar_prefetch = 0 : i64, scratch_operands = 0 : i64, tpu.core_type = #tpu.core_type<tc>, window_params = [{transform_indices = @transform_0, window_bounds = array<i64: 128, 1280>}, {transform_indices = @transform_1, window_bounds = array<i64: 1280, 256>}, {pipeline_mode = #tpu.pipeline_mode<synchronous>, transform_indices = @transform_2, window_bounds = array<i64: 1, 256>}, {transform_indices = @transform_3, window_bounds = array<i64: 128, 256>}]} {
    %c0_i32 = arith.constant 0 : i32
    %0 = arith.cmpi eq, %arg1, %c0_i32 : i32
    %1 = arith.extui %0 : i1 to i32
    %c0_i32_0 = arith.constant 0 : i32
    %2 = arith.cmpi ne, %1, %c0_i32_0 : i32
    scf.if %2 {
      %cst_9 = arith.constant 0.000000e+00 : f32
      %12 = vector.broadcast %cst_9 : f32 to vector<128x256xf32>
      %c0_10 = arith.constant 0 : index
      %c0_11 = arith.constant 0 : index
      %13 = vector.load %arg5[%c0_10, %c0_11] : memref<128x256xf32, #tpu.memory_space<vmem>>, vector<128x256xf32>
      tpu.vector_store %arg5[%c0_10, %c0_11], %12 {strides = array<i32>} : memref<128x256xf32, #tpu.memory_space<vmem>>, vector<128x256xf32>,
    } else {
    }
    %c0 = arith.constant 0 : index
    %c0_1 = arith.constant 0 : index
    %3 = vector.load %arg5[%c0, %c0_1] : memref<128x256xf32, #tpu.memory_space<vmem>>, vector<128x256xf32>
    %c0_2 = arith.constant 0 : index
    %c0_3 = arith.constant 0 : index
    %4 = vector.load %arg2[%c0_2, %c0_3] : memref<128x1280xbf16, #tpu.memory_space<vmem>>, vector<128x1280xbf16>
    %c0_4 = arith.constant 0 : index
    %c0_5 = arith.constant 0 : index
    %5 = vector.load %arg3[%c0_4, %c0_5] : memref<1280x256xbf16, #tpu.memory_space<vmem>>, vector<1280x256xbf16>
    %cst = arith.constant dense<0.000000e+00> : vector<128x256xf32>
    %6 = tpu.matmul %4, %5, %cst {dimension_numbers = #tpu.dot_dimension_numbers<[1], [0], [0], [1], [0, 0, 1, 1], [], []>} : vector<128x1280xbf16>, vector<1280x256xbf16>, vector<128x256xf32> -> vector<128x256xf32>
    %7 = arith.addf %3, %6 : vector<128x256xf32>
    %c0_6 = arith.constant 0 : index
    %c0_7 = arith.constant 0 : index
    %8 = vector.load %arg5[%c0_6, %c0_7] : memref<128x256xf32, #tpu.memory_space<vmem>>, vector<128x256xf32>
    tpu.vector_store %arg5[%c0_6, %c0_7], %7 {strides = array<i32>} : memref<128x256xf32, #tpu.memory_space<vmem>>, vector<128x256xf32>,
    %c1_i32 = arith.constant 1 : i32
    %9 = arith.cmpi eq, %arg1, %c1_i32 : i32
    %10 = arith.extui %9 : i1 to i32
    %c0_i32_8 = arith.constant 0 : i32
    %11 = arith.cmpi ne, %10, %c0_i32_8 : i32
    scf.if %11 {
      %c0_9 = arith.constant 0 : index
      %c0_10 = arith.constant 0 : index
      %12 = vector.load %arg5[%c0_9, %c0_10] : memref<128x256xf32, #tpu.memory_space<vmem>>, vector<128x256xf32>
      %c0_11 = arith.constant 0 : index
      %c0_12 = arith.constant 0 : index
      %13 = vector.load %arg4[%c0_11, %c0_12] : memref<1x256xf32, #tpu.memory_space<vmem>>, vector<1x256xf32>
      %14 = vector.broadcast %13 : vector<1x256xf32> to vector<128x256xf32>
      %15 = arith.addf %12, %14 : vector<128x256xf32>
      %cst_13 = arith.constant 0.000000e+00 : f32
      %16 = vector.broadcast %cst_13 : f32 to vector<128x256xf32>
      %17 = arith.maximumf %15, %16 : vector<128x256xf32>
      %c0_14 = arith.constant 0 : index
      %c0_15 = arith.constant 0 : index
      %18 = vector.load %arg5[%c0_14, %c0_15] : memref<128x256xf32, #tpu.memory_space<vmem>>, vector<128x256xf32>
      tpu.vector_store %arg5[%c0_14, %c0_15], %17 {strides = array<i32>} : memref<128x256xf32, #tpu.memory_space<vmem>>, vector<128x256xf32>,
    } else {
    }
    return
  }
  func.func @transform_0(%arg0: i32, %arg1: i32) -> (i32, i32) {
    %c0_i32 = arith.constant 0 : i32
    return %arg0, %arg1 : i32, i32
  }
  func.func @transform_1(%arg0: i32, %arg1: i32) -> (i32, i32) {
    %c0_i32 = arith.constant 0 : i32
    %c0_i32_0 = arith.constant 0 : i32
    return %arg1, %c0_i32 : i32, i32
  }
  func.func @transform_2(%arg0: i32, %arg1: i32) -> (i32, i32) {
    %c0_i32 = arith.constant 0 : i32
    %c0_i32_0 = arith.constant 0 : i32
    %c0_i32_1 = arith.constant 0 : i32
    return %c0_i32, %c0_i32_0 : i32, i32
  }
  func.func @transform_3(%arg0: i32, %arg1: i32) -> (i32, i32) {
    %c0_i32 = arith.constant 0 : i32
    %c0_i32_0 = arith.constant 0 : i32
    return %arg0, %c0_i32 : i32, i32
  }
}

module attributes {stable_mosaic.version = 11 : i64} {
  func.func @gemm_bn_act_kernel(%arg0: i32, %arg1: i32, %arg2: memref<16x256xbf16, #tpu.memory_space<vmem>>, %arg3: memref<256x1024xbf16, #tpu.memory_space<vmem>>, %arg4: memref<1x1024xf32, #tpu.memory_space<vmem>>, %arg5: memref<16x1024xf32, #tpu.memory_space<vmem>>) attributes {dimension_semantics = [#tpu.dimension_semantics<parallel>, #tpu.dimension_semantics<arbitrary>], iteration_bounds = array<i64: 1, 1>, scalar_prefetch = 0 : i64, scratch_operands = 0 : i64, tpu.core_type = #tpu.core_type<tc>, window_params = [{transform_indices = @transform_0, window_bounds = array<i64: 16, 256>}, {transform_indices = @transform_1, window_bounds = array<i64: 256, 1024>}, {pipeline_mode = #tpu.pipeline_mode<synchronous>, transform_indices = @transform_2, window_bounds = array<i64: 1, 1024>}, {transform_indices = @transform_3, window_bounds = array<i64: 16, 1024>}]} {
    %c0_i32 = arith.constant 0 : i32
    %0 = arith.cmpi eq, %arg1, %c0_i32 : i32
    %1 = arith.extui %0 : i1 to i32
    %c0_i32_0 = arith.constant 0 : i32
    %2 = arith.cmpi ne, %1, %c0_i32_0 : i32
    scf.if %2 {
      %cst_10 = arith.constant 0.000000e+00 : f32
      %12 = vector.broadcast %cst_10 : f32 to vector<16x1024xf32>
      %c0_11 = arith.constant 0 : index
      %c0_12 = arith.constant 0 : index
      %13 = vector.load %arg5[%c0_11, %c0_12] : memref<16x1024xf32, #tpu.memory_space<vmem>>, vector<16x1024xf32>
      tpu.vector_store %arg5[%c0_11, %c0_12], %12 {strides = array<i32>} : memref<16x1024xf32, #tpu.memory_space<vmem>>, vector<16x1024xf32>,
    } else {
    }
    %c0 = arith.constant 0 : index
    %c0_1 = arith.constant 0 : index
    %3 = vector.load %arg5[%c0, %c0_1] : memref<16x1024xf32, #tpu.memory_space<vmem>>, vector<16x1024xf32>
    %c0_2 = arith.constant 0 : index
    %c0_3 = arith.constant 0 : index
    %4 = vector.load %arg2[%c0_2, %c0_3] : memref<16x256xbf16, #tpu.memory_space<vmem>>, vector<16x256xbf16>
    %c0_4 = arith.constant 0 : index
    %c0_5 = arith.constant 0 : index
    %5 = vector.load %arg3[%c0_4, %c0_5] : memref<256x1024xbf16, #tpu.memory_space<vmem>>, vector<256x1024xbf16>
    %cst = arith.constant dense<0.000000e+00> : vector<16x1024xf32>
    %6 = tpu.matmul %4, %5, %cst {dimension_numbers = #tpu.dot_dimension_numbers<[1], [0], [0], [1], [0, 0, 1, 1], [], []>} : vector<16x256xbf16>, vector<256x1024xbf16>, vector<16x1024xf32> -> vector<16x1024xf32>
    %7 = arith.addf %3, %6 : vector<16x1024xf32>
    %c0_6 = arith.constant 0 : index
    %c0_7 = arith.constant 0 : index
    %8 = vector.load %arg5[%c0_6, %c0_7] : memref<16x1024xf32, #tpu.memory_space<vmem>>, vector<16x1024xf32>
    tpu.vector_store %arg5[%c0_6, %c0_7], %7 {strides = array<i32>} : memref<16x1024xf32, #tpu.memory_space<vmem>>, vector<16x1024xf32>,
    %c0_i32_8 = arith.constant 0 : i32
    %9 = arith.cmpi eq, %arg1, %c0_i32_8 : i32
    %10 = arith.extui %9 : i1 to i32
    %c0_i32_9 = arith.constant 0 : i32
    %11 = arith.cmpi ne, %10, %c0_i32_9 : i32
    scf.if %11 {
      %c0_10 = arith.constant 0 : index
      %c0_11 = arith.constant 0 : index
      %12 = vector.load %arg5[%c0_10, %c0_11] : memref<16x1024xf32, #tpu.memory_space<vmem>>, vector<16x1024xf32>
      %c0_12 = arith.constant 0 : index
      %c0_13 = arith.constant 0 : index
      %13 = vector.load %arg4[%c0_12, %c0_13] : memref<1x1024xf32, #tpu.memory_space<vmem>>, vector<1x1024xf32>
      %14 = vector.broadcast %13 : vector<1x1024xf32> to vector<16x1024xf32>
      %15 = arith.addf %12, %14 : vector<16x1024xf32>
      %cst_14 = arith.constant 0.000000e+00 : f32
      %16 = vector.broadcast %cst_14 : f32 to vector<16x1024xf32>
      %17 = arith.maximumf %15, %16 : vector<16x1024xf32>
      %c0_15 = arith.constant 0 : index
      %c0_16 = arith.constant 0 : index
      %18 = vector.load %arg5[%c0_15, %c0_16] : memref<16x1024xf32, #tpu.memory_space<vmem>>, vector<16x1024xf32>
      tpu.vector_store %arg5[%c0_15, %c0_16], %17 {strides = array<i32>} : memref<16x1024xf32, #tpu.memory_space<vmem>>, vector<16x1024xf32>,
    } else {
    }
    return
  }
  func.func @transform_0(%arg0: i32, %arg1: i32) -> (i32, i32) {
    %c0_i32 = arith.constant 0 : i32
    return %arg0, %arg1 : i32, i32
  }
  func.func @transform_1(%arg0: i32, %arg1: i32) -> (i32, i32) {
    %c0_i32 = arith.constant 0 : i32
    %c0_i32_0 = arith.constant 0 : i32
    return %arg1, %c0_i32 : i32, i32
  }
  func.func @transform_2(%arg0: i32, %arg1: i32) -> (i32, i32) {
    %c0_i32 = arith.constant 0 : i32
    %c0_i32_0 = arith.constant 0 : i32
    %c0_i32_1 = arith.constant 0 : i32
    return %c0_i32, %c0_i32_0 : i32, i32
  }
  func.func @transform_3(%arg0: i32, %arg1: i32) -> (i32, i32) {
    %c0_i32 = arith.constant 0 : i32
    %c0_i32_0 = arith.constant 0 : i32
    return %arg0, %c0_i32 : i32, i32
  }
}

module attributes {stable_mosaic.version = 11 : i64} {
  func.func @gemm_bn_act_kernel(%arg0: i32, %arg1: i32, %arg2: memref<16x2048xbf16, #tpu.memory_space<vmem>>, %arg3: memref<2048x128xbf16, #tpu.memory_space<vmem>>, %arg4: memref<1x128xf32, #tpu.memory_space<vmem>>, %arg5: memref<16x128xf32, #tpu.memory_space<vmem>>) attributes {dimension_semantics = [#tpu.dimension_semantics<parallel>, #tpu.dimension_semantics<arbitrary>], iteration_bounds = array<i64: 1, 8>, scalar_prefetch = 0 : i64, scratch_operands = 0 : i64, tpu.core_type = #tpu.core_type<tc>, window_params = [{transform_indices = @transform_0, window_bounds = array<i64: 16, 2048>}, {transform_indices = @transform_1, window_bounds = array<i64: 2048, 128>}, {pipeline_mode = #tpu.pipeline_mode<synchronous>, transform_indices = @transform_2, window_bounds = array<i64: 1, 128>}, {transform_indices = @transform_3, window_bounds = array<i64: 16, 128>}]} {
    %c0_i32 = arith.constant 0 : i32
    %0 = arith.cmpi eq, %arg1, %c0_i32 : i32
    %1 = arith.extui %0 : i1 to i32
    %c0_i32_0 = arith.constant 0 : i32
    %2 = arith.cmpi ne, %1, %c0_i32_0 : i32
    scf.if %2 {
      %cst_9 = arith.constant 0.000000e+00 : f32
      %12 = vector.broadcast %cst_9 : f32 to vector<16x128xf32>
      %c0_10 = arith.constant 0 : index
      %c0_11 = arith.constant 0 : index
      %13 = vector.load %arg5[%c0_10, %c0_11] : memref<16x128xf32, #tpu.memory_space<vmem>>, vector<16x128xf32>
      tpu.vector_store %arg5[%c0_10, %c0_11], %12 {strides = array<i32>} : memref<16x128xf32, #tpu.memory_space<vmem>>, vector<16x128xf32>,
    } else {
    }
    %c0 = arith.constant 0 : index
    %c0_1 = arith.constant 0 : index
    %3 = vector.load %arg5[%c0, %c0_1] : memref<16x128xf32, #tpu.memory_space<vmem>>, vector<16x128xf32>
    %c0_2 = arith.constant 0 : index
    %c0_3 = arith.constant 0 : index
    %4 = vector.load %arg2[%c0_2, %c0_3] : memref<16x2048xbf16, #tpu.memory_space<vmem>>, vector<16x2048xbf16>
    %c0_4 = arith.constant 0 : index
    %c0_5 = arith.constant 0 : index
    %5 = vector.load %arg3[%c0_4, %c0_5] : memref<2048x128xbf16, #tpu.memory_space<vmem>>, vector<2048x128xbf16>
    %cst = arith.constant dense<0.000000e+00> : vector<16x128xf32>
    %6 = tpu.matmul %4, %5, %cst {dimension_numbers = #tpu.dot_dimension_numbers<[1], [0], [0], [1], [0, 0, 1, 1], [], []>} : vector<16x2048xbf16>, vector<2048x128xbf16>, vector<16x128xf32> -> vector<16x128xf32>
    %7 = arith.addf %3, %6 : vector<16x128xf32>
    %c0_6 = arith.constant 0 : index
    %c0_7 = arith.constant 0 : index
    %8 = vector.load %arg5[%c0_6, %c0_7] : memref<16x128xf32, #tpu.memory_space<vmem>>, vector<16x128xf32>
    tpu.vector_store %arg5[%c0_6, %c0_7], %7 {strides = array<i32>} : memref<16x128xf32, #tpu.memory_space<vmem>>, vector<16x128xf32>,
    %c7_i32 = arith.constant 7 : i32
    %9 = arith.cmpi eq, %arg1, %c7_i32 : i32
    %10 = arith.extui %9 : i1 to i32
    %c0_i32_8 = arith.constant 0 : i32
    %11 = arith.cmpi ne, %10, %c0_i32_8 : i32
    scf.if %11 {
      %c0_9 = arith.constant 0 : index
      %c0_10 = arith.constant 0 : index
      %12 = vector.load %arg5[%c0_9, %c0_10] : memref<16x128xf32, #tpu.memory_space<vmem>>, vector<16x128xf32>
      %c0_11 = arith.constant 0 : index
      %c0_12 = arith.constant 0 : index
      %13 = vector.load %arg4[%c0_11, %c0_12] : memref<1x128xf32, #tpu.memory_space<vmem>>, vector<1x128xf32>
      %14 = vector.broadcast %13 : vector<1x128xf32> to vector<16x128xf32>
      %15 = arith.addf %12, %14 : vector<16x128xf32>
      %cst_13 = arith.constant 0.000000e+00 : f32
      %16 = vector.broadcast %cst_13 : f32 to vector<16x128xf32>
      %17 = arith.maximumf %15, %16 : vector<16x128xf32>
      %c0_14 = arith.constant 0 : index
      %c0_15 = arith.constant 0 : index
      %18 = vector.load %arg5[%c0_14, %c0_15] : memref<16x128xf32, #tpu.memory_space<vmem>>, vector<16x128xf32>
      tpu.vector_store %arg5[%c0_14, %c0_15], %17 {strides = array<i32>} : memref<16x128xf32, #tpu.memory_space<vmem>>, vector<16x128xf32>,
    } else {
    }
    return
  }
  func.func @transform_0(%arg0: i32, %arg1: i32) -> (i32, i32) {
    %c0_i32 = arith.constant 0 : i32
    return %arg0, %arg1 : i32, i32
  }
  func.func @transform_1(%arg0: i32, %arg1: i32) -> (i32, i32) {
    %c0_i32 = arith.constant 0 : i32
    %c0_i32_0 = arith.constant 0 : i32
    return %arg1, %c0_i32 : i32, i32
  }
  func.func @transform_2(%arg0: i32, %arg1: i32) -> (i32, i32) {
    %c0_i32 = arith.constant 0 : i32
    %c0_i32_0 = arith.constant 0 : i32
    %c0_i32_1 = arith.constant 0 : i32
    return %c0_i32, %c0_i32_0 : i32, i32
  }
  func.func @transform_3(%arg0: i32, %arg1: i32) -> (i32, i32) {
    %c0_i32 = arith.constant 0 : i32
    %c0_i32_0 = arith.constant 0 : i32
    return %arg0, %c0_i32 : i32, i32
  }
}

module attributes {stable_mosaic.version = 11 : i64} {
  func.func @gemm_bn_act_kernel(%arg0: i32, %arg1: i32, %arg2: memref<16x1024xbf16, #tpu.memory_space<vmem>>, %arg3: memref<1024x128xbf16, #tpu.memory_space<vmem>>, %arg4: memref<1x128xf32, #tpu.memory_space<vmem>>, %arg5: memref<16x128xf32, #tpu.memory_space<vmem>>) attributes {dimension_semantics = [#tpu.dimension_semantics<parallel>, #tpu.dimension_semantics<arbitrary>], iteration_bounds = array<i64: 1, 1>, scalar_prefetch = 0 : i64, scratch_operands = 0 : i64, tpu.core_type = #tpu.core_type<tc>, window_params = [{transform_indices = @transform_0, window_bounds = array<i64: 16, 1024>}, {transform_indices = @transform_1, window_bounds = array<i64: 1024, 128>}, {pipeline_mode = #tpu.pipeline_mode<synchronous>, transform_indices = @transform_2, window_bounds = array<i64: 1, 128>}, {transform_indices = @transform_3, window_bounds = array<i64: 16, 128>}]} {
    %c0_i32 = arith.constant 0 : i32
    %0 = arith.cmpi eq, %arg1, %c0_i32 : i32
    %1 = arith.extui %0 : i1 to i32
    %c0_i32_0 = arith.constant 0 : i32
    %2 = arith.cmpi ne, %1, %c0_i32_0 : i32
    scf.if %2 {
      %cst_10 = arith.constant 0.000000e+00 : f32
      %12 = vector.broadcast %cst_10 : f32 to vector<16x128xf32>
      %c0_11 = arith.constant 0 : index
      %c0_12 = arith.constant 0 : index
      %13 = vector.load %arg5[%c0_11, %c0_12] : memref<16x128xf32, #tpu.memory_space<vmem>>, vector<16x128xf32>
      tpu.vector_store %arg5[%c0_11, %c0_12], %12 {strides = array<i32>} : memref<16x128xf32, #tpu.memory_space<vmem>>, vector<16x128xf32>,
    } else {
    }
    %c0 = arith.constant 0 : index
    %c0_1 = arith.constant 0 : index
    %3 = vector.load %arg5[%c0, %c0_1] : memref<16x128xf32, #tpu.memory_space<vmem>>, vector<16x128xf32>
    %c0_2 = arith.constant 0 : index
    %c0_3 = arith.constant 0 : index
    %4 = vector.load %arg2[%c0_2, %c0_3] : memref<16x1024xbf16, #tpu.memory_space<vmem>>, vector<16x1024xbf16>
    %c0_4 = arith.constant 0 : index
    %c0_5 = arith.constant 0 : index
    %5 = vector.load %arg3[%c0_4, %c0_5] : memref<1024x128xbf16, #tpu.memory_space<vmem>>, vector<1024x128xbf16>
    %cst = arith.constant dense<0.000000e+00> : vector<16x128xf32>
    %6 = tpu.matmul %4, %5, %cst {dimension_numbers = #tpu.dot_dimension_numbers<[1], [0], [0], [1], [0, 0, 1, 1], [], []>} : vector<16x1024xbf16>, vector<1024x128xbf16>, vector<16x128xf32> -> vector<16x128xf32>
    %7 = arith.addf %3, %6 : vector<16x128xf32>
    %c0_6 = arith.constant 0 : index
    %c0_7 = arith.constant 0 : index
    %8 = vector.load %arg5[%c0_6, %c0_7] : memref<16x128xf32, #tpu.memory_space<vmem>>, vector<16x128xf32>
    tpu.vector_store %arg5[%c0_6, %c0_7], %7 {strides = array<i32>} : memref<16x128xf32, #tpu.memory_space<vmem>>, vector<16x128xf32>,
    %c0_i32_8 = arith.constant 0 : i32
    %9 = arith.cmpi eq, %arg1, %c0_i32_8 : i32
    %10 = arith.extui %9 : i1 to i32
    %c0_i32_9 = arith.constant 0 : i32
    %11 = arith.cmpi ne, %10, %c0_i32_9 : i32
    scf.if %11 {
      %c0_10 = arith.constant 0 : index
      %c0_11 = arith.constant 0 : index
      %12 = vector.load %arg5[%c0_10, %c0_11] : memref<16x128xf32, #tpu.memory_space<vmem>>, vector<16x128xf32>
      %c0_12 = arith.constant 0 : index
      %c0_13 = arith.constant 0 : index
      %13 = vector.load %arg4[%c0_12, %c0_13] : memref<1x128xf32, #tpu.memory_space<vmem>>, vector<1x128xf32>
      %14 = vector.broadcast %13 : vector<1x128xf32> to vector<16x128xf32>
      %15 = arith.addf %12, %14 : vector<16x128xf32>
      %c0_14 = arith.constant 0 : index
      %c0_15 = arith.constant 0 : index
      %16 = vector.load %arg5[%c0_14, %c0_15] : memref<16x128xf32, #tpu.memory_space<vmem>>, vector<16x128xf32>
      tpu.vector_store %arg5[%c0_14, %c0_15], %15 {strides = array<i32>} : memref<16x128xf32, #tpu.memory_space<vmem>>, vector<16x128xf32>,
    } else {
    }
    return
  }
  func.func @transform_0(%arg0: i32, %arg1: i32) -> (i32, i32) {
    %c0_i32 = arith.constant 0 : i32
    return %arg0, %arg1 : i32, i32
  }
  func.func @transform_1(%arg0: i32, %arg1: i32) -> (i32, i32) {
    %c0_i32 = arith.constant 0 : i32
    %c0_i32_0 = arith.constant 0 : i32
    return %arg1, %c0_i32 : i32, i32
  }
  func.func @transform_2(%arg0: i32, %arg1: i32) -> (i32, i32) {
    %c0_i32 = arith.constant 0 : i32
    %c0_i32_0 = arith.constant 0 : i32
    %c0_i32_1 = arith.constant 0 : i32
    return %c0_i32, %c0_i32_0 : i32, i32
  }
  func.func @transform_3(%arg0: i32, %arg1: i32) -> (i32, i32) {
    %c0_i32 = arith.constant 0 : i32
    %c0_i32_0 = arith.constant 0 : i32
    return %arg0, %c0_i32 : i32, i32
  }
}

</mosaic_0001>

<bundles_post_ra>
// kernel: conv_q_network_forward.6
= control target key start
LH: loop header
LB: loop body
LE: loop exit
PB: predicated region body
PF: predicated region fallthrough
CT: control target
= control target key end

     0   :  { %s1389_s12 = smov 0   ;;  %s1391_s13 = smov 0   ;;  %s1582_s0 = inlined_call_operand.vmem [shape: bf16[2048,256], index: 0, kind: input, shape index: {}]   ;;  %s1583_s1 = inlined_call_operand.vmem [shape: bf16[256,128], index: 1, kind: input, shape index: {}]   ;;  %s1584_s2 = inlined_call_operand.vmem [shape: f32[1,128], index: 2, kind: input, shape index: {}]   ;;  %s1585_s3 = inlined_call_operand.vmem [shape: f32[2048,128], index: 3, kind: output, shape index: {}]  }
   0x1   :  { %s1393_s14 = smov 0  }
   0x2 LB: > { %s25_s15 = sadd.s32 1, %s1363_s13  ;;  %p1070_p0 = scmp.ge.s32.totalorder %s1367_s14, 1  ;;  %s1367_s14 = sphi %s1393_s14, %s13_s14   ;;  %s1363_s13 = sphi %s1391_s13, %s1587_s13   ;;  %s1359_s12 = sphi %s1389_s12, %s1586_s12  }
   0x3   : > { %p27_p1 = scmp.ge.s32.totalorder %s25_s15, 8  ;;  %p169_p2 = scmp.lt.s32.totalorder %s1367_s14, 9 }
   0x5   : > { %s1589_s15 = smov (%p27_p1, %s25_s15), 0  ;;  %p170_p3 = pnand %p1070_p0, %p169_p2 }
   0x6   : > { %s1071_s18 = sshll.u32 (!%p170_p3), %s1359_s12, 5 }
   0x7   : > { %173 = sbr.rel (%p170_p3) target bundleno = 307 (0x133), region = 32  ;;  %p205_p4 = scmp.lt.s32.totalorder (!%p170_p3), %s1071_s18, 255 }
   0xc   : > { %v1281_v0 = vld [vmem:[%s1583_s1 + $0x78] sm:$0xff]   ;;  %v1283_v2 = vld [vmem:[%s1583_s1 + $0x70] sm:$0xff]   ;;  %v1285_v4 = vld [vmem:[%s1583_s1 + $0x68] sm:$0xff]   ;;  %s1591_s18 = smov (!%p205_p4, %s1071_s18), 255 }
   0xd   : > { %v1282_v1 = vld [vmem:[%s1583_s1 + $0x38] sm:$0xff]   ;;  %1128 = vmatprep.subr.bf16.mxu0 %v1281_v0  ;;  %1240 = vmatprep.subr.bf16.mxu1 %v1281_v0  ;;  %v1284_v3 = vld [vmem:[%s1583_s1 + $0x30] sm:$0xff]   ;;  %v1286_v5 = vld [vmem:[%s1583_s1 + $0x28] sm:$0xff]   ;;  %s1127_s6 = sshll.u32 %s1591_s18, 3 }
   0xe   : > { %1129 = vmatpush3.bf16.msra.mxu0 %v1282_v1  ;;  %1248 = vmatpush3.bf16.msra.mxu1 %v1282_v1  ;;  %v1287_v6 = vld [vmem:[%s1583_s1 + $0x60] sm:$0xff]   ;;  %v1289_v8 = vld [vmem:[%s1583_s1 + $0x58] sm:$0xff]   ;;  %s1442_s11 = scalar_lea.vmem %s1582_s0, %s1127_s6  ;;  %v1291_v10 = vld [vmem:[%s1583_s1 + $0x50] sm:$0xff]   ;;  %s1509_s8 = scalar_lea.vmem %s1585_s3, %s1127_s6 }
   0xf   : > { %1130 = vmatprep.subr.bf16.mxu0 %v1283_v2  ;;  %1241 = vmatprep.subr.bf16.mxu1 %v1283_v2  ;;  %v1288_v7 = vld [vmem:[%s1583_s1 + $0x20] sm:$0xff]   ;;  %v1290_v9 = vld [vmem:[%s1583_s1 + $0x18] sm:$0xff]   ;;  %v1292_v13 = vld [vmem:[%s1583_s1 + $0x10] sm:$0xff]  }
  0x10   : > { %v1299_v11 = vld [vmem:[%s1442_s11 + $0x4] ss:$8 sps:$4 sm:$0xff]   ;;  %v1297_v18 = vld [vmem:[%s1442_s11] ss:$8 sps:$4 sm:$0xff]   ;;  %v1303_v20 = vld [vmem:[%s1442_s11 + $0x14] ss:$8 sps:$4 sm:$0xff]  }
  0x11   : > { %v1302_v12 = vld [vmem:[%s1442_s11 + $0x84] ss:$8 sps:$4 sm:$0xff]   ;;  %648 = vmatprep.mubr.bf16.mxu0 %v1299_v11  ;;  %v1300_v19 = vld [vmem:[%s1442_s11 + $0x80] ss:$8 sps:$4 sm:$0xff]   ;;  %v1305_v21 = vld [vmem:[%s1442_s11 + $0x94] ss:$8 sps:$4 sm:$0xff]  }
  0x12   : > { %1131 = vmatpush3.bf16.msra.mxu0 %v1284_v3  ;;  %1249 = vmatpush3.bf16.msra.mxu1 %v1284_v3  ;;  %v1293_v14 = vld [vmem:[%s1583_s1 + $0x48] sm:$0xff]   ;;  %v1295_v16 = vld [vmem:[%s1583_s1 + $0x40] sm:$0xff]   ;;  %v1307_v22 = vld [vmem:[%s1442_s11 + $0x10] ss:$8 sps:$4 sm:$0xff]  }
  0x13   : > { %1132 = vmatprep.subr.bf16.mxu0 %v1285_v4  ;;  %1242 = vmatprep.subr.bf16.mxu1 %v1285_v4  ;;  %v1294_v15 = vld [vmem:[%s1583_s1 + $0x8] sm:$0xff]   ;;  %v1296_v17 = vld [vmem:[%s1583_s1] sm:$0xff]   ;;  %v1308_v23 = vld [vmem:[%s1442_s11 + $0x90] ss:$8 sps:$4 sm:$0xff]  }
  0x14   : > { %712 = vmatprep.mubr.bf16.mxu1 %v1302_v12  ;;  %v1309_v24 = vld [vmem:[%s1442_s11 + $0x24] ss:$8 sps:$4 sm:$0xff]   ;;  %v1313_v26 = vld [vmem:[%s1442_s11 + $0x20] ss:$8 sps:$4 sm:$0xff]   ;;  %v1315_v28 = vld [vmem:[%s1442_s11 + $0x34] ss:$8 sps:$4 sm:$0xff]  }
  0x15   : > { %v1311_v25 = vld [vmem:[%s1442_s11 + $0xa4] ss:$8 sps:$4 sm:$0xff]   ;;  %v1314_v27 = vld [vmem:[%s1442_s11 + $0xa0] ss:$8 sps:$4 sm:$0xff]   ;;  %v1317_v29 = vld [vmem:[%s1442_s11 + $0xb4] ss:$8 sps:$4 sm:$0xff]  }
  0x16   : > { %1133 = vmatpush3.bf16.msra.mxu0 %v1286_v5  ;;  %1250 = vmatpush3.bf16.msra.mxu1 %v1286_v5  ;;  %v1319_v30 = vld [vmem:[%s1442_s11 + $0x30] ss:$8 sps:$4 sm:$0xff]   ;;  %v1321_v32 = vld [vmem:[%s1442_s11 + $0x44] ss:$8 sps:$4 sm:$0xff]   ;;  %v1325_v34 = vld [vmem:[%s1442_s11 + $0x40] ss:$8 sps:$4 sm:$0xff]  }
  0x17   : > { %1134 = vmatprep.subr.bf16.mxu0 %v1287_v6  ;;  %1243 = vmatprep.subr.bf16.mxu1 %v1287_v6  ;;  %v1320_v31 = vld [vmem:[%s1442_s11 + $0xb0] ss:$8 sps:$4 sm:$0xff]   ;;  %v1323_v33 = vld [vmem:[%s1442_s11 + $0xc4] ss:$8 sps:$4 sm:$0xff]   ;;  %v1326_v35 = vld [vmem:[%s1442_s11 + $0xc0] ss:$8 sps:$4 sm:$0xff]  }
  0x18   : > { %v1327_v36 = vld [vmem:[%s1442_s11 + $0x54] ss:$8 sps:$4 sm:$0xff]   ;;  %v1331_v38 = vld [vmem:[%s1442_s11 + $0x50] ss:$8 sps:$4 sm:$0xff]   ;;  %v1333_v40 = vld [vmem:[%s1442_s11 + $0x64] ss:$8 sps:$4 sm:$0xff]  }
  0x19   : > { %v1329_v37 = vld [vmem:[%s1442_s11 + $0xd4] ss:$8 sps:$4 sm:$0xff]   ;;  %v1332_v39 = vld [vmem:[%s1442_s11 + $0xd0] ss:$8 sps:$4 sm:$0xff]   ;;  %v1335_v41 = vld [vmem:[%s1442_s11 + $0xe4] ss:$8 sps:$4 sm:$0xff]  }
  0x1a   : > { %1135 = vmatpush3.bf16.msra.mxu0 %v1288_v7  ;;  %1251 = vmatpush3.bf16.msra.mxu1 %v1288_v7  ;;  %v1337_v42 = vld [vmem:[%s1442_s11 + $0x60] ss:$8 sps:$4 sm:$0xff]   ;;  %v1339_v44 = vld [vmem:[%s1442_s11 + $0x74] ss:$8 sps:$4 sm:$0xff]   ;;  %v1343_v46 = vld [vmem:[%s1442_s11 + $0x70] ss:$8 sps:$4 sm:$0xff]  }
  0x1b   : > { %1136 = vmatprep.subr.bf16.mxu0 %v1289_v8  ;;  %1244 = vmatprep.subr.bf16.mxu1 %v1289_v8  ;;  %v1338_v43 = vld [vmem:[%s1442_s11 + $0xe0] ss:$8 sps:$4 sm:$0xff]   ;;  %v1341_v45 = vld [vmem:[%s1442_s11 + $0xf4] ss:$8 sps:$4 sm:$0xff]   ;;  %v1344_v47 = vld [vmem:[%s1442_s11 + $0xf0] ss:$8 sps:$4 sm:$0xff]  }
  0x1c   : > { %v1500_v54 = vld [vmem:[%s1584_s2] ss:$0 sm:$0xff] }
  0x1e   : > { %1137 = vmatpush3.bf16.msra.mxu0 %v1290_v9  ;;  %1252 = vmatpush3.bf16.msra.mxu1 %v1290_v9 }
  0x1f   : > { %1138 = vmatprep.subr.bf16.mxu0 %v1291_v10  ;;  %1245 = vmatprep.subr.bf16.mxu1 %v1291_v10 }
  0x22   : > { %1139 = vmatpush3.bf16.msra.mxu0 %v1292_v13  ;;  %1253 = vmatpush3.bf16.msra.mxu1 %v1292_v13 }
  0x23   : > { %1140 = vmatprep.subr.bf16.mxu0 %v1293_v14  ;;  %1246 = vmatprep.subr.bf16.mxu1 %v1293_v14 }
  0x26   : > { %1141 = vmatpush3.bf16.msra.mxu0 %v1294_v15  ;;  %1254 = vmatpush3.bf16.msra.mxu1 %v1294_v15 }
  0x27   : > { %1142 = vmatprep.subr.bf16.mxu0 %v1295_v16  ;;  %1247 = vmatprep.subr.bf16.mxu1 %v1295_v16 }
  0x2a   : > { %1143 = vmatpush3.bf16.msra.mxu0 %v1296_v17  ;;  %1255 = vmatpush3.bf16.msra.mxu1 %v1296_v17 }
  0x2d   : > { %649 = vmatmul.mubr.bf16.vlgmr.msra.gmra.mxu0 %v1297_v18  ;;  %713 = vmatmul.mubr.bf16.vlgmr.msra.gmra.mxu1 %v1300_v19 }
  0x2e   : > { %656 = vmatprep.mubr.bf16.mxu0 %v1303_v20  ;;  %720 = vmatprep.mubr.bf16.mxu1 %v1305_v21 }
  0x35   : > { %657 = vmatmul.mubr.bf16.gmra.mxu0 %v1307_v22  ;;  %721 = vmatmul.mubr.bf16.gmra.mxu1 %v1308_v23 }
  0x36   : > { %664 = vmatprep.mubr.bf16.mxu0 %v1309_v24  ;;  %728 = vmatprep.mubr.bf16.mxu1 %v1311_v25 }
  0x3d   : > { %665 = vmatmul.mubr.bf16.gmra.mxu0 %v1313_v26  ;;  %729 = vmatmul.mubr.bf16.gmra.mxu1 %v1314_v27 }
  0x3e   : > { %672 = vmatprep.mubr.bf16.mxu0 %v1315_v28  ;;  %736 = vmatprep.mubr.bf16.mxu1 %v1317_v29 }
  0x45   : > { %673 = vmatmul.mubr.bf16.gmra.mxu0 %v1319_v30  ;;  %737 = vmatmul.mubr.bf16.gmra.mxu1 %v1320_v31 }
  0x46   : > { %680 = vmatprep.mubr.bf16.mxu0 %v1321_v32  ;;  %744 = vmatprep.mubr.bf16.mxu1 %v1323_v33 }
  0x4d   : > { %681 = vmatmul.mubr.bf16.gmra.mxu0 %v1325_v34  ;;  %745 = vmatmul.mubr.bf16.gmra.mxu1 %v1326_v35 }
  0x4e   : > { %688 = vmatprep.mubr.bf16.mxu0 %v1327_v36  ;;  %752 = vmatprep.mubr.bf16.mxu1 %v1329_v37 }
  0x55   : > { %689 = vmatmul.mubr.bf16.gmra.mxu0 %v1331_v38  ;;  %753 = vmatmul.mubr.bf16.gmra.mxu1 %v1332_v39 }
  0x56   : > { %696 = vmatprep.mubr.bf16.mxu0 %v1333_v40  ;;  %760 = vmatprep.mubr.bf16.mxu1 %v1335_v41 }
  0x5d   : > { %697 = vmatmul.mubr.bf16.gmra.mxu0 %v1337_v42  ;;  %761 = vmatmul.mubr.bf16.gmra.mxu1 %v1338_v43 }
  0x5e   : > { %704 = vmatprep.mubr.bf16.mxu0 %v1339_v44  ;;  %768 = vmatprep.mubr.bf16.mxu1 %v1341_v45 }
  0x65   : > { %705 = vmatmul.mubr.bf16.gmra.mxu0 %v1343_v46  ;;  %769 = vmatmul.mubr.bf16.gmra.mxu1 %v1344_v47 }
  0xed   : > { %v1144_v48 = vpop.f32.mrf.mxu0  ;;  %v1192_v49 = vpop.f32.mrf.mxu1 }
  0xef   : > { %v1145_v50 = vpop.f32.mrf.mxu0  ;;  %v1193_v51 = vpop.f32.mrf.mxu1 }
  0xf0   : > { %v1146_v52 = vadd.f32 %v1145_v50, %v1144_v48  ;;  %v1194_v53 = vadd.f32 %v1193_v51, %v1192_v49 }
  0xf1   : > { %v1147_v55 = vpop.f32.mrf.mxu0  ;;  %v1195_v56 = vpop.f32.mrf.mxu1 }
  0xf2   : > { %v883_v59 = vadd.f32 %v1146_v52, %v1500_v54  ;;  %v899_v60 = vadd.f32 %v1194_v53, %v1500_v54 }
  0xf3   : > { %v1148_v57 = vpop.f32.mrf.mxu0  ;;  %v1196_v58 = vpop.f32.mrf.mxu1 }
  0xf4   : > { %v1149_v61 = vadd.f32 %v1148_v57, %v1147_v55  ;;  %v1197_v62 = vadd.f32 %v1196_v58, %v1195_v56  ;;  %v915_v1 = vmax.f32 %v883_v59, 0.0  ;;  %v931_v2 = vmax.f32 %v899_v60, 0.0 }
  0xf5   : > { %v1150_v63 = vpop.f32.mrf.mxu0  ;;  %v1198_v0 = vpop.f32.mrf.mxu1 }
  0xf6   : > { %947 = vst [vmem:[%s1509_s8] sm:$0xff] %v915_v1  ;;  %963 = vst [vmem:[%s1509_s8 + $0x80] sm:$0xff] %v931_v2  ;;  %v884_v5 = vadd.f32 %v1149_v61, %v1500_v54  ;;  %v900_v6 = vadd.f32 %v1197_v62, %v1500_v54 }
  0xf7   : > { %v1151_v3 = vpop.f32.mrf.mxu0  ;;  %v1199_v4 = vpop.f32.mrf.mxu1 }
  0xf8   : > { %v1152_v7 = vadd.f32 %v1151_v3, %v1150_v63  ;;  %v1200_v8 = vadd.f32 %v1199_v4, %v1198_v0  ;;  %v916_v11 = vmax.f32 %v884_v5, 0.0  ;;  %v932_v12 = vmax.f32 %v900_v6, 0.0 }
  0xf9   : > { %v1153_v9 = vpop.f32.mrf.mxu0  ;;  %v1201_v10 = vpop.f32.mrf.mxu1 }
  0xfa   : > { %948 = vst [vmem:[%s1509_s8 + $0x8] sm:$0xff] %v916_v11  ;;  %964 = vst [vmem:[%s1509_s8 + $0x88] sm:$0xff] %v932_v12  ;;  %v885_v15 = vadd.f32 %v1152_v7, %v1500_v54  ;;  %v901_v16 = vadd.f32 %v1200_v8, %v1500_v54 }
  0xfb   : > { %v1154_v13 = vpop.f32.mrf.mxu0  ;;  %v1202_v14 = vpop.f32.mrf.mxu1 }
  0xfc   : > { %v1155_v17 = vadd.f32 %v1154_v13, %v1153_v9  ;;  %v1203_v18 = vadd.f32 %v1202_v14, %v1201_v10  ;;  %v917_v21 = vmax.f32 %v885_v15, 0.0  ;;  %v933_v22 = vmax.f32 %v901_v16, 0.0 }
  0xfd   : > { %v1156_v19 = vpop.f32.mrf.mxu0  ;;  %v1204_v20 = vpop.f32.mrf.mxu1 }
  0xfe   : > { %949 = vst [vmem:[%s1509_s8 + $0x10] sm:$0xff] %v917_v21  ;;  %965 = vst [vmem:[%s1509_s8 + $0x90] sm:$0xff] %v933_v22  ;;  %v886_v25 = vadd.f32 %v1155_v17, %v1500_v54  ;;  %v902_v26 = vadd.f32 %v1203_v18, %v1500_v54 }
  0xff   : > { %v1157_v23 = vpop.f32.mrf.mxu0  ;;  %v1205_v24 = vpop.f32.mrf.mxu1 }
 0x100   : > { %v1158_v27 = vadd.f32 %v1157_v23, %v1156_v19  ;;  %v1206_v28 = vadd.f32 %v1205_v24, %v1204_v20  ;;  %v918_v31 = vmax.f32 %v886_v25, 0.0  ;;  %v934_v32 = vmax.f32 %v902_v26, 0.0 }
 0x101   : > { %v1159_v29 = vpop.f32.mrf.mxu0  ;;  %v1207_v30 = vpop.f32.mrf.mxu1 }
 0x102   : > { %950 = vst [vmem:[%s1509_s8 + $0x18] sm:$0xff] %v918_v31  ;;  %966 = vst [vmem:[%s1509_s8 + $0x98] sm:$0xff] %v934_v32  ;;  %v887_v35 = vadd.f32 %v1158_v27, %v1500_v54  ;;  %v903_v36 = vadd.f32 %v1206_v28, %v1500_v54 }
 0x103   : > { %v1160_v33 = vpop.f32.mrf.mxu0  ;;  %v1208_v34 = vpop.f32.mrf.mxu1 }
 0x104   : > { %v1161_v37 = vadd.f32 %v1160_v33, %v1159_v29  ;;  %v1209_v38 = vadd.f32 %v1208_v34, %v1207_v30  ;;  %v919_v41 = vmax.f32 %v887_v35, 0.0  ;;  %v935_v42 = vmax.f32 %v903_v36, 0.0 }
 0x105   : > { %v1162_v39 = vpop.f32.mrf.mxu0  ;;  %v1210_v40 = vpop.f32.mrf.mxu1 }
 0x106   : > { %951 = vst [vmem:[%s1509_s8 + $0x20] sm:$0xff] %v919_v41  ;;  %967 = vst [vmem:[%s1509_s8 + $0xa0] sm:$0xff] %v935_v42  ;;  %v888_v45 = vadd.f32 %v1161_v37, %v1500_v54  ;;  %v904_v46 = vadd.f32 %v1209_v38, %v1500_v54 }
 0x107   : > { %v1163_v43 = vpop.f32.mrf.mxu0  ;;  %v1211_v44 = vpop.f32.mrf.mxu1 }
 0x108   : > { %v1164_v47 = vadd.f32 %v1163_v43, %v1162_v39  ;;  %v1212_v48 = vadd.f32 %v1211_v44, %v1210_v40  ;;  %v920_v51 = vmax.f32 %v888_v45, 0.0  ;;  %v936_v52 = vmax.f32 %v904_v46, 0.0 }
 0x109   : > { %v1165_v49 = vpop.f32.mrf.mxu0  ;;  %v1213_v50 = vpop.f32.mrf.mxu1 }
 0x10a   : > { %952 = vst [vmem:[%s1509_s8 + $0x28] sm:$0xff] %v920_v51  ;;  %968 = vst [vmem:[%s1509_s8 + $0xa8] sm:$0xff] %v936_v52  ;;  %v889_v56 = vadd.f32 %v1164_v47, %v1500_v54  ;;  %v905_v57 = vadd.f32 %v1212_v48, %v1500_v54 }
 0x10b   : > { %v1166_v53 = vpop.f32.mrf.mxu0  ;;  %v1214_v55 = vpop.f32.mrf.mxu1 }
 0x10c   : > { %v1167_v58 = vadd.f32 %v1166_v53, %v1165_v49  ;;  %v1215_v59 = vadd.f32 %v1214_v55, %v1213_v50  ;;  %v921_v62 = vmax.f32 %v889_v56, 0.0  ;;  %v937_v63 = vmax.f32 %v905_v57, 0.0 }
 0x10d   : > { %v1168_v60 = vpop.f32.mrf.mxu0  ;;  %v1216_v61 = vpop.f32.mrf.mxu1 }
 0x10e   : > { %953 = vst [vmem:[%s1509_s8 + $0x30] sm:$0xff] %v921_v62  ;;  %969 = vst [vmem:[%s1509_s8 + $0xb0] sm:$0xff] %v937_v63  ;;  %v890_v2 = vadd.f32 %v1167_v58, %v1500_v54  ;;  %v906_v3 = vadd.f32 %v1215_v59, %v1500_v54 }
 0x10f   : > { %v1169_v0 = vpop.f32.mrf.mxu0  ;;  %v1217_v1 = vpop.f32.mrf.mxu1 }
 0x110   : > { %v1170_v4 = vadd.f32 %v1169_v0, %v1168_v60  ;;  %v1218_v5 = vadd.f32 %v1217_v1, %v1216_v61  ;;  %v922_v8 = vmax.f32 %v890_v2, 0.0  ;;  %v938_v9 = vmax.f32 %v906_v3, 0.0 }
 0x111   : > { %v1171_v6 = vpop.f32.mrf.mxu0  ;;  %v1219_v7 = vpop.f32.mrf.mxu1 }
 0x112   : > { %954 = vst [vmem:[%s1509_s8 + $0x38] sm:$0xff] %v922_v8  ;;  %970 = vst [vmem:[%s1509_s8 + $0xb8] sm:$0xff] %v938_v9  ;;  %v891_v12 = vadd.f32 %v1170_v4, %v1500_v54  ;;  %v907_v13 = vadd.f32 %v1218_v5, %v1500_v54 }
 0x113   : > { %v1172_v10 = vpop.f32.mrf.mxu0  ;;  %v1220_v11 = vpop.f32.mrf.mxu1 }
 0x114   : > { %v1173_v14 = vadd.f32 %v1172_v10, %v1171_v6  ;;  %v1221_v15 = vadd.f32 %v1220_v11, %v1219_v7  ;;  %v923_v18 = vmax.f32 %v891_v12, 0.0  ;;  %v939_v19 = vmax.f32 %v907_v13, 0.0 }
 0x115   : > { %v1174_v16 = vpop.f32.mrf.mxu0  ;;  %v1222_v17 = vpop.f32.mrf.mxu1 }
 0x116   : > { %955 = vst [vmem:[%s1509_s8 + $0x40] sm:$0xff] %v923_v18  ;;  %971 = vst [vmem:[%s1509_s8 + $0xc0] sm:$0xff] %v939_v19  ;;  %v892_v22 = vadd.f32 %v1173_v14, %v1500_v54  ;;  %v908_v23 = vadd.f32 %v1221_v15, %v1500_v54 }
 0x117   : > { %v1175_v20 = vpop.f32.mrf.mxu0  ;;  %v1223_v21 = vpop.f32.mrf.mxu1 }
 0x118   : > { %v1176_v24 = vadd.f32 %v1175_v20, %v1174_v16  ;;  %v1224_v25 = vadd.f32 %v1223_v21, %v1222_v17  ;;  %v924_v28 = vmax.f32 %v892_v22, 0.0  ;;  %v940_v29 = vmax.f32 %v908_v23, 0.0 }
 0x119   : > { %v1177_v26 = vpop.f32.mrf.mxu0  ;;  %v1225_v27 = vpop.f32.mrf.mxu1 }
 0x11a   : > { %956 = vst [vmem:[%s1509_s8 + $0x48] sm:$0xff] %v924_v28  ;;  %972 = vst [vmem:[%s1509_s8 + $0xc8] sm:$0xff] %v940_v29  ;;  %v893_v32 = vadd.f32 %v1176_v24, %v1500_v54  ;;  %v909_v33 = vadd.f32 %v1224_v25, %v1500_v54 }
 0x11b   : > { %v1178_v30 = vpop.f32.mrf.mxu0  ;;  %v1226_v31 = vpop.f32.mrf.mxu1 }
 0x11c   : > { %v1179_v34 = vadd.f32 %v1178_v30, %v1177_v26  ;;  %v1227_v35 = vadd.f32 %v1226_v31, %v1225_v27  ;;  %v925_v38 = vmax.f32 %v893_v32, 0.0  ;;  %v941_v39 = vmax.f32 %v909_v33, 0.0 }
 0x11d   : > { %v1180_v36 = vpop.f32.mrf.mxu0  ;;  %v1228_v37 = vpop.f32.mrf.mxu1 }
 0x11e   : > { %957 = vst [vmem:[%s1509_s8 + $0x50] sm:$0xff] %v925_v38  ;;  %973 = vst [vmem:[%s1509_s8 + $0xd0] sm:$0xff] %v941_v39  ;;  %v894_v42 = vadd.f32 %v1179_v34, %v1500_v54  ;;  %v910_v43 = vadd.f32 %v1227_v35, %v1500_v54 }
 0x11f   : > { %v1181_v40 = vpop.f32.mrf.mxu0  ;;  %v1229_v41 = vpop.f32.mrf.mxu1 }
 0x120   : > { %v1182_v44 = vadd.f32 %v1181_v40, %v1180_v36  ;;  %v1230_v45 = vadd.f32 %v1229_v41, %v1228_v37  ;;  %v926_v48 = vmax.f32 %v894_v42, 0.0  ;;  %v942_v49 = vmax.f32 %v910_v43, 0.0 }
 0x121   : > { %v1183_v46 = vpop.f32.mrf.mxu0  ;;  %v1231_v47 = vpop.f32.mrf.mxu1 }
 0x122   : > { %958 = vst [vmem:[%s1509_s8 + $0x58] sm:$0xff] %v926_v48  ;;  %974 = vst [vmem:[%s1509_s8 + $0xd8] sm:$0xff] %v942_v49  ;;  %v895_v52 = vadd.f32 %v1182_v44, %v1500_v54  ;;  %v911_v53 = vadd.f32 %v1230_v45, %v1500_v54 }
 0x123   : > { %v1184_v50 = vpop.f32.mrf.mxu0  ;;  %v1232_v51 = vpop.f32.mrf.mxu1 }
 0x124   : > { %v1185_v55 = vadd.f32 %v1184_v50, %v1183_v46  ;;  %v1233_v56 = vadd.f32 %v1232_v51, %v1231_v47  ;;  %v927_v59 = vmax.f32 %v895_v52, 0.0  ;;  %v943_v60 = vmax.f32 %v911_v53, 0.0 }
 0x125   : > { %v1186_v57 = vpop.f32.mrf.mxu0  ;;  %v1234_v58 = vpop.f32.mrf.mxu1 }
 0x126   : > { %959 = vst [vmem:[%s1509_s8 + $0x60] sm:$0xff] %v927_v59  ;;  %975 = vst [vmem:[%s1509_s8 + $0xe0] sm:$0xff] %v943_v60  ;;  %v896_v63 = vadd.f32 %v1185_v55, %v1500_v54  ;;  %v912_v0 = vadd.f32 %v1233_v56, %v1500_v54 }
 0x127   : > { %v1187_v61 = vpop.f32.mrf.mxu0  ;;  %v1235_v62 = vpop.f32.mrf.mxu1 }
 0x128   : > { %v1188_v1 = vadd.f32 %v1187_v61, %v1186_v57  ;;  %v1236_v2 = vadd.f32 %v1235_v62, %v1234_v58  ;;  %v928_v5 = vmax.f32 %v896_v63, 0.0  ;;  %v944_v6 = vmax.f32 %v912_v0, 0.0 }
 0x129   : > { %v1189_v3 = vpop.f32.mrf.mxu0  ;;  %v1237_v4 = vpop.f32.mrf.mxu1 }
 0x12a   : > { %960 = vst [vmem:[%s1509_s8 + $0x68] sm:$0xff] %v928_v5  ;;  %976 = vst [vmem:[%s1509_s8 + $0xe8] sm:$0xff] %v944_v6  ;;  %v897_v9 = vadd.f32 %v1188_v1, %v1500_v54  ;;  %v913_v10 = vadd.f32 %v1236_v2, %v1500_v54 }
 0x12b   : > { %v1190_v7 = vpop.f32.mrf.mxu0  ;;  %v1238_v8 = vpop.f32.mrf.mxu1 }
 0x12c   : > { %v1191_v11 = vadd.f32 %v1190_v7, %v1189_v3  ;;  %v1239_v12 = vadd.f32 %v1238_v8, %v1237_v4  ;;  %v929_v13 = vmax.f32 %v897_v9, 0.0  ;;  %v945_v14 = vmax.f32 %v913_v10, 0.0 }
 0x12e   : > { %961 = vst [vmem:[%s1509_s8 + $0x70] sm:$0xff] %v929_v13  ;;  %977 = vst [vmem:[%s1509_s8 + $0xf0] sm:$0xff] %v945_v14  ;;  %v898_v15 = vadd.f32 %v1191_v11, %v1500_v54  ;;  %v914_v16 = vadd.f32 %v1239_v12, %v1500_v54 }
 0x130   : > { %v930_v17 = vmax.f32 %v898_v15, 0.0  ;;  %v946_v18 = vmax.f32 %v914_v16, 0.0 }
 0x132   : > { %962 = vst [vmem:[%s1509_s8 + $0x78] sm:$0xff] %v930_v17  ;;  %978 = vst [vmem:[%s1509_s8 + $0xf8] sm:$0xff] %v946_v18 }
 0x133 PF: > { %s13_s14 = sadd.s32 1, %s1367_s14   ;;  %s1586_s12 = smov %s1363_s13 }
 0x134   : > { %p10_p5 = scmp.ge.s32.totalorder %s13_s14, 10   ;;  %s1587_s13 = smov %s1589_s15 }
 0x136   :  { %12 = sbr.rel (!%p10_p5) target bundleno = 2 (0x2), region = 73 }

// kernel: conv_q_network_forward.7
= control target key start
LH: loop header
LB: loop body
LE: loop exit
PB: predicated region body
PF: predicated region fallthrough
CT: control target
= control target key end

     0   :  { %s6448_s12 = smov 0   ;;  %s6450_s13 = smov 0   ;;  %s8351_s0 = inlined_call_operand.vmem [shape: bf16[512,2048], index: 0, kind: input, shape index: {}]   ;;  %s8352_s1 = inlined_call_operand.vmem [shape: bf16[2048,256], index: 1, kind: input, shape index: {}]   ;;  %s8353_s2 = inlined_call_operand.vmem [shape: f32[1,256], index: 2, kind: input, shape index: {}]   ;;  %s8354_s3 = inlined_call_operand.vmem [shape: f32[512,256], index: 3, kind: output, shape index: {}]  }
   0x1   :  { %s6452_s14 = smov 0  }
   0x2 LB: > { %s25_s15 = sadd.s32 1, %s6422_s13  ;;  %p5472_p0 = scmp.ge.s32.totalorder %s6426_s14, 1  ;;  %s6426_s14 = sphi %s6452_s14, %s13_s14   ;;  %s6422_s13 = sphi %s6450_s13, %s8486_s13   ;;  %s6418_s12 = sphi %s6448_s12, %s8485_s12  }
   0x3   : > { %p27_p1 = scmp.ge.s32.totalorder %s25_s15, 2  ;;  %p170_p2 = scmp.lt.s32.totalorder %s6426_s14, 3 }
   0x5   : > { %s8488_s15 = smov (%p27_p1, %s25_s15), 0  ;;  %p171_p3 = pnand %p5472_p0, %p170_p2 }
   0x7   : > { %174 = sbr.rel (%p171_p3) target bundleno = 789 (0x315), region = 32 }
   0xc   : > { %v6020_v0 = vld [vmem:[%s8352_s1 + $0x74] ss:$8 sps:$4 sm:$0xff]   ;;  %v6024_v2 = vld [vmem:[%s8352_s1 + $0x70] ss:$8 sps:$4 sm:$0xff]   ;;  %v6026_v4 = vld [vmem:[%s8352_s1 + $0x64] ss:$8 sps:$4 sm:$0xff]  }
   0xd   : > { %v6022_v1 = vld [vmem:[%s8352_s1 + $0x174] ss:$8 sps:$4 sm:$0xff]   ;;  %3436 = vmatprep.subr.bf16.mxu0 %v6020_v0  ;;  %v6025_v3 = vld [vmem:[%s8352_s1 + $0x170] ss:$8 sps:$4 sm:$0xff]   ;;  %v6028_v5 = vld [vmem:[%s8352_s1 + $0x164] ss:$8 sps:$4 sm:$0xff]  }
   0xe   : > { %3629 = vmatprep.subr.bf16.mxu1 %v6022_v1  ;;  %3437 = vmatpush1.bf16.msra.mxu0 %v6024_v2  ;;  %v6030_v6 = vld [vmem:[%s8352_s1 + $0x60] ss:$8 sps:$4 sm:$0xff]   ;;  %v6032_v8 = vld [vmem:[%s8352_s1 + $0x54] ss:$8 sps:$4 sm:$0xff]   ;;  %v6036_v10 = vld [vmem:[%s8352_s1 + $0x50] ss:$8 sps:$4 sm:$0xff]  }
   0xf   : > { %3630 = vmatpush1.bf16.msra.mxu1 %v6025_v3  ;;  %3438 = vmatprep.subr.bf16.mxu0 %v6026_v4  ;;  %v6031_v7 = vld [vmem:[%s8352_s1 + $0x160] ss:$8 sps:$4 sm:$0xff]   ;;  %v6034_v9 = vld [vmem:[%s8352_s1 + $0x154] ss:$8 sps:$4 sm:$0xff]   ;;  %v6037_v11 = vld [vmem:[%s8352_s1 + $0x150] ss:$8 sps:$4 sm:$0xff]  }
  0x10   : > { %3631 = vmatprep.subr.bf16.mxu1 %v6028_v5  ;;  %v6038_v12 = vld [vmem:[%s8352_s1 + $0x44] ss:$8 sps:$4 sm:$0xff]   ;;  %v6042_v14 = vld [vmem:[%s8352_s1 + $0x40] ss:$8 sps:$4 sm:$0xff]   ;;  %v6044_v16 = vld [vmem:[%s8352_s1 + $0x34] ss:$8 sps:$4 sm:$0xff]  }
  0x11   : > { %v6040_v13 = vld [vmem:[%s8352_s1 + $0x144] ss:$8 sps:$4 sm:$0xff]   ;;  %v6043_v15 = vld [vmem:[%s8352_s1 + $0x140] ss:$8 sps:$4 sm:$0xff]   ;;  %v6046_v17 = vld [vmem:[%s8352_s1 + $0x134] ss:$8 sps:$4 sm:$0xff]  }
  0x12   : > { %3439 = vmatpush1.bf16.msra.mxu0 %v6030_v6  ;;  %v6048_v18 = vld [vmem:[%s8352_s1 + $0x30] ss:$8 sps:$4 sm:$0xff]   ;;  %v6050_v20 = vld [vmem:[%s8352_s1 + $0x24] ss:$8 sps:$4 sm:$0xff]   ;;  %v6054_v22 = vld [vmem:[%s8352_s1 + $0x20] ss:$8 sps:$4 sm:$0xff]  }
  0x13   : > { %3632 = vmatpush1.bf16.msra.mxu1 %v6031_v7  ;;  %3440 = vmatprep.subr.bf16.mxu0 %v6032_v8  ;;  %v6049_v19 = vld [vmem:[%s8352_s1 + $0x130] ss:$8 sps:$4 sm:$0xff]   ;;  %v6052_v21 = vld [vmem:[%s8352_s1 + $0x124] ss:$8 sps:$4 sm:$0xff]   ;;  %v6055_v23 = vld [vmem:[%s8352_s1 + $0x120] ss:$8 sps:$4 sm:$0xff]  }
  0x14   : > { %3633 = vmatprep.subr.bf16.mxu1 %v6034_v9  ;;  %v6056_v24 = vld [vmem:[%s8352_s1 + $0x14] ss:$8 sps:$4 sm:$0xff]   ;;  %v6060_v26 = vld [vmem:[%s8352_s1 + $0x10] ss:$8 sps:$4 sm:$0xff]   ;;  %v6062_v28 = vld [vmem:[%s8352_s1 + $0x4] ss:$8 sps:$4 sm:$0xff]  }
  0x15   : > { %v6058_v25 = vld [vmem:[%s8352_s1 + $0x114] ss:$8 sps:$4 sm:$0xff]   ;;  %v6061_v27 = vld [vmem:[%s8352_s1 + $0x110] ss:$8 sps:$4 sm:$0xff]   ;;  %v6064_v29 = vld [vmem:[%s8352_s1 + $0x104] ss:$8 sps:$4 sm:$0xff]  }
  0x16   : > { %3441 = vmatpush1.bf16.msra.mxu0 %v6036_v10  ;;  %s5473_s30 = sshll.u32 %s6418_s12, 5  ;;  %v6066_v30 = vld [vmem:[%s8352_s1] ss:$8 sps:$4 sm:$0xff]   ;;  %v6068_v32 = vld [vmem:[%s8352_s1 + $0xf4] ss:$8 sps:$4 sm:$0xff]  }
  0x17   : > { %3634 = vmatpush1.bf16.msra.mxu1 %v6037_v11  ;;  %3442 = vmatprep.subr.bf16.mxu0 %v6038_v12  ;;  %v6067_v31 = vld [vmem:[%s8352_s1 + $0x100] ss:$8 sps:$4 sm:$0xff]   ;;  %p208_p4 = scmp.lt.s32.totalorder %s5473_s30, 63  ;;  %v6070_v33 = vld [vmem:[%s8352_s1 + $0x1f4] ss:$8 sps:$4 sm:$0xff]  }
  0x18   : > { %3635 = vmatprep.subr.bf16.mxu1 %v6040_v13  ;;  %v6072_v34 = vld [vmem:[%s8352_s1 + $0xf0] ss:$8 sps:$4 sm:$0xff]   ;;  %v6074_v36 = vld [vmem:[%s8352_s1 + $0xe4] ss:$8 sps:$4 sm:$0xff]   ;;  %v6078_v38 = vld [vmem:[%s8352_s1 + $0xe0] ss:$8 sps:$4 sm:$0xff]  }
  0x19   : > { %v6073_v35 = vld [vmem:[%s8352_s1 + $0x1f0] ss:$8 sps:$4 sm:$0xff]   ;;  %s8490_s30 = smov (!%p208_p4, %s5473_s30), 63  ;;  %v6076_v37 = vld [vmem:[%s8352_s1 + $0x1e4] ss:$8 sps:$4 sm:$0xff]  }
  0x1a   : > { %3443 = vmatpush1.bf16.msra.mxu0 %v6042_v14  ;;  %v6079_v39 = vld [vmem:[%s8352_s1 + $0x1e0] ss:$8 sps:$4 sm:$0xff]   ;;  %v6080_v40 = vld [vmem:[%s8352_s1 + $0xd4] ss:$8 sps:$4 sm:$0xff]   ;;  %s5993_s29 = sshll.u32 %s8490_s30, 6  ;;  %s5994_s23 = sshll.u32 %s8490_s30, 4 }
  0x1b   : > { %3636 = vmatpush1.bf16.msra.mxu1 %v6043_v15  ;;  %3444 = vmatprep.subr.bf16.mxu0 %v6044_v16  ;;  %v6082_v41 = vld [vmem:[%s8352_s1 + $0x1d4] ss:$8 sps:$4 sm:$0xff]   ;;  %v6084_v42 = vld [vmem:[%s8352_s1 + $0xd0] ss:$8 sps:$4 sm:$0xff]   ;;  %s6607_s12 = scalar_lea.vmem %s8351_s0, %s5993_s29  ;;  %v6086_v44 = vld [vmem:[%s8352_s1 + $0xc4] ss:$8 sps:$4 sm:$0xff]   ;;  %s8153_s26 = scalar_lea.vmem %s8354_s3, %s5994_s23 }
  0x1c   : > { %3637 = vmatprep.subr.bf16.mxu1 %v6046_v17  ;;  %v6085_v43 = vld [vmem:[%s8352_s1 + $0x1d0] ss:$8 sps:$4 sm:$0xff]   ;;  %v6088_v45 = vld [vmem:[%s8352_s1 + $0x1c4] ss:$8 sps:$4 sm:$0xff]   ;;  %v6090_v46 = vld [vmem:[%s8352_s1 + $0xc0] ss:$8 sps:$4 sm:$0xff]  }
  0x1d   : > { %v6091_v47 = vld [vmem:[%s8352_s1 + $0x1c0] ss:$8 sps:$4 sm:$0xff]   ;;  %v6092_v52 = vld [vmem:[%s8352_s1 + $0xb4] ss:$8 sps:$4 sm:$0xff]   ;;  %v6096_v56 = vld [vmem:[%s8352_s1 + $0xb0] ss:$8 sps:$4 sm:$0xff]  }
  0x1e   : > { %3445 = vmatpush1.bf16.msra.mxu0 %v6048_v18  ;;  %v6622_v48 = vld [vmem:[%s6607_s12] sm:$0xff]  ;;  %v6628_v50 = vld [vmem:[%s6607_s12 + $0x8] sm:$0xff]  ;;  %v6094_v54 = vld [vmem:[%s8352_s1 + $0x1b4] ss:$8 sps:$4 sm:$0xff]  }
  0x1f   : > { %3638 = vmatpush1.bf16.msra.mxu1 %v6049_v19  ;;  %3446 = vmatprep.subr.bf16.mxu0 %v6050_v20  ;;  %v6625_v49 = vld [vmem:[%s6607_s12 + $0x40] sm:$0xff]  ;;  %v373_v51 = vld [vmem:[%s6607_s12 + $0x48] sm:$0xff]  ;;  %v6097_v57 = vld [vmem:[%s8352_s1 + $0x1b0] ss:$8 sps:$4 sm:$0xff]  }
  0x20   : > { %3639 = vmatprep.subr.bf16.mxu1 %v6052_v21  ;;  %v5480_v53 = vcombine.high %v6622_v48, %v6625_v49  ;;  %v5482_v55 = vcombine.high %v6628_v50, %v373_v51  ;;  %v6098_v58 = vld [vmem:[%s8352_s1 + $0xa4] ss:$8 sps:$4 sm:$0xff]   ;;  %v6102_v60 = vld [vmem:[%s8352_s1 + $0xa0] ss:$8 sps:$4 sm:$0xff]   ;;  %v6104_v62 = vld [vmem:[%s8352_s1 + $0x94] ss:$8 sps:$4 sm:$0xff]   ;;  %v5479_v12 = vcombine.low %v6622_v48, %v6625_v49  ;;  %v5481_v13 = vcombine.low %v6628_v50, %v373_v51 }
  0x21   : > { %v6100_v59 = vld [vmem:[%s8352_s1 + $0x1a4] ss:$8 sps:$4 sm:$0xff]   ;;  %v6103_v61 = vld [vmem:[%s8352_s1 + $0x1a0] ss:$8 sps:$4 sm:$0xff]   ;;  %v6106_v63 = vld [vmem:[%s8352_s1 + $0x194] ss:$8 sps:$4 sm:$0xff]  }
  0x22   : > { %3447 = vmatpush1.bf16.msra.mxu0 %v6054_v22  ;;  %3468 = vmatprep.mubr.bf16.mxu0 %v5480_v53  ;;  %v6108_v0 = vld [vmem:[%s8352_s1 + $0x90] ss:$8 sps:$4 sm:$0xff]   ;;  %v6110_v2 = vld [vmem:[%s8352_s1 + $0x84] ss:$8 sps:$4 sm:$0xff]   ;;  %v6114_v4 = vld [vmem:[%s8352_s1 + $0x80] ss:$8 sps:$4 sm:$0xff]  }
  0x23   : > { %3640 = vmatpush1.bf16.msra.mxu1 %v6055_v23  ;;  %3448 = vmatprep.subr.bf16.mxu0 %v6056_v24  ;;  %v6109_v1 = vld [vmem:[%s8352_s1 + $0x190] ss:$8 sps:$4 sm:$0xff]   ;;  %v6112_v3 = vld [vmem:[%s8352_s1 + $0x184] ss:$8 sps:$4 sm:$0xff]   ;;  %v6115_v5 = vld [vmem:[%s8352_s1 + $0x180] ss:$8 sps:$4 sm:$0xff]  }
  0x24   : > { %3641 = vmatprep.subr.bf16.mxu1 %v6058_v25  ;;  %3661 = vmatprep.mubr.bf16.mxu1 %v5482_v55  ;;  %v6118_v6 = vld [vmem:[%s8352_s1 + $0x274] ss:$8 sps:$4 sm:$0xff]   ;;  %v380_v8 = vld [vmem:[%s6607_s12 + $0x80] sm:$0xff]  ;;  %v381_v10 = vld [vmem:[%s6607_s12 + $0x88] sm:$0xff] }
  0x25   : > { %v6121_v7 = vld [vmem:[%s8352_s1 + $0x374] ss:$8 sps:$4 sm:$0xff]   ;;  %v388_v9 = vld [vmem:[%s6607_s12 + $0xc0] sm:$0xff]  ;;  %v389_v11 = vld [vmem:[%s6607_s12 + $0xc8] sm:$0xff] }
  0x26   : > { %3449 = vmatpush1.bf16.msra.mxu0 %v6060_v26  ;;  %v6116_v14 = vld [vmem:[%s8352_s1 + $0x270] ss:$8 sps:$4 sm:$0xff]   ;;  %v5496_v16 = vcombine.high %v380_v8, %v388_v9  ;;  %v5498_v17 = vcombine.high %v381_v10, %v389_v11  ;;  %v6122_v18 = vld [vmem:[%s8352_s1 + $0x260] ss:$8 sps:$4 sm:$0xff]   ;;  %v6124_v19 = vld [vmem:[%s8352_s1 + $0x264] ss:$8 sps:$4 sm:$0xff]  }
  0x27   : > { %3642 = vmatpush1.bf16.msra.mxu1 %v6061_v27  ;;  %3450 = vmatprep.subr.bf16.mxu0 %v6062_v28  ;;  %v6119_v15 = vld [vmem:[%s8352_s1 + $0x370] ss:$8 sps:$4 sm:$0xff]   ;;  %v6125_v20 = vld [vmem:[%s8352_s1 + $0x360] ss:$8 sps:$4 sm:$0xff]   ;;  %v6127_v21 = vld [vmem:[%s8352_s1 + $0x364] ss:$8 sps:$4 sm:$0xff]   ;;  %v5495_v28 = vcombine.low %v380_v8, %v388_v9 }
  0x28   : > { %3643 = vmatprep.subr.bf16.mxu1 %v6064_v29  ;;  %v396_v22 = vld [vmem:[%s6607_s12 + $0x100] sm:$0xff]  ;;  %v397_v24 = vld [vmem:[%s6607_s12 + $0x108] sm:$0xff]  ;;  %v6130_v26 = vld [vmem:[%s8352_s1 + $0x254] ss:$8 sps:$4 sm:$0xff]   ;;  %v5497_v29 = vcombine.low %v381_v10, %v389_v11 }
  0x29   : > { %v404_v23 = vld [vmem:[%s6607_s12 + $0x140] sm:$0xff]  ;;  %v405_v25 = vld [vmem:[%s6607_s12 + $0x148] sm:$0xff]  ;;  %v6133_v27 = vld [vmem:[%s8352_s1 + $0x354] ss:$8 sps:$4 sm:$0xff]  }
  0x2a   : > { %3451 = vmatpush1.bf16.msra.mxu0 %v6066_v30  ;;  %v5512_v30 = vcombine.high %v396_v22, %v404_v23  ;;  %v6140_v48 = vld [vmem:[%s8352_s1 + $0x230] ss:$8 sps:$4 sm:$0xff]   ;;  %v6148_v50 = vld [vmem:[%s8352_s1 + $0x224] ss:$8 sps:$4 sm:$0xff]   ;;  %v6158_v8 = vld [vmem:[%s8352_s1 + $0x200] ss:$8 sps:$4 sm:$0xff]  }
  0x2b   : > { %3644 = vmatpush1.bf16.msra.mxu1 %v6067_v31  ;;  %3452 = vmatprep.subr.bf16.mxu0 %v6068_v32  ;;  %v5514_v31 = vcombine.high %v397_v24, %v405_v25  ;;  %v6128_v32 = vld [vmem:[%s8352_s1 + $0x250] ss:$8 sps:$4 sm:$0xff]   ;;  %v6151_v51 = vld [vmem:[%s8352_s1 + $0x324] ss:$8 sps:$4 sm:$0xff]   ;;  %v6161_v9 = vld [vmem:[%s8352_s1 + $0x300] ss:$8 sps:$4 sm:$0xff]  }
  0x2c   : > { %3645 = vmatprep.subr.bf16.mxu1 %v6070_v33  ;;  %v6131_v33 = vld [vmem:[%s8352_s1 + $0x350] ss:$8 sps:$4 sm:$0xff]   ;;  %v436_v53 = vld [vmem:[%s6607_s12 + $0x240] sm:$0xff]  ;;  %v437_v55 = vld [vmem:[%s6607_s12 + $0x248] sm:$0xff] }
  0x2d   : > { %v6143_v49 = vld [vmem:[%s8352_s1 + $0x330] ss:$8 sps:$4 sm:$0xff]   ;;  %v6166_v10 = vld [vmem:[%s8352_s1 + $0x2f4] ss:$8 sps:$4 sm:$0xff]  }
  0x2e   : > { %3453 = vmatpush2.bf16.msra.mxu0 %v6072_v34  ;;  %v6136_v34 = vld [vmem:[%s8352_s1 + $0x244] ss:$8 sps:$4 sm:$0xff]   ;;  %v6169_v11 = vld [vmem:[%s8352_s1 + $0x3f4] ss:$8 sps:$4 sm:$0xff]  }
  0x2f   : > { %3646 = vmatpush2.bf16.msra.mxu1 %v6073_v35  ;;  %3454 = vmatprep.subr.bf16.mxu0 %v6074_v36  ;;  %v6139_v35 = vld [vmem:[%s8352_s1 + $0x344] ss:$8 sps:$4 sm:$0xff]  }
  0x30   : > { %3647 = vmatprep.subr.bf16.mxu1 %v6076_v37  ;;  %v412_v36 = vld [vmem:[%s6607_s12 + $0x180] sm:$0xff] }
  0x31   : > { %v420_v37 = vld [vmem:[%s6607_s12 + $0x1c0] sm:$0xff] }
  0x32   : > { %3455 = vmatpush2.bf16.msra.mxu0 %v6078_v38  ;;  %v413_v38 = vld [vmem:[%s6607_s12 + $0x188] sm:$0xff] }
  0x33   : > { %3648 = vmatpush2.bf16.msra.mxu1 %v6079_v39  ;;  %3456 = vmatprep.subr.bf16.mxu0 %v6080_v40  ;;  %v421_v39 = vld [vmem:[%s6607_s12 + $0x1c8] sm:$0xff] }
  0x34   : > { %3649 = vmatprep.subr.bf16.mxu1 %v6082_v41  ;;  %v6134_v40 = vld [vmem:[%s8352_s1 + $0x240] ss:$8 sps:$4 sm:$0xff]  }
  0x35   : > { %v6137_v41 = vld [vmem:[%s8352_s1 + $0x340] ss:$8 sps:$4 sm:$0xff]  }
  0x36   : > { %3457 = vmatpush2.bf16.msra.mxu0 %v6084_v42  ;;  %v6142_v42 = vld [vmem:[%s8352_s1 + $0x234] ss:$8 sps:$4 sm:$0xff]  }
  0x37   : > { %3650 = vmatpush2.bf16.msra.mxu1 %v6085_v43  ;;  %3458 = vmatprep.subr.bf16.mxu0 %v6086_v44  ;;  %v6145_v43 = vld [vmem:[%s8352_s1 + $0x334] ss:$8 sps:$4 sm:$0xff]   ;;  %v5511_v44 = vcombine.low %v396_v22, %v404_v23  ;;  %v461_v22 = vld [vmem:[%s6607_s12 + $0x308] sm:$0xff] }
  0x38   : > { %3651 = vmatprep.subr.bf16.mxu1 %v6088_v45  ;;  %v5513_v45 = vcombine.low %v397_v24, %v405_v25  ;;  %v469_v23 = vld [vmem:[%s6607_s12 + $0x348] sm:$0xff] }
  0x39   : > { %v6170_v24 = vld [vmem:[%s8352_s1 + $0x2e0] ss:$8 sps:$4 sm:$0xff]  }
  0x3a   : > { %3459 = vmatpush2.bf16.msra.mxu0 %v6090_v46  ;;  %v5528_v46 = vcombine.high %v412_v36, %v420_v37  ;;  %v6173_v25 = vld [vmem:[%s8352_s1 + $0x3e0] ss:$8 sps:$4 sm:$0xff]  }
  0x3b   : > { %3652 = vmatpush2.bf16.msra.mxu1 %v6091_v47  ;;  %3460 = vmatprep.subr.bf16.mxu0 %v6092_v52  ;;  %v5530_v47 = vcombine.high %v413_v38, %v421_v39  ;;  %v428_v52 = vld [vmem:[%s6607_s12 + $0x200] sm:$0xff] }
  0x3c   : > { %3653 = vmatprep.subr.bf16.mxu1 %v6094_v54  ;;  %v429_v54 = vld [vmem:[%s6607_s12 + $0x208] sm:$0xff] }
  0x3e   : > { %3461 = vmatpush2.bf16.msra.mxu0 %v6096_v56  ;;  %v6146_v56 = vld [vmem:[%s8352_s1 + $0x220] ss:$8 sps:$4 sm:$0xff]  }
  0x3f   : > { %3654 = vmatpush2.bf16.msra.mxu1 %v6097_v57  ;;  %3462 = vmatprep.subr.bf16.mxu0 %v6098_v58  ;;  %v6149_v57 = vld [vmem:[%s8352_s1 + $0x320] ss:$8 sps:$4 sm:$0xff]   ;;  %v6154_v58 = vld [vmem:[%s8352_s1 + $0x214] ss:$8 sps:$4 sm:$0xff]  }
  0x40   : > { %3655 = vmatprep.subr.bf16.mxu1 %v6100_v59  ;;  %v6157_v59 = vld [vmem:[%s8352_s1 + $0x314] ss:$8 sps:$4 sm:$0xff]  }
  0x42   : > { %3463 = vmatpush2.bf16.msra.mxu0 %v6102_v60  ;;  %v5527_v60 = vcombine.low %v412_v36, %v420_v37  ;;  %v476_v36 = vld [vmem:[%s6607_s12 + $0x380] sm:$0xff] }
  0x43   : > { %3656 = vmatpush2.bf16.msra.mxu1 %v6103_v61  ;;  %3464 = vmatprep.subr.bf16.mxu0 %v6104_v62  ;;  %v5529_v61 = vcombine.low %v413_v38, %v421_v39  ;;  %v5544_v62 = vcombine.high %v428_v52, %v436_v53  ;;  %v484_v37 = vld [vmem:[%s6607_s12 + $0x3c0] sm:$0xff]  ;;  %v477_v38 = vld [vmem:[%s6607_s12 + $0x388] sm:$0xff] }
  0x44   : > { %3657 = vmatprep.subr.bf16.mxu1 %v6106_v63  ;;  %v5546_v63 = vcombine.high %v429_v54, %v437_v55  ;;  %v485_v39 = vld [vmem:[%s6607_s12 + $0x3c8] sm:$0xff] }
  0x46   : > { %3465 = vmatpush2.bf16.msra.mxu0 %v6108_v0  ;;  %v6152_v0 = vld [vmem:[%s8352_s1 + $0x210] ss:$8 sps:$4 sm:$0xff]  }
  0x47   : > { %3658 = vmatpush2.bf16.msra.mxu1 %v6109_v1  ;;  %3466 = vmatprep.subr.bf16.mxu0 %v6110_v2  ;;  %v6155_v1 = vld [vmem:[%s8352_s1 + $0x310] ss:$8 sps:$4 sm:$0xff]   ;;  %v6160_v2 = vld [vmem:[%s8352_s1 + $0x204] ss:$8 sps:$4 sm:$0xff]  }
  0x48   : > { %3659 = vmatprep.subr.bf16.mxu1 %v6112_v3  ;;  %v6163_v3 = vld [vmem:[%s8352_s1 + $0x304] ss:$8 sps:$4 sm:$0xff]  }
  0x4a   : > { %3467 = vmatpush2.bf16.msra.mxu0 %v6114_v4  ;;  %v444_v4 = vld [vmem:[%s6607_s12 + $0x280] sm:$0xff] }
  0x4b   : > { %3660 = vmatpush2.bf16.msra.mxu1 %v6115_v5  ;;  %3822 = vmatprep.subr.bf16.mxu0 %v6118_v6  ;;  %v452_v5 = vld [vmem:[%s6607_s12 + $0x2c0] sm:$0xff]  ;;  %v445_v6 = vld [vmem:[%s6607_s12 + $0x288] sm:$0xff] }
  0x4c   : > { %4015 = vmatprep.subr.bf16.mxu1 %v6121_v7  ;;  %v453_v7 = vld [vmem:[%s6607_s12 + $0x2c8] sm:$0xff] }
  0x4d   : > { %3469 = vmatmul.mubr.bf16.vlgmr.msra.gmra.mxu0 %v5479_v12  ;;  %v5543_v12 = vcombine.low %v428_v52, %v436_v53  ;;  %v492_v52 = vld [vmem:[%s6607_s12 + $0x400] sm:$0xff] }
  0x4e   : > { %3662 = vmatmul.mubr.bf16.vlgmr.msra.gmra.mxu1 %v5481_v13  ;;  %3823 = vmatpush1.bf16.msra.mxu0 %v6116_v14  ;;  %v5545_v13 = vcombine.low %v429_v54, %v437_v55  ;;  %v5560_v14 = vcombine.high %v444_v4, %v452_v5  ;;  %v500_v53 = vld [vmem:[%s6607_s12 + $0x440] sm:$0xff]  ;;  %v493_v54 = vld [vmem:[%s6607_s12 + $0x408] sm:$0xff] }
  0x4f   : > { %4016 = vmatpush1.bf16.msra.mxu1 %v6119_v15  ;;  %3478 = vmatprep.mubr.bf16.mxu0 %v5496_v16  ;;  %v5562_v15 = vcombine.high %v445_v6, %v453_v7  ;;  %v6164_v16 = vld [vmem:[%s8352_s1 + $0x2f0] ss:$8 sps:$4 sm:$0xff]   ;;  %v501_v55 = vld [vmem:[%s6607_s12 + $0x448] sm:$0xff] }
  0x50   : > { %3671 = vmatprep.mubr.bf16.mxu1 %v5498_v17  ;;  %3824 = vmatprep.subr.bf16.mxu0 %v6124_v19  ;;  %v6167_v17 = vld [vmem:[%s8352_s1 + $0x3f0] ss:$8 sps:$4 sm:$0xff]   ;;  %v6175_v19 = vld [vmem:[%s8352_s1 + $0x3e4] ss:$8 sps:$4 sm:$0xff]  }
  0x51   : > { %4017 = vmatprep.subr.bf16.mxu1 %v6127_v21  ;;  %v468_v21 = vld [vmem:[%s6607_s12 + $0x340] sm:$0xff] }
  0x52   : > { %3825 = vmatpush1.bf16.msra.mxu0 %v6122_v18  ;;  %v6172_v18 = vld [vmem:[%s8352_s1 + $0x2e4] ss:$8 sps:$4 sm:$0xff]  }
  0x53   : > { %4018 = vmatpush1.bf16.msra.mxu1 %v6125_v20  ;;  %3826 = vmatprep.subr.bf16.mxu0 %v6130_v26  ;;  %v460_v20 = vld [vmem:[%s6607_s12 + $0x300] sm:$0xff]  ;;  %v6178_v26 = vld [vmem:[%s8352_s1 + $0x2d4] ss:$8 sps:$4 sm:$0xff]  }
  0x54   : > { %4019 = vmatprep.subr.bf16.mxu1 %v6133_v27  ;;  %v6181_v27 = vld [vmem:[%s8352_s1 + $0x3d4] ss:$8 sps:$4 sm:$0xff]  }
  0x55   : > { %3479 = vmatmul.mubr.bf16.gmra.mxu0 %v5495_v28  ;;  %v5559_v28 = vcombine.low %v444_v4, %v452_v5  ;;  %v508_v4 = vld [vmem:[%s6607_s12 + $0x480] sm:$0xff] }
  0x56   : > { %3672 = vmatmul.mubr.bf16.gmra.mxu1 %v5497_v29  ;;  %3488 = vmatprep.mubr.bf16.mxu0 %v5512_v30  ;;  %v5561_v29 = vcombine.low %v445_v6, %v453_v7  ;;  %v5576_v30 = vcombine.high %v460_v20, %v468_v21  ;;  %v516_v5 = vld [vmem:[%s6607_s12 + $0x4c0] sm:$0xff]  ;;  %v509_v6 = vld [vmem:[%s6607_s12 + $0x488] sm:$0xff] }
  0x57   : > { %3681 = vmatprep.mubr.bf16.mxu1 %v5514_v31  ;;  %3827 = vmatpush1.bf16.msra.mxu0 %v6128_v32  ;;  %v5578_v31 = vcombine.high %v461_v22, %v469_v23  ;;  %v6176_v32 = vld [vmem:[%s8352_s1 + $0x2d0] ss:$8 sps:$4 sm:$0xff]   ;;  %v517_v7 = vld [vmem:[%s6607_s12 + $0x4c8] sm:$0xff] }
  0x58   : > { %4020 = vmatpush1.bf16.msra.mxu1 %v6131_v33  ;;  %3828 = vmatprep.subr.bf16.mxu0 %v6136_v34  ;;  %v6179_v33 = vld [vmem:[%s8352_s1 + $0x3d0] ss:$8 sps:$4 sm:$0xff]   ;;  %v6184_v34 = vld [vmem:[%s8352_s1 + $0x2c4] ss:$8 sps:$4 sm:$0xff]  }
  0x59   : > { %4021 = vmatprep.subr.bf16.mxu1 %v6139_v35  ;;  %v6187_v35 = vld [vmem:[%s8352_s1 + $0x3c4] ss:$8 sps:$4 sm:$0xff]  }
  0x5b   : > { %3829 = vmatpush1.bf16.msra.mxu0 %v6134_v40  ;;  %v6182_v40 = vld [vmem:[%s8352_s1 + $0x2c0] ss:$8 sps:$4 sm:$0xff]  }
  0x5c   : > { %4022 = vmatpush1.bf16.msra.mxu1 %v6137_v41  ;;  %3830 = vmatprep.subr.bf16.mxu0 %v6142_v42  ;;  %v6185_v41 = vld [vmem:[%s8352_s1 + $0x3c0] ss:$8 sps:$4 sm:$0xff]   ;;  %v6190_v42 = vld [vmem:[%s8352_s1 + $0x2b4] ss:$8 sps:$4 sm:$0xff]  }
  0x5d   : > { %4023 = vmatprep.subr.bf16.mxu1 %v6145_v43  ;;  %3489 = vmatmul.mubr.bf16.gmra.mxu0 %v5511_v44  ;;  %v6193_v43 = vld [vmem:[%s8352_s1 + $0x3b4] ss:$8 sps:$4 sm:$0xff]   ;;  %v5575_v44 = vcombine.low %v460_v20, %v468_v21  ;;  %v5623_v20 = vcombine.low %v508_v4, %v516_v5  ;;  %v5625_v21 = vcombine.low %v509_v6, %v517_v7 }
  0x5e   : > { %3682 = vmatmul.mubr.bf16.gmra.mxu1 %v5513_v45  ;;  %3498 = vmatprep.mubr.bf16.mxu0 %v5528_v46  ;;  %v5577_v45 = vcombine.low %v461_v22, %v469_v23  ;;  %v5592_v46 = vcombine.high %v476_v36, %v484_v37 }
  0x5f   : > { %3691 = vmatprep.mubr.bf16.mxu1 %v5530_v47  ;;  %3831 = vmatpush1.bf16.msra.mxu0 %v6140_v48  ;;  %v5594_v47 = vcombine.high %v477_v38, %v485_v39  ;;  %v6188_v48 = vld [vmem:[%s8352_s1 + $0x2b0] ss:$8 sps:$4 sm:$0xff]  }
  0x60   : > { %4024 = vmatpush1.bf16.msra.mxu1 %v6143_v49  ;;  %3832 = vmatprep.subr.bf16.mxu0 %v6148_v50  ;;  %v6191_v49 = vld [vmem:[%s8352_s1 + $0x3b0] ss:$8 sps:$4 sm:$0xff]   ;;  %v6196_v50 = vld [vmem:[%s8352_s1 + $0x2a4] ss:$8 sps:$4 sm:$0xff]  }
  0x61   : > { %4025 = vmatprep.subr.bf16.mxu1 %v6151_v51  ;;  %v6199_v51 = vld [vmem:[%s8352_s1 + $0x3a4] ss:$8 sps:$4 sm:$0xff]  }
  0x63   : > { %3833 = vmatpush1.bf16.msra.mxu0 %v6146_v56  ;;  %v6194_v56 = vld [vmem:[%s8352_s1 + $0x2a0] ss:$8 sps:$4 sm:$0xff]  }
  0x64   : > { %4026 = vmatpush1.bf16.msra.mxu1 %v6149_v57  ;;  %3834 = vmatprep.subr.bf16.mxu0 %v6154_v58  ;;  %v6197_v57 = vld [vmem:[%s8352_s1 + $0x3a0] ss:$8 sps:$4 sm:$0xff]   ;;  %v6202_v58 = vld [vmem:[%s8352_s1 + $0x294] ss:$8 sps:$4 sm:$0xff]  }
  0x65   : > { %4027 = vmatprep.subr.bf16.mxu1 %v6157_v59  ;;  %3499 = vmatmul.mubr.bf16.gmra.mxu0 %v5527_v60  ;;  %v6205_v59 = vld [vmem:[%s8352_s1 + $0x394] ss:$8 sps:$4 sm:$0xff]   ;;  %v5591_v60 = vcombine.low %v476_v36, %v484_v37 }
  0x66   : > { %3692 = vmatmul.mubr.bf16.gmra.mxu1 %v5529_v61  ;;  %3508 = vmatprep.mubr.bf16.mxu0 %v5544_v62  ;;  %v5593_v61 = vcombine.low %v477_v38, %v485_v39  ;;  %v5608_v62 = vcombine.high %v492_v52, %v500_v53 }
  0x67   : > { %3701 = vmatprep.mubr.bf16.mxu1 %v5546_v63  ;;  %3835 = vmatpush1.bf16.msra.mxu0 %v6152_v0  ;;  %v5610_v63 = vcombine.high %v493_v54, %v501_v55  ;;  %v6200_v0 = vld [vmem:[%s8352_s1 + $0x290] ss:$8 sps:$4 sm:$0xff]  }
  0x68   : > { %4028 = vmatpush1.bf16.msra.mxu1 %v6155_v1  ;;  %3836 = vmatprep.subr.bf16.mxu0 %v6160_v2  ;;  %v6203_v1 = vld [vmem:[%s8352_s1 + $0x390] ss:$8 sps:$4 sm:$0xff]   ;;  %v6208_v2 = vld [vmem:[%s8352_s1 + $0x284] ss:$8 sps:$4 sm:$0xff]  }
  0x69   : > { %4029 = vmatprep.subr.bf16.mxu1 %v6163_v3  ;;  %v6211_v3 = vld [vmem:[%s8352_s1 + $0x384] ss:$8 sps:$4 sm:$0xff]  }
  0x6b   : > { %3837 = vmatpush1.bf16.msra.mxu0 %v6158_v8  ;;  %v6206_v8 = vld [vmem:[%s8352_s1 + $0x280] ss:$8 sps:$4 sm:$0xff]  }
  0x6c   : > { %4030 = vmatpush1.bf16.msra.mxu1 %v6161_v9  ;;  %3838 = vmatprep.subr.bf16.mxu0 %v6166_v10  ;;  %v6209_v9 = vld [vmem:[%s8352_s1 + $0x380] ss:$8 sps:$4 sm:$0xff]   ;;  %v6214_v10 = vld [vmem:[%s8352_s1 + $0x474] ss:$8 sps:$4 sm:$0xff]  }
  0x6d   : > { %4031 = vmatprep.subr.bf16.mxu1 %v6169_v11  ;;  %3509 = vmatmul.mubr.bf16.gmra.mxu0 %v5543_v12  ;;  %v6217_v11 = vld [vmem:[%s8352_s1 + $0x574] ss:$8 sps:$4 sm:$0xff]   ;;  %v5607_v12 = vcombine.low %v492_v52, %v500_v53 }
  0x6e   : > { %3702 = vmatmul.mubr.bf16.gmra.mxu1 %v5545_v13  ;;  %3518 = vmatprep.mubr.bf16.mxu0 %v5560_v14  ;;  %v5609_v13 = vcombine.low %v493_v54, %v501_v55  ;;  %v5624_v14 = vcombine.high %v508_v4, %v516_v5 }
  0x6f   : > { %3711 = vmatprep.mubr.bf16.mxu1 %v5562_v15  ;;  %3839 = vmatpush2.bf16.msra.mxu0 %v6164_v16  ;;  %v5626_v15 = vcombine.high %v509_v6, %v517_v7  ;;  %v524_v16 = vld [vmem:[%s6607_s12 + $0x500] sm:$0xff] }
  0x70   : > { %4032 = vmatpush2.bf16.msra.mxu1 %v6167_v17  ;;  %3840 = vmatprep.subr.bf16.mxu0 %v6172_v18  ;;  %v532_v17 = vld [vmem:[%s6607_s12 + $0x540] sm:$0xff]  ;;  %v525_v18 = vld [vmem:[%s6607_s12 + $0x508] sm:$0xff] }
  0x71   : > { %4033 = vmatprep.subr.bf16.mxu1 %v6175_v19  ;;  %v533_v19 = vld [vmem:[%s6607_s12 + $0x548] sm:$0xff]  ;;  %v5640_v22 = vcombine.high %v524_v16, %v532_v17 }
  0x72   : > { %v5642_v23 = vcombine.high %v525_v18, %v533_v19 }
  0x73   : > { %3841 = vmatpush2.bf16.msra.mxu0 %v6170_v24  ;;  %v540_v24 = vld [vmem:[%s6607_s12 + $0x580] sm:$0xff] }
  0x74   : > { %4034 = vmatpush2.bf16.msra.mxu1 %v6173_v25  ;;  %3842 = vmatprep.subr.bf16.mxu0 %v6178_v26  ;;  %v548_v25 = vld [vmem:[%s6607_s12 + $0x5c0] sm:$0xff]  ;;  %v541_v26 = vld [vmem:[%s6607_s12 + $0x588] sm:$0xff] }
  0x75   : > { %4035 = vmatprep.subr.bf16.mxu1 %v6181_v27  ;;  %3519 = vmatmul.mubr.bf16.gmra.mxu0 %v5559_v28  ;;  %v549_v27 = vld [vmem:[%s6607_s12 + $0x5c8] sm:$0xff]  ;;  %v5639_v28 = vcombine.low %v524_v16, %v532_v17  ;;  %v5655_v36 = vcombine.low %v540_v24, %v548_v25 }
  0x76   : > { %3712 = vmatmul.mubr.bf16.gmra.mxu1 %v5561_v29  ;;  %3528 = vmatprep.mubr.bf16.mxu0 %v5576_v30  ;;  %v5641_v29 = vcombine.low %v525_v18, %v533_v19  ;;  %v5656_v30 = vcombine.high %v540_v24, %v548_v25  ;;  %v5657_v37 = vcombine.low %v541_v26, %v549_v27  ;;  %v6220_v18 = vld [vmem:[%s8352_s1 + $0x464] ss:$8 sps:$4 sm:$0xff]   ;;  %v399_v24 = vld [vmem:[%s6607_s12 + $0x118] sm:$0xff] }
  0x77   : > { %3721 = vmatprep.mubr.bf16.mxu1 %v5578_v31  ;;  %3843 = vmatpush2.bf16.msra.mxu0 %v6176_v32  ;;  %v5658_v31 = vcombine.high %v541_v26, %v549_v27  ;;  %v556_v32 = vld [vmem:[%s6607_s12 + $0x600] sm:$0xff]  ;;  %v407_v25 = vld [vmem:[%s6607_s12 + $0x158] sm:$0xff] }
  0x78   : > { %4036 = vmatpush2.bf16.msra.mxu1 %v6179_v33  ;;  %3844 = vmatprep.subr.bf16.mxu0 %v6184_v34  ;;  %v564_v33 = vld [vmem:[%s6607_s12 + $0x640] sm:$0xff]  ;;  %v557_v34 = vld [vmem:[%s6607_s12 + $0x608] sm:$0xff]  ;;  %v6226_v26 = vld [vmem:[%s8352_s1 + $0x454] ss:$8 sps:$4 sm:$0xff]  }
  0x79   : > { %4037 = vmatprep.subr.bf16.mxu1 %v6187_v35  ;;  %v565_v35 = vld [vmem:[%s6607_s12 + $0x648] sm:$0xff]  ;;  %v5672_v38 = vcombine.high %v556_v32, %v564_v33  ;;  %v6229_v27 = vld [vmem:[%s8352_s1 + $0x554] ss:$8 sps:$4 sm:$0xff]  }
  0x7a   : > { %v5674_v39 = vcombine.high %v557_v34, %v565_v35  ;;  %v6223_v19 = vld [vmem:[%s8352_s1 + $0x564] ss:$8 sps:$4 sm:$0xff]  }
  0x7b   : > { %3845 = vmatpush2.bf16.msra.mxu0 %v6182_v40  ;;  %v572_v40 = vld [vmem:[%s6607_s12 + $0x680] sm:$0xff] }
  0x7c   : > { %4038 = vmatpush2.bf16.msra.mxu1 %v6185_v41  ;;  %3846 = vmatprep.subr.bf16.mxu0 %v6190_v42  ;;  %v580_v41 = vld [vmem:[%s6607_s12 + $0x6c0] sm:$0xff]  ;;  %v573_v42 = vld [vmem:[%s6607_s12 + $0x688] sm:$0xff] }
  0x7d   : > { %4039 = vmatprep.subr.bf16.mxu1 %v6193_v43  ;;  %3529 = vmatmul.mubr.bf16.gmra.mxu0 %v5575_v44  ;;  %v581_v43 = vld [vmem:[%s6607_s12 + $0x6c8] sm:$0xff]  ;;  %v5671_v44 = vcombine.low %v556_v32, %v564_v33  ;;  %v5687_v52 = vcombine.low %v572_v40, %v580_v41  ;;  %v6224_v32 = vld [vmem:[%s8352_s1 + $0x450] ss:$8 sps:$4 sm:$0xff]  }
  0x7e   : > { %3722 = vmatmul.mubr.bf16.gmra.mxu1 %v5577_v45  ;;  %3538 = vmatprep.mubr.bf16.mxu0 %v5592_v46  ;;  %v5673_v45 = vcombine.low %v557_v34, %v565_v35  ;;  %v5688_v46 = vcombine.high %v572_v40, %v580_v41  ;;  %v5689_v53 = vcombine.low %v573_v42, %v581_v43  ;;  %v6227_v33 = vld [vmem:[%s8352_s1 + $0x550] ss:$8 sps:$4 sm:$0xff]   ;;  %v6232_v34 = vld [vmem:[%s8352_s1 + $0x444] ss:$8 sps:$4 sm:$0xff]   ;;  %v6230_v40 = vld [vmem:[%s8352_s1 + $0x440] ss:$8 sps:$4 sm:$0xff]  }
  0x7f   : > { %3731 = vmatprep.mubr.bf16.mxu1 %v5594_v47  ;;  %3847 = vmatpush2.bf16.msra.mxu0 %v6188_v48  ;;  %v5690_v47 = vcombine.high %v573_v42, %v581_v43  ;;  %v588_v48 = vld [vmem:[%s6607_s12 + $0x700] sm:$0xff]  ;;  %v6238_v42 = vld [vmem:[%s8352_s1 + $0x434] ss:$8 sps:$4 sm:$0xff]  }
  0x80   : > { %4040 = vmatpush2.bf16.msra.mxu1 %v6191_v49  ;;  %3848 = vmatprep.subr.bf16.mxu0 %v6196_v50  ;;  %v596_v49 = vld [vmem:[%s6607_s12 + $0x740] sm:$0xff]  ;;  %v589_v50 = vld [vmem:[%s6607_s12 + $0x708] sm:$0xff]  ;;  %v6241_v43 = vld [vmem:[%s8352_s1 + $0x534] ss:$8 sps:$4 sm:$0xff]  }
  0x81   : > { %4041 = vmatprep.subr.bf16.mxu1 %v6199_v51  ;;  %v597_v51 = vld [vmem:[%s6607_s12 + $0x748] sm:$0xff]  ;;  %v5704_v54 = vcombine.high %v588_v48, %v596_v49 }
  0x82   : > { %v5706_v55 = vcombine.high %v589_v50, %v597_v51  ;;  %v6235_v35 = vld [vmem:[%s8352_s1 + $0x544] ss:$8 sps:$4 sm:$0xff]   ;;  %v6233_v41 = vld [vmem:[%s8352_s1 + $0x540] ss:$8 sps:$4 sm:$0xff]  }
  0x83   : > { %3849 = vmatpush2.bf16.msra.mxu0 %v6194_v56  ;;  %v604_v56 = vld [vmem:[%s6607_s12 + $0x780] sm:$0xff] }
  0x84   : > { %4042 = vmatpush2.bf16.msra.mxu1 %v6197_v57  ;;  %3850 = vmatprep.subr.bf16.mxu0 %v6202_v58  ;;  %v612_v57 = vld [vmem:[%s6607_s12 + $0x7c0] sm:$0xff]  ;;  %v605_v58 = vld [vmem:[%s6607_s12 + $0x788] sm:$0xff] }
  0x85   : > { %4043 = vmatprep.subr.bf16.mxu1 %v6205_v59  ;;  %3539 = vmatmul.mubr.bf16.gmra.mxu0 %v5591_v60  ;;  %v613_v59 = vld [vmem:[%s6607_s12 + $0x7c8] sm:$0xff]  ;;  %v5703_v60 = vcombine.low %v588_v48, %v596_v49  ;;  %v5719_v4 = vcombine.low %v604_v56, %v612_v57  ;;  %v6236_v48 = vld [vmem:[%s8352_s1 + $0x430] ss:$8 sps:$4 sm:$0xff]  }
  0x86   : > { %3732 = vmatmul.mubr.bf16.gmra.mxu1 %v5593_v61  ;;  %3548 = vmatprep.mubr.bf16.mxu0 %v5608_v62  ;;  %v5705_v61 = vcombine.low %v589_v50, %v597_v51  ;;  %v5720_v62 = vcombine.high %v604_v56, %v612_v57  ;;  %v5721_v5 = vcombine.low %v605_v58, %v613_v59  ;;  %v6239_v49 = vld [vmem:[%s8352_s1 + $0x530] ss:$8 sps:$4 sm:$0xff]   ;;  %v6244_v50 = vld [vmem:[%s8352_s1 + $0x424] ss:$8 sps:$4 sm:$0xff]   ;;  %v6242_v56 = vld [vmem:[%s8352_s1 + $0x420] ss:$8 sps:$4 sm:$0xff]  }
  0x87   : > { %3741 = vmatprep.mubr.bf16.mxu1 %v5610_v63  ;;  %3851 = vmatpush2.bf16.msra.mxu0 %v6200_v0  ;;  %v5722_v63 = vcombine.high %v605_v58, %v613_v59  ;;  %v366_v0 = vld [vmem:[%s6607_s12 + $0x10] sm:$0xff]  ;;  %v6247_v51 = vld [vmem:[%s8352_s1 + $0x524] ss:$8 sps:$4 sm:$0xff]   ;;  %v6245_v57 = vld [vmem:[%s8352_s1 + $0x520] ss:$8 sps:$4 sm:$0xff]  }
  0x88   : > { %4044 = vmatpush2.bf16.msra.mxu1 %v6203_v1  ;;  %3852 = vmatprep.subr.bf16.mxu0 %v6208_v2  ;;  %v374_v1 = vld [vmem:[%s6607_s12 + $0x50] sm:$0xff]  ;;  %v367_v2 = vld [vmem:[%s6607_s12 + $0x18] sm:$0xff] }
  0x89   : > { %4045 = vmatprep.subr.bf16.mxu1 %v6211_v3  ;;  %v375_v3 = vld [vmem:[%s6607_s12 + $0x58] sm:$0xff]  ;;  %v5484_v6 = vcombine.high %v366_v0, %v374_v1 }
  0x8a   : > { %v5486_v7 = vcombine.high %v367_v2, %v375_v3  ;;  %v6250_v58 = vld [vmem:[%s8352_s1 + $0x414] ss:$8 sps:$4 sm:$0xff]  }
  0x8b   : > { %3853 = vmatpush2.bf16.msra.mxu0 %v6206_v8  ;;  %v382_v8 = vld [vmem:[%s6607_s12 + $0x90] sm:$0xff] }
  0x8c   : > { %4046 = vmatpush2.bf16.msra.mxu1 %v6209_v9  ;;  %4208 = vmatprep.subr.bf16.mxu0 %v6214_v10  ;;  %v390_v9 = vld [vmem:[%s6607_s12 + $0xd0] sm:$0xff]  ;;  %v383_v10 = vld [vmem:[%s6607_s12 + $0x98] sm:$0xff] }
  0x8d   : > { %4401 = vmatprep.subr.bf16.mxu1 %v6217_v11  ;;  %3549 = vmatmul.mubr.bf16.gmra.mxu0 %v5607_v12  ;;  %v391_v11 = vld [vmem:[%s6607_s12 + $0xd8] sm:$0xff]  ;;  %v5483_v12 = vcombine.low %v366_v0, %v374_v1  ;;  %v5500_v16 = vcombine.high %v382_v8, %v390_v9 }
  0x8e   : > { %3742 = vmatmul.mubr.bf16.gmra.mxu1 %v5609_v13  ;;  %3558 = vmatprep.mubr.bf16.mxu0 %v5624_v14  ;;  %v5485_v13 = vcombine.low %v367_v2, %v375_v3  ;;  %v6212_v14 = vld [vmem:[%s8352_s1 + $0x470] ss:$8 sps:$4 sm:$0xff]   ;;  %v5502_v17 = vcombine.high %v383_v10, %v391_v11  ;;  %v6253_v59 = vld [vmem:[%s8352_s1 + $0x514] ss:$8 sps:$4 sm:$0xff]   ;;  %v6256_v2 = vld [vmem:[%s8352_s1 + $0x404] ss:$8 sps:$4 sm:$0xff]  }
  0x8f   : > { %3751 = vmatprep.mubr.bf16.mxu1 %v5626_v15  ;;  %v6215_v15 = vld [vmem:[%s8352_s1 + $0x570] ss:$8 sps:$4 sm:$0xff]   ;;  %v6259_v3 = vld [vmem:[%s8352_s1 + $0x504] ss:$8 sps:$4 sm:$0xff]  }
  0x90   : > { %v6248_v0 = vld [vmem:[%s8352_s1 + $0x410] ss:$8 sps:$4 sm:$0xff]  }
  0x91   : > { %v6251_v1 = vld [vmem:[%s8352_s1 + $0x510] ss:$8 sps:$4 sm:$0xff]  }
  0x95   : > { %3559 = vmatmul.mubr.bf16.gmra.mxu0 %v5623_v20  ;;  %v6218_v20 = vld [vmem:[%s8352_s1 + $0x460] ss:$8 sps:$4 sm:$0xff]  }
  0x96   : > { %3752 = vmatmul.mubr.bf16.gmra.mxu1 %v5625_v21  ;;  %3568 = vmatprep.mubr.bf16.mxu0 %v5640_v22  ;;  %v6221_v21 = vld [vmem:[%s8352_s1 + $0x560] ss:$8 sps:$4 sm:$0xff]   ;;  %v398_v22 = vld [vmem:[%s6607_s12 + $0x110] sm:$0xff] }
  0x97   : > { %3761 = vmatprep.mubr.bf16.mxu1 %v5642_v23  ;;  %v406_v23 = vld [vmem:[%s6607_s12 + $0x150] sm:$0xff] }
  0x9d   : > { %3569 = vmatmul.mubr.bf16.gmra.mxu0 %v5639_v28  ;;  %v5499_v28 = vcombine.low %v382_v8, %v390_v9  ;;  %v6254_v8 = vld [vmem:[%s8352_s1 + $0x400] ss:$8 sps:$4 sm:$0xff]  }
  0x9e   : > { %3762 = vmatmul.mubr.bf16.gmra.mxu1 %v5641_v29  ;;  %3578 = vmatprep.mubr.bf16.mxu0 %v5656_v30  ;;  %v5501_v29 = vcombine.low %v383_v10, %v391_v11  ;;  %v5516_v30 = vcombine.high %v398_v22, %v406_v23  ;;  %v6257_v9 = vld [vmem:[%s8352_s1 + $0x500] ss:$8 sps:$4 sm:$0xff]   ;;  %v6262_v10 = vld [vmem:[%s8352_s1 + $0x4f4] ss:$8 sps:$4 sm:$0xff]  }
  0x9f   : > { %3771 = vmatprep.mubr.bf16.mxu1 %v5658_v31  ;;  %v5518_v31 = vcombine.high %v399_v24, %v407_v25  ;;  %v6265_v11 = vld [vmem:[%s8352_s1 + $0x5f4] ss:$8 sps:$4 sm:$0xff]  }
  0xa5   : > { %3579 = vmatmul.mubr.bf16.gmra.mxu0 %v5655_v36  ;;  %v414_v36 = vld [vmem:[%s6607_s12 + $0x190] sm:$0xff] }
  0xa6   : > { %3772 = vmatmul.mubr.bf16.gmra.mxu1 %v5657_v37  ;;  %3588 = vmatprep.mubr.bf16.mxu0 %v5672_v38  ;;  %v422_v37 = vld [vmem:[%s6607_s12 + $0x1d0] sm:$0xff]  ;;  %v415_v38 = vld [vmem:[%s6607_s12 + $0x198] sm:$0xff] }
  0xa7   : > { %3781 = vmatprep.mubr.bf16.mxu1 %v5674_v39  ;;  %v423_v39 = vld [vmem:[%s6607_s12 + $0x1d8] sm:$0xff] }
  0xad   : > { %3589 = vmatmul.mubr.bf16.gmra.mxu0 %v5671_v44  ;;  %v5515_v44 = vcombine.low %v398_v22, %v406_v23  ;;  %v463_v22 = vld [vmem:[%s6607_s12 + $0x318] sm:$0xff] }
  0xae   : > { %3782 = vmatmul.mubr.bf16.gmra.mxu1 %v5673_v45  ;;  %3598 = vmatprep.mubr.bf16.mxu0 %v5688_v46  ;;  %v5517_v45 = vcombine.low %v399_v24, %v407_v25  ;;  %v5532_v46 = vcombine.high %v414_v36, %v422_v37  ;;  %v471_v23 = vld [vmem:[%s6607_s12 + $0x358] sm:$0xff]  ;;  %v6266_v24 = vld [vmem:[%s8352_s1 + $0x4e0] ss:$8 sps:$4 sm:$0xff]  }
  0xaf   : > { %3791 = vmatprep.mubr.bf16.mxu1 %v5690_v47  ;;  %v5534_v47 = vcombine.high %v415_v38, %v423_v39  ;;  %v6269_v25 = vld [vmem:[%s8352_s1 + $0x5e0] ss:$8 sps:$4 sm:$0xff]  }
  0xb5   : > { %3599 = vmatmul.mubr.bf16.gmra.mxu0 %v5687_v52  ;;  %v430_v52 = vld [vmem:[%s6607_s12 + $0x210] sm:$0xff] }
  0xb6   : > { %3792 = vmatmul.mubr.bf16.gmra.mxu1 %v5689_v53  ;;  %3608 = vmatprep.mubr.bf16.mxu0 %v5704_v54  ;;  %v438_v53 = vld [vmem:[%s6607_s12 + $0x250] sm:$0xff]  ;;  %v431_v54 = vld [vmem:[%s6607_s12 + $0x218] sm:$0xff] }
  0xb7   : > { %3801 = vmatprep.mubr.bf16.mxu1 %v5706_v55  ;;  %v439_v55 = vld [vmem:[%s6607_s12 + $0x258] sm:$0xff] }
  0xbd   : > { %3609 = vmatmul.mubr.bf16.gmra.mxu0 %v5703_v60  ;;  %v5531_v60 = vcombine.low %v414_v36, %v422_v37  ;;  %v478_v36 = vld [vmem:[%s6607_s12 + $0x390] sm:$0xff] }
  0xbe   : > { %3802 = vmatmul.mubr.bf16.gmra.mxu1 %v5705_v61  ;;  %3618 = vmatprep.mubr.bf16.mxu0 %v5720_v62  ;;  %v5533_v61 = vcombine.low %v415_v38, %v423_v39  ;;  %v5548_v62 = vcombine.high %v430_v52, %v438_v53  ;;  %v486_v37 = vld [vmem:[%s6607_s12 + $0x3d0] sm:$0xff]  ;;  %v479_v38 = vld [vmem:[%s6607_s12 + $0x398] sm:$0xff] }
  0xbf   : > { %3811 = vmatprep.mubr.bf16.mxu1 %v5722_v63  ;;  %v5550_v63 = vcombine.high %v431_v54, %v439_v55  ;;  %v487_v39 = vld [vmem:[%s6607_s12 + $0x3d8] sm:$0xff] }
  0xc5   : > { %3619 = vmatmul.mubr.bf16.gmra.mxu0 %v5719_v4  ;;  %v446_v4 = vld [vmem:[%s6607_s12 + $0x290] sm:$0xff] }
  0xc6   : > { %3812 = vmatmul.mubr.bf16.gmra.mxu1 %v5721_v5  ;;  %3854 = vmatprep.mubr.bf16.mxu0 %v5484_v6  ;;  %v454_v5 = vld [vmem:[%s6607_s12 + $0x2d0] sm:$0xff]  ;;  %v447_v6 = vld [vmem:[%s6607_s12 + $0x298] sm:$0xff] }
  0xc7   : > { %4047 = vmatprep.mubr.bf16.mxu1 %v5486_v7  ;;  %v455_v7 = vld [vmem:[%s6607_s12 + $0x2d8] sm:$0xff] }
  0xcd   : > { %3855 = vmatmul.mubr.bf16.vlgmr.msra.gmra.mxu0 %v5483_v12  ;;  %v5547_v12 = vcombine.low %v430_v52, %v438_v53  ;;  %v494_v52 = vld [vmem:[%s6607_s12 + $0x410] sm:$0xff] }
  0xce   : > { %4048 = vmatmul.mubr.bf16.vlgmr.msra.gmra.mxu1 %v5485_v13  ;;  %4209 = vmatpush1.bf16.msra.mxu0 %v6212_v14  ;;  %v5549_v13 = vcombine.low %v431_v54, %v439_v55  ;;  %v5564_v14 = vcombine.high %v446_v4, %v454_v5  ;;  %v502_v53 = vld [vmem:[%s6607_s12 + $0x450] sm:$0xff]  ;;  %v495_v54 = vld [vmem:[%s6607_s12 + $0x418] sm:$0xff] }
  0xcf   : > { %4402 = vmatpush1.bf16.msra.mxu1 %v6215_v15  ;;  %3864 = vmatprep.mubr.bf16.mxu0 %v5500_v16  ;;  %v5566_v15 = vcombine.high %v447_v6, %v455_v7  ;;  %v6260_v16 = vld [vmem:[%s8352_s1 + $0x4f0] ss:$8 sps:$4 sm:$0xff]  }
  0xd0   : > { %4057 = vmatprep.mubr.bf16.mxu1 %v5502_v17  ;;  %4210 = vmatprep.subr.bf16.mxu0 %v6220_v18  ;;  %v6263_v17 = vld [vmem:[%s8352_s1 + $0x5f0] ss:$8 sps:$4 sm:$0xff]   ;;  %v6268_v18 = vld [vmem:[%s8352_s1 + $0x4e4] ss:$8 sps:$4 sm:$0xff]  }
  0xd1   : > { %4403 = vmatprep.subr.bf16.mxu1 %v6223_v19  ;;  %v6271_v19 = vld [vmem:[%s8352_s1 + $0x5e4] ss:$8 sps:$4 sm:$0xff]   ;;  %v503_v55 = vld [vmem:[%s6607_s12 + $0x458] sm:$0xff] }
  0xd2   : > { %4211 = vmatpush1.bf16.msra.mxu0 %v6218_v20  ;;  %v462_v20 = vld [vmem:[%s6607_s12 + $0x310] sm:$0xff] }
  0xd3   : > { %4404 = vmatpush1.bf16.msra.mxu1 %v6221_v21  ;;  %4212 = vmatprep.subr.bf16.mxu0 %v6226_v26  ;;  %v470_v21 = vld [vmem:[%s6607_s12 + $0x350] sm:$0xff] }
  0xd4   : > { %4405 = vmatprep.subr.bf16.mxu1 %v6229_v27  ;;  %v6274_v26 = vld [vmem:[%s8352_s1 + $0x4d4] ss:$8 sps:$4 sm:$0xff]  }
  0xd5   : > { %3865 = vmatmul.mubr.bf16.gmra.mxu0 %v5499_v28  ;;  %v6277_v27 = vld [vmem:[%s8352_s1 + $0x5d4] ss:$8 sps:$4 sm:$0xff]   ;;  %v5563_v28 = vcombine.low %v446_v4, %v454_v5 }
  0xd6   : > { %4058 = vmatmul.mubr.bf16.gmra.mxu1 %v5501_v29  ;;  %3874 = vmatprep.mubr.bf16.mxu0 %v5516_v30  ;;  %v5565_v29 = vcombine.low %v447_v6, %v455_v7  ;;  %v5580_v30 = vcombine.high %v462_v20, %v470_v21  ;;  %v510_v4 = vld [vmem:[%s6607_s12 + $0x490] sm:$0xff]  ;;  %v511_v6 = vld [vmem:[%s6607_s12 + $0x498] sm:$0xff] }
  0xd7   : > { %4067 = vmatprep.mubr.bf16.mxu1 %v5518_v31  ;;  %4213 = vmatpush1.bf16.msra.mxu0 %v6224_v32  ;;  %v5582_v31 = vcombine.high %v463_v22, %v471_v23  ;;  %v6272_v32 = vld [vmem:[%s8352_s1 + $0x4d0] ss:$8 sps:$4 sm:$0xff]  }
  0xd8   : > { %4406 = vmatpush1.bf16.msra.mxu1 %v6227_v33  ;;  %4214 = vmatprep.subr.bf16.mxu0 %v6232_v34  ;;  %v6275_v33 = vld [vmem:[%s8352_s1 + $0x5d0] ss:$8 sps:$4 sm:$0xff]   ;;  %v6280_v34 = vld [vmem:[%s8352_s1 + $0x4c4] ss:$8 sps:$4 sm:$0xff]  }
  0xd9   : > { %4407 = vmatprep.subr.bf16.mxu1 %v6235_v35  ;;  %v6283_v35 = vld [vmem:[%s8352_s1 + $0x5c4] ss:$8 sps:$4 sm:$0xff]   ;;  %v518_v5 = vld [vmem:[%s6607_s12 + $0x4d0] sm:$0xff]  ;;  %v519_v7 = vld [vmem:[%s6607_s12 + $0x4d8] sm:$0xff] }
  0xdb   : > { %4215 = vmatpush1.bf16.msra.mxu0 %v6230_v40  ;;  %v6278_v40 = vld [vmem:[%s8352_s1 + $0x4c0] ss:$8 sps:$4 sm:$0xff]  }
  0xdc   : > { %4408 = vmatpush1.bf16.msra.mxu1 %v6233_v41  ;;  %4216 = vmatprep.subr.bf16.mxu0 %v6238_v42  ;;  %v6281_v41 = vld [vmem:[%s8352_s1 + $0x5c0] ss:$8 sps:$4 sm:$0xff]   ;;  %v6286_v42 = vld [vmem:[%s8352_s1 + $0x4b4] ss:$8 sps:$4 sm:$0xff]  }
  0xdd   : > { %4409 = vmatprep.subr.bf16.mxu1 %v6241_v43  ;;  %3875 = vmatmul.mubr.bf16.gmra.mxu0 %v5515_v44  ;;  %v6289_v43 = vld [vmem:[%s8352_s1 + $0x5b4] ss:$8 sps:$4 sm:$0xff]   ;;  %v5579_v44 = vcombine.low %v462_v20, %v470_v21 }
  0xde   : > { %4068 = vmatmul.mubr.bf16.gmra.mxu1 %v5517_v45  ;;  %3884 = vmatprep.mubr.bf16.mxu0 %v5532_v46  ;;  %v5581_v45 = vcombine.low %v463_v22, %v471_v23  ;;  %v5596_v46 = vcombine.high %v478_v36, %v486_v37  ;;  %v534_v22 = vld [vmem:[%s6607_s12 + $0x550] sm:$0xff]  ;;  %v527_v23 = vld [vmem:[%s6607_s12 + $0x518] sm:$0xff] }
  0xdf   : > { %4077 = vmatprep.mubr.bf16.mxu1 %v5534_v47  ;;  %4217 = vmatpush1.bf16.msra.mxu0 %v6236_v48  ;;  %v5598_v47 = vcombine.high %v479_v38, %v487_v39  ;;  %v6284_v48 = vld [vmem:[%s8352_s1 + $0x4b0] ss:$8 sps:$4 sm:$0xff]  }
  0xe0   : > { %4410 = vmatpush1.bf16.msra.mxu1 %v6239_v49  ;;  %4218 = vmatprep.subr.bf16.mxu0 %v6244_v50  ;;  %v6287_v49 = vld [vmem:[%s8352_s1 + $0x5b0] ss:$8 sps:$4 sm:$0xff]   ;;  %v6292_v50 = vld [vmem:[%s8352_s1 + $0x4a4] ss:$8 sps:$4 sm:$0xff]  }
  0xe1   : > { %4411 = vmatprep.subr.bf16.mxu1 %v6247_v51  ;;  %v6295_v51 = vld [vmem:[%s8352_s1 + $0x5a4] ss:$8 sps:$4 sm:$0xff]  }
  0xe3   : > { %4219 = vmatpush1.bf16.msra.mxu0 %v6242_v56  ;;  %v6290_v56 = vld [vmem:[%s8352_s1 + $0x4a0] ss:$8 sps:$4 sm:$0xff]  }
  0xe4   : > { %4412 = vmatpush1.bf16.msra.mxu1 %v6245_v57  ;;  %4220 = vmatprep.subr.bf16.mxu0 %v6250_v58  ;;  %v6293_v57 = vld [vmem:[%s8352_s1 + $0x5a0] ss:$8 sps:$4 sm:$0xff]   ;;  %v6298_v58 = vld [vmem:[%s8352_s1 + $0x494] ss:$8 sps:$4 sm:$0xff]  }
  0xe5   : > { %4413 = vmatprep.subr.bf16.mxu1 %v6253_v59  ;;  %3885 = vmatmul.mubr.bf16.gmra.mxu0 %v5531_v60  ;;  %v6301_v59 = vld [vmem:[%s8352_s1 + $0x594] ss:$8 sps:$4 sm:$0xff]   ;;  %v5595_v60 = vcombine.low %v478_v36, %v486_v37 }
  0xe6   : > { %4078 = vmatmul.mubr.bf16.gmra.mxu1 %v5533_v61  ;;  %3894 = vmatprep.mubr.bf16.mxu0 %v5548_v62  ;;  %v5597_v61 = vcombine.low %v479_v38, %v487_v39  ;;  %v5612_v62 = vcombine.high %v494_v52, %v502_v53  ;;  %v542_v39 = vld [vmem:[%s6607_s12 + $0x590] sm:$0xff] }
  0xe7   : > { %4087 = vmatprep.mubr.bf16.mxu1 %v5550_v63  ;;  %4221 = vmatpush1.bf16.msra.mxu0 %v6248_v0  ;;  %v5614_v63 = vcombine.high %v495_v54, %v503_v55  ;;  %v6296_v0 = vld [vmem:[%s8352_s1 + $0x490] ss:$8 sps:$4 sm:$0xff]  }
  0xe8   : > { %4414 = vmatpush1.bf16.msra.mxu1 %v6251_v1  ;;  %4222 = vmatprep.subr.bf16.mxu0 %v6256_v2  ;;  %v6299_v1 = vld [vmem:[%s8352_s1 + $0x590] ss:$8 sps:$4 sm:$0xff]   ;;  %v6304_v2 = vld [vmem:[%s8352_s1 + $0x484] ss:$8 sps:$4 sm:$0xff]  }
  0xe9   : > { %4415 = vmatprep.subr.bf16.mxu1 %v6259_v3  ;;  %v6307_v3 = vld [vmem:[%s8352_s1 + $0x584] ss:$8 sps:$4 sm:$0xff]  }
  0xeb   : > { %4223 = vmatpush1.bf16.msra.mxu0 %v6254_v8  ;;  %v6302_v8 = vld [vmem:[%s8352_s1 + $0x480] ss:$8 sps:$4 sm:$0xff]  }
  0xec   : > { %4416 = vmatpush1.bf16.msra.mxu1 %v6257_v9  ;;  %4224 = vmatprep.subr.bf16.mxu0 %v6262_v10  ;;  %v6305_v9 = vld [vmem:[%s8352_s1 + $0x580] ss:$8 sps:$4 sm:$0xff]   ;;  %v6310_v10 = vld [vmem:[%s8352_s1 + $0x674] ss:$8 sps:$4 sm:$0xff]  }
  0xed   : > { %4417 = vmatprep.subr.bf16.mxu1 %v6265_v11  ;;  %3895 = vmatmul.mubr.bf16.gmra.mxu0 %v5547_v12  ;;  %v6313_v11 = vld [vmem:[%s8352_s1 + $0x774] ss:$8 sps:$4 sm:$0xff]   ;;  %v5611_v12 = vcombine.low %v494_v52, %v502_v53 }
  0xee   : > { %4088 = vmatmul.mubr.bf16.gmra.mxu1 %v5549_v13  ;;  %3904 = vmatprep.mubr.bf16.mxu0 %v5564_v14  ;;  %v5613_v13 = vcombine.low %v495_v54, %v503_v55  ;;  %v5628_v14 = vcombine.high %v510_v4, %v518_v5 }
  0xef   : > { %4097 = vmatprep.mubr.bf16.mxu1 %v5566_v15  ;;  %4225 = vmatpush2.bf16.msra.mxu0 %v6260_v16  ;;  %v5630_v15 = vcombine.high %v511_v6, %v519_v7 }
  0xf0   : > { %4418 = vmatpush2.bf16.msra.mxu1 %v6263_v17  ;;  %4226 = vmatprep.subr.bf16.mxu0 %v6268_v18 }
  0xf1   : > { %4419 = vmatprep.subr.bf16.mxu1 %v6271_v19  ;;  %v526_v19 = vld [vmem:[%s6607_s12 + $0x510] sm:$0xff] }
  0xf3   : > { %4227 = vmatpush2.bf16.msra.mxu0 %v6266_v24  ;;  %v535_v24 = vld [vmem:[%s6607_s12 + $0x558] sm:$0xff] }
  0xf4   : > { %4420 = vmatpush2.bf16.msra.mxu1 %v6269_v25  ;;  %4228 = vmatprep.subr.bf16.mxu0 %v6274_v26 }
  0xf5   : > { %4421 = vmatprep.subr.bf16.mxu1 %v6277_v27  ;;  %3905 = vmatmul.mubr.bf16.gmra.mxu0 %v5563_v28  ;;  %v5627_v28 = vcombine.low %v510_v4, %v518_v5 }
  0xf6   : > { %4098 = vmatmul.mubr.bf16.gmra.mxu1 %v5565_v29  ;;  %3914 = vmatprep.mubr.bf16.mxu0 %v5580_v30  ;;  %v5629_v29 = vcombine.low %v511_v6, %v519_v7 }
  0xf7   : > { %4107 = vmatprep.mubr.bf16.mxu1 %v5582_v31  ;;  %4229 = vmatpush2.bf16.msra.mxu0 %v6272_v32  ;;  %v5644_v31 = vcombine.high %v526_v19, %v534_v22  ;;  %v5646_v32 = vcombine.high %v527_v23, %v535_v24 }
  0xf8   : > { %4422 = vmatpush2.bf16.msra.mxu1 %v6275_v33  ;;  %4230 = vmatprep.subr.bf16.mxu0 %v6280_v34 }
  0xf9   : > { %4423 = vmatprep.subr.bf16.mxu1 %v6283_v35 }
  0xfb   : > { %4231 = vmatpush2.bf16.msra.mxu0 %v6278_v40 }
  0xfc   : > { %4424 = vmatpush2.bf16.msra.mxu1 %v6281_v41  ;;  %4232 = vmatprep.subr.bf16.mxu0 %v6286_v42  ;;  %v550_v42 = vld [vmem:[%s6607_s12 + $0x5d0] sm:$0xff] }
  0xfd   : > { %4425 = vmatprep.subr.bf16.mxu1 %v6289_v43  ;;  %3915 = vmatmul.mubr.bf16.gmra.mxu0 %v5579_v44  ;;  %v543_v43 = vld [vmem:[%s6607_s12 + $0x598] sm:$0xff]  ;;  %v5659_v4 = vcombine.low %v542_v39, %v550_v42 }
  0xfe   : > { %4108 = vmatmul.mubr.bf16.gmra.mxu1 %v5581_v45  ;;  %3924 = vmatprep.mubr.bf16.mxu0 %v5596_v46  ;;  %v551_v44 = vld [vmem:[%s6607_s12 + $0x5d8] sm:$0xff] }
  0xff   : > { %4117 = vmatprep.mubr.bf16.mxu1 %v5598_v47  ;;  %4233 = vmatpush2.bf16.msra.mxu0 %v6284_v48  ;;  %v5643_v48 = vcombine.low %v526_v19, %v534_v22  ;;  %v5662_v52 = vcombine.high %v543_v43, %v551_v44  ;;  %v5661_v5 = vcombine.low %v543_v43, %v551_v44  ;;  %v582_v19 = vld [vmem:[%s6607_s12 + $0x6d0] sm:$0xff]  ;;  %v591_v44 = vld [vmem:[%s6607_s12 + $0x718] sm:$0xff] }
 0x100   : > { %4426 = vmatpush2.bf16.msra.mxu1 %v6287_v49  ;;  %4234 = vmatprep.subr.bf16.mxu0 %v6292_v50  ;;  %v5645_v49 = vcombine.low %v527_v23, %v535_v24  ;;  %v598_v43 = vld [vmem:[%s6607_s12 + $0x750] sm:$0xff] }
 0x101   : > { %4427 = vmatprep.subr.bf16.mxu1 %v6295_v51  ;;  %v5660_v51 = vcombine.high %v542_v39, %v550_v42 }
 0x103   : > { %4235 = vmatpush2.bf16.msra.mxu0 %v6290_v56 }
 0x104   : > { %4428 = vmatpush2.bf16.msra.mxu1 %v6293_v57  ;;  %4236 = vmatprep.subr.bf16.mxu0 %v6298_v58 }
 0x105   : > { %4429 = vmatprep.subr.bf16.mxu1 %v6301_v59  ;;  %3925 = vmatmul.mubr.bf16.gmra.mxu0 %v5595_v60  ;;  %v558_v59 = vld [vmem:[%s6607_s12 + $0x610] sm:$0xff] }
 0x106   : > { %4118 = vmatmul.mubr.bf16.gmra.mxu1 %v5597_v61  ;;  %3934 = vmatprep.mubr.bf16.mxu0 %v5612_v62  ;;  %v566_v62 = vld [vmem:[%s6607_s12 + $0x650] sm:$0xff] }
 0x107   : > { %4127 = vmatprep.mubr.bf16.mxu1 %v5614_v63  ;;  %4237 = vmatpush2.bf16.msra.mxu0 %v6296_v0  ;;  %v559_v63 = vld [vmem:[%s6607_s12 + $0x618] sm:$0xff]  ;;  %v5676_v7 = vcombine.high %v558_v59, %v566_v62 }
 0x108   : > { %4430 = vmatpush2.bf16.msra.mxu1 %v6299_v1  ;;  %4238 = vmatprep.subr.bf16.mxu0 %v6304_v2  ;;  %v567_v0 = vld [vmem:[%s6607_s12 + $0x658] sm:$0xff] }
 0x109   : > { %4431 = vmatprep.subr.bf16.mxu1 %v6307_v3 }
 0x10b   : > { %4239 = vmatpush2.bf16.msra.mxu0 %v6302_v8  ;;  %v5678_v8 = vcombine.high %v559_v63, %v567_v0 }
 0x10c   : > { %4432 = vmatpush2.bf16.msra.mxu1 %v6305_v9  ;;  %4594 = vmatprep.subr.bf16.mxu0 %v6310_v10 }
 0x10d   : > { %4787 = vmatprep.subr.bf16.mxu1 %v6313_v11  ;;  %v3470_v16 = vpop.f32.mrf.mxu0  ;;  %3935 = vmatmul.mubr.bf16.gmra.mxu0 %v5611_v12 }
 0x10e   : > { %v3663_v17 = vpop.f32.mrf.mxu1  ;;  %4128 = vmatmul.mubr.bf16.gmra.mxu1 %v5613_v13  ;;  %3944 = vmatprep.mubr.bf16.mxu0 %v5628_v14 }
 0x10f   : > { %v7175_v18 = vadd.f32 %v3663_v17, %v3470_v16  ;;  %4137 = vmatprep.mubr.bf16.mxu1 %v5630_v15  ;;  %v3472_v20 = vpop.f32.mrf.mxu0  ;;  %v574_v15 = vld [vmem:[%s6607_s12 + $0x690] sm:$0xff] }
 0x110   : > { %v3665_v21 = vpop.f32.mrf.mxu1 }
 0x111   : > { %v7181_v25 = vadd.f32 %v3665_v21, %v3472_v20  ;;  %v3474_v26 = vpop.f32.mrf.mxu0  ;;  %v575_v20 = vld [vmem:[%s6607_s12 + $0x698] sm:$0xff] }
 0x112   : > { %v3667_v27 = vpop.f32.mrf.mxu1  ;;  %v583_v21 = vld [vmem:[%s6607_s12 + $0x6d8] sm:$0xff] }
 0x113   : > { %v7183_v30 = vadd.f32 %v3667_v27, %v3474_v26  ;;  %v3476_v33 = vpop.f32.mrf.mxu0  ;;  %v5675_v26 = vcombine.low %v558_v59, %v566_v62  ;;  %v5677_v27 = vcombine.low %v559_v63, %v567_v0  ;;  %v606_v0 = vld [vmem:[%s6607_s12 + $0x790] sm:$0xff] }
 0x114   : > { %v3669_v34 = vpop.f32.mrf.mxu1 }
 0x115   : > { %v7185_v35 = vadd.f32 %v3669_v34, %v3476_v33  ;;  %v3480_v36 = vpop.f32.mrf.mxu0  ;;  %3945 = vmatmul.mubr.bf16.gmra.mxu0 %v5627_v28 }
 0x116   : > { %v3673_v37 = vpop.f32.mrf.mxu1  ;;  %4138 = vmatmul.mubr.bf16.gmra.mxu1 %v5629_v29  ;;  %3954 = vmatprep.mubr.bf16.mxu0 %v5644_v31  ;;  %v5692_v29 = vcombine.high %v574_v15, %v582_v19  ;;  %v5694_v31 = vcombine.high %v575_v20, %v583_v21 }
 0x117   : > { %v7187_v38 = vadd.f32 %v3673_v37, %v3480_v36  ;;  %4147 = vmatprep.mubr.bf16.mxu1 %v5646_v32  ;;  %v3482_v40 = vpop.f32.mrf.mxu0 }
 0x118   : > { %v3675_v41 = vpop.f32.mrf.mxu1 }
 0x119   : > { %v7193_v45 = vadd.f32 %v3675_v41, %v3482_v40  ;;  %v3484_v46 = vpop.f32.mrf.mxu0  ;;  %v590_v40 = vld [vmem:[%s6607_s12 + $0x710] sm:$0xff] }
 0x11a   : > { %v3677_v47 = vpop.f32.mrf.mxu1 }
 0x11b   : > { %v7195_v50 = vadd.f32 %v3677_v47, %v3484_v46  ;;  %v3486_v53 = vpop.f32.mrf.mxu0  ;;  %v599_v46 = vld [vmem:[%s6607_s12 + $0x758] sm:$0xff] }
 0x11c   : > { %v3679_v54 = vpop.f32.mrf.mxu1 }
 0x11d   : > { %v7197_v55 = vadd.f32 %v3679_v54, %v3486_v53  ;;  %v3490_v56 = vpop.f32.mrf.mxu0  ;;  %3955 = vmatmul.mubr.bf16.gmra.mxu0 %v5643_v48  ;;  %v5708_v54 = vcombine.high %v590_v40, %v598_v43 }
 0x11e   : > { %v3683_v57 = vpop.f32.mrf.mxu1  ;;  %4148 = vmatmul.mubr.bf16.gmra.mxu1 %v5645_v49  ;;  %3964 = vmatprep.mubr.bf16.mxu0 %v5660_v51  ;;  %v5691_v51 = vcombine.low %v574_v15, %v582_v19 }
 0x11f   : > { %v7199_v58 = vadd.f32 %v3683_v57, %v3490_v56  ;;  %4157 = vmatprep.mubr.bf16.mxu1 %v5662_v52  ;;  %v3492_v60 = vpop.f32.mrf.mxu0  ;;  %v5693_v52 = vcombine.low %v575_v20, %v583_v21  ;;  %v5710_v56 = vcombine.high %v591_v44, %v599_v46 }
 0x120   : > { %v3685_v61 = vpop.f32.mrf.mxu1 }
 0x121   : > { %v7205_v1 = vadd.f32 %v3685_v61, %v3492_v60  ;;  %v3494_v2 = vpop.f32.mrf.mxu0 }
 0x122   : > { %v3687_v3 = vpop.f32.mrf.mxu1 }
 0x123   : > { %v7207_v6 = vadd.f32 %v3687_v3, %v3494_v2  ;;  %v3496_v9 = vpop.f32.mrf.mxu0 }
 0x124   : > { %v3689_v10 = vpop.f32.mrf.mxu1 }
 0x125   : > { %v7209_v11 = vadd.f32 %v3689_v10, %v3496_v9  ;;  %v3500_v12 = vpop.f32.mrf.mxu0  ;;  %3965 = vmatmul.mubr.bf16.gmra.mxu0 %v5659_v4  ;;  %v614_v4 = vld [vmem:[%s6607_s12 + $0x7d0] sm:$0xff] }
 0x126   : > { %v3693_v13 = vpop.f32.mrf.mxu1  ;;  %4158 = vmatmul.mubr.bf16.gmra.mxu1 %v5661_v5  ;;  %3974 = vmatprep.mubr.bf16.mxu0 %v5676_v7  ;;  %v607_v5 = vld [vmem:[%s6607_s12 + $0x798] sm:$0xff] }
 0x127   : > { %v7211_v14 = vadd.f32 %v3693_v13, %v3500_v12  ;;  %4167 = vmatprep.mubr.bf16.mxu1 %v5678_v8  ;;  %v3502_v16 = vpop.f32.mrf.mxu0  ;;  %v615_v7 = vld [vmem:[%s6607_s12 + $0x7d8] sm:$0xff]  ;;  %v5707_v12 = vcombine.low %v590_v40, %v598_v43  ;;  %v5709_v13 = vcombine.low %v591_v44, %v599_v46 }
 0x128   : > { %v3695_v17 = vpop.f32.mrf.mxu1  ;;  %v5725_v43 = vcombine.low %v607_v5, %v615_v7 }
 0x129   : > { %v7217_v22 = vadd.f32 %v3695_v17, %v3502_v16  ;;  %v3504_v23 = vpop.f32.mrf.mxu0  ;;  %v5724_v16 = vcombine.high %v606_v0, %v614_v4  ;;  %v5726_v17 = vcombine.high %v607_v5, %v615_v7 }
 0x12a   : > { %v3697_v24 = vpop.f32.mrf.mxu1 }
 0x12b   : > { %v7219_v28 = vadd.f32 %v3697_v24, %v3504_v23  ;;  %v3506_v32 = vpop.f32.mrf.mxu0 }
 0x12c   : > { %v3699_v33 = vpop.f32.mrf.mxu1 }
 0x12d   : > { %v7221_v34 = vadd.f32 %v3699_v33, %v3506_v32  ;;  %v3510_v36 = vpop.f32.mrf.mxu0  ;;  %3975 = vmatmul.mubr.bf16.gmra.mxu0 %v5675_v26  ;;  %v376_v32 = vld [vmem:[%s6607_s12 + $0x60] sm:$0xff]  ;;  %v369_v33 = vld [vmem:[%s6607_s12 + $0x28] sm:$0xff] }
 0x12e   : > { %v3703_v37 = vpop.f32.mrf.mxu1  ;;  %4168 = vmatmul.mubr.bf16.gmra.mxu1 %v5677_v27  ;;  %3984 = vmatprep.mubr.bf16.mxu0 %v5692_v29  ;;  %v368_v27 = vld [vmem:[%s6607_s12 + $0x20] sm:$0xff] }
 0x12f   : > { %v7223_v39 = vadd.f32 %v3703_v37, %v3510_v36  ;;  %4177 = vmatprep.mubr.bf16.mxu1 %v5694_v31  ;;  %v3512_v41 = vpop.f32.mrf.mxu0  ;;  %v377_v36 = vld [vmem:[%s6607_s12 + $0x68] sm:$0xff]  ;;  %v5488_v46 = vcombine.high %v368_v27, %v376_v32 }
 0x130   : > { %v3705_v42 = vpop.f32.mrf.mxu1 }
 0x131   : > { %v7229_v47 = vadd.f32 %v3705_v42, %v3512_v41  ;;  %v3514_v48 = vpop.f32.mrf.mxu0  ;;  %v5723_v42 = vcombine.low %v606_v0, %v614_v4  ;;  %v393_v4 = vld [vmem:[%s6607_s12 + $0xe8] sm:$0xff] }
 0x132   : > { %v3707_v49 = vpop.f32.mrf.mxu1 }
 0x133   : > { %v7231_v53 = vadd.f32 %v3707_v49, %v3514_v48  ;;  %v3516_v57 = vpop.f32.mrf.mxu0  ;;  %v5490_v48 = vcombine.high %v369_v33, %v377_v36 }
 0x134   : > { %v3709_v59 = vpop.f32.mrf.mxu1 }
 0x135   : > { %v7233_v60 = vadd.f32 %v3709_v59, %v3516_v57  ;;  %v3520_v61 = vpop.f32.mrf.mxu0  ;;  %3985 = vmatmul.mubr.bf16.gmra.mxu0 %v5691_v51 }
 0x136   : > { %v3713_v62 = vpop.f32.mrf.mxu1  ;;  %4178 = vmatmul.mubr.bf16.gmra.mxu1 %v5693_v52  ;;  %3994 = vmatprep.mubr.bf16.mxu0 %v5708_v54 }
 0x137   : > { %v7235_v63 = vadd.f32 %v3713_v62, %v3520_v61  ;;  %4187 = vmatprep.mubr.bf16.mxu1 %v5710_v56  ;;  %v3522_v2 = vpop.f32.mrf.mxu0  ;;  %v384_v62 = vld [vmem:[%s6607_s12 + $0xa0] sm:$0xff] }
 0x138   : > { %v3715_v3 = vpop.f32.mrf.mxu1 }
 0x139   : > { %v7241_v8 = vadd.f32 %v3715_v3, %v3522_v2  ;;  %v3524_v9 = vpop.f32.mrf.mxu0  ;;  %v392_v2 = vld [vmem:[%s6607_s12 + $0xe0] sm:$0xff]  ;;  %v385_v3 = vld [vmem:[%s6607_s12 + $0xa8] sm:$0xff] }
 0x13a   : > { %v3717_v10 = vpop.f32.mrf.mxu1 }
 0x13b   : > { %v7243_v15 = vadd.f32 %v3717_v10, %v3524_v9  ;;  %v3526_v19 = vpop.f32.mrf.mxu0  ;;  %v5487_v9 = vcombine.low %v368_v27, %v376_v32  ;;  %v5489_v10 = vcombine.low %v369_v33, %v377_v36  ;;  %v6316_v27 = vld [vmem:[%s8352_s1 + $0x664] ss:$8 sps:$4 sm:$0xff]   ;;  %v6314_v33 = vld [vmem:[%s8352_s1 + $0x660] ss:$8 sps:$4 sm:$0xff]  }
 0x13c   : > { %v3719_v20 = vpop.f32.mrf.mxu1  ;;  %v6317_v36 = vld [vmem:[%s8352_s1 + $0x760] ss:$8 sps:$4 sm:$0xff]  }
 0x13d   : > { %v7245_v21 = vadd.f32 %v3719_v20, %v3526_v19  ;;  %v3530_v23 = vpop.f32.mrf.mxu0  ;;  %3995 = vmatmul.mubr.bf16.gmra.mxu0 %v5707_v12  ;;  %v5504_v20 = vcombine.high %v384_v62, %v392_v2 }
 0x13e   : > { %v3723_v24 = vpop.f32.mrf.mxu1  ;;  %4188 = vmatmul.mubr.bf16.gmra.mxu1 %v5709_v13  ;;  %4004 = vmatprep.mubr.bf16.mxu0 %v5724_v16  ;;  %v6308_v13 = vld [vmem:[%s8352_s1 + $0x670] ss:$8 sps:$4 sm:$0xff]  }
 0x13f   : > { %v7247_v26 = vadd.f32 %v3723_v24, %v3530_v23  ;;  %4197 = vmatprep.mubr.bf16.mxu1 %v5726_v17  ;;  %v3532_v29 = vpop.f32.mrf.mxu0  ;;  %v6311_v16 = vld [vmem:[%s8352_s1 + $0x770] ss:$8 sps:$4 sm:$0xff]   ;;  %v5506_v23 = vcombine.high %v385_v3, %v393_v4 }
 0x140   : > { %v3725_v31 = vpop.f32.mrf.mxu1 }
 0x141   : > { %v7253_v37 = vadd.f32 %v3725_v31, %v3532_v29  ;;  %v3534_v40 = vpop.f32.mrf.mxu0  ;;  %v6319_v29 = vld [vmem:[%s8352_s1 + $0x764] ss:$8 sps:$4 sm:$0xff]  }
 0x142   : > { %v3727_v41 = vpop.f32.mrf.mxu1 }
 0x143   : > { %v7255_v44 = vadd.f32 %v3727_v41, %v3534_v40  ;;  %v3536_v49 = vpop.f32.mrf.mxu0  ;;  %v7292_v41 = vld [vmem:[%s6607_s12 + $0x120] sm:$0xff] }
 0x144   : > { %v3729_v51 = vpop.f32.mrf.mxu1 }
 0x145   : > { %v7257_v52 = vadd.f32 %v3729_v51, %v3536_v49  ;;  %v3540_v54 = vpop.f32.mrf.mxu0  ;;  %4005 = vmatmul.mubr.bf16.gmra.mxu0 %v5723_v42  ;;  %v7295_v42 = vld [vmem:[%s6607_s12 + $0x160] sm:$0xff]  ;;  %v7301_v49 = vld [vmem:[%s6607_s12 + $0x168] sm:$0xff]  ;;  %v6322_v51 = vld [vmem:[%s8352_s1 + $0x654] ss:$8 sps:$4 sm:$0xff]  }
 0x146   : > { %v3733_v56 = vpop.f32.mrf.mxu1  ;;  %4198 = vmatmul.mubr.bf16.gmra.mxu1 %v5725_v43  ;;  %4240 = vmatprep.mubr.bf16.mxu0 %v5488_v46  ;;  %v7298_v43 = vld [vmem:[%s6607_s12 + $0x128] sm:$0xff] }
 0x147   : > { %v7259_v57 = vadd.f32 %v3733_v56, %v3540_v54  ;;  %4433 = vmatprep.mubr.bf16.mxu1 %v5490_v48  ;;  %v3542_v59 = vpop.f32.mrf.mxu0  ;;  %v6325_v54 = vld [vmem:[%s8352_s1 + $0x754] ss:$8 sps:$4 sm:$0xff]  }
 0x148   : > { %v3735_v61 = vpop.f32.mrf.mxu1 }
 0x149   : > { %v7262_v0 = vadd.f32 %v3735_v61, %v3542_v59  ;;  %v3544_v5 = vpop.f32.mrf.mxu0 }
 0x14a   : > { %v3737_v7 = vpop.f32.mrf.mxu1 }
 0x14b   : > { %v7267_v12 = vadd.f32 %v3737_v7, %v3544_v5  ;;  %v3546_v17 = vpop.f32.mrf.mxu0  ;;  %v5503_v5 = vcombine.low %v384_v62, %v392_v2  ;;  %v5505_v7 = vcombine.low %v385_v3, %v393_v4  ;;  %v6323_v62 = vld [vmem:[%s8352_s1 + $0x750] ss:$8 sps:$4 sm:$0xff]   ;;  %v6328_v3 = vld [vmem:[%s8352_s1 + $0x644] ss:$8 sps:$4 sm:$0xff]  }
 0x14c   : > { %v3739_v19 = vpop.f32.mrf.mxu1  ;;  %v6331_v4 = vld [vmem:[%s8352_s1 + $0x744] ss:$8 sps:$4 sm:$0xff]  }
 0x14d   : > { %v7275_v24 = vadd.f32 %v3739_v19, %v3546_v17  ;;  %v3550_v31 = vpop.f32.mrf.mxu0  ;;  %4241 = vmatmul.mubr.bf16.vlgmr.msra.gmra.mxu0 %v5487_v9  ;;  %v6320_v19 = vld [vmem:[%s8352_s1 + $0x650] ss:$8 sps:$4 sm:$0xff]  }
 0x14e   : > { %v3743_v32 = vpop.f32.mrf.mxu1  ;;  %4434 = vmatmul.mubr.bf16.vlgmr.msra.gmra.mxu1 %v5489_v10  ;;  %4595 = vmatpush1.bf16.msra.mxu0 %v6308_v13  ;;  %v5520_v10 = vcombine.high %v7292_v41, %v7295_v42  ;;  %v5522_v13 = vcombine.high %v7298_v43, %v7301_v49 }
 0x14f   : > { %v7289_v40 = vadd.f32 %v3743_v32, %v3550_v31  ;;  %4788 = vmatpush1.bf16.msra.mxu1 %v6311_v16  ;;  %v3552_v46 = vpop.f32.mrf.mxu0  ;;  %4250 = vmatprep.mubr.bf16.mxu0 %v5504_v20  ;;  %v7337_v31 = vld [vmem:[%s6607_s12 + $0x1e0] sm:$0xff]  ;;  %v7340_v32 = vld [vmem:[%s6607_s12 + $0x1a8] sm:$0xff] }
 0x150   : > { %v3745_v48 = vpop.f32.mrf.mxu1  ;;  %4443 = vmatprep.mubr.bf16.mxu1 %v5506_v23  ;;  %4596 = vmatprep.subr.bf16.mxu0 %v6316_v27 }
 0x151   : > { %v7309_v56 = vadd.f32 %v3745_v48, %v3552_v46  ;;  %4789 = vmatprep.subr.bf16.mxu1 %v6319_v29  ;;  %v3554_v59 = vpop.f32.mrf.mxu0  ;;  %v7334_v29 = vld [vmem:[%s6607_s12 + $0x1a0] sm:$0xff]  ;;  %v7343_v46 = vld [vmem:[%s6607_s12 + $0x1e8] sm:$0xff] }
 0x152   : > { %v3747_v61 = vpop.f32.mrf.mxu1  ;;  %4597 = vmatpush1.bf16.msra.mxu0 %v6314_v33  ;;  %v6326_v48 = vld [vmem:[%s8352_s1 + $0x640] ss:$8 sps:$4 sm:$0xff]  }
 0x153   : > { %v7311_v9 = vadd.f32 %v3747_v61, %v3554_v59  ;;  %4790 = vmatpush1.bf16.msra.mxu1 %v6317_v36  ;;  %v3556_v16 = vpop.f32.mrf.mxu0  ;;  %4598 = vmatprep.subr.bf16.mxu0 %v6322_v51  ;;  %v6329_v51 = vld [vmem:[%s8352_s1 + $0x740] ss:$8 sps:$4 sm:$0xff]   ;;  %v6334_v59 = vld [vmem:[%s8352_s1 + $0x634] ss:$8 sps:$4 sm:$0xff]  }
 0x154   : > { %v3749_v17 = vpop.f32.mrf.mxu1  ;;  %4791 = vmatprep.subr.bf16.mxu1 %v6325_v54  ;;  %v6337_v61 = vld [vmem:[%s8352_s1 + $0x734] ss:$8 sps:$4 sm:$0xff]  }
 0x155   : > { %v7323_v2 = vadd.f32 %v3749_v17, %v3556_v16  ;;  %v3560_v20 = vpop.f32.mrf.mxu0  ;;  %4251 = vmatmul.mubr.bf16.gmra.mxu0 %v5503_v5  ;;  %v5536_v17 = vcombine.high %v7334_v29, %v7337_v31 }
 0x156   : > { %v3753_v23 = vpop.f32.mrf.mxu1  ;;  %4444 = vmatmul.mubr.bf16.gmra.mxu1 %v5505_v7  ;;  %4260 = vmatprep.mubr.bf16.mxu0 %v5520_v10  ;;  %v5519_v10 = vcombine.low %v7292_v41, %v7295_v42  ;;  %v6332_v41 = vld [vmem:[%s8352_s1 + $0x630] ss:$8 sps:$4 sm:$0xff]  }
 0x157   : > { %v7331_v27 = vadd.f32 %v3753_v23, %v3560_v20  ;;  %4453 = vmatprep.mubr.bf16.mxu1 %v5522_v13  ;;  %v3562_v33 = vpop.f32.mrf.mxu0  ;;  %4599 = vmatpush1.bf16.msra.mxu0 %v6320_v19  ;;  %v5521_v13 = vcombine.low %v7298_v43, %v7301_v49  ;;  %v5538_v19 = vcombine.high %v7340_v32, %v7343_v46  ;;  %v6335_v42 = vld [vmem:[%s8352_s1 + $0x730] ss:$8 sps:$4 sm:$0xff]   ;;  %v6340_v49 = vld [vmem:[%s8352_s1 + $0x624] ss:$8 sps:$4 sm:$0xff]  }
 0x158   : > { %v3755_v36 = vpop.f32.mrf.mxu1  ;;  %4792 = vmatpush1.bf16.msra.mxu1 %v6323_v62  ;;  %4600 = vmatprep.subr.bf16.mxu0 %v6328_v3 }
 0x159   : > { %v7351_v54 = vadd.f32 %v3755_v36, %v3562_v33  ;;  %4793 = vmatprep.subr.bf16.mxu1 %v6331_v4  ;;  %v3564_v5 = vpop.f32.mrf.mxu0  ;;  %v6343_v4 = vld [vmem:[%s8352_s1 + $0x724] ss:$8 sps:$4 sm:$0xff]  }
 0x15a   : > { %v3757_v7 = vpop.f32.mrf.mxu1  ;;  %v7386_v36 = vld [vmem:[%s6607_s12 + $0x220] sm:$0xff] }
 0x15b   : > { %v7363_v16 = vadd.f32 %v3757_v7, %v3564_v5  ;;  %v3566_v62 = vpop.f32.mrf.mxu0  ;;  %4601 = vmatpush1.bf16.msra.mxu0 %v6326_v48  ;;  %v7389_v48 = vld [vmem:[%s6607_s12 + $0x260] sm:$0xff]  ;;  %v7395_v5 = vld [vmem:[%s6607_s12 + $0x268] sm:$0xff] }
 0x15c   : > { %v3759_v3 = vpop.f32.mrf.mxu1  ;;  %4794 = vmatpush1.bf16.msra.mxu1 %v6329_v51  ;;  %4602 = vmatprep.subr.bf16.mxu0 %v6334_v59  ;;  %v7392_v51 = vld [vmem:[%s6607_s12 + $0x228] sm:$0xff] }
 0x15d   : > { %v7375_v43 = vadd.f32 %v3759_v3, %v3566_v62  ;;  %4795 = vmatprep.subr.bf16.mxu1 %v6337_v61  ;;  %v3570_v20 = vpop.f32.mrf.mxu0  ;;  %4261 = vmatmul.mubr.bf16.gmra.mxu0 %v5519_v10  ;;  %v6338_v7 = vld [vmem:[%s8352_s1 + $0x620] ss:$8 sps:$4 sm:$0xff]  }
 0x15e   : > { %v3763_v23 = vpop.f32.mrf.mxu1  ;;  %4454 = vmatmul.mubr.bf16.gmra.mxu1 %v5521_v13  ;;  %4270 = vmatprep.mubr.bf16.mxu0 %v5536_v17  ;;  %v6341_v10 = vld [vmem:[%s8352_s1 + $0x720] ss:$8 sps:$4 sm:$0xff]   ;;  %v6346_v17 = vld [vmem:[%s8352_s1 + $0x614] ss:$8 sps:$4 sm:$0xff]  }
 0x15f   : > { %v7383_v33 = vadd.f32 %v3763_v23, %v3570_v20  ;;  %4463 = vmatprep.mubr.bf16.mxu1 %v5538_v19  ;;  %v3572_v59 = vpop.f32.mrf.mxu0  ;;  %4603 = vmatpush1.bf16.msra.mxu0 %v6332_v41  ;;  %v6349_v19 = vld [vmem:[%s8352_s1 + $0x714] ss:$8 sps:$4 sm:$0xff]   ;;  %v5535_v41 = vcombine.low %v7334_v29, %v7337_v31  ;;  %v6344_v29 = vld [vmem:[%s8352_s1 + $0x610] ss:$8 sps:$4 sm:$0xff]  }
 0x160   : > { %v3765_v61 = vpop.f32.mrf.mxu1  ;;  %4796 = vmatpush1.bf16.msra.mxu1 %v6335_v42  ;;  %4604 = vmatprep.subr.bf16.mxu0 %v6340_v49  ;;  %v5537_v42 = vcombine.low %v7340_v32, %v7343_v46  ;;  %v5552_v49 = vcombine.high %v7386_v36, %v7389_v48  ;;  %v6347_v31 = vld [vmem:[%s8352_s1 + $0x710] ss:$8 sps:$4 sm:$0xff]   ;;  %v6352_v46 = vld [vmem:[%s8352_s1 + $0x604] ss:$8 sps:$4 sm:$0xff]  }
 0x161   : > { %v7403_v13 = vadd.f32 %v3765_v61, %v3572_v59  ;;  %4797 = vmatprep.subr.bf16.mxu1 %v6343_v4  ;;  %v3574_v62 = vpop.f32.mrf.mxu0  ;;  %v5554_v4 = vcombine.high %v7392_v51, %v7395_v5  ;;  %v6355_v61 = vld [vmem:[%s8352_s1 + $0x704] ss:$8 sps:$4 sm:$0xff]  }
 0x162   : > { %v3767_v3 = vpop.f32.mrf.mxu1 }
 0x163   : > { %8355 = vst [vmem:[#allocation2_spill] sm:$0xff] %v7403_v13  ;;  %v7415_v20 = vadd.f32 %v3767_v3, %v3574_v62  ;;  %v3576_v23 = vpop.f32.mrf.mxu0  ;;  %4605 = vmatpush1.bf16.msra.mxu0 %v6338_v7  ;;  %v7438_v3 = vld [vmem:[%s6607_s12 + $0x2a0] sm:$0xff] }
 0x164   : > { %v3769_v59 = vpop.f32.mrf.mxu1  ;;  %4798 = vmatpush1.bf16.msra.mxu1 %v6341_v10  ;;  %4606 = vmatprep.subr.bf16.mxu0 %v6346_v17  ;;  %v7441_v17 = vld [vmem:[%s6607_s12 + $0x2e0] sm:$0xff] }
 0x165   : > { %8356 = vst [vmem:[#allocation3_spill] sm:$0xff] %v7415_v20  ;;  %v7427_v32 = vadd.f32 %v3769_v59, %v3576_v23  ;;  %4799 = vmatprep.subr.bf16.mxu1 %v6349_v19  ;;  %v3580_v7 = vpop.f32.mrf.mxu0  ;;  %4271 = vmatmul.mubr.bf16.gmra.mxu0 %v5535_v41  ;;  %v7444_v19 = vld [vmem:[%s6607_s12 + $0x2a8] sm:$0xff] }
 0x166   : > { %v3773_v10 = vpop.f32.mrf.mxu1  ;;  %4464 = vmatmul.mubr.bf16.gmra.mxu1 %v5537_v42  ;;  %4280 = vmatprep.mubr.bf16.mxu0 %v5552_v49  ;;  %v6350_v41 = vld [vmem:[%s8352_s1 + $0x600] ss:$8 sps:$4 sm:$0xff]  }
 0x167   : > { %8357 = vst [vmem:[#allocation4_spill] sm:$0xff] %v7427_v32  ;;  %v7435_v62 = vadd.f32 %v3773_v10, %v3580_v7  ;;  %4473 = vmatprep.mubr.bf16.mxu1 %v5554_v4  ;;  %v3582_v23 = vpop.f32.mrf.mxu0  ;;  %v7447_v32 = vld [vmem:[%s6607_s12 + $0x2e8] sm:$0xff]  ;;  %4607 = vmatpush1.bf16.msra.mxu0 %v6344_v29  ;;  %v6358_v4 = vld [vmem:[%s8352_s1 + $0x6f4] ss:$8 sps:$4 sm:$0xff]   ;;  %v5551_v10 = vcombine.low %v7386_v36, %v7389_v48  ;;  %v6356_v36 = vld [vmem:[%s8352_s1 + $0x6f0] ss:$8 sps:$4 sm:$0xff]  }
 0x168   : > { %v3775_v59 = vpop.f32.mrf.mxu1  ;;  %4800 = vmatpush1.bf16.msra.mxu1 %v6347_v31  ;;  %v6353_v42 = vld [vmem:[%s8352_s1 + $0x700] ss:$8 sps:$4 sm:$0xff]   ;;  %4608 = vmatprep.subr.bf16.mxu0 %v6352_v46  ;;  %v6361_v29 = vld [vmem:[%s8352_s1 + $0x7f4] ss:$8 sps:$4 sm:$0xff]   ;;  %v5568_v46 = vcombine.high %v7438_v3, %v7441_v17  ;;  %v6359_v48 = vld [vmem:[%s8352_s1 + $0x7f0] ss:$8 sps:$4 sm:$0xff]  }
 0x169   : > { %8358 = vst [vmem:[#allocation5_spill] sm:$0xff] %v7435_v62  ;;  %v7455_v49 = vadd.f32 %v3775_v59, %v3582_v23  ;;  %4801 = vmatprep.subr.bf16.mxu1 %v6355_v61  ;;  %v3584_v31 = vpop.f32.mrf.mxu0  ;;  %v5553_v62 = vcombine.low %v7392_v51, %v7395_v5  ;;  %v5570_v61 = vcombine.high %v7444_v19, %v7447_v32  ;;  %v6364_v5 = vld [vmem:[%s8352_s1 + $0x6e4] ss:$8 sps:$4 sm:$0xff]   ;;  %v6398_v20 = vld [vmem:[%s8352_s1 + $0x680] ss:$8 sps:$4 sm:$0xff]  }
 0x16a   : > { %v3777_v7 = vpop.f32.mrf.mxu1 }
 0x16b   : > { %8359 = vst [vmem:[#allocation6_spill] sm:$0xff] %v7455_v49  ;;  %v7467_v23 = vadd.f32 %v3777_v7, %v3584_v31  ;;  %v3586_v59 = vpop.f32.mrf.mxu0  ;;  %4609 = vmatpush1.bf16.msra.mxu0 %v6350_v41  ;;  %v6367_v41 = vld [vmem:[%s8352_s1 + $0x7e4] ss:$8 sps:$4 sm:$0xff]  }
 0x16c   : > { %v3779_v49 = vpop.f32.mrf.mxu1  ;;  %4802 = vmatpush1.bf16.msra.mxu1 %v6353_v42  ;;  %4610 = vmatprep.subr.bf16.mxu0 %v6358_v4  ;;  %v7493_v4 = vld [vmem:[%s6607_s12 + $0x360] sm:$0xff] }
 0x16d   : > { %8360 = vst [vmem:[#allocation7_spill] sm:$0xff] %v7467_v23  ;;  %v7479_v51 = vadd.f32 %v3779_v49, %v3586_v59  ;;  %4803 = vmatprep.subr.bf16.mxu1 %v6361_v29  ;;  %v3590_v42 = vpop.f32.mrf.mxu0  ;;  %4281 = vmatmul.mubr.bf16.gmra.mxu0 %v5551_v10  ;;  %v7490_v49 = vld [vmem:[%s6607_s12 + $0x320] sm:$0xff]  ;;  %v7496_v29 = vld [vmem:[%s6607_s12 + $0x328] sm:$0xff] }
 0x16e   : > { %v3783_v31 = vpop.f32.mrf.mxu1  ;;  %4474 = vmatmul.mubr.bf16.gmra.mxu1 %v5553_v62  ;;  %4290 = vmatprep.mubr.bf16.mxu0 %v5568_v46  ;;  %v7499_v23 = vld [vmem:[%s6607_s12 + $0x368] sm:$0xff] }
 0x16f   : > { %8361 = vst [vmem:[#allocation8_spill] sm:$0xff] %v7479_v51  ;;  %v7487_v7 = vadd.f32 %v3783_v31, %v3590_v42  ;;  %4483 = vmatprep.mubr.bf16.mxu1 %v5570_v61  ;;  %v3592_v59 = vpop.f32.mrf.mxu0  ;;  %4611 = vmatpush2.bf16.msra.mxu0 %v6356_v36  ;;  %v6362_v62 = vld [vmem:[%s8352_s1 + $0x6e0] ss:$8 sps:$4 sm:$0xff]   ;;  %v6370_v61 = vld [vmem:[%s8352_s1 + $0x6d4] ss:$8 sps:$4 sm:$0xff]   ;;  %v5567_v31 = vcombine.low %v7438_v3, %v7441_v17 }
 0x170   : > { %v3785_v51 = vpop.f32.mrf.mxu1  ;;  %4804 = vmatpush2.bf16.msra.mxu1 %v6359_v48  ;;  %v6365_v10 = vld [vmem:[%s8352_s1 + $0x7e0] ss:$8 sps:$4 sm:$0xff]   ;;  %4612 = vmatprep.subr.bf16.mxu0 %v6364_v5  ;;  %v6373_v36 = vld [vmem:[%s8352_s1 + $0x7d4] ss:$8 sps:$4 sm:$0xff]   ;;  %v5584_v5 = vcombine.high %v7490_v49, %v7493_v4  ;;  %v6368_v3 = vld [vmem:[%s8352_s1 + $0x6d0] ss:$8 sps:$4 sm:$0xff]  }
 0x171   : > { %8362 = vst [vmem:[#allocation9_spill] sm:$0xff] %v7487_v7  ;;  %v7507_v46 = vadd.f32 %v3785_v51, %v3592_v59  ;;  %4805 = vmatprep.subr.bf16.mxu1 %v6367_v41  ;;  %v3594_v48 = vpop.f32.mrf.mxu0  ;;  %v5569_v7 = vcombine.low %v7444_v19, %v7447_v32  ;;  %v5586_v41 = vcombine.high %v7496_v29, %v7499_v23  ;;  %v6371_v32 = vld [vmem:[%s8352_s1 + $0x7d0] ss:$8 sps:$4 sm:$0xff]   ;;  %v6376_v19 = vld [vmem:[%s8352_s1 + $0x6c4] ss:$8 sps:$4 sm:$0xff]  }
 0x172   : > { %v3787_v42 = vpop.f32.mrf.mxu1 }
 0x173   : > { %8363 = vst [vmem:[#allocation10_spill] sm:$0xff] %v7507_v46  ;;  %v7519_v51 = vadd.f32 %v3787_v42, %v3594_v48  ;;  %v3596_v59 = vpop.f32.mrf.mxu0  ;;  %4613 = vmatpush2.bf16.msra.mxu0 %v6362_v62  ;;  %v6379_v62 = vld [vmem:[%s8352_s1 + $0x7c4] ss:$8 sps:$4 sm:$0xff]  }
 0x174   : > { %v3789_v46 = vpop.f32.mrf.mxu1  ;;  %4806 = vmatpush2.bf16.msra.mxu1 %v6365_v10  ;;  %4614 = vmatprep.subr.bf16.mxu0 %v6370_v61  ;;  %v7545_v61 = vld [vmem:[%s6607_s12 + $0x3e0] sm:$0xff] }
 0x175   : > { %8364 = vst [vmem:[#allocation11_spill] sm:$0xff] %v7519_v51  ;;  %v7531_v17 = vadd.f32 %v3789_v46, %v3596_v59  ;;  %4807 = vmatprep.subr.bf16.mxu1 %v6373_v36  ;;  %v3600_v10 = vpop.f32.mrf.mxu0  ;;  %4291 = vmatmul.mubr.bf16.gmra.mxu0 %v5567_v31  ;;  %v7542_v46 = vld [vmem:[%s6607_s12 + $0x3a0] sm:$0xff]  ;;  %v7548_v36 = vld [vmem:[%s6607_s12 + $0x3a8] sm:$0xff] }
 0x176   : > { %v3793_v48 = vpop.f32.mrf.mxu1  ;;  %4484 = vmatmul.mubr.bf16.gmra.mxu1 %v5569_v7  ;;  %4300 = vmatprep.mubr.bf16.mxu0 %v5584_v5  ;;  %v7551_v51 = vld [vmem:[%s6607_s12 + $0x3e8] sm:$0xff] }
 0x177   : > { %8365 = vst [vmem:[#allocation12_spill] sm:$0xff] %v7531_v17  ;;  %v7539_v42 = vadd.f32 %v3793_v48, %v3600_v10  ;;  %4493 = vmatprep.mubr.bf16.mxu1 %v5586_v41  ;;  %v3602_v59 = vpop.f32.mrf.mxu0  ;;  %4615 = vmatpush2.bf16.msra.mxu0 %v6368_v3  ;;  %v6374_v7 = vld [vmem:[%s8352_s1 + $0x6c0] ss:$8 sps:$4 sm:$0xff]   ;;  %v6382_v41 = vld [vmem:[%s8352_s1 + $0x6b4] ss:$8 sps:$4 sm:$0xff]   ;;  %v5583_v48 = vcombine.low %v7490_v49, %v7493_v4 }
 0x178   : > { %v3795_v17 = vpop.f32.mrf.mxu1  ;;  %4808 = vmatpush2.bf16.msra.mxu1 %v6371_v32  ;;  %v6377_v31 = vld [vmem:[%s8352_s1 + $0x7c0] ss:$8 sps:$4 sm:$0xff]   ;;  %4616 = vmatprep.subr.bf16.mxu0 %v6376_v19  ;;  %v6385_v3 = vld [vmem:[%s8352_s1 + $0x7b4] ss:$8 sps:$4 sm:$0xff]   ;;  %v5600_v19 = vcombine.high %v7542_v46, %v7545_v61  ;;  %v6380_v49 = vld [vmem:[%s8352_s1 + $0x6b0] ss:$8 sps:$4 sm:$0xff]  }
 0x179   : > { %8366 = vst [vmem:[#allocation13_spill] sm:$0xff] %v7539_v42  ;;  %v7559_v5 = vadd.f32 %v3795_v17, %v3602_v59  ;;  %4809 = vmatprep.subr.bf16.mxu1 %v6379_v62  ;;  %v3604_v32 = vpop.f32.mrf.mxu0  ;;  %v5585_v42 = vcombine.low %v7496_v29, %v7499_v23  ;;  %v5602_v62 = vcombine.high %v7548_v36, %v7551_v51  ;;  %v6383_v23 = vld [vmem:[%s8352_s1 + $0x7b0] ss:$8 sps:$4 sm:$0xff]   ;;  %v6388_v29 = vld [vmem:[%s8352_s1 + $0x6a4] ss:$8 sps:$4 sm:$0xff]  }
 0x17a   : > { %v3797_v10 = vpop.f32.mrf.mxu1 }
 0x17b   : > { %8367 = vst [vmem:[#allocation14_spill] sm:$0xff] %v7559_v5  ;;  %v7571_v17 = vadd.f32 %v3797_v10, %v3604_v32  ;;  %v3606_v59 = vpop.f32.mrf.mxu0  ;;  %4617 = vmatpush2.bf16.msra.mxu0 %v6374_v7  ;;  %v6391_v7 = vld [vmem:[%s8352_s1 + $0x7a4] ss:$8 sps:$4 sm:$0xff]  }
 0x17c   : > { %v3799_v5 = vpop.f32.mrf.mxu1  ;;  %4810 = vmatpush2.bf16.msra.mxu1 %v6377_v31  ;;  %4618 = vmatprep.subr.bf16.mxu0 %v6382_v41  ;;  %v7597_v41 = vld [vmem:[%s6607_s12 + $0x460] sm:$0xff] }
 0x17d   : > { %8368 = vst [vmem:[#allocation15_spill] sm:$0xff] %v7571_v17  ;;  %v7583_v4 = vadd.f32 %v3799_v5, %v3606_v59  ;;  %4811 = vmatprep.subr.bf16.mxu1 %v6385_v3  ;;  %v3610_v31 = vpop.f32.mrf.mxu0  ;;  %4301 = vmatmul.mubr.bf16.gmra.mxu0 %v5583_v48  ;;  %v7594_v5 = vld [vmem:[%s6607_s12 + $0x420] sm:$0xff]  ;;  %v7600_v3 = vld [vmem:[%s6607_s12 + $0x428] sm:$0xff] }
 0x17e   : > { %v3803_v32 = vpop.f32.mrf.mxu1  ;;  %4494 = vmatmul.mubr.bf16.gmra.mxu1 %v5585_v42  ;;  %4310 = vmatprep.mubr.bf16.mxu0 %v5600_v19  ;;  %v7603_v17 = vld [vmem:[%s6607_s12 + $0x468] sm:$0xff] }
 0x17f   : > { %8369 = vst [vmem:[#allocation16_spill] sm:$0xff] %v7583_v4  ;;  %v7591_v10 = vadd.f32 %v3803_v32, %v3610_v31  ;;  %4503 = vmatprep.mubr.bf16.mxu1 %v5602_v62  ;;  %v3612_v59 = vpop.f32.mrf.mxu0  ;;  %4619 = vmatpush2.bf16.msra.mxu0 %v6380_v49  ;;  %v6386_v42 = vld [vmem:[%s8352_s1 + $0x6a0] ss:$8 sps:$4 sm:$0xff]   ;;  %v6394_v62 = vld [vmem:[%s8352_s1 + $0x694] ss:$8 sps:$4 sm:$0xff]   ;;  %v5599_v32 = vcombine.low %v7542_v46, %v7545_v61 }
 0x180   : > { %v3805_v4 = vpop.f32.mrf.mxu1  ;;  %4812 = vmatpush2.bf16.msra.mxu1 %v6383_v23  ;;  %v6389_v48 = vld [vmem:[%s8352_s1 + $0x7a0] ss:$8 sps:$4 sm:$0xff]   ;;  %4620 = vmatprep.subr.bf16.mxu0 %v6388_v29  ;;  %v6397_v49 = vld [vmem:[%s8352_s1 + $0x794] ss:$8 sps:$4 sm:$0xff]   ;;  %v5616_v29 = vcombine.high %v7594_v5, %v7597_v41  ;;  %v6392_v46 = vld [vmem:[%s8352_s1 + $0x690] ss:$8 sps:$4 sm:$0xff]  }
 0x181   : > { %8370 = vst [vmem:[#allocation17_spill] sm:$0xff] %v7591_v10  ;;  %v7611_v19 = vadd.f32 %v3805_v4, %v3612_v59  ;;  %4813 = vmatprep.subr.bf16.mxu1 %v6391_v7  ;;  %v3614_v23 = vpop.f32.mrf.mxu0  ;;  %v5601_v10 = vcombine.low %v7548_v36, %v7551_v51  ;;  %v5618_v7 = vcombine.high %v7600_v3, %v7603_v17  ;;  %v6395_v51 = vld [vmem:[%s8352_s1 + $0x790] ss:$8 sps:$4 sm:$0xff]   ;;  %v6400_v36 = vld [vmem:[%s8352_s1 + $0x684] ss:$8 sps:$4 sm:$0xff]  }
 0x182   : > { %v3807_v31 = vpop.f32.mrf.mxu1 }
 0x183   : > { %8371 = vst [vmem:[#allocation18_spill] sm:$0xff] %v7611_v19  ;;  %v7623_v4 = vadd.f32 %v3807_v31, %v3614_v23  ;;  %v3616_v59 = vpop.f32.mrf.mxu0  ;;  %4621 = vmatpush2.bf16.msra.mxu0 %v6386_v42  ;;  %v6403_v42 = vld [vmem:[%s8352_s1 + $0x784] ss:$8 sps:$4 sm:$0xff]  }
 0x184   : > { %v3809_v19 = vpop.f32.mrf.mxu1  ;;  %4814 = vmatpush2.bf16.msra.mxu1 %v6389_v48  ;;  %4622 = vmatprep.subr.bf16.mxu0 %v6394_v62  ;;  %v520_v62 = vld [vmem:[%s6607_s12 + $0x4e0] sm:$0xff] }
 0x185   : > { %8372 = vst [vmem:[#allocation19_spill] sm:$0xff] %v7623_v4  ;;  %v7635_v61 = vadd.f32 %v3809_v19, %v3616_v59  ;;  %4815 = vmatprep.subr.bf16.mxu1 %v6397_v49  ;;  %v3620_v48 = vpop.f32.mrf.mxu0  ;;  %4311 = vmatmul.mubr.bf16.gmra.mxu0 %v5599_v32  ;;  %v512_v19 = vld [vmem:[%s6607_s12 + $0x4a0] sm:$0xff]  ;;  %v513_v59 = vld [vmem:[%s6607_s12 + $0x4a8] sm:$0xff] }
 0x186   : > { %v3813_v23 = vpop.f32.mrf.mxu1  ;;  %4504 = vmatmul.mubr.bf16.gmra.mxu1 %v5601_v10  ;;  %4320 = vmatprep.mubr.bf16.mxu0 %v5616_v29  ;;  %v521_v4 = vld [vmem:[%s6607_s12 + $0x4e8] sm:$0xff] }
 0x187   : > { %8373 = vst [vmem:[#allocation20_spill] sm:$0xff] %v7635_v61  ;;  %v7643_v31 = vadd.f32 %v3813_v23, %v3620_v48  ;;  %4513 = vmatprep.mubr.bf16.mxu1 %v5618_v7  ;;  %v3622_v49 = vpop.f32.mrf.mxu0  ;;  %4623 = vmatpush2.bf16.msra.mxu0 %v6392_v46  ;;  %v6401_v10 = vld [vmem:[%s8352_s1 + $0x780] ss:$8 sps:$4 sm:$0xff]   ;;  %v5615_v48 = vcombine.low %v7594_v5, %v7597_v41 }
 0x188   : > { %v3815_v61 = vpop.f32.mrf.mxu1  ;;  %4816 = vmatpush2.bf16.msra.mxu1 %v6395_v51  ;;  %4624 = vmatprep.subr.bf16.mxu0 %v6400_v36  ;;  %v5617_v46 = vcombine.low %v7600_v3, %v7603_v17  ;;  %v5632_v23 = vcombine.high %v512_v19, %v520_v62  ;;  %v528_v5 = vld [vmem:[%s6607_s12 + $0x520] sm:$0xff] }
 0x189   : > { %8374 = vst [vmem:[#allocation21_spill] sm:$0xff] %v7643_v31  ;;  %v7655_v32 = vadd.f32 %v3815_v61, %v3622_v49  ;;  %4817 = vmatprep.subr.bf16.mxu1 %v6403_v42  ;;  %v3624_v29 = vpop.f32.mrf.mxu0  ;;  %v5634_v31 = vcombine.high %v513_v59, %v521_v4 }
 0x18a   : > { %v3817_v7 = vpop.f32.mrf.mxu1 }
 0x18b   : > { %8375 = vst [vmem:[#allocation22_spill] sm:$0xff] %v7655_v32  ;;  %v7661_v51 = vadd.f32 %v3817_v7, %v3624_v29  ;;  %v3626_v13 = vpop.f32.mrf.mxu0  ;;  %4625 = vmatpush2.bf16.msra.mxu0 %v6398_v20  ;;  %v536_v29 = vld [vmem:[%s6607_s12 + $0x560] sm:$0xff]  ;;  %v529_v7 = vld [vmem:[%s6607_s12 + $0x528] sm:$0xff] }
 0x18c   : > { %v3819_v61 = vpop.f32.mrf.mxu1  ;;  %4818 = vmatpush2.bf16.msra.mxu1 %v6401_v10 }
 0x18d   : > { %8376 = vst [vmem:[#allocation23_spill] sm:$0xff] %v7661_v51  ;;  %v7663_v36 = vadd.f32 %v3819_v61, %v3626_v13  ;;  %v3856_v42 = vpop.f32.mrf.mxu0  ;;  %4321 = vmatmul.mubr.bf16.gmra.mxu0 %v5615_v48  ;;  %v537_v51 = vld [vmem:[%s6607_s12 + $0x568] sm:$0xff]  ;;  %v5631_v61 = vcombine.low %v512_v19, %v520_v62 }
 0x18e   : > { %v4049_v49 = vpop.f32.mrf.mxu1  ;;  %4514 = vmatmul.mubr.bf16.gmra.mxu1 %v5617_v46  ;;  %v3857_v17 = vadd.f32 %v3856_v42, %v7175_v18  ;;  %4330 = vmatprep.mubr.bf16.mxu0 %v5632_v23  ;;  %v5650_v46 = vcombine.high %v529_v7, %v537_v51 }
 0x18f   : > { %8377 = vst [vmem:[#allocation24_spill] sm:$0xff] %v7663_v36  ;;  %4523 = vmatprep.mubr.bf16.mxu1 %v5634_v31  ;;  %v3858_v41 = vpop.f32.mrf.mxu0  ;;  %v5633_v36 = vcombine.low %v513_v59, %v521_v4  ;;  %v5648_v31 = vcombine.high %v528_v5, %v536_v29 }
 0x190   : > { %v4051_v3 = vpop.f32.mrf.mxu1  ;;  %v7670_v32 = vadd.f32 %v4049_v49, %v3857_v17  ;;  %v3859_v20 = vadd.f32 %v3858_v41, %v7181_v25 }
 0x191   : > { %v3860_v13 = vpop.f32.mrf.mxu0 }
 0x192   : > { %v4053_v10 = vpop.f32.mrf.mxu1  ;;  %v7673_v48 = vadd.f32 %v4051_v3, %v3859_v20  ;;  %v3861_v18 = vadd.f32 %v3860_v13, %v7183_v30  ;;  %v544_v30 = vld [vmem:[%s6607_s12 + $0x5a0] sm:$0xff]  ;;  %v545_v20 = vld [vmem:[%s6607_s12 + $0x5a8] sm:$0xff] }
 0x193   : > { %v3862_v23 = vpop.f32.mrf.mxu0  ;;  %v552_v3 = vld [vmem:[%s6607_s12 + $0x5e0] sm:$0xff]  ;;  %v553_v13 = vld [vmem:[%s6607_s12 + $0x5e8] sm:$0xff] }
 0x194   : > { %v4055_v42 = vpop.f32.mrf.mxu1  ;;  %v7676_v49 = vadd.f32 %v4053_v10, %v3861_v18  ;;  %v3863_v25 = vadd.f32 %v3862_v23, %v7185_v35 }
 0x195   : > { %v3866_v17 = vpop.f32.mrf.mxu0  ;;  %4331 = vmatmul.mubr.bf16.gmra.mxu0 %v5631_v61  ;;  %v5647_v61 = vcombine.low %v528_v5, %v536_v29 }
 0x196   : > { %v4059_v41 = vpop.f32.mrf.mxu1  ;;  %4524 = vmatmul.mubr.bf16.gmra.mxu1 %v5633_v36  ;;  %v7679_v4 = vadd.f32 %v4055_v42, %v3863_v25  ;;  %v3867_v19 = vadd.f32 %v3866_v17, %v7187_v38  ;;  %4340 = vmatprep.mubr.bf16.mxu0 %v5648_v31  ;;  %v5649_v36 = vcombine.low %v529_v7, %v537_v51 }
 0x197   : > { %4533 = vmatprep.mubr.bf16.mxu1 %v5650_v46  ;;  %v3868_v62 = vpop.f32.mrf.mxu0  ;;  %v5664_v31 = vcombine.high %v544_v30, %v552_v3  ;;  %v5666_v46 = vcombine.high %v545_v20, %v553_v13 }
 0x198   : > { %v4061_v59 = vpop.f32.mrf.mxu1  ;;  %v7686_v10 = vadd.f32 %v4059_v41, %v3867_v19  ;;  %v3869_v35 = vadd.f32 %v3868_v62, %v7193_v45 }
 0x199   : > { %v3870_v18 = vpop.f32.mrf.mxu0 }
 0x19a   : > { %v4063_v23 = vpop.f32.mrf.mxu1  ;;  %v7689_v42 = vadd.f32 %v4061_v59, %v3869_v35  ;;  %v3871_v38 = vadd.f32 %v3870_v18, %v7195_v50  ;;  %v560_v50 = vld [vmem:[%s6607_s12 + $0x620] sm:$0xff]  ;;  %v561_v35 = vld [vmem:[%s6607_s12 + $0x628] sm:$0xff] }
 0x19b   : > { %v3872_v25 = vpop.f32.mrf.mxu0  ;;  %v568_v59 = vld [vmem:[%s6607_s12 + $0x660] sm:$0xff]  ;;  %v569_v18 = vld [vmem:[%s6607_s12 + $0x668] sm:$0xff] }
 0x19c   : > { %v4065_v17 = vpop.f32.mrf.mxu1  ;;  %v7692_v41 = vadd.f32 %v4063_v23, %v3871_v38  ;;  %v3873_v45 = vadd.f32 %v3872_v25, %v7197_v55 }
 0x19d   : > { %v3876_v19 = vpop.f32.mrf.mxu0  ;;  %4341 = vmatmul.mubr.bf16.gmra.mxu0 %v5647_v61  ;;  %v5663_v61 = vcombine.low %v544_v30, %v552_v3 }
 0x19e   : > { %v4069_v62 = vpop.f32.mrf.mxu1  ;;  %4534 = vmatmul.mubr.bf16.gmra.mxu1 %v5649_v36  ;;  %v7695_v51 = vadd.f32 %v4065_v17, %v3873_v45  ;;  %v3877_v5 = vadd.f32 %v3876_v19, %v7199_v58  ;;  %4350 = vmatprep.mubr.bf16.mxu0 %v5664_v31  ;;  %v5665_v36 = vcombine.low %v545_v20, %v553_v13 }
 0x19f   : > { %4543 = vmatprep.mubr.bf16.mxu1 %v5666_v46  ;;  %v3878_v29 = vpop.f32.mrf.mxu0  ;;  %v5680_v31 = vcombine.high %v560_v50, %v568_v59  ;;  %v5682_v46 = vcombine.high %v561_v35, %v569_v18 }
 0x1a0   : > { %v4071_v7 = vpop.f32.mrf.mxu1  ;;  %v7702_v23 = vadd.f32 %v4069_v62, %v3877_v5  ;;  %v3879_v55 = vadd.f32 %v3878_v29, %v7205_v1 }
 0x1a1   : > { %v3880_v38 = vpop.f32.mrf.mxu0 }
 0x1a2   : > { %v4073_v25 = vpop.f32.mrf.mxu1  ;;  %v7705_v17 = vadd.f32 %v4071_v7, %v3879_v55  ;;  %v3881_v58 = vadd.f32 %v3880_v38, %v7207_v6  ;;  %v576_v6 = vld [vmem:[%s6607_s12 + $0x6a0] sm:$0xff]  ;;  %v577_v55 = vld [vmem:[%s6607_s12 + $0x6a8] sm:$0xff] }
 0x1a3   : > { %v3882_v45 = vpop.f32.mrf.mxu0  ;;  %v584_v7 = vld [vmem:[%s6607_s12 + $0x6e0] sm:$0xff]  ;;  %v585_v38 = vld [vmem:[%s6607_s12 + $0x6e8] sm:$0xff] }
 0x1a4   : > { %v4075_v19 = vpop.f32.mrf.mxu1  ;;  %v7708_v62 = vadd.f32 %v4073_v25, %v3881_v58  ;;  %v3883_v1 = vadd.f32 %v3882_v45, %v7209_v11 }
 0x1a5   : > { %v3886_v5 = vpop.f32.mrf.mxu0  ;;  %4351 = vmatmul.mubr.bf16.gmra.mxu0 %v5663_v61  ;;  %v5679_v61 = vcombine.low %v560_v50, %v568_v59 }
 0x1a6   : > { %v4079_v29 = vpop.f32.mrf.mxu1  ;;  %4544 = vmatmul.mubr.bf16.gmra.mxu1 %v5665_v36  ;;  %v7711_v30 = vadd.f32 %v4075_v19, %v3883_v1  ;;  %v3887_v3 = vadd.f32 %v3886_v5, %v7211_v14  ;;  %4360 = vmatprep.mubr.bf16.mxu0 %v5680_v31  ;;  %v5681_v36 = vcombine.low %v561_v35, %v569_v18 }
 0x1a7   : > { %4553 = vmatprep.mubr.bf16.mxu1 %v5682_v46  ;;  %v3888_v20 = vpop.f32.mrf.mxu0  ;;  %v5696_v31 = vcombine.high %v576_v6, %v584_v7  ;;  %v5698_v46 = vcombine.high %v577_v55, %v585_v38 }
 0x1a8   : > { %v4081_v13 = vpop.f32.mrf.mxu1  ;;  %v7718_v25 = vadd.f32 %v4079_v29, %v3887_v3  ;;  %v3889_v11 = vadd.f32 %v3888_v20, %v7217_v22 }
 0x1a9   : > { %v3890_v58 = vpop.f32.mrf.mxu0 }
 0x1aa   : > { %v4083_v45 = vpop.f32.mrf.mxu1  ;;  %v7721_v19 = vadd.f32 %v4081_v13, %v3889_v11  ;;  %v3891_v14 = vadd.f32 %v3890_v58, %v7219_v28  ;;  %v592_v28 = vld [vmem:[%s6607_s12 + $0x720] sm:$0xff]  ;;  %v593_v11 = vld [vmem:[%s6607_s12 + $0x728] sm:$0xff] }
 0x1ab   : > { %v3892_v1 = vpop.f32.mrf.mxu0  ;;  %v600_v13 = vld [vmem:[%s6607_s12 + $0x760] sm:$0xff]  ;;  %v601_v58 = vld [vmem:[%s6607_s12 + $0x768] sm:$0xff] }
 0x1ac   : > { %v4085_v5 = vpop.f32.mrf.mxu1  ;;  %v7724_v29 = vadd.f32 %v4083_v45, %v3891_v14  ;;  %v3893_v22 = vadd.f32 %v3892_v1, %v7221_v34 }
 0x1ad   : > { %v3896_v3 = vpop.f32.mrf.mxu0  ;;  %4361 = vmatmul.mubr.bf16.gmra.mxu0 %v5679_v61  ;;  %v5695_v61 = vcombine.low %v576_v6, %v584_v7 }
 0x1ae   : > { %v4089_v20 = vpop.f32.mrf.mxu1  ;;  %4554 = vmatmul.mubr.bf16.gmra.mxu1 %v5681_v36  ;;  %v7727_v50 = vadd.f32 %v4085_v5, %v3893_v22  ;;  %v3897_v59 = vadd.f32 %v3896_v3, %v7223_v39  ;;  %4370 = vmatprep.mubr.bf16.mxu0 %v5696_v31  ;;  %v5697_v36 = vcombine.low %v577_v55, %v585_v38 }
 0x1af   : > { %4563 = vmatprep.mubr.bf16.mxu1 %v5698_v46  ;;  %v3898_v35 = vpop.f32.mrf.mxu0  ;;  %v5712_v31 = vcombine.high %v592_v28, %v600_v13  ;;  %v5714_v46 = vcombine.high %v593_v11, %v601_v58 }
 0x1b0   : > { %v4091_v18 = vpop.f32.mrf.mxu1  ;;  %v7734_v45 = vadd.f32 %v4089_v20, %v3897_v59  ;;  %v3899_v34 = vadd.f32 %v3898_v35, %v7229_v47 }
 0x1b1   : > { %v3900_v14 = vpop.f32.mrf.mxu0 }
 0x1b2   : > { %v4093_v1 = vpop.f32.mrf.mxu1  ;;  %v7737_v5 = vadd.f32 %v4091_v18, %v3899_v34  ;;  %v3901_v39 = vadd.f32 %v3900_v14, %v7231_v53  ;;  %v608_v53 = vld [vmem:[%s6607_s12 + $0x7a0] sm:$0xff]  ;;  %v609_v34 = vld [vmem:[%s6607_s12 + $0x7a8] sm:$0xff] }
 0x1b3   : > { %v3902_v22 = vpop.f32.mrf.mxu0  ;;  %v616_v18 = vld [vmem:[%s6607_s12 + $0x7e0] sm:$0xff]  ;;  %v617_v14 = vld [vmem:[%s6607_s12 + $0x7e8] sm:$0xff] }
 0x1b4   : > { %v4095_v3 = vpop.f32.mrf.mxu1  ;;  %v7740_v20 = vadd.f32 %v4093_v1, %v3901_v39  ;;  %v3903_v47 = vadd.f32 %v3902_v22, %v7233_v60 }
 0x1b5   : > { %v3906_v59 = vpop.f32.mrf.mxu0  ;;  %4371 = vmatmul.mubr.bf16.gmra.mxu0 %v5695_v61  ;;  %v5711_v61 = vcombine.low %v592_v28, %v600_v13 }
 0x1b6   : > { %v4099_v35 = vpop.f32.mrf.mxu1  ;;  %4564 = vmatmul.mubr.bf16.gmra.mxu1 %v5697_v36  ;;  %v7743_v6 = vadd.f32 %v4095_v3, %v3903_v47  ;;  %v3907_v7 = vadd.f32 %v3906_v59, %v7235_v63  ;;  %4380 = vmatprep.mubr.bf16.mxu0 %v5712_v31  ;;  %v5713_v36 = vcombine.low %v593_v11, %v601_v58 }
 0x1b7   : > { %4573 = vmatprep.mubr.bf16.mxu1 %v5714_v46  ;;  %v3908_v55 = vpop.f32.mrf.mxu0  ;;  %v5728_v31 = vcombine.high %v608_v53, %v616_v18  ;;  %v5730_v46 = vcombine.high %v609_v34, %v617_v14 }
 0x1b8   : > { %v4101_v38 = vpop.f32.mrf.mxu1  ;;  %v7750_v1 = vadd.f32 %v4099_v35, %v3907_v7  ;;  %v3909_v60 = vadd.f32 %v3908_v55, %v7241_v8 }
 0x1b9   : > { %v3910_v39 = vpop.f32.mrf.mxu0 }
 0x1ba   : > { %v4103_v22 = vpop.f32.mrf.mxu1  ;;  %v7753_v3 = vadd.f32 %v4101_v38, %v3909_v60  ;;  %v3911_v63 = vadd.f32 %v3910_v39, %v7243_v15  ;;  %v370_v15 = vld [vmem:[%s6607_s12 + $0x30] sm:$0xff]  ;;  %v371_v60 = vld [vmem:[%s6607_s12 + $0x38] sm:$0xff] }
 0x1bb   : > { %v3912_v47 = vpop.f32.mrf.mxu0  ;;  %v378_v38 = vld [vmem:[%s6607_s12 + $0x70] sm:$0xff]  ;;  %v379_v39 = vld [vmem:[%s6607_s12 + $0x78] sm:$0xff] }
 0x1bc   : > { %v4105_v59 = vpop.f32.mrf.mxu1  ;;  %v7756_v35 = vadd.f32 %v4103_v22, %v3911_v63  ;;  %v3913_v8 = vadd.f32 %v3912_v47, %v7245_v21 }
 0x1bd   : > { %v3916_v7 = vpop.f32.mrf.mxu0  ;;  %4381 = vmatmul.mubr.bf16.gmra.mxu0 %v5711_v61  ;;  %v5727_v61 = vcombine.low %v608_v53, %v616_v18 }
 0x1be   : > { %v4109_v55 = vpop.f32.mrf.mxu1  ;;  %4574 = vmatmul.mubr.bf16.gmra.mxu1 %v5713_v36  ;;  %v7759_v28 = vadd.f32 %v4105_v59, %v3913_v8  ;;  %v3917_v13 = vadd.f32 %v3916_v7, %v7247_v26  ;;  %4390 = vmatprep.mubr.bf16.mxu0 %v5728_v31  ;;  %v5729_v36 = vcombine.low %v609_v34, %v617_v14 }
 0x1bf   : > { %4583 = vmatprep.mubr.bf16.mxu1 %v5730_v46  ;;  %v3918_v11 = vpop.f32.mrf.mxu0  ;;  %v5492_v31 = vcombine.high %v370_v15, %v378_v38  ;;  %v5494_v46 = vcombine.high %v371_v60, %v379_v39 }
 0x1c0   : > { %v4111_v58 = vpop.f32.mrf.mxu1  ;;  %v7766_v22 = vadd.f32 %v4109_v55, %v3917_v13  ;;  %v3919_v21 = vadd.f32 %v3918_v11, %v7253_v37 }
 0x1c1   : > { %v3920_v63 = vpop.f32.mrf.mxu0 }
 0x1c2   : > { %v4113_v47 = vpop.f32.mrf.mxu1  ;;  %v7769_v59 = vadd.f32 %v4111_v58, %v3919_v21  ;;  %v3921_v26 = vadd.f32 %v3920_v63, %v7255_v44  ;;  %v386_v44 = vld [vmem:[%s6607_s12 + $0xb0] sm:$0xff]  ;;  %v387_v21 = vld [vmem:[%s6607_s12 + $0xb8] sm:$0xff] }
 0x1c3   : > { %v3922_v8 = vpop.f32.mrf.mxu0  ;;  %v394_v58 = vld [vmem:[%s6607_s12 + $0xf0] sm:$0xff]  ;;  %v395_v63 = vld [vmem:[%s6607_s12 + $0xf8] sm:$0xff] }
 0x1c4   : > { %v4115_v7 = vpop.f32.mrf.mxu1  ;;  %v7772_v55 = vadd.f32 %v4113_v47, %v3921_v26  ;;  %v3923_v37 = vadd.f32 %v3922_v8, %v7257_v52 }
 0x1c5   : > { %v3926_v13 = vpop.f32.mrf.mxu0  ;;  %4391 = vmatmul.mubr.bf16.gmra.mxu0 %v5727_v61  ;;  %v5491_v61 = vcombine.low %v370_v15, %v378_v38 }
 0x1c6   : > { %v4119_v11 = vpop.f32.mrf.mxu1  ;;  %4584 = vmatmul.mubr.bf16.gmra.mxu1 %v5729_v36  ;;  %v7775_v53 = vadd.f32 %v4115_v7, %v3923_v37  ;;  %v3927_v18 = vadd.f32 %v3926_v13, %v7259_v57  ;;  %4626 = vmatprep.mubr.bf16.mxu0 %v5492_v31  ;;  %v5493_v36 = vcombine.low %v371_v60, %v379_v39 }
 0x1c7   : > { %4819 = vmatprep.mubr.bf16.mxu1 %v5494_v46  ;;  %v3928_v34 = vpop.f32.mrf.mxu0  ;;  %v5508_v31 = vcombine.high %v386_v44, %v394_v58  ;;  %v5510_v46 = vcombine.high %v387_v21, %v395_v63 }
 0x1c8   : > { %v4121_v14 = vpop.f32.mrf.mxu1  ;;  %v7782_v47 = vadd.f32 %v4119_v11, %v3927_v18  ;;  %v3929_v52 = vadd.f32 %v3928_v34, %v7262_v0 }
 0x1c9   : > { %v3930_v26 = vpop.f32.mrf.mxu0 }
 0x1ca   : > { %v4123_v8 = vpop.f32.mrf.mxu1  ;;  %v7785_v7 = vadd.f32 %v4121_v14, %v3929_v52  ;;  %v3931_v57 = vadd.f32 %v3930_v26, %v7267_v12  ;;  %v402_v12 = vld [vmem:[%s6607_s12 + $0x130] sm:$0xff]  ;;  %v403_v52 = vld [vmem:[%s6607_s12 + $0x138] sm:$0xff] }
 0x1cb   : > { %v3932_v37 = vpop.f32.mrf.mxu0  ;;  %v410_v14 = vld [vmem:[%s6607_s12 + $0x170] sm:$0xff]  ;;  %v411_v26 = vld [vmem:[%s6607_s12 + $0x178] sm:$0xff] }
 0x1cc   : > { %v4125_v13 = vpop.f32.mrf.mxu1  ;;  %v7788_v11 = vadd.f32 %v4123_v8, %v3931_v57  ;;  %v3933_v0 = vadd.f32 %v3932_v37, %v7275_v24 }
 0x1cd   : > { %v3936_v18 = vpop.f32.mrf.mxu0  ;;  %4627 = vmatmul.mubr.bf16.vlgmr.msra.gmra.mxu0 %v5491_v61  ;;  %v5507_v61 = vcombine.low %v386_v44, %v394_v58 }
 0x1ce   : > { %v4129_v34 = vpop.f32.mrf.mxu1  ;;  %4820 = vmatmul.mubr.bf16.vlgmr.msra.gmra.mxu1 %v5493_v36  ;;  %v7791_v15 = vadd.f32 %v4125_v13, %v3933_v0  ;;  %v3937_v38 = vadd.f32 %v3936_v18, %v7289_v40  ;;  %4636 = vmatprep.mubr.bf16.mxu0 %v5508_v31  ;;  %v5509_v36 = vcombine.low %v387_v21, %v395_v63 }
 0x1cf   : > { %4829 = vmatprep.mubr.bf16.mxu1 %v5510_v46  ;;  %v3938_v60 = vpop.f32.mrf.mxu0  ;;  %v5524_v31 = vcombine.high %v402_v12, %v410_v14  ;;  %v5526_v46 = vcombine.high %v403_v52, %v411_v26 }
 0x1d0   : > { %v4131_v39 = vpop.f32.mrf.mxu1  ;;  %v7798_v8 = vadd.f32 %v4129_v34, %v3937_v38  ;;  %v3939_v24 = vadd.f32 %v3938_v60, %v7309_v56 }
 0x1d1   : > { %v3940_v57 = vpop.f32.mrf.mxu0 }
 0x1d2   : > { %v4133_v37 = vpop.f32.mrf.mxu1  ;;  %v7801_v13 = vadd.f32 %v4131_v39, %v3939_v24  ;;  %v3941_v40 = vadd.f32 %v3940_v57, %v7311_v9  ;;  %v418_v9 = vld [vmem:[%s6607_s12 + $0x1b0] sm:$0xff]  ;;  %v419_v24 = vld [vmem:[%s6607_s12 + $0x1b8] sm:$0xff] }
 0x1d3   : > { %v3942_v0 = vpop.f32.mrf.mxu0  ;;  %v426_v39 = vld [vmem:[%s6607_s12 + $0x1f0] sm:$0xff]  ;;  %v427_v57 = vld [vmem:[%s6607_s12 + $0x1f8] sm:$0xff] }
 0x1d4   : > { %v4135_v18 = vpop.f32.mrf.mxu1  ;;  %v7804_v34 = vadd.f32 %v4133_v37, %v3941_v40  ;;  %v3943_v56 = vadd.f32 %v3942_v0, %v7323_v2 }
 0x1d5   : > { %v3946_v38 = vpop.f32.mrf.mxu0  ;;  %4637 = vmatmul.mubr.bf16.gmra.mxu0 %v5507_v61  ;;  %v5523_v61 = vcombine.low %v402_v12, %v410_v14 }
 0x1d6   : > { %v4139_v60 = vpop.f32.mrf.mxu1  ;;  %4830 = vmatmul.mubr.bf16.gmra.mxu1 %v5509_v36  ;;  %v7807_v44 = vadd.f32 %v4135_v18, %v3943_v56  ;;  %v3947_v58 = vadd.f32 %v3946_v38, %v7331_v27  ;;  %4646 = vmatprep.mubr.bf16.mxu0 %v5524_v31  ;;  %v5525_v36 = vcombine.low %v403_v52, %v411_v26 }
 0x1d7   : > { %4839 = vmatprep.mubr.bf16.mxu1 %v5526_v46  ;;  %v3948_v21 = vpop.f32.mrf.mxu0  ;;  %v5540_v31 = vcombine.high %v418_v9, %v426_v39  ;;  %v5542_v46 = vcombine.high %v419_v24, %v427_v57 }
 0x1d8   : > { %v4141_v63 = vpop.f32.mrf.mxu1  ;;  %v7814_v37 = vadd.f32 %v4139_v60, %v3947_v58  ;;  %v3949_v2 = vadd.f32 %v3948_v21, %v7351_v54 }
 0x1d9   : > { %v3950_v40 = vpop.f32.mrf.mxu0 }
 0x1da   : > { %v4143_v0 = vpop.f32.mrf.mxu1  ;;  %v7817_v18 = vadd.f32 %v4141_v63, %v3949_v2  ;;  %v3951_v27 = vadd.f32 %v3950_v40, %v7363_v16  ;;  %v434_v16 = vld [vmem:[%s6607_s12 + $0x230] sm:$0xff]  ;;  %v435_v2 = vld [vmem:[%s6607_s12 + $0x238] sm:$0xff] }
 0x1db   : > { %v3952_v56 = vpop.f32.mrf.mxu0  ;;  %v442_v63 = vld [vmem:[%s6607_s12 + $0x270] sm:$0xff]  ;;  %v443_v40 = vld [vmem:[%s6607_s12 + $0x278] sm:$0xff] }
 0x1dc   : > { %v4145_v38 = vpop.f32.mrf.mxu1  ;;  %v7820_v60 = vadd.f32 %v4143_v0, %v3951_v27  ;;  %v3953_v54 = vadd.f32 %v3952_v56, %v7375_v43  ;;  %v8381_v27 = vld [vmem:[#allocation2_spill] sm:$0xff] }
 0x1dd   : > { %v3956_v58 = vpop.f32.mrf.mxu0  ;;  %4647 = vmatmul.mubr.bf16.gmra.mxu0 %v5523_v61  ;;  %v5539_v61 = vcombine.low %v418_v9, %v426_v39  ;;  %v8387_v39 = vld [vmem:[#allocation5_spill] sm:$0xff] }
 0x1de   : > { %8378 = vst [vmem:[#allocation25_spill] sm:$0xff] %v7820_v60  ;;  %v4149_v21 = vpop.f32.mrf.mxu1  ;;  %4840 = vmatmul.mubr.bf16.gmra.mxu1 %v5525_v36  ;;  %v7823_v12 = vadd.f32 %v4145_v38, %v3953_v54  ;;  %v3957_v14 = vadd.f32 %v3956_v58, %v7383_v33  ;;  %4656 = vmatprep.mubr.bf16.mxu0 %v5540_v31  ;;  %v8383_v54 = vld [vmem:[#allocation3_spill] sm:$0xff] }
 0x1df   : > { %4849 = vmatprep.mubr.bf16.mxu1 %v5542_v46  ;;  %v3958_v52 = vpop.f32.mrf.mxu0  ;;  %v5541_v36 = vcombine.low %v419_v24, %v427_v57  ;;  %v5556_v31 = vcombine.high %v434_v16, %v442_v63  ;;  %v5558_v46 = vcombine.high %v435_v2, %v443_v40  ;;  %v450_v57 = vld [vmem:[%s6607_s12 + $0x2b0] sm:$0xff] }
 0x1e0   : > { %8379 = vst [vmem:[#allocation26_spill] sm:$0xff] %v7823_v12  ;;  %v4151_v26 = vpop.f32.mrf.mxu1  ;;  %v7830_v0 = vadd.f32 %v4149_v21, %v3957_v14  ;;  %v3959_v43 = vadd.f32 %v3958_v52, %v8381_v27  ;;  %v8385_v14 = vld [vmem:[#allocation4_spill] sm:$0xff] }
 0x1e1   : > { %v3960_v56 = vpop.f32.mrf.mxu0 }
 0x1e2   : > { %8380 = vst [vmem:[#allocation27_spill] sm:$0xff] %v7830_v0  ;;  %v4153_v60 = vpop.f32.mrf.mxu1  ;;  %v7833_v38 = vadd.f32 %v4151_v26, %v3959_v43  ;;  %v3961_v33 = vadd.f32 %v3960_v56, %v8383_v54  ;;  %v458_v56 = vld [vmem:[%s6607_s12 + $0x2f0] sm:$0xff]  ;;  %v451_v54 = vld [vmem:[%s6607_s12 + $0x2b8] sm:$0xff] }
 0x1e3   : > { %v3962_v58 = vpop.f32.mrf.mxu0 }
 0x1e4   : > { %8382 = vst [vmem:[#allocation2_spill] sm:$0xff] %v7833_v38  ;;  %v4155_v12 = vpop.f32.mrf.mxu1  ;;  %v7836_v21 = vadd.f32 %v4153_v60, %v3961_v33  ;;  %v3963_v52 = vadd.f32 %v3962_v58, %v8385_v14  ;;  %v459_v38 = vld [vmem:[%s6607_s12 + $0x2f8] sm:$0xff]  ;;  %v8389_v33 = vld [vmem:[#allocation6_spill] sm:$0xff] }
 0x1e5   : > { %v3966_v27 = vpop.f32.mrf.mxu0  ;;  %4657 = vmatmul.mubr.bf16.gmra.mxu0 %v5539_v61  ;;  %v5555_v61 = vcombine.low %v434_v16, %v442_v63  ;;  %v8395_v63 = vld [vmem:[#allocation9_spill] sm:$0xff] }
 0x1e6   : > { %8384 = vst [vmem:[#allocation3_spill] sm:$0xff] %v7836_v21  ;;  %v4159_v0 = vpop.f32.mrf.mxu1  ;;  %4850 = vmatmul.mubr.bf16.gmra.mxu1 %v5541_v36  ;;  %v7839_v9 = vadd.f32 %v4155_v12, %v3963_v52  ;;  %v3967_v24 = vadd.f32 %v3966_v27, %v8387_v39  ;;  %4666 = vmatprep.mubr.bf16.mxu0 %v5556_v31  ;;  %v8391_v52 = vld [vmem:[#allocation7_spill] sm:$0xff] }
 0x1e7   : > { %4859 = vmatprep.mubr.bf16.mxu1 %v5558_v46  ;;  %v3968_v26 = vpop.f32.mrf.mxu0  ;;  %v5557_v36 = vcombine.low %v435_v2, %v443_v40  ;;  %v5572_v46 = vcombine.high %v450_v57, %v458_v56  ;;  %v5574_v27 = vcombine.high %v451_v54, %v459_v38  ;;  %v466_v40 = vld [vmem:[%s6607_s12 + $0x330] sm:$0xff] }
 0x1e8   : > { %8386 = vst [vmem:[#allocation4_spill] sm:$0xff] %v7839_v9  ;;  %v4161_v43 = vpop.f32.mrf.mxu1  ;;  %v7846_v60 = vadd.f32 %v4159_v0, %v3967_v24  ;;  %v3969_v58 = vadd.f32 %v3968_v26, %v8389_v33  ;;  %v8393_v24 = vld [vmem:[#allocation8_spill] sm:$0xff] }
 0x1e9   : > { %v3970_v14 = vpop.f32.mrf.mxu0 }
 0x1ea   : > { %8388 = vst [vmem:[#allocation5_spill] sm:$0xff] %v7846_v60  ;;  %v4163_v21 = vpop.f32.mrf.mxu1  ;;  %v7849_v12 = vadd.f32 %v4161_v43, %v3969_v58  ;;  %v3971_v31 = vadd.f32 %v3970_v14, %v8391_v52  ;;  %v474_v14 = vld [vmem:[%s6607_s12 + $0x370] sm:$0xff]  ;;  %v467_v52 = vld [vmem:[%s6607_s12 + $0x338] sm:$0xff] }
 0x1eb   : > { %v3972_v39 = vpop.f32.mrf.mxu0 }
 0x1ec   : > { %8390 = vst [vmem:[#allocation6_spill] sm:$0xff] %v7849_v12  ;;  %v4165_v9 = vpop.f32.mrf.mxu1  ;;  %v7852_v0 = vadd.f32 %v4163_v21, %v3971_v31  ;;  %v3973_v26 = vadd.f32 %v3972_v39, %v8393_v24  ;;  %v475_v12 = vld [vmem:[%s6607_s12 + $0x378] sm:$0xff]  ;;  %v8397_v31 = vld [vmem:[#allocation10_spill] sm:$0xff] }
 0x1ed   : > { %v3976_v33 = vpop.f32.mrf.mxu0  ;;  %4667 = vmatmul.mubr.bf16.gmra.mxu0 %v5555_v61  ;;  %v5571_v61 = vcombine.low %v450_v57, %v458_v56  ;;  %v8403_v57 = vld [vmem:[#allocation13_spill] sm:$0xff] }
 0x1ee   : > { %8392 = vst [vmem:[#allocation7_spill] sm:$0xff] %v7852_v0  ;;  %v4169_v60 = vpop.f32.mrf.mxu1  ;;  %4860 = vmatmul.mubr.bf16.gmra.mxu1 %v5557_v36  ;;  %v7855_v16 = vadd.f32 %v4165_v9, %v3973_v26  ;;  %v3977_v2 = vadd.f32 %v3976_v33, %v8395_v63  ;;  %4676 = vmatprep.mubr.bf16.mxu0 %v5572_v46  ;;  %v8399_v26 = vld [vmem:[#allocation11_spill] sm:$0xff] }
 0x1ef   : > { %4869 = vmatprep.mubr.bf16.mxu1 %v5574_v27  ;;  %v3978_v43 = vpop.f32.mrf.mxu0  ;;  %v5573_v36 = vcombine.low %v451_v54, %v459_v38  ;;  %v5588_v27 = vcombine.high %v466_v40, %v474_v14  ;;  %v5590_v33 = vcombine.high %v467_v52, %v475_v12  ;;  %v482_v54 = vld [vmem:[%s6607_s12 + $0x3b0] sm:$0xff] }
 0x1f0   : > { %8394 = vst [vmem:[#allocation8_spill] sm:$0xff] %v7855_v16  ;;  %v4171_v58 = vpop.f32.mrf.mxu1  ;;  %v7862_v21 = vadd.f32 %v4169_v60, %v3977_v2  ;;  %v3979_v39 = vadd.f32 %v3978_v43, %v8397_v31  ;;  %v8401_v2 = vld [vmem:[#allocation12_spill] sm:$0xff] }
 0x1f1   : > { %v3980_v24 = vpop.f32.mrf.mxu0 }
 0x1f2   : > { %8396 = vst [vmem:[#allocation9_spill] sm:$0xff] %v7862_v21  ;;  %v4173_v0 = vpop.f32.mrf.mxu1  ;;  %v7865_v9 = vadd.f32 %v4171_v58, %v3979_v39  ;;  %v3981_v46 = vadd.f32 %v3980_v24, %v8399_v26  ;;  %v490_v24 = vld [vmem:[%s6607_s12 + $0x3f0] sm:$0xff]  ;;  %v483_v26 = vld [vmem:[%s6607_s12 + $0x3b8] sm:$0xff] }
 0x1f3   : > { %v3982_v63 = vpop.f32.mrf.mxu0 }
 0x1f4   : > { %8398 = vst [vmem:[#allocation10_spill] sm:$0xff] %v7865_v9  ;;  %v4175_v16 = vpop.f32.mrf.mxu1  ;;  %v7868_v60 = vadd.f32 %v4173_v0, %v3981_v46  ;;  %v3983_v43 = vadd.f32 %v3982_v63, %v8401_v2  ;;  %v491_v9 = vld [vmem:[%s6607_s12 + $0x3f8] sm:$0xff]  ;;  %v8405_v46 = vld [vmem:[#allocation14_spill] sm:$0xff] }
 0x1f5   : > { %v3986_v31 = vpop.f32.mrf.mxu0  ;;  %4677 = vmatmul.mubr.bf16.gmra.mxu0 %v5571_v61  ;;  %v5587_v61 = vcombine.low %v466_v40, %v474_v14  ;;  %v8411_v40 = vld [vmem:[#allocation17_spill] sm:$0xff] }
 0x1f6   : > { %8400 = vst [vmem:[#allocation11_spill] sm:$0xff] %v7868_v60  ;;  %v4179_v21 = vpop.f32.mrf.mxu1  ;;  %4870 = vmatmul.mubr.bf16.gmra.mxu1 %v5573_v36  ;;  %v7871_v38 = vadd.f32 %v4175_v16, %v3983_v43  ;;  %v3987_v56 = vadd.f32 %v3986_v31, %v8403_v57  ;;  %4686 = vmatprep.mubr.bf16.mxu0 %v5588_v27  ;;  %v8407_v43 = vld [vmem:[#allocation15_spill] sm:$0xff] }
 0x1f7   : > { %4879 = vmatprep.mubr.bf16.mxu1 %v5590_v33  ;;  %v3988_v58 = vpop.f32.mrf.mxu0  ;;  %v5589_v36 = vcombine.low %v467_v52, %v475_v12  ;;  %v5604_v33 = vcombine.high %v482_v54, %v490_v24  ;;  %v5606_v31 = vcombine.high %v483_v26, %v491_v9  ;;  %v498_v52 = vld [vmem:[%s6607_s12 + $0x430] sm:$0xff] }
 0x1f8   : > { %8402 = vst [vmem:[#allocation12_spill] sm:$0xff] %v7871_v38  ;;  %v4181_v39 = vpop.f32.mrf.mxu1  ;;  %v7878_v0 = vadd.f32 %v4179_v21, %v3987_v56  ;;  %v3989_v63 = vadd.f32 %v3988_v58, %v8405_v46  ;;  %v8409_v56 = vld [vmem:[#allocation16_spill] sm:$0xff] }
 0x1f9   : > { %v3990_v2 = vpop.f32.mrf.mxu0 }
 0x1fa   : > { %8404 = vst [vmem:[#allocation13_spill] sm:$0xff] %v7878_v0  ;;  %v4183_v60 = vpop.f32.mrf.mxu1  ;;  %v7881_v16 = vadd.f32 %v4181_v39, %v3989_v63  ;;  %v3991_v27 = vadd.f32 %v3990_v2, %v8407_v43  ;;  %v506_v2 = vld [vmem:[%s6607_s12 + $0x470] sm:$0xff]  ;;  %v499_v43 = vld [vmem:[%s6607_s12 + $0x438] sm:$0xff] }
 0x1fb   : > { %v3992_v57 = vpop.f32.mrf.mxu0 }
 0x1fc   : > { %8406 = vst [vmem:[#allocation14_spill] sm:$0xff] %v7881_v16  ;;  %v4185_v38 = vpop.f32.mrf.mxu1  ;;  %v7884_v21 = vadd.f32 %v4183_v60, %v3991_v27  ;;  %v3993_v58 = vadd.f32 %v3992_v57, %v8409_v56  ;;  %v507_v16 = vld [vmem:[%s6607_s12 + $0x478] sm:$0xff]  ;;  %v8413_v27 = vld [vmem:[#allocation18_spill] sm:$0xff] }
 0x1fd   : > { %v3996_v46 = vpop.f32.mrf.mxu0  ;;  %4687 = vmatmul.mubr.bf16.gmra.mxu0 %v5587_v61  ;;  %v5603_v61 = vcombine.low %v482_v54, %v490_v24  ;;  %v8419_v54 = vld [vmem:[#allocation21_spill] sm:$0xff] }
 0x1fe   : > { %8408 = vst [vmem:[#allocation15_spill] sm:$0xff] %v7884_v21  ;;  %v4189_v0 = vpop.f32.mrf.mxu1  ;;  %4880 = vmatmul.mubr.bf16.gmra.mxu1 %v5589_v36  ;;  %v7887_v12 = vadd.f32 %v4185_v38, %v3993_v58  ;;  %v3997_v14 = vadd.f32 %v3996_v46, %v8411_v40  ;;  %4696 = vmatprep.mubr.bf16.mxu0 %v5604_v33  ;;  %v8415_v58 = vld [vmem:[#allocation19_spill] sm:$0xff] }
 0x1ff   : > { %4889 = vmatprep.mubr.bf16.mxu1 %v5606_v31  ;;  %v3998_v39 = vpop.f32.mrf.mxu0  ;;  %v5605_v36 = vcombine.low %v483_v26, %v491_v9  ;;  %v5620_v31 = vcombine.high %v498_v52, %v506_v2  ;;  %v5622_v46 = vcombine.high %v499_v43, %v507_v16  ;;  %v514_v26 = vld [vmem:[%s6607_s12 + $0x4b0] sm:$0xff] }
 0x200   : > { %8410 = vst [vmem:[#allocation16_spill] sm:$0xff] %v7887_v12  ;;  %v4191_v63 = vpop.f32.mrf.mxu1  ;;  %v7894_v60 = vadd.f32 %v4189_v0, %v3997_v14  ;;  %v3999_v57 = vadd.f32 %v3998_v39, %v8413_v27  ;;  %v8417_v14 = vld [vmem:[#allocation20_spill] sm:$0xff] }
 0x201   : > { %v4000_v56 = vpop.f32.mrf.mxu0 }
 0x202   : > { %8412 = vst [vmem:[#allocation17_spill] sm:$0xff] %v7894_v60  ;;  %v4193_v21 = vpop.f32.mrf.mxu1  ;;  %v7897_v38 = vadd.f32 %v4191_v63, %v3999_v57  ;;  %v4001_v33 = vadd.f32 %v4000_v56, %v8415_v58  ;;  %v522_v56 = vld [vmem:[%s6607_s12 + $0x4f0] sm:$0xff]  ;;  %v515_v58 = vld [vmem:[%s6607_s12 + $0x4b8] sm:$0xff] }
 0x203   : > { %v4002_v40 = vpop.f32.mrf.mxu0 }
 0x204   : > { %8414 = vst [vmem:[#allocation18_spill] sm:$0xff] %v7897_v38  ;;  %v4195_v12 = vpop.f32.mrf.mxu1  ;;  %v7900_v0 = vadd.f32 %v4193_v21, %v4001_v33  ;;  %v4003_v39 = vadd.f32 %v4002_v40, %v8417_v14  ;;  %v523_v38 = vld [vmem:[%s6607_s12 + $0x4f8] sm:$0xff]  ;;  %v8421_v33 = vld [vmem:[#allocation22_spill] sm:$0xff] }
 0x205   : > { %v4006_v27 = vpop.f32.mrf.mxu0  ;;  %4697 = vmatmul.mubr.bf16.gmra.mxu0 %v5603_v61  ;;  %v5619_v61 = vcombine.low %v498_v52, %v506_v2  ;;  %v530_v2 = vld [vmem:[%s6607_s12 + $0x530] sm:$0xff] }
 0x206   : > { %8416 = vst [vmem:[#allocation19_spill] sm:$0xff] %v7900_v0  ;;  %v4199_v60 = vpop.f32.mrf.mxu1  ;;  %4890 = vmatmul.mubr.bf16.gmra.mxu1 %v5605_v36  ;;  %v7903_v9 = vadd.f32 %v4195_v12, %v4003_v39  ;;  %v4007_v24 = vadd.f32 %v4006_v27, %v8419_v54  ;;  %4706 = vmatprep.mubr.bf16.mxu0 %v5620_v31  ;;  %v8422_v39 = vld [vmem:[#allocation23_spill] sm:$0xff] }
 0x207   : > { %4899 = vmatprep.mubr.bf16.mxu1 %v5622_v46  ;;  %v4008_v63 = vpop.f32.mrf.mxu0  ;;  %v5621_v36 = vcombine.low %v499_v43, %v507_v16  ;;  %v5636_v46 = vcombine.high %v514_v26, %v522_v56  ;;  %v5638_v27 = vcombine.high %v515_v58, %v523_v38 }
 0x208   : > { %8418 = vst [vmem:[#allocation20_spill] sm:$0xff] %v7903_v9  ;;  %v4201_v57 = vpop.f32.mrf.mxu1  ;;  %v7910_v21 = vadd.f32 %v4199_v60, %v4007_v24  ;;  %v4009_v40 = vadd.f32 %v4008_v63, %v8421_v33  ;;  %v8423_v24 = vld [vmem:[#allocation24_spill] sm:$0xff] }
 0x209   : > { %v4010_v14 = vpop.f32.mrf.mxu0 }
 0x20a   : > { %8420 = vst [vmem:[#allocation21_spill] sm:$0xff] %v7910_v21  ;;  %v4203_v0 = vpop.f32.mrf.mxu1  ;;  %v7913_v12 = vadd.f32 %v4201_v57, %v4009_v40  ;;  %v4011_v31 = vadd.f32 %v4010_v14, %v8422_v39  ;;  %v538_v40 = vld [vmem:[%s6607_s12 + $0x570] sm:$0xff]  ;;  %v531_v14 = vld [vmem:[%s6607_s12 + $0x538] sm:$0xff] }
 0x20b   : > { %v4012_v54 = vpop.f32.mrf.mxu0  ;;  %v539_v39 = vld [vmem:[%s6607_s12 + $0x578] sm:$0xff] }
 0x20c   : > { %v4205_v9 = vpop.f32.mrf.mxu1  ;;  %v7916_v60 = vadd.f32 %v4203_v0, %v4011_v31  ;;  %v4013_v63 = vadd.f32 %v4012_v54, %v8423_v24 }
 0x20d   : > { %v4242_v33 = vpop.f32.mrf.mxu0  ;;  %4707 = vmatmul.mubr.bf16.gmra.mxu0 %v5619_v61  ;;  %v5635_v61 = vcombine.low %v514_v26, %v522_v56 }
 0x20e   : > { %v4435_v21 = vpop.f32.mrf.mxu1  ;;  %4900 = vmatmul.mubr.bf16.gmra.mxu1 %v5621_v36  ;;  %v7919_v16 = vadd.f32 %v4205_v9, %v4013_v63  ;;  %v4243_v52 = vadd.f32 %v4242_v33, %v7670_v32  ;;  %4716 = vmatprep.mubr.bf16.mxu0 %v5636_v46  ;;  %v5637_v36 = vcombine.low %v515_v58, %v523_v38 }
 0x20f   : > { %4909 = vmatprep.mubr.bf16.mxu1 %v5638_v27  ;;  %v4244_v43 = vpop.f32.mrf.mxu0  ;;  %v5652_v46 = vcombine.high %v530_v2, %v538_v40  ;;  %v5654_v27 = vcombine.high %v531_v14, %v539_v39 }
 0x210   : > { %v4437_v57 = vpop.f32.mrf.mxu1  ;;  %v7926_v0 = vadd.f32 %v4435_v21, %v4243_v52  ;;  %v4245_v31 = vadd.f32 %v4244_v43, %v7673_v48 }
 0x211   : > { %v4246_v54 = vpop.f32.mrf.mxu0 }
 0x212   : > { %v4439_v24 = vpop.f32.mrf.mxu1  ;;  %v7929_v9 = vadd.f32 %v4437_v57, %v4245_v31  ;;  %v4247_v32 = vadd.f32 %v4246_v54, %v7676_v49  ;;  %v546_v49 = vld [vmem:[%s6607_s12 + $0x5b0] sm:$0xff]  ;;  %v547_v31 = vld [vmem:[%s6607_s12 + $0x5b8] sm:$0xff] }
 0x213   : > { %v4248_v63 = vpop.f32.mrf.mxu0  ;;  %v554_v57 = vld [vmem:[%s6607_s12 + $0x5f0] sm:$0xff]  ;;  %v555_v54 = vld [vmem:[%s6607_s12 + $0x5f8] sm:$0xff] }
 0x214   : > { %v4441_v33 = vpop.f32.mrf.mxu1  ;;  %v7932_v21 = vadd.f32 %v4439_v24, %v4247_v32  ;;  %v4249_v48 = vadd.f32 %v4248_v63, %v7679_v4 }
 0x215   : > { %v4252_v52 = vpop.f32.mrf.mxu0  ;;  %4717 = vmatmul.mubr.bf16.gmra.mxu0 %v5635_v61  ;;  %v5651_v61 = vcombine.low %v530_v2, %v538_v40 }
 0x216   : > { %v4445_v43 = vpop.f32.mrf.mxu1  ;;  %4910 = vmatmul.mubr.bf16.gmra.mxu1 %v5637_v36  ;;  %v7935_v38 = vadd.f32 %v4441_v33, %v4249_v48  ;;  %v4253_v26 = vadd.f32 %v4252_v52, %v7686_v10  ;;  %4726 = vmatprep.mubr.bf16.mxu0 %v5652_v46  ;;  %v5653_v36 = vcombine.low %v531_v14, %v539_v39 }
 0x217   : > { %4919 = vmatprep.mubr.bf16.mxu1 %v5654_v27  ;;  %v4254_v56 = vpop.f32.mrf.mxu0  ;;  %v5668_v46 = vcombine.high %v546_v49, %v554_v57  ;;  %v5670_v27 = vcombine.high %v547_v31, %v555_v54 }
 0x218   : > { %v4447_v58 = vpop.f32.mrf.mxu1  ;;  %v7942_v24 = vadd.f32 %v4445_v43, %v4253_v26  ;;  %v4255_v4 = vadd.f32 %v4254_v56, %v7689_v42 }
 0x219   : > { %v4256_v32 = vpop.f32.mrf.mxu0 }
 0x21a   : > { %v4449_v63 = vpop.f32.mrf.mxu1  ;;  %v7945_v33 = vadd.f32 %v4447_v58, %v4255_v4  ;;  %v4257_v10 = vadd.f32 %v4256_v32, %v7692_v41  ;;  %v562_v41 = vld [vmem:[%s6607_s12 + $0x630] sm:$0xff]  ;;  %v563_v4 = vld [vmem:[%s6607_s12 + $0x638] sm:$0xff] }
 0x21b   : > { %v4258_v48 = vpop.f32.mrf.mxu0  ;;  %v570_v58 = vld [vmem:[%s6607_s12 + $0x670] sm:$0xff]  ;;  %v571_v32 = vld [vmem:[%s6607_s12 + $0x678] sm:$0xff] }
 0x21c   : > { %v4451_v52 = vpop.f32.mrf.mxu1  ;;  %v7948_v43 = vadd.f32 %v4449_v63, %v4257_v10  ;;  %v4259_v42 = vadd.f32 %v4258_v48, %v7695_v51 }
 0x21d   : > { %v4262_v26 = vpop.f32.mrf.mxu0  ;;  %4727 = vmatmul.mubr.bf16.gmra.mxu0 %v5651_v61  ;;  %v5667_v61 = vcombine.low %v546_v49, %v554_v57 }
 0x21e   : > { %v4455_v56 = vpop.f32.mrf.mxu1  ;;  %4920 = vmatmul.mubr.bf16.gmra.mxu1 %v5653_v36  ;;  %v7951_v2 = vadd.f32 %v4451_v52, %v4259_v42  ;;  %v4263_v40 = vadd.f32 %v4262_v26, %v7702_v23  ;;  %4736 = vmatprep.mubr.bf16.mxu0 %v5668_v46  ;;  %v5669_v36 = vcombine.low %v547_v31, %v555_v54 }
 0x21f   : > { %4929 = vmatprep.mubr.bf16.mxu1 %v5670_v27  ;;  %v4264_v14 = vpop.f32.mrf.mxu0  ;;  %v5684_v46 = vcombine.high %v562_v41, %v570_v58  ;;  %v5686_v27 = vcombine.high %v563_v4, %v571_v32 }
 0x220   : > { %v4457_v39 = vpop.f32.mrf.mxu1  ;;  %v7958_v63 = vadd.f32 %v4455_v56, %v4263_v40  ;;  %v4265_v51 = vadd.f32 %v4264_v14, %v7705_v17 }
 0x221   : > { %v4266_v10 = vpop.f32.mrf.mxu0 }
 0x222   : > { %v4459_v48 = vpop.f32.mrf.mxu1  ;;  %v7961_v52 = vadd.f32 %v4457_v39, %v4265_v51  ;;  %v4267_v23 = vadd.f32 %v4266_v10, %v7708_v62  ;;  %v578_v62 = vld [vmem:[%s6607_s12 + $0x6b0] sm:$0xff]  ;;  %v579_v51 = vld [vmem:[%s6607_s12 + $0x6b8] sm:$0xff] }
 0x223   : > { %v4268_v42 = vpop.f32.mrf.mxu0  ;;  %v586_v39 = vld [vmem:[%s6607_s12 + $0x6f0] sm:$0xff]  ;;  %v587_v10 = vld [vmem:[%s6607_s12 + $0x6f8] sm:$0xff] }
 0x224   : > { %v4461_v26 = vpop.f32.mrf.mxu1  ;;  %v7964_v56 = vadd.f32 %v4459_v48, %v4267_v23  ;;  %v4269_v17 = vadd.f32 %v4268_v42, %v7711_v30 }
 0x225   : > { %v4272_v40 = vpop.f32.mrf.mxu0  ;;  %4737 = vmatmul.mubr.bf16.gmra.mxu0 %v5667_v61  ;;  %v5683_v61 = vcombine.low %v562_v41, %v570_v58 }
 0x226   : > { %v4465_v14 = vpop.f32.mrf.mxu1  ;;  %4930 = vmatmul.mubr.bf16.gmra.mxu1 %v5669_v36  ;;  %v7967_v49 = vadd.f32 %v4461_v26, %v4269_v17  ;;  %v4273_v57 = vadd.f32 %v4272_v40, %v7718_v25  ;;  %4746 = vmatprep.mubr.bf16.mxu0 %v5684_v46  ;;  %v5685_v36 = vcombine.low %v563_v4, %v571_v32 }
 0x227   : > { %4939 = vmatprep.mubr.bf16.mxu1 %v5686_v27  ;;  %v4274_v31 = vpop.f32.mrf.mxu0  ;;  %v5700_v46 = vcombine.high %v578_v62, %v586_v39  ;;  %v5702_v27 = vcombine.high %v579_v51, %v587_v10 }
 0x228   : > { %v4467_v54 = vpop.f32.mrf.mxu1  ;;  %v7974_v48 = vadd.f32 %v4465_v14, %v4273_v57  ;;  %v4275_v30 = vadd.f32 %v4274_v31, %v7721_v19 }
 0x229   : > { %v4276_v23 = vpop.f32.mrf.mxu0 }
 0x22a   : > { %v4469_v42 = vpop.f32.mrf.mxu1  ;;  %v7977_v26 = vadd.f32 %v4467_v54, %v4275_v30  ;;  %v4277_v25 = vadd.f32 %v4276_v23, %v7724_v29  ;;  %v594_v29 = vld [vmem:[%s6607_s12 + $0x730] sm:$0xff]  ;;  %v595_v30 = vld [vmem:[%s6607_s12 + $0x738] sm:$0xff] }
 0x22b   : > { %v4278_v17 = vpop.f32.mrf.mxu0  ;;  %v602_v54 = vld [vmem:[%s6607_s12 + $0x770] sm:$0xff]  ;;  %v603_v23 = vld [vmem:[%s6607_s12 + $0x778] sm:$0xff] }
 0x22c   : > { %v4471_v40 = vpop.f32.mrf.mxu1  ;;  %v7980_v14 = vadd.f32 %v4469_v42, %v4277_v25  ;;  %v4279_v19 = vadd.f32 %v4278_v17, %v7727_v50 }
 0x22d   : > { %v4282_v57 = vpop.f32.mrf.mxu0  ;;  %4747 = vmatmul.mubr.bf16.gmra.mxu0 %v5683_v61  ;;  %v5699_v61 = vcombine.low %v578_v62, %v586_v39 }
 0x22e   : > { %v4475_v31 = vpop.f32.mrf.mxu1  ;;  %4940 = vmatmul.mubr.bf16.gmra.mxu1 %v5685_v36  ;;  %v7983_v41 = vadd.f32 %v4471_v40, %v4279_v19  ;;  %v4283_v58 = vadd.f32 %v4282_v57, %v7734_v45  ;;  %4756 = vmatprep.mubr.bf16.mxu0 %v5700_v46  ;;  %v5701_v36 = vcombine.low %v579_v51, %v587_v10 }
 0x22f   : > { %4949 = vmatprep.mubr.bf16.mxu1 %v5702_v27  ;;  %v4284_v4 = vpop.f32.mrf.mxu0  ;;  %v5716_v46 = vcombine.high %v594_v29, %v602_v54  ;;  %v5718_v27 = vcombine.high %v595_v30, %v603_v23 }
 0x230   : > { %v4477_v32 = vpop.f32.mrf.mxu1  ;;  %v7990_v42 = vadd.f32 %v4475_v31, %v4283_v58  ;;  %v4285_v50 = vadd.f32 %v4284_v4, %v7737_v5 }
 0x231   : > { %v4286_v25 = vpop.f32.mrf.mxu0 }
 0x232   : > { %v4479_v17 = vpop.f32.mrf.mxu1  ;;  %v7993_v40 = vadd.f32 %v4477_v32, %v4285_v50  ;;  %v4287_v45 = vadd.f32 %v4286_v25, %v7740_v20  ;;  %v610_v20 = vld [vmem:[%s6607_s12 + $0x7b0] sm:$0xff]  ;;  %v611_v50 = vld [vmem:[%s6607_s12 + $0x7b8] sm:$0xff] }
 0x233   : > { %v4288_v19 = vpop.f32.mrf.mxu0  ;;  %v618_v32 = vld [vmem:[%s6607_s12 + $0x7f0] sm:$0xff]  ;;  %v619_v25 = vld [vmem:[%s6607_s12 + $0x7f8] sm:$0xff] }
 0x234   : > { %v4481_v57 = vpop.f32.mrf.mxu1  ;;  %v7996_v31 = vadd.f32 %v4479_v17, %v4287_v45  ;;  %v4289_v5 = vadd.f32 %v4288_v19, %v7743_v6 }
 0x235   : > { %v4292_v58 = vpop.f32.mrf.mxu0  ;;  %4757 = vmatmul.mubr.bf16.gmra.mxu0 %v5699_v61  ;;  %v5715_v61 = vcombine.low %v594_v29, %v602_v54 }
 0x236   : > { %8424 = vst [vmem:[#allocation22_spill] sm:$0xff] %v7996_v31  ;;  %v4485_v4 = vpop.f32.mrf.mxu1  ;;  %4950 = vmatmul.mubr.bf16.gmra.mxu1 %v5701_v36  ;;  %v7999_v62 = vadd.f32 %v4481_v57, %v4289_v5  ;;  %v4293_v39 = vadd.f32 %v4292_v58, %v7750_v1  ;;  %4766 = vmatprep.mubr.bf16.mxu0 %v5716_v46 }
 0x237   : > { %4959 = vmatprep.mubr.bf16.mxu1 %v5718_v27  ;;  %v4294_v51 = vpop.f32.mrf.mxu0  ;;  %v5717_v36 = vcombine.low %v595_v30, %v603_v23  ;;  %v5732_v46 = vcombine.high %v610_v20, %v618_v32  ;;  %v5734_v27 = vcombine.high %v611_v50, %v619_v25 }
 0x238   : > { %8425 = vst [vmem:[#allocation23_spill] sm:$0xff] %v7999_v62  ;;  %v4487_v10 = vpop.f32.mrf.mxu1  ;;  %v8006_v17 = vadd.f32 %v4485_v4, %v4293_v39  ;;  %v4295_v6 = vadd.f32 %v4294_v51, %v7753_v3 }
 0x239   : > { %v4296_v45 = vpop.f32.mrf.mxu0 }
 0x23a   : > { %v4489_v19 = vpop.f32.mrf.mxu1  ;;  %v8009_v57 = vadd.f32 %v4487_v10, %v4295_v6  ;;  %v4297_v1 = vadd.f32 %v4296_v45, %v7756_v35  ;;  %v5731_v6 = vcombine.low %v610_v20, %v618_v32 }
 0x23b   : > { %v4298_v5 = vpop.f32.mrf.mxu0 }
 0x23c   : > { %v4491_v58 = vpop.f32.mrf.mxu1  ;;  %v8012_v62 = vadd.f32 %v4489_v19, %v4297_v1  ;;  %v4299_v31 = vadd.f32 %v4298_v5, %v7759_v28  ;;  %v5733_v28 = vcombine.low %v611_v50, %v619_v25 }
 0x23d   : > { %v4302_v4 = vpop.f32.mrf.mxu0  ;;  %4767 = vmatmul.mubr.bf16.gmra.mxu0 %v5715_v61 }
 0x23e   : > { %v4495_v39 = vpop.f32.mrf.mxu1  ;;  %4960 = vmatmul.mubr.bf16.gmra.mxu1 %v5717_v36  ;;  %v8015_v3 = vadd.f32 %v4491_v58, %v4299_v31  ;;  %v4303_v29 = vadd.f32 %v4302_v4, %v7766_v22  ;;  %4776 = vmatprep.mubr.bf16.mxu0 %v5732_v46 }
 0x23f   : > { %4969 = vmatprep.mubr.bf16.mxu1 %v5734_v27  ;;  %v4304_v54 = vpop.f32.mrf.mxu0 }
 0x240   : > { %v4497_v35 = vpop.f32.mrf.mxu1  ;;  %v8018_v30 = vadd.f32 %v4495_v39, %v4303_v29  ;;  %v4305_v23 = vadd.f32 %v4304_v54, %v7769_v59 }
 0x241   : > { %v4306_v51 = vpop.f32.mrf.mxu0 }
 0x242   : > { %v4499_v10 = vpop.f32.mrf.mxu1  ;;  %v8021_v45 = vadd.f32 %v4497_v35, %v4305_v23  ;;  %v4307_v19 = vadd.f32 %v4306_v51, %v7772_v55 }
 0x243   : > { %v4308_v31 = vpop.f32.mrf.mxu0 }
 0x244   : > { %v4501_v61 = vpop.f32.mrf.mxu1  ;;  %v8024_v36 = vadd.f32 %v4499_v10, %v4307_v19  ;;  %v4309_v22 = vadd.f32 %v4308_v31, %v7775_v53 }
 0x245   : > { %v4312_v1 = vpop.f32.mrf.mxu0  ;;  %4777 = vmatmul.mubr.bf16.gmra.mxu0 %v5731_v6 }
 0x246   : > { %v4505_v46 = vpop.f32.mrf.mxu1  ;;  %4970 = vmatmul.mubr.bf16.gmra.mxu1 %v5733_v28  ;;  %v8027_v27 = vadd.f32 %v4501_v61, %v4309_v22  ;;  %v4313_v59 = vadd.f32 %v4312_v1, %v7782_v47 }
 0x247   : > { %v4314_v20 = vpop.f32.mrf.mxu0 }
 0x248   : > { %v4507_v32 = vpop.f32.mrf.mxu1  ;;  %v8030_v50 = vadd.f32 %v4505_v46, %v4313_v59  ;;  %v4315_v55 = vadd.f32 %v4314_v20, %v7785_v7 }
 0x249   : > { %v4316_v25 = vpop.f32.mrf.mxu0 }
 0x24a   : > { %v4509_v5 = vpop.f32.mrf.mxu1  ;;  %v8033_v58 = vadd.f32 %v4507_v32, %v4315_v55  ;;  %v4317_v53 = vadd.f32 %v4316_v25, %v7788_v11 }
 0x24b   : > { %v4318_v4 = vpop.f32.mrf.mxu0 }
 0x24c   : > { %v4511_v39 = vpop.f32.mrf.mxu1  ;;  %v8036_v29 = vadd.f32 %v4509_v5, %v4317_v53  ;;  %v4319_v54 = vadd.f32 %v4318_v4, %v7791_v15 }
 0x24d   : > { %v4322_v35 = vpop.f32.mrf.mxu0 }
 0x24e   : > { %v4515_v47 = vpop.f32.mrf.mxu1  ;;  %v8039_v23 = vadd.f32 %v4511_v39, %v4319_v54  ;;  %v4323_v51 = vadd.f32 %v4322_v35, %v7798_v8  ;;  %v8426_v39 = vld [vmem:[#allocation25_spill] sm:$0xff] }
 0x24f   : > { %v4324_v10 = vpop.f32.mrf.mxu0 }
 0x250   : > { %v4517_v7 = vpop.f32.mrf.mxu1  ;;  %v8042_v6 = vadd.f32 %v4515_v47, %v4323_v51  ;;  %v4325_v28 = vadd.f32 %v4324_v10, %v7801_v13  ;;  %v8427_v51 = vld [vmem:[#allocation26_spill] sm:$0xff] }
 0x251   : > { %v4326_v19 = vpop.f32.mrf.mxu0 }
 0x252   : > { %v4519_v11 = vpop.f32.mrf.mxu1  ;;  %v8045_v31 = vadd.f32 %v4517_v7, %v4325_v28  ;;  %v4327_v61 = vadd.f32 %v4326_v19, %v7804_v34  ;;  %v8428_v19 = vld [vmem:[#allocation27_spill] sm:$0xff] }
 0x253   : > { %v4328_v22 = vpop.f32.mrf.mxu0 }
 0x254   : > { %v4521_v15 = vpop.f32.mrf.mxu1  ;;  %v8048_v1 = vadd.f32 %v4519_v11, %v4327_v61  ;;  %v4329_v46 = vadd.f32 %v4328_v22, %v7807_v44 }
 0x255   : > { %v4332_v59 = vpop.f32.mrf.mxu0 }
 0x256   : > { %v4525_v8 = vpop.f32.mrf.mxu1  ;;  %v8051_v20 = vadd.f32 %v4521_v15, %v4329_v46  ;;  %v4333_v32 = vadd.f32 %v4332_v59, %v7814_v37  ;;  %v8429_v15 = vld [vmem:[#allocation2_spill] sm:$0xff] }
 0x257   : > { %v4334_v55 = vpop.f32.mrf.mxu0 }
 0x258   : > { %v4527_v13 = vpop.f32.mrf.mxu1  ;;  %v8054_v25 = vadd.f32 %v4525_v8, %v4333_v32  ;;  %v4335_v5 = vadd.f32 %v4334_v55, %v7817_v18  ;;  %v8430_v55 = vld [vmem:[#allocation3_spill] sm:$0xff] }
 0x259   : > { %v4336_v53 = vpop.f32.mrf.mxu0 }
 0x25a   : > { %v4529_v34 = vpop.f32.mrf.mxu1  ;;  %v8057_v4 = vadd.f32 %v4527_v13, %v4335_v5  ;;  %v4337_v54 = vadd.f32 %v4336_v53, %v8426_v39  ;;  %v8432_v39 = vld [vmem:[#allocation4_spill] sm:$0xff] }
 0x25b   : > { %v4338_v35 = vpop.f32.mrf.mxu0 }
 0x25c   : > { %v4531_v44 = vpop.f32.mrf.mxu1  ;;  %v8060_v47 = vadd.f32 %v4529_v34, %v4337_v54  ;;  %v4339_v10 = vadd.f32 %v4338_v35, %v8427_v51 }
 0x25d   : > { %v4342_v7 = vpop.f32.mrf.mxu0 }
 0x25e   : > { %v4535_v37 = vpop.f32.mrf.mxu1  ;;  %v8063_v28 = vadd.f32 %v4531_v44, %v4339_v10  ;;  %v4343_v11 = vadd.f32 %v4342_v7, %v8428_v19  ;;  %v8434_v10 = vld [vmem:[#allocation5_spill] sm:$0xff] }
 0x25f   : > { %v4344_v61 = vpop.f32.mrf.mxu0 }
 0x260   : > { %v4537_v18 = vpop.f32.mrf.mxu1  ;;  %v8066_v22 = vadd.f32 %v4535_v37, %v4343_v11  ;;  %v4345_v46 = vadd.f32 %v4344_v61, %v8429_v15  ;;  %v8436_v61 = vld [vmem:[#allocation6_spill] sm:$0xff] }
 0x261   : > { %v4346_v59 = vpop.f32.mrf.mxu0 }
 0x262   : > { %v4539_v8 = vpop.f32.mrf.mxu1  ;;  %v8069_v32 = vadd.f32 %v4537_v18, %v4345_v46  ;;  %v4347_v13 = vadd.f32 %v4346_v59, %v8430_v55 }
 0x263   : > { %v4348_v5 = vpop.f32.mrf.mxu0 }
 0x264   : > { %v4541_v53 = vpop.f32.mrf.mxu1  ;;  %v8072_v34 = vadd.f32 %v4539_v8, %v4347_v13  ;;  %v4349_v54 = vadd.f32 %v4348_v5, %v8432_v39  ;;  %v8438_v8 = vld [vmem:[#allocation7_spill] sm:$0xff] }
 0x265   : > { %v4352_v35 = vpop.f32.mrf.mxu0 }
 0x266   : > { %8431 = vst [vmem:[#allocation24_spill] sm:$0xff] %v8072_v34  ;;  %v4545_v44 = vpop.f32.mrf.mxu1  ;;  %v8075_v51 = vadd.f32 %v4541_v53, %v4349_v54  ;;  %v4353_v7 = vadd.f32 %v4352_v35, %v8434_v10  ;;  %v8440_v53 = vld [vmem:[#allocation8_spill] sm:$0xff] }
 0x267   : > { %v4354_v37 = vpop.f32.mrf.mxu0 }
 0x268   : > { %8433 = vst [vmem:[#allocation25_spill] sm:$0xff] %v8075_v51  ;;  %v4547_v19 = vpop.f32.mrf.mxu1  ;;  %v8078_v11 = vadd.f32 %v4545_v44, %v4353_v7  ;;  %v4355_v18 = vadd.f32 %v4354_v37, %v8436_v61  ;;  %v8442_v44 = vld [vmem:[#allocation9_spill] sm:$0xff] }
 0x269   : > { %v4356_v15 = vpop.f32.mrf.mxu0 }
 0x26a   : > { %8435 = vst [vmem:[#allocation26_spill] sm:$0xff] %v8078_v11  ;;  %v4549_v46 = vpop.f32.mrf.mxu1  ;;  %v8081_v59 = vadd.f32 %v4547_v19, %v4355_v18  ;;  %v4357_v55 = vadd.f32 %v4356_v15, %v8438_v8  ;;  %v8444_v19 = vld [vmem:[#allocation10_spill] sm:$0xff] }
 0x26b   : > { %v4358_v13 = vpop.f32.mrf.mxu0 }
 0x26c   : > { %8437 = vst [vmem:[#allocation27_spill] sm:$0xff] %v8081_v59  ;;  %v4551_v5 = vpop.f32.mrf.mxu1  ;;  %v8084_v39 = vadd.f32 %v4549_v46, %v4357_v55  ;;  %v4359_v54 = vadd.f32 %v4358_v13, %v8440_v53  ;;  %v8446_v46 = vld [vmem:[#allocation11_spill] sm:$0xff] }
 0x26d   : > { %v4362_v51 = vpop.f32.mrf.mxu0 }
 0x26e   : > { %8439 = vst [vmem:[#allocation2_spill] sm:$0xff] %v8084_v39  ;;  %v4555_v35 = vpop.f32.mrf.mxu1  ;;  %v8087_v10 = vadd.f32 %v4551_v5, %v4359_v54  ;;  %v4363_v7 = vadd.f32 %v4362_v51, %v8442_v44  ;;  %v8448_v5 = vld [vmem:[#allocation12_spill] sm:$0xff] }
 0x26f   : > { %v4364_v11 = vpop.f32.mrf.mxu0 }
 0x270   : > { %8441 = vst [vmem:[#allocation3_spill] sm:$0xff] %v8087_v10  ;;  %v4557_v37 = vpop.f32.mrf.mxu1  ;;  %v8090_v61 = vadd.f32 %v4555_v35, %v4363_v7  ;;  %v4365_v18 = vadd.f32 %v4364_v11, %v8444_v19  ;;  %v8450_v35 = vld [vmem:[#allocation13_spill] sm:$0xff] }
 0x271   : > { %v4366_v59 = vpop.f32.mrf.mxu0 }
 0x272   : > { %8443 = vst [vmem:[#allocation4_spill] sm:$0xff] %v8090_v61  ;;  %v4559_v15 = vpop.f32.mrf.mxu1  ;;  %v8093_v8 = vadd.f32 %v4557_v37, %v4365_v18  ;;  %v4367_v55 = vadd.f32 %v4366_v59, %v8446_v46  ;;  %v8452_v37 = vld [vmem:[#allocation14_spill] sm:$0xff] }
 0x273   : > { %v4368_v39 = vpop.f32.mrf.mxu0 }
 0x274   : > { %8445 = vst [vmem:[#allocation5_spill] sm:$0xff] %v8093_v8  ;;  %v4561_v13 = vpop.f32.mrf.mxu1  ;;  %v8096_v53 = vadd.f32 %v4559_v15, %v4367_v55  ;;  %v4369_v54 = vadd.f32 %v4368_v39, %v8448_v5  ;;  %v8454_v15 = vld [vmem:[#allocation15_spill] sm:$0xff] }
 0x275   : > { %v4372_v10 = vpop.f32.mrf.mxu0 }
 0x276   : > { %8447 = vst [vmem:[#allocation6_spill] sm:$0xff] %v8096_v53  ;;  %v4565_v51 = vpop.f32.mrf.mxu1  ;;  %v8099_v44 = vadd.f32 %v4561_v13, %v4369_v54  ;;  %v4373_v7 = vadd.f32 %v4372_v10, %v8450_v35  ;;  %v8456_v13 = vld [vmem:[#allocation16_spill] sm:$0xff] }
 0x277   : > { %v4374_v61 = vpop.f32.mrf.mxu0 }
 0x278   : > { %8449 = vst [vmem:[#allocation7_spill] sm:$0xff] %v8099_v44  ;;  %v4567_v11 = vpop.f32.mrf.mxu1  ;;  %v8102_v19 = vadd.f32 %v4565_v51, %v4373_v7  ;;  %v4375_v18 = vadd.f32 %v4374_v61, %v8452_v37  ;;  %v8458_v51 = vld [vmem:[#allocation17_spill] sm:$0xff] }
 0x279   : > { %v4376_v8 = vpop.f32.mrf.mxu0 }
 0x27a   : > { %8451 = vst [vmem:[#allocation8_spill] sm:$0xff] %v8102_v19  ;;  %v4569_v59 = vpop.f32.mrf.mxu1  ;;  %v8105_v46 = vadd.f32 %v4567_v11, %v4375_v18  ;;  %v4377_v55 = vadd.f32 %v4376_v8, %v8454_v15  ;;  %v8460_v11 = vld [vmem:[#allocation18_spill] sm:$0xff] }
 0x27b   : > { %v4378_v53 = vpop.f32.mrf.mxu0 }
 0x27c   : > { %8453 = vst [vmem:[#allocation9_spill] sm:$0xff] %v8105_v46  ;;  %v4571_v39 = vpop.f32.mrf.mxu1  ;;  %v8108_v5 = vadd.f32 %v4569_v59, %v4377_v55  ;;  %v4379_v54 = vadd.f32 %v4378_v53, %v8456_v13  ;;  %v8461_v59 = vld [vmem:[#allocation19_spill] sm:$0xff] }
 0x27d   : > { %v4382_v44 = vpop.f32.mrf.mxu0 }
 0x27e   : > { %8455 = vst [vmem:[#allocation10_spill] sm:$0xff] %v8108_v5  ;;  %v4575_v10 = vpop.f32.mrf.mxu1  ;;  %v8111_v35 = vadd.f32 %v4571_v39, %v4379_v54  ;;  %v4383_v7 = vadd.f32 %v4382_v44, %v8458_v51  ;;  %v8463_v39 = vld [vmem:[#allocation20_spill] sm:$0xff] }
 0x27f   : > { %v4384_v19 = vpop.f32.mrf.mxu0 }
 0x280   : > { %8457 = vst [vmem:[#allocation11_spill] sm:$0xff] %v8111_v35  ;;  %v4577_v61 = vpop.f32.mrf.mxu1  ;;  %v8114_v37 = vadd.f32 %v4575_v10, %v4383_v7  ;;  %v4385_v18 = vadd.f32 %v4384_v19, %v8460_v11  ;;  %v5177_v35 = vlaneseq  ;;  %v8464_v10 = vld [vmem:[#allocation21_spill] sm:$0xff] }
 0x281   : > { %v4386_v46 = vpop.f32.mrf.mxu0 }
 0x282   : > { %8459 = vst [vmem:[#allocation12_spill] sm:$0xff] %v8114_v37  ;;  %v4579_v8 = vpop.f32.mrf.mxu1  ;;  %v8117_v15 = vadd.f32 %v4577_v61, %v4385_v18  ;;  %v4387_v55 = vadd.f32 %v4386_v46, %v8461_v59  ;;  %v5178_v46 = vshrl.u32 %v5177_v35, 7 }
 0x283   : > { %v4388_v5 = vpop.f32.mrf.mxu0 }
 0x284   : > { %v4581_v53 = vpop.f32.mrf.mxu1  ;;  %v8120_v13 = vadd.f32 %v4579_v8, %v4387_v55  ;;  %v4389_v54 = vadd.f32 %v4388_v5, %v8463_v39 }
 0x285   : > { %v4392_v44 = vpop.f32.mrf.mxu0 }
 0x286   : > { %8462 = vst [vmem:[#allocation13_spill] sm:$0xff] %v8120_v13  ;;  %v4585_v51 = vpop.f32.mrf.mxu1  ;;  %v8123_v34 = vadd.f32 %v4581_v53, %v4389_v54  ;;  %v4393_v7 = vadd.f32 %v4392_v44, %v8464_v10  ;;  %v5179_v54 = vsub.s32 0, %v5178_v46 }
 0x287   : > { %v4394_v19 = vpop.f32.mrf.mxu0 }
 0x288   : > { %v4587_v11 = vpop.f32.mrf.mxu1  ;;  %v8126_v37 = vadd.f32 %v4585_v51, %v4393_v7  ;;  %v4395_v61 = vadd.f32 %v4394_v19, %v7913_v12  ;;  %v5175_v12 = vld [vmem:[%s8353_s2] sm:$0x3]  ;;  %v5183_v7 = vsub.s32 1, %v5178_v46 }
 0x289   : > { %v4396_v18 = vpop.f32.mrf.mxu0 }
 0x28a   : > { %v4589_v59 = vpop.f32.mrf.mxu1  ;;  %v8129_v8 = vadd.f32 %v4587_v11, %v4395_v61  ;;  %v4397_v5 = vadd.f32 %v4396_v18, %v7916_v60  ;;  %v8141_v61 = vrot.slane %v5175_v12, %v5179_v54 }
 0x28b   : > { %v4398_v55 = vpop.f32.mrf.mxu0 }
 0x28c   : > { %v4591_v39 = vpop.f32.mrf.mxu1  ;;  %v8132_v13 = vadd.f32 %v4589_v59, %v4397_v5  ;;  %v4399_v53 = vadd.f32 %v4398_v55, %v7919_v16  ;;  %v8145_v55 = vrot.slane %v5175_v12, %v5183_v7 }
 0x28d   : > { %v4628_v44 = vpop.f32.mrf.mxu0 }
 0x28e   : > { %8465 = vst [vmem:[#allocation14_spill] sm:$0xff] %v8132_v13  ;;  %v4821_v51 = vpop.f32.mrf.mxu1  ;;  %v8138_v35 = vadd.f32 %v4591_v39, %v4399_v53  ;;  %v4629_v10 = vadd.f32 %v4628_v44, %v7926_v0 }
 0x28f   : > { %v4630_v60 = vpop.f32.mrf.mxu0 }
 0x290   : > { %v4823_v19 = vpop.f32.mrf.mxu1  ;;  %v4822_v11 = vadd.f32 %v4821_v51, %v4629_v10  ;;  %v4631_v18 = vadd.f32 %v4630_v60, %v7929_v9 }
 0x291   : > { %v4632_v16 = vpop.f32.mrf.mxu0 }
 0x292   : > { %v4825_v59 = vpop.f32.mrf.mxu1  ;;  %v4824_v5 = vadd.f32 %v4823_v19, %v4631_v18  ;;  %v4633_v13 = vadd.f32 %v4632_v16, %v7932_v21  ;;  %v5187_v0 = vadd.f32 %v8141_v61, %v4822_v11 }
 0x293   : > { %v4634_v39 = vpop.f32.mrf.mxu0 }
 0x294   : > { %v4827_v53 = vpop.f32.mrf.mxu1  ;;  %v4826_v46 = vadd.f32 %v4825_v59, %v4633_v13  ;;  %v4635_v44 = vadd.f32 %v4634_v39, %v7935_v38  ;;  %v5251_v51 = vmax.f32 %v5187_v0, 0.0  ;;  %v5188_v12 = vadd.f32 %v8145_v55, %v4824_v5 }
 0x295   : > { %v4638_v9 = vpop.f32.mrf.mxu0 }
 0x296   : > { %v4831_v54 = vpop.f32.mrf.mxu1  ;;  %v4828_v21 = vadd.f32 %v4827_v53, %v4635_v44  ;;  %v4639_v10 = vadd.f32 %v4638_v9, %v7942_v24  ;;  %5315 = vst [vmem:[%s8153_s26] sm:$0xff] %v5251_v51  ;;  %v5252_v38 = vmax.f32 %v5188_v12, 0.0  ;;  %v5189_v60 = vadd.f32 %v8141_v61, %v4826_v46 }
 0x297   : > { %v4640_v7 = vpop.f32.mrf.mxu0 }
 0x298   : > { %v4833_v13 = vpop.f32.mrf.mxu1  ;;  %v4641_v19 = vadd.f32 %v4640_v7, %v7945_v33  ;;  %v4832_v11 = vadd.f32 %v4831_v54, %v4639_v10  ;;  %5316 = vst [vmem:[%s8153_s26 + $0x8] sm:$0xff] %v5252_v38  ;;  %v5253_v59 = vmax.f32 %v5189_v60, 0.0  ;;  %v5190_v5 = vadd.f32 %v8145_v55, %v4828_v21 }
 0x299   : > { %v4642_v18 = vpop.f32.mrf.mxu0 }
 0x29a   : > { %v4835_v16 = vpop.f32.mrf.mxu1  ;;  %v4834_v39 = vadd.f32 %v4833_v13, %v4641_v19  ;;  %v4643_v24 = vadd.f32 %v4642_v18, %v7948_v43  ;;  %5317 = vst [vmem:[%s8153_s26 + $0x10] sm:$0xff] %v5253_v59  ;;  %v5254_v44 = vmax.f32 %v5190_v5, 0.0  ;;  %v5191_v33 = vadd.f32 %v8141_v61, %v4832_v11 }
 0x29b   : > { %v4644_v53 = vpop.f32.mrf.mxu0 }
 0x29c   : > { %v4837_v0 = vpop.f32.mrf.mxu1  ;;  %v4836_v9 = vadd.f32 %v4835_v16, %v4643_v24  ;;  %v4645_v46 = vadd.f32 %v4644_v53, %v7951_v2  ;;  %5318 = vst [vmem:[%s8153_s26 + $0x18] sm:$0xff] %v5254_v44  ;;  %v5192_v12 = vadd.f32 %v8145_v55, %v4834_v39  ;;  %v5255_v43 = vmax.f32 %v5191_v33, 0.0 }
 0x29d   : > { %v4648_v54 = vpop.f32.mrf.mxu0 }
 0x29e   : > { %v4841_v51 = vpop.f32.mrf.mxu1  ;;  %v4838_v21 = vadd.f32 %v4837_v0, %v4645_v46  ;;  %v4649_v10 = vadd.f32 %v4648_v54, %v7958_v63  ;;  %v5256_v38 = vmax.f32 %v5192_v12, 0.0  ;;  %v5193_v60 = vadd.f32 %v8141_v61, %v4836_v9  ;;  %5319 = vst [vmem:[%s8153_s26 + $0x20] sm:$0xff] %v5255_v43 }
 0x29f   : > { %v4650_v7 = vpop.f32.mrf.mxu0 }
 0x2a0   : > { %v4843_v13 = vpop.f32.mrf.mxu1  ;;  %v4842_v19 = vadd.f32 %v4841_v51, %v4649_v10  ;;  %v4651_v2 = vadd.f32 %v4650_v7, %v7961_v52  ;;  %5320 = vst [vmem:[%s8153_s26 + $0x28] sm:$0xff] %v5256_v38  ;;  %v5257_v16 = vmax.f32 %v5193_v60, 0.0  ;;  %v5194_v59 = vadd.f32 %v8145_v55, %v4838_v21 }
 0x2a1   : > { %v4652_v11 = vpop.f32.mrf.mxu0 }
 0x2a2   : > { %v4845_v18 = vpop.f32.mrf.mxu1  ;;  %v4653_v63 = vadd.f32 %v4652_v11, %v7964_v56  ;;  %v4844_v5 = vadd.f32 %v4843_v13, %v4651_v2  ;;  %5321 = vst [vmem:[%s8153_s26 + $0x30] sm:$0xff] %v5257_v16  ;;  %v5258_v53 = vmax.f32 %v5194_v59, 0.0  ;;  %v5195_v0 = vadd.f32 %v8141_v61, %v4842_v19 }
 0x2a3   : > { %v4654_v39 = vpop.f32.mrf.mxu0 }
 0x2a4   : > { %v4847_v24 = vpop.f32.mrf.mxu1  ;;  %v4846_v44 = vadd.f32 %v4845_v18, %v4653_v63  ;;  %v4655_v52 = vadd.f32 %v4654_v39, %v7967_v49  ;;  %5322 = vst [vmem:[%s8153_s26 + $0x38] sm:$0xff] %v5258_v53  ;;  %v5259_v33 = vmax.f32 %v5195_v0, 0.0  ;;  %v5196_v56 = vadd.f32 %v8145_v55, %v4844_v5 }
 0x2a5   : > { %v4658_v9 = vpop.f32.mrf.mxu0 }
 0x2a6   : > { %v4851_v46 = vpop.f32.mrf.mxu1  ;;  %v4848_v54 = vadd.f32 %v4847_v24, %v4655_v52  ;;  %v4659_v51 = vadd.f32 %v4658_v9, %v7974_v48  ;;  %5323 = vst [vmem:[%s8153_s26 + $0x40] sm:$0xff] %v5259_v33  ;;  %v5197_v10 = vadd.f32 %v8141_v61, %v4846_v44  ;;  %v5260_v49 = vmax.f32 %v5196_v56, 0.0 }
 0x2a7   : > { %v4660_v12 = vpop.f32.mrf.mxu0 }
 0x2a8   : > { %v4853_v21 = vpop.f32.mrf.mxu1  ;;  %v4852_v43 = vadd.f32 %v4851_v46, %v4659_v51  ;;  %v4661_v7 = vadd.f32 %v4660_v12, %v7977_v26  ;;  %v5261_v60 = vmax.f32 %v5197_v10, 0.0  ;;  %v5198_v19 = vadd.f32 %v8145_v55, %v4848_v54  ;;  %5324 = vst [vmem:[%s8153_s26 + $0x48] sm:$0xff] %v5260_v49 }
 0x2a9   : > { %v4662_v13 = vpop.f32.mrf.mxu0 }
 0x2aa   : > { %v4855_v38 = vpop.f32.mrf.mxu1  ;;  %v4854_v2 = vadd.f32 %v4853_v21, %v4661_v7  ;;  %v4663_v48 = vadd.f32 %v4662_v13, %v7980_v14  ;;  %5325 = vst [vmem:[%s8153_s26 + $0x50] sm:$0xff] %v5261_v60  ;;  %v5262_v16 = vmax.f32 %v5198_v19, 0.0  ;;  %v5199_v59 = vadd.f32 %v8141_v61, %v4852_v43  ;;  %v8466_v21 = vld [vmem:[#allocation22_spill] sm:$0xff] }
 0x2ab   : > { %v4664_v11 = vpop.f32.mrf.mxu0 }
 0x2ac   : > { %v4857_v18 = vpop.f32.mrf.mxu1  ;;  %v4665_v26 = vadd.f32 %v4664_v11, %v7983_v41  ;;  %v4856_v63 = vadd.f32 %v4855_v38, %v4663_v48  ;;  %5326 = vst [vmem:[%s8153_s26 + $0x58] sm:$0xff] %v5262_v16  ;;  %v5263_v24 = vmax.f32 %v5199_v59, 0.0  ;;  %v5200_v53 = vadd.f32 %v8145_v55, %v4854_v2 }
 0x2ad   : > { %v4668_v5 = vpop.f32.mrf.mxu0 }
 0x2ae   : > { %v4861_v39 = vpop.f32.mrf.mxu1  ;;  %v4858_v0 = vadd.f32 %v4857_v18, %v4665_v26  ;;  %v4669_v14 = vadd.f32 %v4668_v5, %v7990_v42  ;;  %5327 = vst [vmem:[%s8153_s26 + $0x60] sm:$0xff] %v5263_v24  ;;  %v5264_v9 = vmax.f32 %v5200_v53, 0.0  ;;  %v5201_v41 = vadd.f32 %v8141_v61, %v4856_v63 }
 0x2af   : > { %v4670_v44 = vpop.f32.mrf.mxu0 }
 0x2b0   : > { %v4863_v52 = vpop.f32.mrf.mxu1  ;;  %v4862_v46 = vadd.f32 %v4861_v39, %v4669_v14  ;;  %v4671_v33 = vadd.f32 %v4670_v44, %v7993_v40  ;;  %5328 = vst [vmem:[%s8153_s26 + $0x68] sm:$0xff] %v5264_v9  ;;  %v5202_v56 = vadd.f32 %v8145_v55, %v4858_v0  ;;  %v5265_v42 = vmax.f32 %v5201_v41, 0.0  ;;  %v8467_v40 = vld [vmem:[#allocation23_spill] sm:$0xff] }
 0x2b1   : > { %v4672_v54 = vpop.f32.mrf.mxu0 }
 0x2b2   : > { %v4865_v51 = vpop.f32.mrf.mxu1  ;;  %v4864_v12 = vadd.f32 %v4863_v52, %v4671_v33  ;;  %v4673_v10 = vadd.f32 %v4672_v54, %v8466_v21  ;;  %v5266_v49 = vmax.f32 %v5202_v56, 0.0  ;;  %v5203_v13 = vadd.f32 %v8141_v61, %v4862_v46  ;;  %5329 = vst [vmem:[%s8153_s26 + $0x70] sm:$0xff] %v5265_v42 }
 0x2b3   : > { %v4674_v43 = vpop.f32.mrf.mxu0 }
 0x2b4   : > { %v4867_v7 = vpop.f32.mrf.mxu1  ;;  %v4866_v38 = vadd.f32 %v4865_v51, %v4673_v10  ;;  %v4675_v60 = vadd.f32 %v4674_v43, %v8467_v40  ;;  %5330 = vst [vmem:[%s8153_s26 + $0x78] sm:$0xff] %v5266_v49  ;;  %v5267_v48 = vmax.f32 %v5203_v13, 0.0  ;;  %v5204_v11 = vadd.f32 %v8145_v55, %v4864_v12 }
 0x2b5   : > { %v4678_v19 = vpop.f32.mrf.mxu0 }
 0x2b6   : > { %v4871_v2 = vpop.f32.mrf.mxu1  ;;  %v4679_v18 = vadd.f32 %v4678_v19, %v8006_v17  ;;  %v4868_v16 = vadd.f32 %v4867_v7, %v4675_v60  ;;  %5331 = vst [vmem:[%s8153_s26 + $0x80] sm:$0xff] %v5267_v48  ;;  %v5268_v63 = vmax.f32 %v5204_v11, 0.0  ;;  %v5205_v5 = vadd.f32 %v8141_v61, %v4866_v38 }
 0x2b7   : > { %v4680_v59 = vpop.f32.mrf.mxu0 }
 0x2b8   : > { %v4873_v26 = vpop.f32.mrf.mxu1  ;;  %v4872_v39 = vadd.f32 %v4871_v2, %v4679_v18  ;;  %v4681_v24 = vadd.f32 %v4680_v59, %v8009_v57  ;;  %5332 = vst [vmem:[%s8153_s26 + $0x88] sm:$0xff] %v5268_v63  ;;  %v5269_v14 = vmax.f32 %v5205_v5, 0.0  ;;  %v5206_v17 = vadd.f32 %v8145_v55, %v4868_v16 }
 0x2b9   : > { %v4682_v53 = vpop.f32.mrf.mxu0 }
 0x2ba   : > { %v4875_v0 = vpop.f32.mrf.mxu1  ;;  %v4874_v44 = vadd.f32 %v4873_v26, %v4681_v24  ;;  %v4683_v52 = vadd.f32 %v4682_v53, %v8012_v62  ;;  %5333 = vst [vmem:[%s8153_s26 + $0x90] sm:$0xff] %v5269_v14  ;;  %v5207_v33 = vadd.f32 %v8141_v61, %v4872_v39  ;;  %v5270_v57 = vmax.f32 %v5206_v17, 0.0 }
 0x2bb   : > { %v4684_v9 = vpop.f32.mrf.mxu0 }
 0x2bc   : > { %v4877_v46 = vpop.f32.mrf.mxu1  ;;  %v4876_v41 = vadd.f32 %v4875_v0, %v4683_v52  ;;  %v4685_v54 = vadd.f32 %v4684_v9, %v8015_v3  ;;  %v5271_v12 = vmax.f32 %v5207_v33, 0.0  ;;  %v5208_v21 = vadd.f32 %v8145_v55, %v4874_v44  ;;  %5334 = vst [vmem:[%s8153_s26 + $0x98] sm:$0xff] %v5270_v57 }
 0x2bd   : > { %v4688_v51 = vpop.f32.mrf.mxu0 }
 0x2be   : > { %v4881_v56 = vpop.f32.mrf.mxu1  ;;  %v4878_v10 = vadd.f32 %v4877_v46, %v4685_v54  ;;  %v4689_v62 = vadd.f32 %v4688_v51, %v8018_v30  ;;  %5335 = vst [vmem:[%s8153_s26 + $0xa0] sm:$0xff] %v5271_v12  ;;  %v5272_v7 = vmax.f32 %v5208_v21, 0.0  ;;  %v5209_v49 = vadd.f32 %v8141_v61, %v4876_v41 }
 0x2bf   : > { %v4690_v42 = vpop.f32.mrf.mxu0 }
 0x2c0   : > { %v4883_v43 = vpop.f32.mrf.mxu1  ;;  %v4691_v3 = vadd.f32 %v4690_v42, %v8021_v45  ;;  %v4882_v13 = vadd.f32 %v4881_v56, %v4689_v62  ;;  %5336 = vst [vmem:[%s8153_s26 + $0xa8] sm:$0xff] %v5272_v7  ;;  %v5273_v60 = vmax.f32 %v5209_v49, 0.0  ;;  %v5210_v19 = vadd.f32 %v8145_v55, %v4878_v10 }
 0x2c1   : > { %v4692_v38 = vpop.f32.mrf.mxu0 }
 0x2c2   : > { %v4885_v40 = vpop.f32.mrf.mxu1  ;;  %v4884_v2 = vadd.f32 %v4883_v43, %v4691_v3  ;;  %v4693_v30 = vadd.f32 %v4692_v38, %v8024_v36  ;;  %5337 = vst [vmem:[%s8153_s26 + $0xb0] sm:$0xff] %v5273_v60  ;;  %v5274_v18 = vmax.f32 %v5210_v19, 0.0  ;;  %v5211_v45 = vadd.f32 %v8141_v61, %v4882_v13 }
 0x2c3   : > { %v4694_v48 = vpop.f32.mrf.mxu0 }
 0x2c4   : > { %v4887_v11 = vpop.f32.mrf.mxu1  ;;  %v4886_v16 = vadd.f32 %v4885_v40, %v4693_v30  ;;  %v4695_v59 = vadd.f32 %v4694_v48, %v8027_v27  ;;  %5338 = vst [vmem:[%s8153_s26 + $0xb8] sm:$0xff] %v5274_v18  ;;  %v5212_v5 = vadd.f32 %v8145_v55, %v4884_v2  ;;  %v5275_v36 = vmax.f32 %v5211_v45, 0.0 }
 0x2c5   : > { %v4698_v26 = vpop.f32.mrf.mxu0 }
 0x2c6   : > { %v4891_v63 = vpop.f32.mrf.mxu1  ;;  %v4888_v39 = vadd.f32 %v4887_v11, %v4695_v59  ;;  %v4699_v24 = vadd.f32 %v4698_v26, %v8030_v50  ;;  %v5276_v14 = vmax.f32 %v5212_v5, 0.0  ;;  %v5213_v44 = vadd.f32 %v8141_v61, %v4886_v16  ;;  %5339 = vst [vmem:[%s8153_s26 + $0xc0] sm:$0xff] %v5275_v36 }
 0x2c7   : > { %v4700_v53 = vpop.f32.mrf.mxu0 }
 0x2c8   : > { %v4893_v0 = vpop.f32.mrf.mxu1  ;;  %v4892_v52 = vadd.f32 %v4891_v63, %v4699_v24  ;;  %v4701_v27 = vadd.f32 %v4700_v53, %v8033_v58  ;;  %5340 = vst [vmem:[%s8153_s26 + $0xc8] sm:$0xff] %v5276_v14  ;;  %v5277_v46 = vmax.f32 %v5213_v44, 0.0  ;;  %v5214_v33 = vadd.f32 %v8145_v55, %v4888_v39 }
 0x2c9   : > { %v4702_v17 = vpop.f32.mrf.mxu0 }
 0x2ca   : > { %v4895_v9 = vpop.f32.mrf.mxu1  ;;  %v4703_v50 = vadd.f32 %v4702_v17, %v8036_v29  ;;  %v4894_v41 = vadd.f32 %v4893_v0, %v4701_v27  ;;  %5341 = vst [vmem:[%s8153_s26 + $0xd0] sm:$0xff] %v5277_v46  ;;  %v5278_v51 = vmax.f32 %v5214_v33, 0.0  ;;  %v5215_v56 = vadd.f32 %v8141_v61, %v4892_v52 }
 0x2cb   : > { %v4704_v54 = vpop.f32.mrf.mxu0 }
 0x2cc   : > { %v4897_v57 = vpop.f32.mrf.mxu1  ;;  %v4896_v12 = vadd.f32 %v4895_v9, %v4703_v50  ;;  %v4705_v58 = vadd.f32 %v4704_v54, %v8039_v23  ;;  %5342 = vst [vmem:[%s8153_s26 + $0xd8] sm:$0xff] %v5278_v51  ;;  %v5279_v62 = vmax.f32 %v5215_v56, 0.0  ;;  %v5216_v29 = vadd.f32 %v8145_v55, %v4894_v41 }
 0x2cd   : > { %v4708_v21 = vpop.f32.mrf.mxu0 }
 0x2ce   : > { %v4901_v10 = vpop.f32.mrf.mxu1  ;;  %v4898_v42 = vadd.f32 %v4897_v57, %v4705_v58  ;;  %v4709_v43 = vadd.f32 %v4708_v21, %v8042_v6  ;;  %5343 = vst [vmem:[%s8153_s26 + $0xe0] sm:$0xff] %v5279_v62  ;;  %v5217_v3 = vadd.f32 %v8141_v61, %v4896_v12  ;;  %v5280_v23 = vmax.f32 %v5216_v29, 0.0 }
 0x2cf   : > { %v4710_v7 = vpop.f32.mrf.mxu0 }
 0x2d0   : > { %v4903_v49 = vpop.f32.mrf.mxu1  ;;  %v4902_v13 = vadd.f32 %v4901_v10, %v4709_v43  ;;  %v4711_v38 = vadd.f32 %v4710_v7, %v8045_v31  ;;  %v5281_v19 = vmax.f32 %v5217_v3, 0.0  ;;  %v5218_v2 = vadd.f32 %v8145_v55, %v4898_v42  ;;  %5344 = vst [vmem:[%s8153_s26 + $0xe8] sm:$0xff] %v5280_v23 }
 0x2d1   : > { %v4712_v40 = vpop.f32.mrf.mxu0 }
 0x2d2   : > { %v4905_v60 = vpop.f32.mrf.mxu1  ;;  %v4904_v30 = vadd.f32 %v4903_v49, %v4711_v38  ;;  %v4713_v6 = vadd.f32 %v4712_v40, %v8048_v1  ;;  %5345 = vst [vmem:[%s8153_s26 + $0xf0] sm:$0xff] %v5281_v19  ;;  %v5282_v18 = vmax.f32 %v5218_v2, 0.0  ;;  %v5219_v16 = vadd.f32 %v8141_v61, %v4902_v13  ;;  %v8468_v13 = vld [vmem:[#allocation24_spill] sm:$0xff]  ;;  %v8469_v2 = vld [vmem:[#allocation25_spill] sm:$0xff] }
 0x2d3   : > { %v4714_v48 = vpop.f32.mrf.mxu0 }
 0x2d4   : > { %v4907_v11 = vpop.f32.mrf.mxu1  ;;  %v4715_v31 = vadd.f32 %v4714_v48, %v8051_v20  ;;  %v4906_v59 = vadd.f32 %v4905_v60, %v4713_v6  ;;  %5346 = vst [vmem:[%s8153_s26 + $0xf8] sm:$0xff] %v5282_v18  ;;  %v5283_v63 = vmax.f32 %v5219_v16, 0.0  ;;  %v5220_v5 = vadd.f32 %v8145_v55, %v4904_v30 }
 0x2d5   : > { %v4718_v45 = vpop.f32.mrf.mxu0 }
 0x2d6   : > { %v4911_v26 = vpop.f32.mrf.mxu1  ;;  %v4908_v39 = vadd.f32 %v4907_v11, %v4715_v31  ;;  %v4719_v1 = vadd.f32 %v4718_v45, %v8054_v25  ;;  %5347 = vst [vmem:[%s8153_s26 + $0x100] sm:$0xff] %v5283_v63  ;;  %v5284_v53 = vmax.f32 %v5220_v5, 0.0  ;;  %v5221_v20 = vadd.f32 %v8141_v61, %v4906_v59  ;;  %v8470_v31 = vld [vmem:[#allocation26_spill] sm:$0xff] }
 0x2d7   : > { %v4720_v24 = vpop.f32.mrf.mxu0 }
 0x2d8   : > { %v4913_v36 = vpop.f32.mrf.mxu1  ;;  %v4912_v0 = vadd.f32 %v4911_v26, %v4719_v1  ;;  %v4721_v14 = vadd.f32 %v4720_v24, %v8057_v4  ;;  %5348 = vst [vmem:[%s8153_s26 + $0x108] sm:$0xff] %v5284_v53  ;;  %v5222_v27 = vadd.f32 %v8145_v55, %v4908_v39  ;;  %v5285_v25 = vmax.f32 %v5221_v20, 0.0  ;;  %v8471_v39 = vld [vmem:[#allocation27_spill] sm:$0xff] }
 0x2d9   : > { %v4722_v44 = vpop.f32.mrf.mxu0 }
 0x2da   : > { %v4915_v52 = vpop.f32.mrf.mxu1  ;;  %v4914_v17 = vadd.f32 %v4913_v36, %v4721_v14  ;;  %v4723_v9 = vadd.f32 %v4722_v44, %v8060_v47  ;;  %v5286_v50 = vmax.f32 %v5222_v27, 0.0  ;;  %v5223_v41 = vadd.f32 %v8141_v61, %v4912_v0  ;;  %5349 = vst [vmem:[%s8153_s26 + $0x110] sm:$0xff] %v5285_v25  ;;  %v8472_v44 = vld [vmem:[#allocation2_spill] sm:$0xff] }
 0x2db   : > { %v4724_v46 = vpop.f32.mrf.mxu0 }
 0x2dc   : > { %v4917_v33 = vpop.f32.mrf.mxu1  ;;  %v4916_v54 = vadd.f32 %v4915_v52, %v4723_v9  ;;  %v4725_v4 = vadd.f32 %v4724_v46, %v8063_v28  ;;  %5350 = vst [vmem:[%s8153_s26 + $0x118] sm:$0xff] %v5286_v50  ;;  %v5287_v56 = vmax.f32 %v5223_v41, 0.0  ;;  %v5224_v12 = vadd.f32 %v8145_v55, %v4914_v17  ;;  %v8473_v46 = vld [vmem:[#allocation3_spill] sm:$0xff] }
 0x2dd   : > { %v4728_v57 = vpop.f32.mrf.mxu0 }
 0x2de   : > { %v4921_v51 = vpop.f32.mrf.mxu1  ;;  %v4729_v47 = vadd.f32 %v4728_v57, %v8066_v22  ;;  %v4918_v58 = vadd.f32 %v4917_v33, %v4725_v4  ;;  %5351 = vst [vmem:[%s8153_s26 + $0x120] sm:$0xff] %v5287_v56  ;;  %v5288_v62 = vmax.f32 %v5224_v12, 0.0  ;;  %v5225_v42 = vadd.f32 %v8141_v61, %v4916_v54 }
 0x2df   : > { %v4730_v21 = vpop.f32.mrf.mxu0 }
 0x2e0   : > { %v4923_v10 = vpop.f32.mrf.mxu1  ;;  %v4922_v43 = vadd.f32 %v4921_v51, %v4729_v47  ;;  %v4731_v28 = vadd.f32 %v4730_v21, %v8069_v32  ;;  %5352 = vst [vmem:[%s8153_s26 + $0x128] sm:$0xff] %v5288_v62  ;;  %v5289_v49 = vmax.f32 %v5225_v42, 0.0  ;;  %v5226_v22 = vadd.f32 %v8145_v55, %v4918_v58  ;;  %v8474_v51 = vld [vmem:[#allocation4_spill] sm:$0xff]  ;;  %v8475_v42 = vld [vmem:[#allocation5_spill] sm:$0xff] }
 0x2e1   : > { %v4732_v29 = vpop.f32.mrf.mxu0 }
 0x2e2   : > { %v4925_v7 = vpop.f32.mrf.mxu1  ;;  %v4924_v3 = vadd.f32 %v4923_v10, %v4731_v28  ;;  %v4733_v38 = vadd.f32 %v4732_v29, %v8468_v13  ;;  %5353 = vst [vmem:[%s8153_s26 + $0x130] sm:$0xff] %v5289_v49  ;;  %v5227_v60 = vadd.f32 %v8141_v61, %v4922_v43  ;;  %v5290_v32 = vmax.f32 %v5226_v22, 0.0 }
 0x2e3   : > { %v4734_v23 = vpop.f32.mrf.mxu0 }
 0x2e4   : > { %v4927_v40 = vpop.f32.mrf.mxu1  ;;  %v4926_v19 = vadd.f32 %v4925_v7, %v4733_v38  ;;  %v4735_v30 = vadd.f32 %v4734_v23, %v8469_v2  ;;  %v5291_v11 = vmax.f32 %v5227_v60, 0.0  ;;  %v5228_v18 = vadd.f32 %v8145_v55, %v4924_v3  ;;  %5354 = vst [vmem:[%s8153_s26 + $0x138] sm:$0xff] %v5290_v32  ;;  %v8476_v3 = vld [vmem:[#allocation6_spill] sm:$0xff]  ;;  %v8477_v2 = vld [vmem:[#allocation7_spill] sm:$0xff] }
 0x2e5   : > { %v4738_v6 = vpop.f32.mrf.mxu0 }
 0x2e6   : > { %v4931_v48 = vpop.f32.mrf.mxu1  ;;  %v4928_v16 = vadd.f32 %v4927_v40, %v4735_v30  ;;  %v4739_v59 = vadd.f32 %v4738_v6, %v8470_v31  ;;  %5355 = vst [vmem:[%s8153_s26 + $0x140] sm:$0xff] %v5291_v11  ;;  %v5292_v63 = vmax.f32 %v5228_v18, 0.0  ;;  %v5229_v5 = vadd.f32 %v8141_v61, %v4926_v19  ;;  %v8478_v18 = vld [vmem:[#allocation8_spill] sm:$0xff] }
 0x2e7   : > { %v4740_v45 = vpop.f32.mrf.mxu0 }
 0x2e8   : > { %v4933_v26 = vpop.f32.mrf.mxu1  ;;  %v4741_v1 = vadd.f32 %v4740_v45, %v8471_v39  ;;  %v4932_v24 = vadd.f32 %v4931_v48, %v4739_v59  ;;  %5356 = vst [vmem:[%s8153_s26 + $0x148] sm:$0xff] %v5292_v63  ;;  %v5293_v0 = vmax.f32 %v5229_v5, 0.0  ;;  %v5230_v14 = vadd.f32 %v8145_v55, %v4928_v16  ;;  %v8479_v5 = vld [vmem:[#allocation9_spill] sm:$0xff] }
 0x2e9   : > { %v4742_v36 = vpop.f32.mrf.mxu0 }
 0x2ea   : > { %v4935_v53 = vpop.f32.mrf.mxu1  ;;  %v4934_v20 = vadd.f32 %v4933_v26, %v4741_v1  ;;  %v4743_v52 = vadd.f32 %v4742_v36, %v8472_v44  ;;  %5357 = vst [vmem:[%s8153_s26 + $0x150] sm:$0xff] %v5293_v0  ;;  %v5294_v9 = vmax.f32 %v5230_v14, 0.0  ;;  %v5231_v50 = vadd.f32 %v8141_v61, %v4932_v24 }
 0x2eb   : > { %v4744_v27 = vpop.f32.mrf.mxu0 }
 0x2ec   : > { %v4937_v17 = vpop.f32.mrf.mxu1  ;;  %v4936_v25 = vadd.f32 %v4935_v53, %v4743_v52  ;;  %v4745_v33 = vadd.f32 %v4744_v27, %v8473_v46  ;;  %5358 = vst [vmem:[%s8153_s26 + $0x158] sm:$0xff] %v5294_v9  ;;  %v5232_v4 = vadd.f32 %v8145_v55, %v4934_v20  ;;  %v5295_v12 = vmax.f32 %v5231_v50, 0.0  ;;  %v8480_v20 = vld [vmem:[#allocation10_spill] sm:$0xff] }
 0x2ed   : > { %v4748_v41 = vpop.f32.mrf.mxu0 }
 0x2ee   : > { %v4941_v54 = vpop.f32.mrf.mxu1  ;;  %v4938_v57 = vadd.f32 %v4937_v17, %v4745_v33  ;;  %v4749_v56 = vadd.f32 %v4748_v41, %v8474_v51  ;;  %v5296_v21 = vmax.f32 %v5232_v4, 0.0  ;;  %v5233_v10 = vadd.f32 %v8141_v61, %v4936_v25  ;;  %5359 = vst [vmem:[%s8153_s26 + $0x160] sm:$0xff] %v5295_v12  ;;  %v8481_v25 = vld [vmem:[#allocation11_spill] sm:$0xff]  ;;  %v8482_v51 = vld [vmem:[#allocation12_spill] sm:$0xff] }
 0x2ef   : > { %v4750_v47 = vpop.f32.mrf.mxu0 }
 0x2f0   : > { %v4943_v58 = vpop.f32.mrf.mxu1  ;;  %v4942_v62 = vadd.f32 %v4941_v54, %v4749_v56  ;;  %v4751_v43 = vadd.f32 %v4750_v47, %v8475_v42  ;;  %5360 = vst [vmem:[%s8153_s26 + $0x168] sm:$0xff] %v5296_v21  ;;  %v5297_v7 = vmax.f32 %v5233_v10, 0.0  ;;  %v5234_v49 = vadd.f32 %v8145_v55, %v4938_v57 }
 0x2f1   : > { %v4752_v28 = vpop.f32.mrf.mxu0 }
 0x2f2   : > { %v4945_v29 = vpop.f32.mrf.mxu1  ;;  %v4753_v13 = vadd.f32 %v4752_v28, %v8476_v3  ;;  %v4944_v38 = vadd.f32 %v4943_v58, %v4751_v43  ;;  %5361 = vst [vmem:[%s8153_s26 + $0x170] sm:$0xff] %v5297_v7  ;;  %v5298_v40 = vmax.f32 %v5234_v49, 0.0  ;;  %v5235_v60 = vadd.f32 %v8141_v61, %v4942_v62  ;;  %v8483_v7 = vld [vmem:[#allocation13_spill] sm:$0xff] }
 0x2f3   : > { %v4754_v22 = vpop.f32.mrf.mxu0 }
 0x2f4   : > { %v4947_v23 = vpop.f32.mrf.mxu1  ;;  %v4946_v19 = vadd.f32 %v4945_v29, %v4753_v13  ;;  %v4755_v30 = vadd.f32 %v4754_v22, %v8477_v2  ;;  %5362 = vst [vmem:[%s8153_s26 + $0x178] sm:$0xff] %v5298_v40  ;;  %v5299_v48 = vmax.f32 %v5235_v60, 0.0  ;;  %v5236_v31 = vadd.f32 %v8145_v55, %v4944_v38 }
 0x2f5   : > { %v4758_v32 = vpop.f32.mrf.mxu0 }
 0x2f6   : > { %v4951_v6 = vpop.f32.mrf.mxu1  ;;  %v4948_v11 = vadd.f32 %v4947_v23, %v4755_v30  ;;  %v4759_v16 = vadd.f32 %v4758_v32, %v8478_v18  ;;  %5363 = vst [vmem:[%s8153_s26 + $0x180] sm:$0xff] %v5299_v48  ;;  %v5237_v26 = vadd.f32 %v8141_v61, %v4946_v19  ;;  %v5300_v1 = vmax.f32 %v5236_v31, 0.0 }
 0x2f7   : > { %v4760_v59 = vpop.f32.mrf.mxu0 }
 0x2f8   : > { %v4953_v45 = vpop.f32.mrf.mxu1  ;;  %v4952_v63 = vadd.f32 %v4951_v6, %v4759_v16  ;;  %v4761_v39 = vadd.f32 %v4760_v59, %v8479_v5  ;;  %v5301_v53 = vmax.f32 %v5237_v26, 0.0  ;;  %v5238_v0 = vadd.f32 %v8145_v55, %v4948_v11  ;;  %5364 = vst [vmem:[%s8153_s26 + $0x188] sm:$0xff] %v5300_v1  ;;  %v8484_v5 = vld [vmem:[#allocation14_spill] sm:$0xff] }
 0x2f9   : > { %v4762_v24 = vpop.f32.mrf.mxu0 }
 0x2fa   : > { %v4955_v36 = vpop.f32.mrf.mxu1  ;;  %v4954_v14 = vadd.f32 %v4953_v45, %v4761_v39  ;;  %v4763_v44 = vadd.f32 %v4762_v24, %v8480_v20  ;;  %5365 = vst [vmem:[%s8153_s26 + $0x190] sm:$0xff] %v5301_v53  ;;  %v5302_v17 = vmax.f32 %v5238_v0, 0.0  ;;  %v5239_v9 = vadd.f32 %v8141_v61, %v4952_v63 }
 0x2fb   : > { %v4764_v52 = vpop.f32.mrf.mxu0 }
 0x2fc   : > { %v4957_v27 = vpop.f32.mrf.mxu1  ;;  %v4765_v46 = vadd.f32 %v4764_v52, %v8481_v25  ;;  %v4956_v33 = vadd.f32 %v4955_v36, %v4763_v44  ;;  %5366 = vst [vmem:[%s8153_s26 + $0x198] sm:$0xff] %v5302_v17  ;;  %v5303_v54 = vmax.f32 %v5239_v9, 0.0  ;;  %v5240_v4 = vadd.f32 %v8145_v55, %v4954_v14 }
 0x2fd   : > { %v4768_v50 = vpop.f32.mrf.mxu0 }
 0x2fe   : > { %v4961_v41 = vpop.f32.mrf.mxu1  ;;  %v4958_v57 = vadd.f32 %v4957_v27, %v4765_v46  ;;  %v4769_v56 = vadd.f32 %v4768_v50, %v8482_v51  ;;  %5367 = vst [vmem:[%s8153_s26 + $0x1a0] sm:$0xff] %v5303_v54  ;;  %v5304_v58 = vmax.f32 %v5240_v4, 0.0  ;;  %v5241_v62 = vadd.f32 %v8141_v61, %v4956_v33 }
 0x2ff   : > { %v4770_v12 = vpop.f32.mrf.mxu0 }
 0x300   : > { %v4963_v47 = vpop.f32.mrf.mxu1  ;;  %v4962_v21 = vadd.f32 %v4961_v41, %v4769_v56  ;;  %v4771_v10 = vadd.f32 %v4770_v12, %v8117_v15  ;;  %5368 = vst [vmem:[%s8153_s26 + $0x1a8] sm:$0xff] %v5304_v58  ;;  %v5242_v28 = vadd.f32 %v8145_v55, %v4958_v57  ;;  %v5305_v3 = vmax.f32 %v5241_v62, 0.0 }
 0x301   : > { %v4772_v42 = vpop.f32.mrf.mxu0 }
 0x302   : > { %v4965_v43 = vpop.f32.mrf.mxu1  ;;  %v4964_v29 = vadd.f32 %v4963_v47, %v4771_v10  ;;  %v4773_v49 = vadd.f32 %v4772_v42, %v8483_v7  ;;  %v5306_v22 = vmax.f32 %v5242_v28, 0.0  ;;  %v5243_v23 = vadd.f32 %v8141_v61, %v4962_v21  ;;  %5369 = vst [vmem:[%s8153_s26 + $0x1b0] sm:$0xff] %v5305_v3 }
 0x303   : > { %v4774_v13 = vpop.f32.mrf.mxu0 }
 0x304   : > { %v4967_v38 = vpop.f32.mrf.mxu1  ;;  %v4966_v40 = vadd.f32 %v4965_v43, %v4773_v49  ;;  %v4775_v15 = vadd.f32 %v4774_v13, %v8123_v34  ;;  %5370 = vst [vmem:[%s8153_s26 + $0x1b8] sm:$0xff] %v5306_v22  ;;  %v5307_v2 = vmax.f32 %v5243_v23, 0.0  ;;  %v5244_v30 = vadd.f32 %v8145_v55, %v4964_v29 }
 0x305   : > { %v4778_v60 = vpop.f32.mrf.mxu0 }
 0x306   : > { %v4971_v19 = vpop.f32.mrf.mxu1  ;;  %v4779_v32 = vadd.f32 %v4778_v60, %v8126_v37  ;;  %v4968_v6 = vadd.f32 %v4967_v38, %v4775_v15  ;;  %5371 = vst [vmem:[%s8153_s26 + $0x1c0] sm:$0xff] %v5307_v2  ;;  %v5308_v18 = vmax.f32 %v5244_v30, 0.0  ;;  %v5245_v16 = vadd.f32 %v8141_v61, %v4966_v40 }
 0x307   : > { %v4780_v48 = vpop.f32.mrf.mxu0 }
 0x308   : > { %v4973_v11 = vpop.f32.mrf.mxu1  ;;  %v4972_v31 = vadd.f32 %v4971_v19, %v4779_v32  ;;  %v4781_v34 = vadd.f32 %v4780_v48, %v8129_v8  ;;  %5372 = vst [vmem:[%s8153_s26 + $0x1c8] sm:$0xff] %v5308_v18  ;;  %v5309_v26 = vmax.f32 %v5245_v16, 0.0  ;;  %v5246_v39 = vadd.f32 %v8145_v55, %v4968_v6 }
 0x309   : > { %v4782_v59 = vpop.f32.mrf.mxu0 }
 0x30a   : > { %v4975_v45 = vpop.f32.mrf.mxu1  ;;  %v4974_v63 = vadd.f32 %v4973_v11, %v4781_v34  ;;  %v4783_v37 = vadd.f32 %v4782_v59, %v8484_v5  ;;  %5373 = vst [vmem:[%s8153_s26 + $0x1d0] sm:$0xff] %v5309_v26  ;;  %v5247_v24 = vadd.f32 %v8141_v61, %v4972_v31  ;;  %v5310_v53 = vmax.f32 %v5246_v39, 0.0 }
 0x30b   : > { %v4784_v1 = vpop.f32.mrf.mxu0 }
 0x30c   : > { %v4976_v36 = vadd.f32 %v4975_v45, %v4783_v37  ;;  %v4785_v8 = vadd.f32 %v4784_v1, %v8138_v35  ;;  %v4977_v0 = vpop.f32.mrf.mxu1  ;;  %v5311_v14 = vmax.f32 %v5247_v24, 0.0  ;;  %v5248_v20 = vadd.f32 %v8145_v55, %v4974_v63  ;;  %5374 = vst [vmem:[%s8153_s26 + $0x1d8] sm:$0xff] %v5310_v53 }
 0x30e   : > { %v4978_v44 = vadd.f32 %v4977_v0, %v4785_v8  ;;  %5375 = vst [vmem:[%s8153_s26 + $0x1e0] sm:$0xff] %v5311_v14  ;;  %v5312_v52 = vmax.f32 %v5248_v20, 0.0  ;;  %v5249_v27 = vadd.f32 %v8141_v61, %v4976_v36 }
 0x310   : > { %5376 = vst [vmem:[%s8153_s26 + $0x1e8] sm:$0xff] %v5312_v52  ;;  %v5313_v17 = vmax.f32 %v5249_v27, 0.0  ;;  %v5250_v9 = vadd.f32 %v8145_v55, %v4978_v44 }
 0x312   : > { %5377 = vst [vmem:[%s8153_s26 + $0x1f0] sm:$0xff] %v5313_v17  ;;  %v5314_v25 = vmax.f32 %v5250_v9, 0.0 }
 0x314   : > { %5378 = vst [vmem:[%s8153_s26 + $0x1f8] sm:$0xff] %v5314_v25 }
 0x315 PF: > { %s13_s14 = sadd.s32 1, %s6426_s14   ;;  %s8485_s12 = smov %s6422_s13 }
 0x316   : > { %p10_p5 = scmp.ge.s32.totalorder %s13_s14, 4   ;;  %s8486_s13 = smov %s8488_s15 }
 0x318   :  { %12 = sbr.rel (!%p10_p5) target bundleno = 2 (0x2), region = 73 }

// kernel: conv_q_network_forward.8
= control target key start
LH: loop header
LB: loop body
LE: loop exit
PB: predicated region body
PF: predicated region fallthrough
CT: control target
= control target key end

     0   :  { %s3513_s12 = smov 0   ;;  %s3515_s13 = smov 0   ;;  %s4756_s0 = inlined_call_operand.vmem [shape: bf16[128,2560], index: 0, kind: input, shape index: {}]   ;;  %s4757_s1 = inlined_call_operand.vmem [shape: bf16[2560,256], index: 1, kind: input, shape index: {}]   ;;  %s4758_s2 = inlined_call_operand.vmem [shape: f32[1,256], index: 2, kind: input, shape index: {}]   ;;  %s4759_s3 = inlined_call_operand.vmem [shape: f32[128,256], index: 3, kind: output, shape index: {}]  }
   0x1   :  { %s3517_s14 = smov 0   ;;  %s3519_s15 = smov 0  }
   0x2   :  { %s3521_s16 = smov 0  }
   0x3 LB: > { %s22_s17 = sadd.s32 1, %s3486_s15  ;;  %p41_p1 = scmp.ne.s32.totalorder %s3478_s13, %s3474_s12  ;;  %s3490_s16 = sphi %s3521_s16, %s13_s16   ;;  %s3486_s15 = sphi %s3519_s15, %s4839_s15   ;;  %s3482_s14 = sphi %s3517_s14, %s4838_s14   ;;  %s3478_s13 = sphi %s3515_s13, %s4837_s13   ;;  %s3474_s12 = sphi %s3513_s12, %s4836_s12  }
   0x4   : > { %p23_p0 = scmp.ge.s32.totalorder %s22_s17, 2  ;;  %p42_p2 = scmp.eq.s32.totalorder %s3490_s16, 0 }
   0x5   : > { %s34_s19 = sadd.s32 1, %s3478_s13  ;;  %p2764_p5 = scmp.ge.s32.totalorder %s3490_s16, 2 }
   0x6   : > { %s4841_s17 = smov (%p23_p0, %s22_s17), 0  ;;  %p43_p3 = por %p42_p2, %p41_p1 }
   0x7   : > { %s30_s18 = ssub.s32 %s3486_s15, %s4841_s17  ;;  %143 = sbr.rel (%p2764_p5) target bundleno = 57 (0x39), region = 20 }
   0x8   : > { %p32_p4 = scmp.eq.s32.totalorder %s30_s18, 0 }
   0xa   : > { %s3548_s20 = scalar_select %p32_p4, %s3478_s13, %s34_s19  }
   0xc   : > { %146 = sbr.rel (!%p43_p3) target bundleno = 57 (0x39), region = 24  ;;  %s148_s21 = sand.u32 (%p43_p3), 1, %s3478_s13  }
   0xd   : > { %s3015_s22 = smul.u32 (%p43_p3), 40, %s3486_s15 }
   0xe   : > { %s3049_s23 = smul.u32 (%p43_p3), 640, %s148_s21 }
   0xf   : > { %s3556_s26 = scalar_lea.vmem (%p43_p3), %s4756_s0, %s3015_s22 }
  0x10   : > { %v169_v0 = vld [vmem:[%s3556_s26] sm:$0xff] (%p43_p3)  ;;  %v171_v1 = vld [vmem:[%s3556_s26 + $0x8] sm:$0xff] (%p43_p3)  ;;  %v173_v2 = vld [vmem:[%s3556_s26 + $0x10] sm:$0xff] (%p43_p3)  ;;  %s3561_s27 = scalar_lea.vmem (%p43_p3), [#allocation2], %s3049_s23 }
  0x11   : > { %170 = vst [vmem:[%s3561_s27] sm:$0xff] %v169_v0  ;;  %172 = vst [vmem:[%s3561_s27 + $0x8] sm:$0xff] %v171_v1  ;;  %v175_v3 = vld [vmem:[%s3556_s26 + $0x18] sm:$0xff]  ;;  %v177_v4 = vld [vmem:[%s3556_s26 + $0x20] sm:$0xff] }
  0x12   : > { %174 = vst [vmem:[%s3561_s27 + $0x10] sm:$0xff] %v173_v2  ;;  %v179_v5 = vld [vmem:[%s3556_s26 + $0x50] sm:$0xff]  ;;  %176 = vst [vmem:[%s3561_s27 + $0x18] sm:$0xff] %v175_v3  ;;  %v181_v6 = vld [vmem:[%s3556_s26 + $0x58] sm:$0xff] }
  0x13   : > { %178 = vst [vmem:[%s3561_s27 + $0x20] sm:$0xff] %v177_v4  ;;  %180 = vst [vmem:[%s3561_s27 + $0x28] sm:$0xff] %v179_v5  ;;  %v183_v7 = vld [vmem:[%s3556_s26 + $0x60] sm:$0xff]  ;;  %v185_v8 = vld [vmem:[%s3556_s26 + $0x68] sm:$0xff] }
  0x14   : > { %182 = vst [vmem:[%s3561_s27 + $0x30] sm:$0xff] %v181_v6  ;;  %184 = vst [vmem:[%s3561_s27 + $0x38] sm:$0xff] %v183_v7  ;;  %v187_v9 = vld [vmem:[%s3556_s26 + $0x70] sm:$0xff]  ;;  %v189_v10 = vld [vmem:[%s3556_s26 + $0xa0] sm:$0xff] }
  0x15   : > { %186 = vst [vmem:[%s3561_s27 + $0x40] sm:$0xff] %v185_v8  ;;  %v191_v11 = vld [vmem:[%s3556_s26 + $0xa8] sm:$0xff]  ;;  %188 = vst [vmem:[%s3561_s27 + $0x48] sm:$0xff] %v187_v9  ;;  %v193_v12 = vld [vmem:[%s3556_s26 + $0xb0] sm:$0xff] }
  0x16   : > { %190 = vst [vmem:[%s3561_s27 + $0x50] sm:$0xff] %v189_v10  ;;  %192 = vst [vmem:[%s3561_s27 + $0x58] sm:$0xff] %v191_v11  ;;  %v195_v13 = vld [vmem:[%s3556_s26 + $0xb8] sm:$0xff]  ;;  %v197_v14 = vld [vmem:[%s3556_s26 + $0xc0] sm:$0xff] }
  0x17   : > { %194 = vst [vmem:[%s3561_s27 + $0x60] sm:$0xff] %v193_v12  ;;  %196 = vst [vmem:[%s3561_s27 + $0x68] sm:$0xff] %v195_v13  ;;  %v199_v15 = vld [vmem:[%s3556_s26 + $0xf0] sm:$0xff]  ;;  %v201_v16 = vld [vmem:[%s3556_s26 + $0xf8] sm:$0xff] }
  0x18   : > { %198 = vst [vmem:[%s3561_s27 + $0x70] sm:$0xff] %v197_v14  ;;  %v203_v17 = vld [vmem:[%s3556_s26 + $0x100] sm:$0xff]  ;;  %200 = vst [vmem:[%s3561_s27 + $0x78] sm:$0xff] %v199_v15  ;;  %v205_v18 = vld [vmem:[%s3556_s26 + $0x108] sm:$0xff] }
  0x19   : > { %202 = vst [vmem:[%s3561_s27 + $0x80] sm:$0xff] %v201_v16  ;;  %204 = vst [vmem:[%s3561_s27 + $0x88] sm:$0xff] %v203_v17  ;;  %v207_v19 = vld [vmem:[%s3556_s26 + $0x110] sm:$0xff]  ;;  %v209_v20 = vld [vmem:[%s3556_s26 + $0x140] sm:$0xff] }
  0x1a   : > { %206 = vst [vmem:[%s3561_s27 + $0x90] sm:$0xff] %v205_v18  ;;  %208 = vst [vmem:[%s3561_s27 + $0x98] sm:$0xff] %v207_v19  ;;  %v211_v21 = vld [vmem:[%s3556_s26 + $0x148] sm:$0xff]  ;;  %v213_v22 = vld [vmem:[%s3556_s26 + $0x150] sm:$0xff] }
  0x1b   : > { %210 = vst [vmem:[%s3561_s27 + $0xa0] sm:$0xff] %v209_v20  ;;  %v215_v23 = vld [vmem:[%s3556_s26 + $0x158] sm:$0xff]  ;;  %212 = vst [vmem:[%s3561_s27 + $0xa8] sm:$0xff] %v211_v21  ;;  %v217_v24 = vld [vmem:[%s3556_s26 + $0x160] sm:$0xff] }
  0x1c   : > { %214 = vst [vmem:[%s3561_s27 + $0xb0] sm:$0xff] %v213_v22  ;;  %216 = vst [vmem:[%s3561_s27 + $0xb8] sm:$0xff] %v215_v23  ;;  %v219_v25 = vld [vmem:[%s3556_s26 + $0x190] sm:$0xff]  ;;  %v221_v26 = vld [vmem:[%s3556_s26 + $0x198] sm:$0xff] }
  0x1d   : > { %218 = vst [vmem:[%s3561_s27 + $0xc0] sm:$0xff] %v217_v24  ;;  %220 = vst [vmem:[%s3561_s27 + $0xc8] sm:$0xff] %v219_v25  ;;  %v223_v27 = vld [vmem:[%s3556_s26 + $0x1a0] sm:$0xff]  ;;  %v225_v28 = vld [vmem:[%s3556_s26 + $0x1a8] sm:$0xff] }
  0x1e   : > { %222 = vst [vmem:[%s3561_s27 + $0xd0] sm:$0xff] %v221_v26  ;;  %v227_v29 = vld [vmem:[%s3556_s26 + $0x1b0] sm:$0xff]  ;;  %224 = vst [vmem:[%s3561_s27 + $0xd8] sm:$0xff] %v223_v27  ;;  %v229_v30 = vld [vmem:[%s3556_s26 + $0x1e0] sm:$0xff] }
  0x1f   : > { %226 = vst [vmem:[%s3561_s27 + $0xe0] sm:$0xff] %v225_v28  ;;  %228 = vst [vmem:[%s3561_s27 + $0xe8] sm:$0xff] %v227_v29  ;;  %v231_v31 = vld [vmem:[%s3556_s26 + $0x1e8] sm:$0xff]  ;;  %v233_v32 = vld [vmem:[%s3556_s26 + $0x1f0] sm:$0xff] }
  0x20   : > { %230 = vst [vmem:[%s3561_s27 + $0xf0] sm:$0xff] %v229_v30  ;;  %232 = vst [vmem:[%s3561_s27 + $0xf8] sm:$0xff] %v231_v31  ;;  %v235_v33 = vld [vmem:[%s3556_s26 + $0x1f8] sm:$0xff]  ;;  %v237_v34 = vld [vmem:[%s3556_s26 + $0x200] sm:$0xff] }
  0x21   : > { %234 = vst [vmem:[%s3561_s27 + $0x100] sm:$0xff] %v233_v32  ;;  %v239_v35 = vld [vmem:[%s3556_s26 + $0x230] sm:$0xff]  ;;  %236 = vst [vmem:[%s3561_s27 + $0x108] sm:$0xff] %v235_v33  ;;  %v241_v36 = vld [vmem:[%s3556_s26 + $0x238] sm:$0xff] }
  0x22   : > { %238 = vst [vmem:[%s3561_s27 + $0x110] sm:$0xff] %v237_v34  ;;  %240 = vst [vmem:[%s3561_s27 + $0x118] sm:$0xff] %v239_v35  ;;  %v243_v37 = vld [vmem:[%s3556_s26 + $0x240] sm:$0xff]  ;;  %v245_v38 = vld [vmem:[%s3556_s26 + $0x248] sm:$0xff] }
  0x23   : > { %242 = vst [vmem:[%s3561_s27 + $0x120] sm:$0xff] %v241_v36  ;;  %244 = vst [vmem:[%s3561_s27 + $0x128] sm:$0xff] %v243_v37  ;;  %v247_v39 = vld [vmem:[%s3556_s26 + $0x250] sm:$0xff]  ;;  %v249_v40 = vld [vmem:[%s3556_s26 + $0x280] sm:$0xff] }
  0x24   : > { %246 = vst [vmem:[%s3561_s27 + $0x130] sm:$0xff] %v245_v38  ;;  %v251_v41 = vld [vmem:[%s3556_s26 + $0x288] sm:$0xff]  ;;  %248 = vst [vmem:[%s3561_s27 + $0x138] sm:$0xff] %v247_v39  ;;  %v253_v42 = vld [vmem:[%s3556_s26 + $0x290] sm:$0xff] }
  0x25   : > { %250 = vst [vmem:[%s3561_s27 + $0x140] sm:$0xff] %v249_v40  ;;  %252 = vst [vmem:[%s3561_s27 + $0x148] sm:$0xff] %v251_v41  ;;  %v255_v43 = vld [vmem:[%s3556_s26 + $0x298] sm:$0xff]  ;;  %v257_v44 = vld [vmem:[%s3556_s26 + $0x2a0] sm:$0xff] }
  0x26   : > { %254 = vst [vmem:[%s3561_s27 + $0x150] sm:$0xff] %v253_v42  ;;  %256 = vst [vmem:[%s3561_s27 + $0x158] sm:$0xff] %v255_v43  ;;  %v259_v45 = vld [vmem:[%s3556_s26 + $0x2d0] sm:$0xff]  ;;  %v261_v46 = vld [vmem:[%s3556_s26 + $0x2d8] sm:$0xff] }
  0x27   : > { %258 = vst [vmem:[%s3561_s27 + $0x160] sm:$0xff] %v257_v44  ;;  %v263_v47 = vld [vmem:[%s3556_s26 + $0x2e0] sm:$0xff]  ;;  %260 = vst [vmem:[%s3561_s27 + $0x168] sm:$0xff] %v259_v45  ;;  %v265_v48 = vld [vmem:[%s3556_s26 + $0x2e8] sm:$0xff] }
  0x28   : > { %262 = vst [vmem:[%s3561_s27 + $0x170] sm:$0xff] %v261_v46  ;;  %264 = vst [vmem:[%s3561_s27 + $0x178] sm:$0xff] %v263_v47  ;;  %v267_v49 = vld [vmem:[%s3556_s26 + $0x2f0] sm:$0xff]  ;;  %v269_v50 = vld [vmem:[%s3556_s26 + $0x320] sm:$0xff] }
  0x29   : > { %266 = vst [vmem:[%s3561_s27 + $0x180] sm:$0xff] %v265_v48  ;;  %268 = vst [vmem:[%s3561_s27 + $0x188] sm:$0xff] %v267_v49  ;;  %v271_v51 = vld [vmem:[%s3556_s26 + $0x328] sm:$0xff]  ;;  %v273_v52 = vld [vmem:[%s3556_s26 + $0x330] sm:$0xff] }
  0x2a   : > { %270 = vst [vmem:[%s3561_s27 + $0x190] sm:$0xff] %v269_v50  ;;  %v275_v53 = vld [vmem:[%s3556_s26 + $0x338] sm:$0xff]  ;;  %272 = vst [vmem:[%s3561_s27 + $0x198] sm:$0xff] %v271_v51  ;;  %v277_v54 = vld [vmem:[%s3556_s26 + $0x340] sm:$0xff] }
  0x2b   : > { %274 = vst [vmem:[%s3561_s27 + $0x1a0] sm:$0xff] %v273_v52  ;;  %276 = vst [vmem:[%s3561_s27 + $0x1a8] sm:$0xff] %v275_v53  ;;  %v279_v55 = vld [vmem:[%s3556_s26 + $0x370] sm:$0xff]  ;;  %v281_v56 = vld [vmem:[%s3556_s26 + $0x378] sm:$0xff] }
  0x2c   : > { %278 = vst [vmem:[%s3561_s27 + $0x1b0] sm:$0xff] %v277_v54  ;;  %280 = vst [vmem:[%s3561_s27 + $0x1b8] sm:$0xff] %v279_v55  ;;  %v283_v57 = vld [vmem:[%s3556_s26 + $0x380] sm:$0xff]  ;;  %v285_v58 = vld [vmem:[%s3556_s26 + $0x388] sm:$0xff] }
  0x2d   : > { %282 = vst [vmem:[%s3561_s27 + $0x1c0] sm:$0xff] %v281_v56  ;;  %v287_v59 = vld [vmem:[%s3556_s26 + $0x390] sm:$0xff]  ;;  %284 = vst [vmem:[%s3561_s27 + $0x1c8] sm:$0xff] %v283_v57  ;;  %v289_v60 = vld [vmem:[%s3556_s26 + $0x3c0] sm:$0xff] }
  0x2e   : > { %286 = vst [vmem:[%s3561_s27 + $0x1d0] sm:$0xff] %v285_v58  ;;  %288 = vst [vmem:[%s3561_s27 + $0x1d8] sm:$0xff] %v287_v59  ;;  %v291_v61 = vld [vmem:[%s3556_s26 + $0x3c8] sm:$0xff]  ;;  %v293_v62 = vld [vmem:[%s3556_s26 + $0x3d0] sm:$0xff] }
  0x2f   : > { %290 = vst [vmem:[%s3561_s27 + $0x1e0] sm:$0xff] %v289_v60  ;;  %292 = vst [vmem:[%s3561_s27 + $0x1e8] sm:$0xff] %v291_v61  ;;  %v295_v63 = vld [vmem:[%s3556_s26 + $0x3d8] sm:$0xff]  ;;  %v297_v0 = vld [vmem:[%s3556_s26 + $0x3e0] sm:$0xff] }
  0x30   : > { %294 = vst [vmem:[%s3561_s27 + $0x1f0] sm:$0xff] %v293_v62  ;;  %v299_v1 = vld [vmem:[%s3556_s26 + $0x410] sm:$0xff]  ;;  %296 = vst [vmem:[%s3561_s27 + $0x1f8] sm:$0xff] %v295_v63  ;;  %v301_v2 = vld [vmem:[%s3556_s26 + $0x418] sm:$0xff] }
  0x31   : > { %298 = vst [vmem:[%s3561_s27 + $0x200] sm:$0xff] %v297_v0  ;;  %300 = vst [vmem:[%s3561_s27 + $0x208] sm:$0xff] %v299_v1  ;;  %v303_v3 = vld [vmem:[%s3556_s26 + $0x420] sm:$0xff]  ;;  %v305_v4 = vld [vmem:[%s3556_s26 + $0x428] sm:$0xff] }
  0x32   : > { %302 = vst [vmem:[%s3561_s27 + $0x210] sm:$0xff] %v301_v2  ;;  %304 = vst [vmem:[%s3561_s27 + $0x218] sm:$0xff] %v303_v3  ;;  %v307_v5 = vld [vmem:[%s3556_s26 + $0x430] sm:$0xff]  ;;  %v309_v6 = vld [vmem:[%s3556_s26 + $0x460] sm:$0xff] }
  0x33   : > { %306 = vst [vmem:[%s3561_s27 + $0x220] sm:$0xff] %v305_v4  ;;  %v311_v7 = vld [vmem:[%s3556_s26 + $0x468] sm:$0xff]  ;;  %308 = vst [vmem:[%s3561_s27 + $0x228] sm:$0xff] %v307_v5  ;;  %v313_v8 = vld [vmem:[%s3556_s26 + $0x470] sm:$0xff] }
  0x34   : > { %310 = vst [vmem:[%s3561_s27 + $0x230] sm:$0xff] %v309_v6  ;;  %312 = vst [vmem:[%s3561_s27 + $0x238] sm:$0xff] %v311_v7  ;;  %v315_v9 = vld [vmem:[%s3556_s26 + $0x478] sm:$0xff]  ;;  %v317_v10 = vld [vmem:[%s3556_s26 + $0x480] sm:$0xff] }
  0x35   : > { %314 = vst [vmem:[%s3561_s27 + $0x240] sm:$0xff] %v313_v8  ;;  %316 = vst [vmem:[%s3561_s27 + $0x248] sm:$0xff] %v315_v9  ;;  %v319_v11 = vld [vmem:[%s3556_s26 + $0x4b0] sm:$0xff]  ;;  %v321_v12 = vld [vmem:[%s3556_s26 + $0x4b8] sm:$0xff] }
  0x36   : > { %318 = vst [vmem:[%s3561_s27 + $0x250] sm:$0xff] %v317_v10  ;;  %v323_v13 = vld [vmem:[%s3556_s26 + $0x4c0] sm:$0xff]  ;;  %320 = vst [vmem:[%s3561_s27 + $0x258] sm:$0xff] %v319_v11  ;;  %v325_v14 = vld [vmem:[%s3556_s26 + $0x4c8] sm:$0xff] }
  0x37   : > { %322 = vst [vmem:[%s3561_s27 + $0x260] sm:$0xff] %v321_v12  ;;  %324 = vst [vmem:[%s3561_s27 + $0x268] sm:$0xff] %v323_v13  ;;  %v327_v15 = vld [vmem:[%s3556_s26 + $0x4d0] sm:$0xff] }
  0x38   : > { %326 = vst [vmem:[%s3561_s27 + $0x270] sm:$0xff] %v325_v14  ;;  %328 = vst [vmem:[%s3561_s27 + $0x278] sm:$0xff] %v327_v15 }
  0x39 PF: > { %p2766_p6 = scmp.ge.s32.totalorder %s3490_s16, 1  ;;  %p343_p7 = scmp.lt.s32.totalorder %s3490_s16, 3 }
  0x3b   : > { %p344_p8 = pnand %p2766_p6, %p343_p7 }
  0x3d   : > { %347 = sbr.rel (%p344_p8) target bundleno = 542 (0x21e), region = 51 }
  0x42   : > { %s350_s28 = sand.u32 1, %s3474_s12   ;;  %s382_s29 = smul.u32 160, %s3482_s14 }
  0x43   : > { %s3050_s30 = smul.u32 640, %s350_s28  ;;  %p2769_p10 = scmp.ne.s32.totalorder %s3482_s14, 0 }
  0x44   : > { %p383_p9 = scmp.lt.s32.totalorder %s382_s29, 319 }
  0x45   : > { %s3729_s8 = scalar_lea.vmem [#allocation2], %s3050_s30  ;;  %399 = sbr.rel (%p2769_p10) target bundleno = 91 (0x5b), region = 59 }
  0x46   : > { %s4843_s29 = smov (!%p383_p9, %s382_s29), 319 }
  0x47   : > { %s3016_s4 = sshll.u32 %s4843_s29, 3 }
  0x48   : > { %s3727_s7 = scalar_lea.vmem %s4757_s1, %s3016_s4 }
  0x4a   : > { %v3492_v16 = vmov 0.0  }
  0x4b   : > { %400 = vst [vmem:[%s4759_s3] sm:$0xff] %v3492_v16  ;;  %401 = vst [vmem:[%s4759_s3 + $0x8] sm:$0xff] %v3492_v16 }
  0x4c   : > { %402 = vst [vmem:[%s4759_s3 + $0x10] sm:$0xff] %v3492_v16  ;;  %403 = vst [vmem:[%s4759_s3 + $0x18] sm:$0xff] %v3492_v16 }
  0x4d   : > { %404 = vst [vmem:[%s4759_s3 + $0x20] sm:$0xff] %v3492_v16  ;;  %405 = vst [vmem:[%s4759_s3 + $0x28] sm:$0xff] %v3492_v16 }
  0x4e   : > { %406 = vst [vmem:[%s4759_s3 + $0x30] sm:$0xff] %v3492_v16  ;;  %407 = vst [vmem:[%s4759_s3 + $0x38] sm:$0xff] %v3492_v16 }
  0x4f   : > { %408 = vst [vmem:[%s4759_s3 + $0x40] sm:$0xff] %v3492_v16  ;;  %409 = vst [vmem:[%s4759_s3 + $0x48] sm:$0xff] %v3492_v16 }
  0x50   : > { %410 = vst [vmem:[%s4759_s3 + $0x50] sm:$0xff] %v3492_v16  ;;  %411 = vst [vmem:[%s4759_s3 + $0x58] sm:$0xff] %v3492_v16 }
  0x51   : > { %412 = vst [vmem:[%s4759_s3 + $0x60] sm:$0xff] %v3492_v16  ;;  %413 = vst [vmem:[%s4759_s3 + $0x68] sm:$0xff] %v3492_v16 }
  0x52   : > { %414 = vst [vmem:[%s4759_s3 + $0x70] sm:$0xff] %v3492_v16  ;;  %415 = vst [vmem:[%s4759_s3 + $0x78] sm:$0xff] %v3492_v16 }
  0x53   : > { %416 = vst [vmem:[%s4759_s3 + $0x80] sm:$0xff] %v3492_v16  ;;  %417 = vst [vmem:[%s4759_s3 + $0x88] sm:$0xff] %v3492_v16 }
  0x54   : > { %418 = vst [vmem:[%s4759_s3 + $0x90] sm:$0xff] %v3492_v16  ;;  %419 = vst [vmem:[%s4759_s3 + $0x98] sm:$0xff] %v3492_v16 }
  0x55   : > { %420 = vst [vmem:[%s4759_s3 + $0xa0] sm:$0xff] %v3492_v16  ;;  %421 = vst [vmem:[%s4759_s3 + $0xa8] sm:$0xff] %v3492_v16 }
  0x56   : > { %422 = vst [vmem:[%s4759_s3 + $0xb0] sm:$0xff] %v3492_v16  ;;  %423 = vst [vmem:[%s4759_s3 + $0xb8] sm:$0xff] %v3492_v16 }
  0x57   : > { %424 = vst [vmem:[%s4759_s3 + $0xc0] sm:$0xff] %v3492_v16  ;;  %425 = vst [vmem:[%s4759_s3 + $0xc8] sm:$0xff] %v3492_v16 }
  0x58   : > { %426 = vst [vmem:[%s4759_s3 + $0xd0] sm:$0xff] %v3492_v16  ;;  %427 = vst [vmem:[%s4759_s3 + $0xd8] sm:$0xff] %v3492_v16 }
  0x59   : > { %428 = vst [vmem:[%s4759_s3 + $0xe0] sm:$0xff] %v3492_v16  ;;  %429 = vst [vmem:[%s4759_s3 + $0xe8] sm:$0xff] %v3492_v16 }
  0x5a   : > { %430 = vst [vmem:[%s4759_s3 + $0xf0] sm:$0xff] %v3492_v16  ;;  %431 = vst [vmem:[%s4759_s3 + $0xf8] sm:$0xff] %v3492_v16 }
  0x5b PF: > { %v3092_v17 = vld [vmem:[%s3727_s7 + $0x74] ss:$8 sps:$4 sm:$0xff]   ;;  %v3096_v19 = vld [vmem:[%s3727_s7 + $0x70] ss:$8 sps:$4 sm:$0xff]   ;;  %v3098_v21 = vld [vmem:[%s3727_s7 + $0x64] ss:$8 sps:$4 sm:$0xff]  }
  0x5c   : > { %v3094_v18 = vld [vmem:[%s3727_s7 + $0x174] ss:$8 sps:$4 sm:$0xff]   ;;  %1904 = vmatprep.subr.bf16.mxu0 %v3092_v17  ;;  %v3097_v20 = vld [vmem:[%s3727_s7 + $0x170] ss:$8 sps:$4 sm:$0xff]   ;;  %v3100_v22 = vld [vmem:[%s3727_s7 + $0x164] ss:$8 sps:$4 sm:$0xff]  }
  0x5d   : > { %2017 = vmatprep.subr.bf16.mxu1 %v3094_v18  ;;  %1905 = vmatpush1.bf16.msra.mxu0 %v3096_v19  ;;  %v3102_v23 = vld [vmem:[%s3727_s7 + $0x60] ss:$8 sps:$4 sm:$0xff]   ;;  %v3104_v25 = vld [vmem:[%s3727_s7 + $0x54] ss:$8 sps:$4 sm:$0xff]   ;;  %v3108_v27 = vld [vmem:[%s3727_s7 + $0x50] ss:$8 sps:$4 sm:$0xff]  }
  0x5e   : > { %2018 = vmatpush1.bf16.msra.mxu1 %v3097_v20  ;;  %1906 = vmatprep.subr.bf16.mxu0 %v3098_v21  ;;  %v3103_v24 = vld [vmem:[%s3727_s7 + $0x160] ss:$8 sps:$4 sm:$0xff]   ;;  %v3106_v26 = vld [vmem:[%s3727_s7 + $0x154] ss:$8 sps:$4 sm:$0xff]   ;;  %v3109_v28 = vld [vmem:[%s3727_s7 + $0x150] ss:$8 sps:$4 sm:$0xff]  }
  0x5f   : > { %2019 = vmatprep.subr.bf16.mxu1 %v3100_v22  ;;  %v3110_v29 = vld [vmem:[%s3727_s7 + $0x44] ss:$8 sps:$4 sm:$0xff]   ;;  %v3114_v31 = vld [vmem:[%s3727_s7 + $0x40] ss:$8 sps:$4 sm:$0xff]   ;;  %v3116_v33 = vld [vmem:[%s3727_s7 + $0x34] ss:$8 sps:$4 sm:$0xff]  }
  0x60   : > { %v3112_v30 = vld [vmem:[%s3727_s7 + $0x144] ss:$8 sps:$4 sm:$0xff]   ;;  %v3115_v32 = vld [vmem:[%s3727_s7 + $0x140] ss:$8 sps:$4 sm:$0xff]   ;;  %v3118_v34 = vld [vmem:[%s3727_s7 + $0x134] ss:$8 sps:$4 sm:$0xff]  }
  0x61   : > { %1907 = vmatpush1.bf16.msra.mxu0 %v3102_v23  ;;  %v3120_v35 = vld [vmem:[%s3727_s7 + $0x30] ss:$8 sps:$4 sm:$0xff]   ;;  %v3122_v37 = vld [vmem:[%s3727_s7 + $0x24] ss:$8 sps:$4 sm:$0xff]   ;;  %v3126_v39 = vld [vmem:[%s3727_s7 + $0x20] ss:$8 sps:$4 sm:$0xff]  }
  0x62   : > { %2020 = vmatpush1.bf16.msra.mxu1 %v3103_v24  ;;  %1908 = vmatprep.subr.bf16.mxu0 %v3104_v25  ;;  %v3121_v36 = vld [vmem:[%s3727_s7 + $0x130] ss:$8 sps:$4 sm:$0xff]   ;;  %v3124_v38 = vld [vmem:[%s3727_s7 + $0x124] ss:$8 sps:$4 sm:$0xff]   ;;  %v3127_v40 = vld [vmem:[%s3727_s7 + $0x120] ss:$8 sps:$4 sm:$0xff]  }
  0x63   : > { %2021 = vmatprep.subr.bf16.mxu1 %v3106_v26  ;;  %v3128_v41 = vld [vmem:[%s3727_s7 + $0x14] ss:$8 sps:$4 sm:$0xff]   ;;  %v3132_v43 = vld [vmem:[%s3727_s7 + $0x10] ss:$8 sps:$4 sm:$0xff]   ;;  %v3134_v45 = vld [vmem:[%s3727_s7 + $0x4] ss:$8 sps:$4 sm:$0xff]  }
  0x64   : > { %v3130_v42 = vld [vmem:[%s3727_s7 + $0x114] ss:$8 sps:$4 sm:$0xff]   ;;  %v3133_v44 = vld [vmem:[%s3727_s7 + $0x110] ss:$8 sps:$4 sm:$0xff]   ;;  %v3136_v46 = vld [vmem:[%s3727_s7 + $0x104] ss:$8 sps:$4 sm:$0xff]  }
  0x65   : > { %1909 = vmatpush1.bf16.msra.mxu0 %v3108_v27  ;;  %v3138_v47 = vld [vmem:[%s3727_s7] ss:$8 sps:$4 sm:$0xff]   ;;  %v3140_v49 = vld [vmem:[%s3727_s7 + $0xf4] ss:$8 sps:$4 sm:$0xff]   ;;  %v3144_v51 = vld [vmem:[%s3727_s7 + $0xf0] ss:$8 sps:$4 sm:$0xff]  }
  0x66   : > { %2022 = vmatpush1.bf16.msra.mxu1 %v3109_v28  ;;  %1910 = vmatprep.subr.bf16.mxu0 %v3110_v29  ;;  %v3139_v48 = vld [vmem:[%s3727_s7 + $0x100] ss:$8 sps:$4 sm:$0xff]   ;;  %v3142_v50 = vld [vmem:[%s3727_s7 + $0x1f4] ss:$8 sps:$4 sm:$0xff]   ;;  %v3145_v52 = vld [vmem:[%s3727_s7 + $0x1f0] ss:$8 sps:$4 sm:$0xff]  }
  0x67   : > { %2023 = vmatprep.subr.bf16.mxu1 %v3112_v30  ;;  %v3146_v53 = vld [vmem:[%s3727_s7 + $0xe4] ss:$8 sps:$4 sm:$0xff]   ;;  %v3150_v55 = vld [vmem:[%s3727_s7 + $0xe0] ss:$8 sps:$4 sm:$0xff]   ;;  %v3152_v57 = vld [vmem:[%s3727_s7 + $0xd4] ss:$8 sps:$4 sm:$0xff]  }
  0x68   : > { %v3148_v54 = vld [vmem:[%s3727_s7 + $0x1e4] ss:$8 sps:$4 sm:$0xff]   ;;  %v3151_v56 = vld [vmem:[%s3727_s7 + $0x1e0] ss:$8 sps:$4 sm:$0xff]   ;;  %v3154_v58 = vld [vmem:[%s3727_s7 + $0x1d4] ss:$8 sps:$4 sm:$0xff]  }
  0x69   : > { %1911 = vmatpush1.bf16.msra.mxu0 %v3114_v31  ;;  %v3156_v59 = vld [vmem:[%s3727_s7 + $0xd0] ss:$8 sps:$4 sm:$0xff]   ;;  %v3158_v61 = vld [vmem:[%s3727_s7 + $0xc4] ss:$8 sps:$4 sm:$0xff]   ;;  %v3162_v63 = vld [vmem:[%s3727_s7 + $0xc0] ss:$8 sps:$4 sm:$0xff]  }
  0x6a   : > { %2024 = vmatpush1.bf16.msra.mxu1 %v3115_v32  ;;  %1912 = vmatprep.subr.bf16.mxu0 %v3116_v33  ;;  %v3157_v60 = vld [vmem:[%s3727_s7 + $0x1d0] ss:$8 sps:$4 sm:$0xff]   ;;  %v3160_v62 = vld [vmem:[%s3727_s7 + $0x1c4] ss:$8 sps:$4 sm:$0xff]   ;;  %v3163_v0 = vld [vmem:[%s3727_s7 + $0x1c0] ss:$8 sps:$4 sm:$0xff]  }
  0x6b   : > { %2025 = vmatprep.subr.bf16.mxu1 %v3118_v34  ;;  %v3164_v1 = vld [vmem:[%s3727_s7 + $0xb4] ss:$8 sps:$4 sm:$0xff]   ;;  %v3190_v2 = vld [vmem:[%s3729_s8 + $0x4] ss:$40 sps:$4 sm:$0xff]   ;;  %v3168_v5 = vld [vmem:[%s3727_s7 + $0xb0] ss:$8 sps:$4 sm:$0xff]  }
  0x6c   : > { %v3166_v3 = vld [vmem:[%s3727_s7 + $0x1b4] ss:$8 sps:$4 sm:$0xff]   ;;  %1936 = vmatprep.mubr.bf16.mxu0 %v3190_v2  ;;  %v3169_v6 = vld [vmem:[%s3727_s7 + $0x1b0] ss:$8 sps:$4 sm:$0xff]   ;;  %v3170_v7 = vld [vmem:[%s3727_s7 + $0xa4] ss:$8 sps:$4 sm:$0xff]  }
  0x6d   : > { %1913 = vmatpush1.bf16.msra.mxu0 %v3120_v35  ;;  %v3193_v4 = vld [vmem:[%s3729_s8 + $0xc] ss:$40 sps:$4 sm:$0xff]   ;;  %v3174_v9 = vld [vmem:[%s3727_s7 + $0xa0] ss:$8 sps:$4 sm:$0xff]   ;;  %v3180_v13 = vld [vmem:[%s3727_s7 + $0x90] ss:$8 sps:$4 sm:$0xff]  }
  0x6e   : > { %2026 = vmatpush1.bf16.msra.mxu1 %v3121_v36  ;;  %1914 = vmatprep.subr.bf16.mxu0 %v3122_v37  ;;  %v3172_v8 = vld [vmem:[%s3727_s7 + $0x1a4] ss:$8 sps:$4 sm:$0xff]   ;;  %v3175_v10 = vld [vmem:[%s3727_s7 + $0x1a0] ss:$8 sps:$4 sm:$0xff]   ;;  %v3176_v11 = vld [vmem:[%s3727_s7 + $0x94] ss:$8 sps:$4 sm:$0xff]  }
  0x6f   : > { %2027 = vmatprep.subr.bf16.mxu1 %v3124_v38  ;;  %2049 = vmatprep.mubr.bf16.mxu1 %v3193_v4  ;;  %v3178_v12 = vld [vmem:[%s3727_s7 + $0x194] ss:$8 sps:$4 sm:$0xff]   ;;  %v3181_v14 = vld [vmem:[%s3727_s7 + $0x190] ss:$8 sps:$4 sm:$0xff]   ;;  %v3182_v15 = vld [vmem:[%s3727_s7 + $0x84] ss:$8 sps:$4 sm:$0xff]  }
  0x70   : > { %v3184_v16 = vld [vmem:[%s3727_s7 + $0x184] ss:$8 sps:$4 sm:$0xff]   ;;  %v3186_v17 = vld [vmem:[%s3727_s7 + $0x80] ss:$8 sps:$4 sm:$0xff]   ;;  %v3196_v19 = vld [vmem:[%s3727_s7 + $0x274] ss:$8 sps:$4 sm:$0xff]  }
  0x71   : > { %1915 = vmatpush1.bf16.msra.mxu0 %v3126_v39  ;;  %v3187_v18 = vld [vmem:[%s3727_s7 + $0x180] ss:$8 sps:$4 sm:$0xff]   ;;  %v3199_v20 = vld [vmem:[%s3727_s7 + $0x374] ss:$8 sps:$4 sm:$0xff]   ;;  %v3194_v23 = vld [vmem:[%s3727_s7 + $0x270] ss:$8 sps:$4 sm:$0xff]  }
  0x72   : > { %2028 = vmatpush1.bf16.msra.mxu1 %v3127_v40  ;;  %1916 = vmatprep.subr.bf16.mxu0 %v3128_v41  ;;  %v3188_v21 = vld [vmem:[%s3729_s8] ss:$40 sps:$4 sm:$0xff]   ;;  %v3197_v24 = vld [vmem:[%s3727_s7 + $0x370] ss:$8 sps:$4 sm:$0xff]   ;;  %v3202_v25 = vld [vmem:[%s3727_s7 + $0x264] ss:$8 sps:$4 sm:$0xff]  }
  0x73   : > { %2029 = vmatprep.subr.bf16.mxu1 %v3130_v42  ;;  %v3191_v22 = vld [vmem:[%s3729_s8 + $0x8] ss:$40 sps:$4 sm:$0xff]   ;;  %v3205_v26 = vld [vmem:[%s3727_s7 + $0x364] ss:$8 sps:$4 sm:$0xff]   ;;  %v3206_v27 = vld [vmem:[%s3729_s8 + $0x54] ss:$40 sps:$4 sm:$0xff]  }
  0x74   : > { %v3208_v28 = vld [vmem:[%s3729_s8 + $0x5c] ss:$40 sps:$4 sm:$0xff]   ;;  %v3200_v29 = vld [vmem:[%s3727_s7 + $0x260] ss:$8 sps:$4 sm:$0xff]   ;;  %v3210_v33 = vld [vmem:[%s3729_s8 + $0x50] ss:$40 sps:$4 sm:$0xff]  }
  0x75   : > { %1917 = vmatpush1.bf16.msra.mxu0 %v3132_v43  ;;  %v3203_v30 = vld [vmem:[%s3727_s7 + $0x360] ss:$8 sps:$4 sm:$0xff]   ;;  %v3214_v31 = vld [vmem:[%s3727_s7 + $0x254] ss:$8 sps:$4 sm:$0xff]   ;;  %v3212_v35 = vld [vmem:[%s3727_s7 + $0x250] ss:$8 sps:$4 sm:$0xff]  }
  0x76   : > { %2030 = vmatpush1.bf16.msra.mxu1 %v3133_v44  ;;  %1918 = vmatprep.subr.bf16.mxu0 %v3134_v45  ;;  %v3217_v32 = vld [vmem:[%s3727_s7 + $0x354] ss:$8 sps:$4 sm:$0xff]   ;;  %v3211_v34 = vld [vmem:[%s3729_s8 + $0x58] ss:$40 sps:$4 sm:$0xff]   ;;  %v3220_v37 = vld [vmem:[%s3727_s7 + $0x244] ss:$8 sps:$4 sm:$0xff]  }
  0x77   : > { %2031 = vmatprep.subr.bf16.mxu1 %v3136_v46  ;;  %v3215_v36 = vld [vmem:[%s3727_s7 + $0x350] ss:$8 sps:$4 sm:$0xff]   ;;  %v3223_v38 = vld [vmem:[%s3727_s7 + $0x344] ss:$8 sps:$4 sm:$0xff]   ;;  %v3218_v41 = vld [vmem:[%s3727_s7 + $0x240] ss:$8 sps:$4 sm:$0xff]  }
  0x78   : > { %v3224_v39 = vld [vmem:[%s3729_s8 + $0xa4] ss:$40 sps:$4 sm:$0xff]   ;;  %v3221_v42 = vld [vmem:[%s3727_s7 + $0x340] ss:$8 sps:$4 sm:$0xff]   ;;  %v3232_v43 = vld [vmem:[%s3727_s7 + $0x234] ss:$8 sps:$4 sm:$0xff]  }
  0x79   : > { %1919 = vmatpush1.bf16.msra.mxu0 %v3138_v47  ;;  %v3226_v40 = vld [vmem:[%s3729_s8 + $0xac] ss:$40 sps:$4 sm:$0xff]   ;;  %v3228_v45 = vld [vmem:[%s3729_s8 + $0xa0] ss:$40 sps:$4 sm:$0xff]   ;;  %v3230_v47 = vld [vmem:[%s3727_s7 + $0x230] ss:$8 sps:$4 sm:$0xff]  }
  0x7a   : > { %2032 = vmatpush1.bf16.msra.mxu1 %v3139_v48  ;;  %1920 = vmatprep.subr.bf16.mxu0 %v3140_v49  ;;  %v3235_v44 = vld [vmem:[%s3727_s7 + $0x334] ss:$8 sps:$4 sm:$0xff]   ;;  %v3229_v46 = vld [vmem:[%s3729_s8 + $0xa8] ss:$40 sps:$4 sm:$0xff]   ;;  %v3238_v49 = vld [vmem:[%s3727_s7 + $0x224] ss:$8 sps:$4 sm:$0xff]  }
  0x7b   : > { %2033 = vmatprep.subr.bf16.mxu1 %v3142_v50  ;;  %v3233_v48 = vld [vmem:[%s3727_s7 + $0x330] ss:$8 sps:$4 sm:$0xff]   ;;  %v3241_v50 = vld [vmem:[%s3727_s7 + $0x324] ss:$8 sps:$4 sm:$0xff]   ;;  %v3257_v2 = vld [vmem:[%s3727_s7 + $0x300] ss:$8 sps:$4 sm:$0xff]  }
  0x7c   : > { %v3271_v4 = vld [vmem:[%s3727_s7 + $0x3f4] ss:$8 sps:$4 sm:$0xff]   ;;  %p3010_p11 = scmp.ne.s32.totalorder %s3482_s14, 1 }
  0x7d   : > { %1921 = vmatpush2.bf16.msra.mxu0 %v3144_v51  ;;  %v3242_v51 = vld [vmem:[%s3729_s8 + $0xf4] ss:$40 sps:$4 sm:$0xff]  }
  0x7e   : > { %2034 = vmatpush2.bf16.msra.mxu1 %v3145_v52  ;;  %1922 = vmatprep.subr.bf16.mxu0 %v3146_v53  ;;  %v3244_v52 = vld [vmem:[%s3729_s8 + $0xfc] ss:$40 sps:$4 sm:$0xff]   ;;  %v3236_v53 = vld [vmem:[%s3727_s7 + $0x220] ss:$8 sps:$4 sm:$0xff]  }
  0x7f   : > { %2035 = vmatprep.subr.bf16.mxu1 %v3148_v54  ;;  %v3239_v54 = vld [vmem:[%s3727_s7 + $0x320] ss:$8 sps:$4 sm:$0xff]  }
  0x81   : > { %1923 = vmatpush2.bf16.msra.mxu0 %v3150_v55  ;;  %v3250_v55 = vld [vmem:[%s3727_s7 + $0x214] ss:$8 sps:$4 sm:$0xff]  }
  0x82   : > { %2036 = vmatpush2.bf16.msra.mxu1 %v3151_v56  ;;  %1924 = vmatprep.subr.bf16.mxu0 %v3152_v57  ;;  %v3253_v56 = vld [vmem:[%s3727_s7 + $0x314] ss:$8 sps:$4 sm:$0xff]   ;;  %v3246_v57 = vld [vmem:[%s3729_s8 + $0xf0] ss:$40 sps:$4 sm:$0xff]  }
  0x83   : > { %2037 = vmatprep.subr.bf16.mxu1 %v3154_v58  ;;  %v3247_v58 = vld [vmem:[%s3729_s8 + $0xf8] ss:$40 sps:$4 sm:$0xff]  }
  0x85   : > { %1925 = vmatpush2.bf16.msra.mxu0 %v3156_v59  ;;  %v3248_v59 = vld [vmem:[%s3727_s7 + $0x210] ss:$8 sps:$4 sm:$0xff]  }
  0x86   : > { %2038 = vmatpush2.bf16.msra.mxu1 %v3157_v60  ;;  %1926 = vmatprep.subr.bf16.mxu0 %v3158_v61  ;;  %v3251_v60 = vld [vmem:[%s3727_s7 + $0x310] ss:$8 sps:$4 sm:$0xff]   ;;  %v3256_v61 = vld [vmem:[%s3727_s7 + $0x204] ss:$8 sps:$4 sm:$0xff]  }
  0x87   : > { %2039 = vmatprep.subr.bf16.mxu1 %v3160_v62  ;;  %v3259_v62 = vld [vmem:[%s3727_s7 + $0x304] ss:$8 sps:$4 sm:$0xff]  }
  0x89   : > { %1927 = vmatpush2.bf16.msra.mxu0 %v3162_v63  ;;  %v3260_v63 = vld [vmem:[%s3729_s8 + $0x144] ss:$40 sps:$4 sm:$0xff]  }
  0x8a   : > { %2040 = vmatpush2.bf16.msra.mxu1 %v3163_v0  ;;  %1928 = vmatprep.subr.bf16.mxu0 %v3164_v1  ;;  %v3262_v0 = vld [vmem:[%s3729_s8 + $0x14c] ss:$40 sps:$4 sm:$0xff]   ;;  %v3254_v1 = vld [vmem:[%s3727_s7 + $0x200] ss:$8 sps:$4 sm:$0xff]  }
  0x8b   : > { %2041 = vmatprep.subr.bf16.mxu1 %v3166_v3  ;;  %v3268_v3 = vld [vmem:[%s3727_s7 + $0x2f4] ss:$8 sps:$4 sm:$0xff]  }
  0x8d   : > { %1929 = vmatpush2.bf16.msra.mxu0 %v3168_v5  ;;  %v3264_v5 = vld [vmem:[%s3729_s8 + $0x140] ss:$40 sps:$4 sm:$0xff]  }
  0x8e   : > { %2042 = vmatpush2.bf16.msra.mxu1 %v3169_v6  ;;  %1930 = vmatprep.subr.bf16.mxu0 %v3170_v7  ;;  %v3265_v6 = vld [vmem:[%s3729_s8 + $0x148] ss:$40 sps:$4 sm:$0xff]  }
  0x8f   : > { %2043 = vmatprep.subr.bf16.mxu1 %v3172_v8  ;;  %v3266_v7 = vld [vmem:[%s3727_s7 + $0x2f0] ss:$8 sps:$4 sm:$0xff]  }
  0x90   : > { %v3269_v8 = vld [vmem:[%s3727_s7 + $0x3f0] ss:$8 sps:$4 sm:$0xff]  }
  0x91   : > { %1931 = vmatpush2.bf16.msra.mxu0 %v3174_v9  ;;  %v3274_v9 = vld [vmem:[%s3727_s7 + $0x2e4] ss:$8 sps:$4 sm:$0xff]  }
  0x92   : > { %2044 = vmatpush2.bf16.msra.mxu1 %v3175_v10  ;;  %1932 = vmatprep.subr.bf16.mxu0 %v3176_v11  ;;  %v3277_v10 = vld [vmem:[%s3727_s7 + $0x3e4] ss:$8 sps:$4 sm:$0xff]   ;;  %v3278_v11 = vld [vmem:[%s3729_s8 + $0x194] ss:$40 sps:$4 sm:$0xff]  }
  0x93   : > { %2045 = vmatprep.subr.bf16.mxu1 %v3178_v12  ;;  %v3280_v12 = vld [vmem:[%s3729_s8 + $0x19c] ss:$40 sps:$4 sm:$0xff]  }
  0x95   : > { %1933 = vmatpush2.bf16.msra.mxu0 %v3180_v13  ;;  %v3272_v13 = vld [vmem:[%s3727_s7 + $0x2e0] ss:$8 sps:$4 sm:$0xff]  }
  0x96   : > { %2046 = vmatpush2.bf16.msra.mxu1 %v3181_v14  ;;  %1934 = vmatprep.subr.bf16.mxu0 %v3182_v15  ;;  %v3275_v14 = vld [vmem:[%s3727_s7 + $0x3e0] ss:$8 sps:$4 sm:$0xff]   ;;  %v3286_v15 = vld [vmem:[%s3727_s7 + $0x2d4] ss:$8 sps:$4 sm:$0xff]  }
  0x97   : > { %2047 = vmatprep.subr.bf16.mxu1 %v3184_v16  ;;  %v3289_v16 = vld [vmem:[%s3727_s7 + $0x3d4] ss:$8 sps:$4 sm:$0xff]  }
  0x99   : > { %1935 = vmatpush2.bf16.msra.mxu0 %v3186_v17  ;;  %v3282_v17 = vld [vmem:[%s3729_s8 + $0x190] ss:$40 sps:$4 sm:$0xff]  }
  0x9a   : > { %2048 = vmatpush2.bf16.msra.mxu1 %v3187_v18  ;;  %2130 = vmatprep.subr.bf16.mxu0 %v3196_v19  ;;  %v3283_v18 = vld [vmem:[%s3729_s8 + $0x198] ss:$40 sps:$4 sm:$0xff]  }
  0x9b   : > { %2243 = vmatprep.subr.bf16.mxu1 %v3199_v20  ;;  %v3284_v19 = vld [vmem:[%s3727_s7 + $0x2d0] ss:$8 sps:$4 sm:$0xff]  }
  0x9c   : > { %1937 = vmatmul.mubr.bf16.vlgmr.msra.gmra.mxu0 %v3188_v21  ;;  %v3287_v20 = vld [vmem:[%s3727_s7 + $0x3d0] ss:$8 sps:$4 sm:$0xff]   ;;  %v3292_v21 = vld [vmem:[%s3727_s7 + $0x2c4] ss:$8 sps:$4 sm:$0xff]  }
  0x9d   : > { %2050 = vmatmul.mubr.bf16.vlgmr.msra.gmra.mxu1 %v3191_v22  ;;  %2131 = vmatpush1.bf16.msra.mxu0 %v3194_v23  ;;  %v3295_v22 = vld [vmem:[%s3727_s7 + $0x3c4] ss:$8 sps:$4 sm:$0xff]  }
  0x9e   : > { %2244 = vmatpush1.bf16.msra.mxu1 %v3197_v24  ;;  %2132 = vmatprep.subr.bf16.mxu0 %v3202_v25  ;;  %v3296_v23 = vld [vmem:[%s3729_s8 + $0x1e4] ss:$40 sps:$4 sm:$0xff]   ;;  %v3290_v25 = vld [vmem:[%s3727_s7 + $0x2c0] ss:$8 sps:$4 sm:$0xff]  }
  0x9f   : > { %2245 = vmatprep.subr.bf16.mxu1 %v3205_v26  ;;  %1946 = vmatprep.mubr.bf16.mxu0 %v3206_v27  ;;  %v3298_v24 = vld [vmem:[%s3729_s8 + $0x1ec] ss:$40 sps:$4 sm:$0xff]   ;;  %v3293_v26 = vld [vmem:[%s3727_s7 + $0x3c0] ss:$8 sps:$4 sm:$0xff]  }
  0xa0   : > { %2059 = vmatprep.mubr.bf16.mxu1 %v3208_v28  ;;  %v3304_v27 = vld [vmem:[%s3727_s7 + $0x2b4] ss:$8 sps:$4 sm:$0xff]  }
  0xa1   : > { %2133 = vmatpush1.bf16.msra.mxu0 %v3200_v29  ;;  %v3307_v28 = vld [vmem:[%s3727_s7 + $0x3b4] ss:$8 sps:$4 sm:$0xff]   ;;  %v3300_v29 = vld [vmem:[%s3729_s8 + $0x1e0] ss:$40 sps:$4 sm:$0xff]  }
  0xa2   : > { %2246 = vmatpush1.bf16.msra.mxu1 %v3203_v30  ;;  %2134 = vmatprep.subr.bf16.mxu0 %v3214_v31  ;;  %v3301_v30 = vld [vmem:[%s3729_s8 + $0x1e8] ss:$40 sps:$4 sm:$0xff]  }
  0xa3   : > { %2247 = vmatprep.subr.bf16.mxu1 %v3217_v32  ;;  %v3302_v31 = vld [vmem:[%s3727_s7 + $0x2b0] ss:$8 sps:$4 sm:$0xff]  }
  0xa4   : > { %1947 = vmatmul.mubr.bf16.gmra.mxu0 %v3210_v33  ;;  %v3305_v32 = vld [vmem:[%s3727_s7 + $0x3b0] ss:$8 sps:$4 sm:$0xff]   ;;  %v3310_v33 = vld [vmem:[%s3727_s7 + $0x2a4] ss:$8 sps:$4 sm:$0xff]  }
  0xa5   : > { %2060 = vmatmul.mubr.bf16.gmra.mxu1 %v3211_v34  ;;  %2135 = vmatpush1.bf16.msra.mxu0 %v3212_v35  ;;  %v3313_v34 = vld [vmem:[%s3727_s7 + $0x3a4] ss:$8 sps:$4 sm:$0xff]   ;;  %v3314_v35 = vld [vmem:[%s3729_s8 + $0x234] ss:$40 sps:$4 sm:$0xff]  }
  0xa6   : > { %2248 = vmatpush1.bf16.msra.mxu1 %v3215_v36  ;;  %2136 = vmatprep.subr.bf16.mxu0 %v3220_v37  ;;  %v3316_v36 = vld [vmem:[%s3729_s8 + $0x23c] ss:$40 sps:$4 sm:$0xff]   ;;  %v3308_v37 = vld [vmem:[%s3727_s7 + $0x2a0] ss:$8 sps:$4 sm:$0xff]  }
  0xa7   : > { %2249 = vmatprep.subr.bf16.mxu1 %v3223_v38  ;;  %1956 = vmatprep.mubr.bf16.mxu0 %v3224_v39  ;;  %v3311_v38 = vld [vmem:[%s3727_s7 + $0x3a0] ss:$8 sps:$4 sm:$0xff]   ;;  %v3322_v39 = vld [vmem:[%s3727_s7 + $0x294] ss:$8 sps:$4 sm:$0xff]  }
  0xa8   : > { %2069 = vmatprep.mubr.bf16.mxu1 %v3226_v40  ;;  %v3325_v40 = vld [vmem:[%s3727_s7 + $0x394] ss:$8 sps:$4 sm:$0xff]  }
  0xa9   : > { %2137 = vmatpush1.bf16.msra.mxu0 %v3218_v41  ;;  %v3318_v41 = vld [vmem:[%s3729_s8 + $0x230] ss:$40 sps:$4 sm:$0xff]  }
  0xaa   : > { %2250 = vmatpush1.bf16.msra.mxu1 %v3221_v42  ;;  %2138 = vmatprep.subr.bf16.mxu0 %v3232_v43  ;;  %v3319_v42 = vld [vmem:[%s3729_s8 + $0x238] ss:$40 sps:$4 sm:$0xff]  }
  0xab   : > { %2251 = vmatprep.subr.bf16.mxu1 %v3235_v44  ;;  %v3320_v43 = vld [vmem:[%s3727_s7 + $0x290] ss:$8 sps:$4 sm:$0xff]  }
  0xac   : > { %1957 = vmatmul.mubr.bf16.gmra.mxu0 %v3228_v45  ;;  %v3323_v44 = vld [vmem:[%s3727_s7 + $0x390] ss:$8 sps:$4 sm:$0xff]   ;;  %v3328_v45 = vld [vmem:[%s3727_s7 + $0x284] ss:$8 sps:$4 sm:$0xff]  }
  0xad   : > { %2070 = vmatmul.mubr.bf16.gmra.mxu1 %v3229_v46  ;;  %2139 = vmatpush1.bf16.msra.mxu0 %v3230_v47  ;;  %v3331_v46 = vld [vmem:[%s3727_s7 + $0x384] ss:$8 sps:$4 sm:$0xff]   ;;  %v3334_v47 = vld [vmem:[%s3729_s8 + $0x14] ss:$40 sps:$4 sm:$0xff]  }
  0xae   : > { %2252 = vmatpush1.bf16.msra.mxu1 %v3233_v48  ;;  %2140 = vmatprep.subr.bf16.mxu0 %v3238_v49  ;;  %v3337_v48 = vld [vmem:[%s3729_s8 + $0x1c] ss:$40 sps:$4 sm:$0xff]   ;;  %v3326_v49 = vld [vmem:[%s3727_s7 + $0x280] ss:$8 sps:$4 sm:$0xff]  }
  0xaf   : > { %2253 = vmatprep.subr.bf16.mxu1 %v3241_v50  ;;  %1966 = vmatprep.mubr.bf16.mxu0 %v3242_v51  ;;  %v3329_v50 = vld [vmem:[%s3727_s7 + $0x380] ss:$8 sps:$4 sm:$0xff]   ;;  %v3340_v51 = vld [vmem:[%s3727_s7 + $0x474] ss:$8 sps:$4 sm:$0xff]  }
  0xb0   : > { %2079 = vmatprep.mubr.bf16.mxu1 %v3244_v52  ;;  %v3332_v52 = vld [vmem:[%s3729_s8 + $0x10] ss:$40 sps:$4 sm:$0xff]  }
  0xb1   : > { %2141 = vmatpush1.bf16.msra.mxu0 %v3236_v53  ;;  %v3335_v53 = vld [vmem:[%s3729_s8 + $0x18] ss:$40 sps:$4 sm:$0xff]  }
  0xb2   : > { %2254 = vmatpush1.bf16.msra.mxu1 %v3239_v54  ;;  %2142 = vmatprep.subr.bf16.mxu0 %v3250_v55  ;;  %v3338_v54 = vld [vmem:[%s3727_s7 + $0x470] ss:$8 sps:$4 sm:$0xff]   ;;  %v3343_v55 = vld [vmem:[%s3727_s7 + $0x464] ss:$8 sps:$4 sm:$0xff]  }
  0xb3   : > { %2255 = vmatprep.subr.bf16.mxu1 %v3253_v56  ;;  %v3344_v56 = vld [vmem:[%s3729_s8 + $0x64] ss:$40 sps:$4 sm:$0xff]  }
  0xb4   : > { %1967 = vmatmul.mubr.bf16.gmra.mxu0 %v3246_v57  ;;  %v3346_v57 = vld [vmem:[%s3729_s8 + $0x6c] ss:$40 sps:$4 sm:$0xff]  }
  0xb5   : > { %2080 = vmatmul.mubr.bf16.gmra.mxu1 %v3247_v58  ;;  %2143 = vmatpush1.bf16.msra.mxu0 %v3248_v59  ;;  %v3341_v58 = vld [vmem:[%s3727_s7 + $0x460] ss:$8 sps:$4 sm:$0xff]   ;;  %v3352_v59 = vld [vmem:[%s3727_s7 + $0x454] ss:$8 sps:$4 sm:$0xff]  }
  0xb6   : > { %2256 = vmatpush1.bf16.msra.mxu1 %v3251_v60  ;;  %2144 = vmatprep.subr.bf16.mxu0 %v3256_v61  ;;  %v3348_v60 = vld [vmem:[%s3729_s8 + $0x60] ss:$40 sps:$4 sm:$0xff]  }
  0xb7   : > { %2257 = vmatprep.subr.bf16.mxu1 %v3259_v62  ;;  %1976 = vmatprep.mubr.bf16.mxu0 %v3260_v63  ;;  %v3349_v61 = vld [vmem:[%s3729_s8 + $0x68] ss:$40 sps:$4 sm:$0xff]   ;;  %v3355_v63 = vld [vmem:[%s3727_s7 + $0x444] ss:$8 sps:$4 sm:$0xff]  }
  0xb8   : > { %2089 = vmatprep.mubr.bf16.mxu1 %v3262_v0  ;;  %v3350_v62 = vld [vmem:[%s3727_s7 + $0x450] ss:$8 sps:$4 sm:$0xff]   ;;  %v3356_v0 = vld [vmem:[%s3729_s8 + $0xb4] ss:$40 sps:$4 sm:$0xff]  }
  0xb9   : > { %2145 = vmatpush1.bf16.msra.mxu0 %v3254_v1  ;;  %v3358_v1 = vld [vmem:[%s3729_s8 + $0xbc] ss:$40 sps:$4 sm:$0xff]  }
  0xba   : > { %2258 = vmatpush1.bf16.msra.mxu1 %v3257_v2  ;;  %2146 = vmatprep.subr.bf16.mxu0 %v3268_v3  ;;  %v3353_v2 = vld [vmem:[%s3727_s7 + $0x440] ss:$8 sps:$4 sm:$0xff]   ;;  %v3364_v3 = vld [vmem:[%s3727_s7 + $0x434] ss:$8 sps:$4 sm:$0xff]  }
  0xbb   : > { %2259 = vmatprep.subr.bf16.mxu1 %v3271_v4  ;;  %v3360_v4 = vld [vmem:[%s3729_s8 + $0xb0] ss:$40 sps:$4 sm:$0xff]  }
  0xbc   : > { %1977 = vmatmul.mubr.bf16.gmra.mxu0 %v3264_v5  ;;  %v3361_v5 = vld [vmem:[%s3729_s8 + $0xb8] ss:$40 sps:$4 sm:$0xff]  }
  0xbd   : > { %2090 = vmatmul.mubr.bf16.gmra.mxu1 %v3265_v6  ;;  %2147 = vmatpush2.bf16.msra.mxu0 %v3266_v7  ;;  %v3362_v6 = vld [vmem:[%s3727_s7 + $0x430] ss:$8 sps:$4 sm:$0xff]   ;;  %v3367_v7 = vld [vmem:[%s3727_s7 + $0x424] ss:$8 sps:$4 sm:$0xff]  }
  0xbe   : > { %2260 = vmatpush2.bf16.msra.mxu1 %v3269_v8  ;;  %2148 = vmatprep.subr.bf16.mxu0 %v3274_v9  ;;  %v3368_v8 = vld [vmem:[%s3729_s8 + $0x104] ss:$40 sps:$4 sm:$0xff]  }
  0xbf   : > { %2261 = vmatprep.subr.bf16.mxu1 %v3277_v10  ;;  %1986 = vmatprep.mubr.bf16.mxu0 %v3278_v11  ;;  %v3370_v9 = vld [vmem:[%s3729_s8 + $0x10c] ss:$40 sps:$4 sm:$0xff]   ;;  %v3365_v10 = vld [vmem:[%s3727_s7 + $0x420] ss:$8 sps:$4 sm:$0xff]  }
  0xc0   : > { %2099 = vmatprep.mubr.bf16.mxu1 %v3280_v12  ;;  %v3376_v11 = vld [vmem:[%s3727_s7 + $0x414] ss:$8 sps:$4 sm:$0xff]   ;;  %v3372_v12 = vld [vmem:[%s3729_s8 + $0x100] ss:$40 sps:$4 sm:$0xff]  }
  0xc1   : > { %2149 = vmatpush2.bf16.msra.mxu0 %v3272_v13  ;;  %v3373_v13 = vld [vmem:[%s3729_s8 + $0x108] ss:$40 sps:$4 sm:$0xff]  }
  0xc2   : > { %2262 = vmatpush2.bf16.msra.mxu1 %v3275_v14  ;;  %2150 = vmatprep.subr.bf16.mxu0 %v3286_v15  ;;  %v3374_v14 = vld [vmem:[%s3727_s7 + $0x410] ss:$8 sps:$4 sm:$0xff]   ;;  %v3379_v15 = vld [vmem:[%s3727_s7 + $0x404] ss:$8 sps:$4 sm:$0xff]  }
  0xc3   : > { %2263 = vmatprep.subr.bf16.mxu1 %v3289_v16  ;;  %v3380_v16 = vld [vmem:[%s3729_s8 + $0x154] ss:$40 sps:$4 sm:$0xff]  }
  0xc4   : > { %1987 = vmatmul.mubr.bf16.gmra.mxu0 %v3282_v17  ;;  %v3382_v17 = vld [vmem:[%s3729_s8 + $0x15c] ss:$40 sps:$4 sm:$0xff]  }
  0xc5   : > { %2100 = vmatmul.mubr.bf16.gmra.mxu1 %v3283_v18  ;;  %2151 = vmatpush2.bf16.msra.mxu0 %v3284_v19  ;;  %v3377_v18 = vld [vmem:[%s3727_s7 + $0x400] ss:$8 sps:$4 sm:$0xff]   ;;  %v3388_v19 = vld [vmem:[%s3727_s7 + $0x4f4] ss:$8 sps:$4 sm:$0xff]  }
  0xc6   : > { %2264 = vmatpush2.bf16.msra.mxu1 %v3287_v20  ;;  %2152 = vmatprep.subr.bf16.mxu0 %v3292_v21  ;;  %v3384_v20 = vld [vmem:[%s3729_s8 + $0x150] ss:$40 sps:$4 sm:$0xff]  }
  0xc7   : > { %2265 = vmatprep.subr.bf16.mxu1 %v3295_v22  ;;  %1996 = vmatprep.mubr.bf16.mxu0 %v3296_v23  ;;  %v3385_v21 = vld [vmem:[%s3729_s8 + $0x158] ss:$40 sps:$4 sm:$0xff]   ;;  %v3391_v23 = vld [vmem:[%s3727_s7 + $0x4e4] ss:$8 sps:$4 sm:$0xff]  }
  0xc8   : > { %2109 = vmatprep.mubr.bf16.mxu1 %v3298_v24  ;;  %v3386_v22 = vld [vmem:[%s3727_s7 + $0x4f0] ss:$8 sps:$4 sm:$0xff]   ;;  %v3392_v24 = vld [vmem:[%s3729_s8 + $0x1a4] ss:$40 sps:$4 sm:$0xff]  }
  0xc9   : > { %2153 = vmatpush2.bf16.msra.mxu0 %v3290_v25  ;;  %v3394_v25 = vld [vmem:[%s3729_s8 + $0x1ac] ss:$40 sps:$4 sm:$0xff]  }
  0xca   : > { %2266 = vmatpush2.bf16.msra.mxu1 %v3293_v26  ;;  %2154 = vmatprep.subr.bf16.mxu0 %v3304_v27  ;;  %v3389_v26 = vld [vmem:[%s3727_s7 + $0x4e0] ss:$8 sps:$4 sm:$0xff]   ;;  %v3400_v27 = vld [vmem:[%s3727_s7 + $0x4d4] ss:$8 sps:$4 sm:$0xff]  }
  0xcb   : > { %2267 = vmatprep.subr.bf16.mxu1 %v3307_v28  ;;  %v3396_v28 = vld [vmem:[%s3729_s8 + $0x1a0] ss:$40 sps:$4 sm:$0xff]  }
  0xcc   : > { %1997 = vmatmul.mubr.bf16.gmra.mxu0 %v3300_v29  ;;  %v3397_v29 = vld [vmem:[%s3729_s8 + $0x1a8] ss:$40 sps:$4 sm:$0xff]  }
  0xcd   : > { %2110 = vmatmul.mubr.bf16.gmra.mxu1 %v3301_v30  ;;  %2155 = vmatpush2.bf16.msra.mxu0 %v3302_v31  ;;  %v3398_v30 = vld [vmem:[%s3727_s7 + $0x4d0] ss:$8 sps:$4 sm:$0xff]   ;;  %v3403_v31 = vld [vmem:[%s3727_s7 + $0x4c4] ss:$8 sps:$4 sm:$0xff]  }
  0xce   : > { %2268 = vmatpush2.bf16.msra.mxu1 %v3305_v32  ;;  %2156 = vmatprep.subr.bf16.mxu0 %v3310_v33  ;;  %v3404_v32 = vld [vmem:[%s3729_s8 + $0x1f4] ss:$40 sps:$4 sm:$0xff]  }
  0xcf   : > { %2269 = vmatprep.subr.bf16.mxu1 %v3313_v34  ;;  %2006 = vmatprep.mubr.bf16.mxu0 %v3314_v35  ;;  %v3406_v33 = vld [vmem:[%s3729_s8 + $0x1fc] ss:$40 sps:$4 sm:$0xff]   ;;  %v3401_v34 = vld [vmem:[%s3727_s7 + $0x4c0] ss:$8 sps:$4 sm:$0xff]  }
  0xd0   : > { %2119 = vmatprep.mubr.bf16.mxu1 %v3316_v36  ;;  %v3412_v35 = vld [vmem:[%s3727_s7 + $0x4b4] ss:$8 sps:$4 sm:$0xff]   ;;  %v3408_v36 = vld [vmem:[%s3729_s8 + $0x1f0] ss:$40 sps:$4 sm:$0xff]  }
  0xd1   : > { %2157 = vmatpush2.bf16.msra.mxu0 %v3308_v37  ;;  %v3409_v37 = vld [vmem:[%s3729_s8 + $0x1f8] ss:$40 sps:$4 sm:$0xff]  }
  0xd2   : > { %2270 = vmatpush2.bf16.msra.mxu1 %v3311_v38  ;;  %2158 = vmatprep.subr.bf16.mxu0 %v3322_v39  ;;  %v3410_v38 = vld [vmem:[%s3727_s7 + $0x4b0] ss:$8 sps:$4 sm:$0xff]   ;;  %v3415_v39 = vld [vmem:[%s3727_s7 + $0x4a4] ss:$8 sps:$4 sm:$0xff]  }
  0xd3   : > { %2271 = vmatprep.subr.bf16.mxu1 %v3325_v40  ;;  %v3416_v40 = vld [vmem:[%s3729_s8 + $0x244] ss:$40 sps:$4 sm:$0xff]  }
  0xd4   : > { %2007 = vmatmul.mubr.bf16.gmra.mxu0 %v3318_v41  ;;  %v3418_v41 = vld [vmem:[%s3729_s8 + $0x24c] ss:$40 sps:$4 sm:$0xff]  }
  0xd5   : > { %2120 = vmatmul.mubr.bf16.gmra.mxu1 %v3319_v42  ;;  %2159 = vmatpush2.bf16.msra.mxu0 %v3320_v43  ;;  %v3413_v42 = vld [vmem:[%s3727_s7 + $0x4a0] ss:$8 sps:$4 sm:$0xff]   ;;  %v3424_v43 = vld [vmem:[%s3727_s7 + $0x494] ss:$8 sps:$4 sm:$0xff]  }
  0xd6   : > { %2272 = vmatpush2.bf16.msra.mxu1 %v3323_v44  ;;  %2160 = vmatprep.subr.bf16.mxu0 %v3328_v45  ;;  %v3420_v44 = vld [vmem:[%s3729_s8 + $0x240] ss:$40 sps:$4 sm:$0xff]  }
  0xd7   : > { %2273 = vmatprep.subr.bf16.mxu1 %v3331_v46  ;;  %2162 = vmatprep.mubr.bf16.mxu0 %v3334_v47  ;;  %v3421_v45 = vld [vmem:[%s3729_s8 + $0x248] ss:$40 sps:$4 sm:$0xff]   ;;  %v3427_v47 = vld [vmem:[%s3727_s7 + $0x484] ss:$8 sps:$4 sm:$0xff]  }
  0xd8   : > { %2275 = vmatprep.mubr.bf16.mxu1 %v3337_v48  ;;  %v3422_v46 = vld [vmem:[%s3727_s7 + $0x490] ss:$8 sps:$4 sm:$0xff]   ;;  %v3430_v48 = vld [vmem:[%s3729_s8 + $0x24] ss:$40 sps:$4 sm:$0xff]  }
  0xd9   : > { %2161 = vmatpush2.bf16.msra.mxu0 %v3326_v49  ;;  %v3433_v49 = vld [vmem:[%s3729_s8 + $0x164] ss:$40 sps:$4 sm:$0xff]  }
  0xda   : > { %2274 = vmatpush2.bf16.msra.mxu1 %v3329_v50  ;;  %2356 = vmatprep.subr.bf16.mxu0 %v3340_v51  ;;  %v3425_v50 = vld [vmem:[%s3727_s7 + $0x480] ss:$8 sps:$4 sm:$0xff]  }
  0xdb   : > { %3017 = vmatprep.subr.bf16.mxu1 %v3340_v51  ;;  %v3428_v51 = vld [vmem:[%s3729_s8 + $0x20] ss:$40 sps:$4 sm:$0xff]  }
  0xdc   : > { %2163 = vmatmul.mubr.bf16.vlgmr.msra.gmra.mxu0 %v3332_v52  ;;  %v3431_v52 = vld [vmem:[%s3729_s8 + $0x160] ss:$40 sps:$4 sm:$0xff]  }
  0xdd   : > { %2276 = vmatmul.mubr.bf16.vlgmr.msra.gmra.mxu1 %v3335_v53  ;;  %2357 = vmatpush1.bf16.msra.mxu0 %v3338_v54  ;;  %v3434_v53 = vld [vmem:[%s3729_s8 + $0x74] ss:$40 sps:$4 sm:$0xff]  }
  0xde   : > { %3033 = vmatpush1.bf16.msra.mxu1 %v3338_v54  ;;  %2358 = vmatprep.subr.bf16.mxu0 %v3343_v55  ;;  %v3436_v54 = vld [vmem:[%s3729_s8 + $0x1b4] ss:$40 sps:$4 sm:$0xff]  }
  0xdf   : > { %3018 = vmatprep.subr.bf16.mxu1 %v3343_v55  ;;  %2172 = vmatprep.mubr.bf16.mxu0 %v3344_v56  ;;  %v3438_v55 = vld [vmem:[%s3729_s8 + $0x70] ss:$40 sps:$4 sm:$0xff]  }
  0xe0   : > { %2285 = vmatprep.mubr.bf16.mxu1 %v3346_v57  ;;  %v3439_v56 = vld [vmem:[%s3729_s8 + $0x1b0] ss:$40 sps:$4 sm:$0xff]   ;;  %v3440_v57 = vld [vmem:[%s3729_s8 + $0xc4] ss:$40 sps:$4 sm:$0xff]  }
  0xe1   : > { %2359 = vmatpush1.bf16.msra.mxu0 %v3341_v58 }
  0xe2   : > { %3034 = vmatpush1.bf16.msra.mxu1 %v3341_v58  ;;  %2360 = vmatprep.subr.bf16.mxu0 %v3352_v59  ;;  %v3442_v58 = vld [vmem:[%s3729_s8 + $0x204] ss:$40 sps:$4 sm:$0xff]  }
  0xe3   : > { %3019 = vmatprep.subr.bf16.mxu1 %v3352_v59  ;;  %v3444_v59 = vld [vmem:[%s3729_s8 + $0xc0] ss:$40 sps:$4 sm:$0xff]  }
  0xe4   : > { %2173 = vmatmul.mubr.bf16.gmra.mxu0 %v3348_v60  ;;  %v3445_v60 = vld [vmem:[%s3729_s8 + $0x200] ss:$40 sps:$4 sm:$0xff]  }
  0xe5   : > { %2286 = vmatmul.mubr.bf16.gmra.mxu1 %v3349_v61  ;;  %2361 = vmatpush1.bf16.msra.mxu0 %v3350_v62  ;;  %v3446_v61 = vld [vmem:[%s3729_s8 + $0x114] ss:$40 sps:$4 sm:$0xff]  }
  0xe6   : > { %3035 = vmatpush1.bf16.msra.mxu1 %v3350_v62  ;;  %2362 = vmatprep.subr.bf16.mxu0 %v3355_v63  ;;  %v3448_v62 = vld [vmem:[%s3729_s8 + $0x254] ss:$40 sps:$4 sm:$0xff]  }
  0xe7   : > { %3020 = vmatprep.subr.bf16.mxu1 %v3355_v63  ;;  %2182 = vmatprep.mubr.bf16.mxu0 %v3356_v0  ;;  %v3450_v63 = vld [vmem:[%s3729_s8 + $0x110] ss:$40 sps:$4 sm:$0xff]  }
  0xe8   : > { %2295 = vmatprep.mubr.bf16.mxu1 %v3358_v1  ;;  %v3451_v0 = vld [vmem:[%s3729_s8 + $0x250] ss:$40 sps:$4 sm:$0xff]  }
  0xe9   : > { %2363 = vmatpush1.bf16.msra.mxu0 %v3353_v2 }
  0xea   : > { %3036 = vmatpush1.bf16.msra.mxu1 %v3353_v2  ;;  %2364 = vmatprep.subr.bf16.mxu0 %v3364_v3 }
  0xeb   : > { %3021 = vmatprep.subr.bf16.mxu1 %v3364_v3 }
  0xec   : > { %2183 = vmatmul.mubr.bf16.gmra.mxu0 %v3360_v4 }
  0xed   : > { %2296 = vmatmul.mubr.bf16.gmra.mxu1 %v3361_v5  ;;  %2365 = vmatpush1.bf16.msra.mxu0 %v3362_v6 }
  0xee   : > { %3037 = vmatpush1.bf16.msra.mxu1 %v3362_v6  ;;  %2366 = vmatprep.subr.bf16.mxu0 %v3367_v7 }
  0xef   : > { %3022 = vmatprep.subr.bf16.mxu1 %v3367_v7  ;;  %2192 = vmatprep.mubr.bf16.mxu0 %v3368_v8 }
  0xf0   : > { %2305 = vmatprep.mubr.bf16.mxu1 %v3370_v9 }
  0xf1   : > { %2367 = vmatpush1.bf16.msra.mxu0 %v3365_v10 }
  0xf2   : > { %3038 = vmatpush1.bf16.msra.mxu1 %v3365_v10  ;;  %2368 = vmatprep.subr.bf16.mxu0 %v3376_v11 }
  0xf3   : > { %3023 = vmatprep.subr.bf16.mxu1 %v3376_v11 }
  0xf4   : > { %2193 = vmatmul.mubr.bf16.gmra.mxu0 %v3372_v12 }
  0xf5   : > { %2306 = vmatmul.mubr.bf16.gmra.mxu1 %v3373_v13  ;;  %2369 = vmatpush1.bf16.msra.mxu0 %v3374_v14 }
  0xf6   : > { %3039 = vmatpush1.bf16.msra.mxu1 %v3374_v14  ;;  %2370 = vmatprep.subr.bf16.mxu0 %v3379_v15 }
  0xf7   : > { %3024 = vmatprep.subr.bf16.mxu1 %v3379_v15  ;;  %2202 = vmatprep.mubr.bf16.mxu0 %v3380_v16 }
  0xf8   : > { %2315 = vmatprep.mubr.bf16.mxu1 %v3382_v17 }
  0xf9   : > { %2371 = vmatpush1.bf16.msra.mxu0 %v3377_v18 }
  0xfa   : > { %3040 = vmatpush1.bf16.msra.mxu1 %v3377_v18  ;;  %2372 = vmatprep.subr.bf16.mxu0 %v3388_v19 }
  0xfb   : > { %3025 = vmatprep.subr.bf16.mxu1 %v3388_v19 }
  0xfc   : > { %2203 = vmatmul.mubr.bf16.gmra.mxu0 %v3384_v20 }
  0xfd   : > { %2316 = vmatmul.mubr.bf16.gmra.mxu1 %v3385_v21  ;;  %2373 = vmatpush2.bf16.msra.mxu0 %v3386_v22 }
  0xfe   : > { %3041 = vmatpush2.bf16.msra.mxu1 %v3386_v22  ;;  %2374 = vmatprep.subr.bf16.mxu0 %v3391_v23 }
  0xff   : > { %3026 = vmatprep.subr.bf16.mxu1 %v3391_v23  ;;  %2212 = vmatprep.mubr.bf16.mxu0 %v3392_v24 }
 0x100   : > { %2325 = vmatprep.mubr.bf16.mxu1 %v3394_v25 }
 0x101   : > { %2375 = vmatpush2.bf16.msra.mxu0 %v3389_v26 }
 0x102   : > { %3042 = vmatpush2.bf16.msra.mxu1 %v3389_v26  ;;  %2376 = vmatprep.subr.bf16.mxu0 %v3400_v27 }
 0x103   : > { %3027 = vmatprep.subr.bf16.mxu1 %v3400_v27 }
 0x104   : > { %2213 = vmatmul.mubr.bf16.gmra.mxu0 %v3396_v28 }
 0x105   : > { %2326 = vmatmul.mubr.bf16.gmra.mxu1 %v3397_v29  ;;  %2377 = vmatpush2.bf16.msra.mxu0 %v3398_v30 }
 0x106   : > { %3043 = vmatpush2.bf16.msra.mxu1 %v3398_v30  ;;  %2378 = vmatprep.subr.bf16.mxu0 %v3403_v31 }
 0x107   : > { %3028 = vmatprep.subr.bf16.mxu1 %v3403_v31  ;;  %2222 = vmatprep.mubr.bf16.mxu0 %v3404_v32 }
 0x108   : > { %2335 = vmatprep.mubr.bf16.mxu1 %v3406_v33 }
 0x109   : > { %2379 = vmatpush2.bf16.msra.mxu0 %v3401_v34 }
 0x10a   : > { %3044 = vmatpush2.bf16.msra.mxu1 %v3401_v34  ;;  %2380 = vmatprep.subr.bf16.mxu0 %v3412_v35 }
 0x10b   : > { %3029 = vmatprep.subr.bf16.mxu1 %v3412_v35 }
 0x10c   : > { %2223 = vmatmul.mubr.bf16.gmra.mxu0 %v3408_v36 }
 0x10d   : > { %2336 = vmatmul.mubr.bf16.gmra.mxu1 %v3409_v37  ;;  %2381 = vmatpush2.bf16.msra.mxu0 %v3410_v38 }
 0x10e   : > { %3045 = vmatpush2.bf16.msra.mxu1 %v3410_v38  ;;  %2382 = vmatprep.subr.bf16.mxu0 %v3415_v39 }
 0x10f   : > { %3030 = vmatprep.subr.bf16.mxu1 %v3415_v39  ;;  %2232 = vmatprep.mubr.bf16.mxu0 %v3416_v40 }
 0x110   : > { %2345 = vmatprep.mubr.bf16.mxu1 %v3418_v41 }
 0x111   : > { %2383 = vmatpush2.bf16.msra.mxu0 %v3413_v42 }
 0x112   : > { %3046 = vmatpush2.bf16.msra.mxu1 %v3413_v42  ;;  %2384 = vmatprep.subr.bf16.mxu0 %v3424_v43 }
 0x113   : > { %3031 = vmatprep.subr.bf16.mxu1 %v3424_v43 }
 0x114   : > { %2233 = vmatmul.mubr.bf16.gmra.mxu0 %v3420_v44 }
 0x115   : > { %2346 = vmatmul.mubr.bf16.gmra.mxu1 %v3421_v45  ;;  %2385 = vmatpush2.bf16.msra.mxu0 %v3422_v46 }
 0x116   : > { %3047 = vmatpush2.bf16.msra.mxu1 %v3422_v46  ;;  %2386 = vmatprep.subr.bf16.mxu0 %v3427_v47 }
 0x117   : > { %3032 = vmatprep.subr.bf16.mxu1 %v3427_v47  ;;  %2388 = vmatprep.mubr.bf16.mxu0 %v3430_v48 }
 0x118   : > { %2428 = vmatprep.mubr.bf16.mxu1 %v3433_v49 }
 0x119   : > { %2387 = vmatpush2.bf16.msra.mxu0 %v3425_v50 }
 0x11a   : > { %3048 = vmatpush2.bf16.msra.mxu1 %v3425_v50 }
 0x11c   : > { %2389 = vmatmul.mubr.bf16.vlgmr.msra.gmra.mxu0 %v3428_v51 }
 0x11d   : > { %2429 = vmatmul.mubr.bf16.vlgmr.msra.gmra.mxu1 %v3431_v52  ;;  %2398 = vmatprep.mubr.bf16.mxu0 %v3434_v53 }
 0x11e   : > { %2438 = vmatprep.mubr.bf16.mxu1 %v3436_v54 }
 0x124   : > { %2399 = vmatmul.mubr.bf16.gmra.mxu0 %v3438_v55 }
 0x125   : > { %2439 = vmatmul.mubr.bf16.gmra.mxu1 %v3439_v56  ;;  %2408 = vmatprep.mubr.bf16.mxu0 %v3440_v57 }
 0x126   : > { %2448 = vmatprep.mubr.bf16.mxu1 %v3442_v58 }
 0x12c   : > { %2409 = vmatmul.mubr.bf16.gmra.mxu0 %v3444_v59 }
 0x12d   : > { %2449 = vmatmul.mubr.bf16.gmra.mxu1 %v3445_v60  ;;  %2418 = vmatprep.mubr.bf16.mxu0 %v3446_v61 }
 0x12e   : > { %2458 = vmatprep.mubr.bf16.mxu1 %v3448_v62 }
 0x134   : > { %2419 = vmatmul.mubr.bf16.gmra.mxu0 %v3450_v63 }
 0x135   : > { %2459 = vmatmul.mubr.bf16.gmra.mxu1 %v3451_v0 }
 0x15c   : > { %v1938_v1 = vpop.f32.mrf.mxu0 }
 0x15d   : > { %v2051_v2 = vpop.f32.mrf.mxu1 }
 0x15e   : > { %v4068_v3 = vadd.f32 %v2051_v2, %v1938_v1  ;;  %v1940_v4 = vpop.f32.mrf.mxu0 }
 0x15f   : > { %v2053_v5 = vpop.f32.mrf.mxu1 }
 0x160   : > { %v4070_v6 = vadd.f32 %v2053_v5, %v1940_v4  ;;  %v1942_v7 = vpop.f32.mrf.mxu0 }
 0x161   : > { %v2055_v8 = vpop.f32.mrf.mxu1 }
 0x162   : > { %v4072_v9 = vadd.f32 %v2055_v8, %v1942_v7  ;;  %v1944_v10 = vpop.f32.mrf.mxu0 }
 0x163   : > { %v2057_v11 = vpop.f32.mrf.mxu1 }
 0x164   : > { %v4074_v12 = vadd.f32 %v2057_v11, %v1944_v10  ;;  %v1948_v13 = vpop.f32.mrf.mxu0 }
 0x165   : > { %v2061_v14 = vpop.f32.mrf.mxu1 }
 0x166   : > { %v4076_v15 = vadd.f32 %v2061_v14, %v1948_v13  ;;  %v1950_v16 = vpop.f32.mrf.mxu0 }
 0x167   : > { %v2063_v17 = vpop.f32.mrf.mxu1 }
 0x168   : > { %v4078_v18 = vadd.f32 %v2063_v17, %v1950_v16  ;;  %v1952_v19 = vpop.f32.mrf.mxu0 }
 0x169   : > { %v2065_v20 = vpop.f32.mrf.mxu1 }
 0x16a   : > { %v4080_v21 = vadd.f32 %v2065_v20, %v1952_v19  ;;  %v1954_v22 = vpop.f32.mrf.mxu0 }
 0x16b   : > { %v2067_v23 = vpop.f32.mrf.mxu1 }
 0x16c   : > { %v4082_v24 = vadd.f32 %v2067_v23, %v1954_v22  ;;  %v1958_v25 = vpop.f32.mrf.mxu0 }
 0x16d   : > { %v2071_v26 = vpop.f32.mrf.mxu1 }
 0x16e   : > { %v4084_v27 = vadd.f32 %v2071_v26, %v1958_v25  ;;  %v1960_v28 = vpop.f32.mrf.mxu0 }
 0x16f   : > { %v2073_v29 = vpop.f32.mrf.mxu1 }
 0x170   : > { %v4086_v30 = vadd.f32 %v2073_v29, %v1960_v28  ;;  %v1962_v31 = vpop.f32.mrf.mxu0 }
 0x171   : > { %v2075_v32 = vpop.f32.mrf.mxu1 }
 0x172   : > { %v4088_v33 = vadd.f32 %v2075_v32, %v1962_v31  ;;  %v1964_v34 = vpop.f32.mrf.mxu0 }
 0x173   : > { %v2077_v35 = vpop.f32.mrf.mxu1 }
 0x174   : > { %4760 = vst [vmem:[#allocation3_spill] sm:$0xff] %v4088_v33  ;;  %v4090_v36 = vadd.f32 %v2077_v35, %v1964_v34  ;;  %v1968_v37 = vpop.f32.mrf.mxu0 }
 0x175   : > { %v2081_v38 = vpop.f32.mrf.mxu1 }
 0x176   : > { %4761 = vst [vmem:[#allocation4_spill] sm:$0xff] %v4090_v36  ;;  %v4092_v39 = vadd.f32 %v2081_v38, %v1968_v37  ;;  %v1970_v40 = vpop.f32.mrf.mxu0 }
 0x177   : > { %v2083_v41 = vpop.f32.mrf.mxu1 }
 0x178   : > { %4762 = vst [vmem:[#allocation5_spill] sm:$0xff] %v4092_v39  ;;  %v4094_v42 = vadd.f32 %v2083_v41, %v1970_v40  ;;  %v1972_v43 = vpop.f32.mrf.mxu0 }
 0x179   : > { %v2085_v44 = vpop.f32.mrf.mxu1 }
 0x17a   : > { %4763 = vst [vmem:[#allocation6_spill] sm:$0xff] %v4094_v42  ;;  %v4096_v45 = vadd.f32 %v2085_v44, %v1972_v43  ;;  %v1974_v46 = vpop.f32.mrf.mxu0 }
 0x17b   : > { %v2087_v47 = vpop.f32.mrf.mxu1 }
 0x17c   : > { %4764 = vst [vmem:[#allocation7_spill] sm:$0xff] %v4096_v45  ;;  %v4098_v48 = vadd.f32 %v2087_v47, %v1974_v46  ;;  %v1978_v49 = vpop.f32.mrf.mxu0 }
 0x17d   : > { %v2091_v50 = vpop.f32.mrf.mxu1 }
 0x17e   : > { %4765 = vst [vmem:[#allocation8_spill] sm:$0xff] %v4098_v48  ;;  %v4100_v51 = vadd.f32 %v2091_v50, %v1978_v49  ;;  %v1980_v52 = vpop.f32.mrf.mxu0 }
 0x17f   : > { %v2093_v53 = vpop.f32.mrf.mxu1 }
 0x180   : > { %v4102_v54 = vadd.f32 %v2093_v53, %v1980_v52  ;;  %v1982_v55 = vpop.f32.mrf.mxu0 }
 0x181   : > { %v2095_v56 = vpop.f32.mrf.mxu1 }
 0x182   : > { %v4104_v57 = vadd.f32 %v2095_v56, %v1982_v55  ;;  %v1984_v58 = vpop.f32.mrf.mxu0 }
 0x183   : > { %v2097_v59 = vpop.f32.mrf.mxu1 }
 0x184   : > { %v4106_v60 = vadd.f32 %v2097_v59, %v1984_v58  ;;  %v1988_v61 = vpop.f32.mrf.mxu0 }
 0x185   : > { %v2101_v62 = vpop.f32.mrf.mxu1 }
 0x186   : > { %v4108_v63 = vadd.f32 %v2101_v62, %v1988_v61  ;;  %v1990_v0 = vpop.f32.mrf.mxu0 }
 0x187   : > { %v2103_v1 = vpop.f32.mrf.mxu1 }
 0x188   : > { %v4110_v2 = vadd.f32 %v2103_v1, %v1990_v0  ;;  %v1992_v4 = vpop.f32.mrf.mxu0 }
 0x189   : > { %v2105_v5 = vpop.f32.mrf.mxu1 }
 0x18a   : > { %v4112_v7 = vadd.f32 %v2105_v5, %v1992_v4  ;;  %v1994_v8 = vpop.f32.mrf.mxu0 }
 0x18b   : > { %v2107_v10 = vpop.f32.mrf.mxu1 }
 0x18c   : > { %v4114_v11 = vadd.f32 %v2107_v10, %v1994_v8  ;;  %v1998_v13 = vpop.f32.mrf.mxu0 }
 0x18d   : > { %v2111_v14 = vpop.f32.mrf.mxu1 }
 0x18e   : > { %v4116_v16 = vadd.f32 %v2111_v14, %v1998_v13  ;;  %v2000_v17 = vpop.f32.mrf.mxu0 }
 0x18f   : > { %v2113_v19 = vpop.f32.mrf.mxu1 }
 0x190   : > { %v4118_v20 = vadd.f32 %v2113_v19, %v2000_v17  ;;  %v2002_v22 = vpop.f32.mrf.mxu0 }
 0x191   : > { %v2115_v23 = vpop.f32.mrf.mxu1 }
 0x192   : > { %4766 = vst [vmem:[#allocation9_spill] sm:$0xff] %v4118_v20  ;;  %v4120_v25 = vadd.f32 %v2115_v23, %v2002_v22  ;;  %v2004_v26 = vpop.f32.mrf.mxu0 }
 0x193   : > { %v2117_v28 = vpop.f32.mrf.mxu1 }
 0x194   : > { %4767 = vst [vmem:[#allocation10_spill] sm:$0xff] %v4120_v25  ;;  %v4122_v29 = vadd.f32 %v2117_v28, %v2004_v26  ;;  %v2008_v31 = vpop.f32.mrf.mxu0 }
 0x195   : > { %v2121_v32 = vpop.f32.mrf.mxu1 }
 0x196   : > { %4768 = vst [vmem:[#allocation11_spill] sm:$0xff] %v4122_v29  ;;  %v4124_v34 = vadd.f32 %v2121_v32, %v2008_v31  ;;  %v2010_v35 = vpop.f32.mrf.mxu0 }
 0x197   : > { %v2123_v37 = vpop.f32.mrf.mxu1 }
 0x198   : > { %4769 = vst [vmem:[#allocation12_spill] sm:$0xff] %v4124_v34  ;;  %v4126_v38 = vadd.f32 %v2123_v37, %v2010_v35  ;;  %v2012_v40 = vpop.f32.mrf.mxu0 }
 0x199   : > { %v2125_v41 = vpop.f32.mrf.mxu1 }
 0x19a   : > { %4770 = vst [vmem:[#allocation13_spill] sm:$0xff] %v4126_v38  ;;  %v4128_v43 = vadd.f32 %v2125_v41, %v2012_v40  ;;  %v2014_v44 = vpop.f32.mrf.mxu0 }
 0x19b   : > { %v2127_v46 = vpop.f32.mrf.mxu1 }
 0x19c   : > { %4771 = vst [vmem:[#allocation14_spill] sm:$0xff] %v4128_v43  ;;  %v4130_v47 = vadd.f32 %v2127_v46, %v2014_v44  ;;  %v2164_v49 = vpop.f32.mrf.mxu0 }
 0x19d   : > { %v4132_v50 = vpop.f32.mrf.mxu1 }
 0x19e   : > { %4772 = vst [vmem:[#allocation15_spill] sm:$0xff] %v4130_v47  ;;  %v2166_v52 = vpop.f32.mrf.mxu0 }
 0x19f   : > { %v4134_v53 = vpop.f32.mrf.mxu1 }
 0x1a0   : > { %v2168_v55 = vpop.f32.mrf.mxu0 }
 0x1a1   : > { %v4136_v56 = vpop.f32.mrf.mxu1 }
 0x1a2   : > { %v4138_v58 = vpop.f32.mrf.mxu0 }
 0x1a3   : > { %v4140_v59 = vpop.f32.mrf.mxu1 }
 0x1a4   : > { %v4142_v61 = vpop.f32.mrf.mxu0 }
 0x1a5   : > { %v4144_v62 = vpop.f32.mrf.mxu1 }
 0x1a6   : > { %v4146_v0 = vpop.f32.mrf.mxu0 }
 0x1a7   : > { %v4148_v1 = vpop.f32.mrf.mxu1 }
 0x1a8   : > { %v4150_v4 = vpop.f32.mrf.mxu0 }
 0x1a9   : > { %v4152_v5 = vpop.f32.mrf.mxu1 }
 0x1aa   : > { %v4154_v8 = vpop.f32.mrf.mxu0 }
 0x1ab   : > { %v4156_v10 = vpop.f32.mrf.mxu1 }
 0x1ac   : > { %v4158_v13 = vpop.f32.mrf.mxu0 }
 0x1ad   : > { %v4160_v14 = vpop.f32.mrf.mxu1 }
 0x1ae   : > { %4773 = vst [vmem:[#allocation16_spill] sm:$0xff] %v4160_v14  ;;  %v4162_v17 = vpop.f32.mrf.mxu0 }
 0x1af   : > { %v4164_v19 = vpop.f32.mrf.mxu1 }
 0x1b0   : > { %4774 = vst [vmem:[#allocation17_spill] sm:$0xff] %v4164_v19  ;;  %v4166_v22 = vpop.f32.mrf.mxu0 }
 0x1b1   : > { %4775 = vst [vmem:[#allocation18_spill] sm:$0xff] %v4166_v22  ;;  %v4168_v23 = vpop.f32.mrf.mxu1 }
 0x1b2   : > { %4776 = vst [vmem:[#allocation19_spill] sm:$0xff] %v4168_v23  ;;  %v4170_v26 = vpop.f32.mrf.mxu0 }
 0x1b3   : > { %4777 = vst [vmem:[#allocation20_spill] sm:$0xff] %v4170_v26  ;;  %v4172_v28 = vpop.f32.mrf.mxu1 }
 0x1b4   : > { %4778 = vst [vmem:[#allocation21_spill] sm:$0xff] %v4172_v28  ;;  %v4174_v31 = vpop.f32.mrf.mxu0 }
 0x1b5   : > { %4779 = vst [vmem:[#allocation22_spill] sm:$0xff] %v4174_v31  ;;  %v4176_v32 = vpop.f32.mrf.mxu1 }
 0x1b6   : > { %4780 = vst [vmem:[#allocation23_spill] sm:$0xff] %v4176_v32  ;;  %v4178_v35 = vpop.f32.mrf.mxu0 }
 0x1b7   : > { %4781 = vst [vmem:[#allocation24_spill] sm:$0xff] %v4178_v35  ;;  %v4180_v37 = vpop.f32.mrf.mxu1 }
 0x1b8   : > { %4782 = vst [vmem:[#allocation25_spill] sm:$0xff] %v4180_v37  ;;  %v4182_v40 = vpop.f32.mrf.mxu0 }
 0x1b9   : > { %4783 = vst [vmem:[#allocation26_spill] sm:$0xff] %v4182_v40  ;;  %v4184_v41 = vpop.f32.mrf.mxu1 }
 0x1ba   : > { %4784 = vst [vmem:[#allocation27_spill] sm:$0xff] %v4184_v41  ;;  %v4186_v44 = vpop.f32.mrf.mxu0 }
 0x1bb   : > { %4785 = vst [vmem:[#allocation28_spill] sm:$0xff] %v4186_v44  ;;  %v4188_v46 = vpop.f32.mrf.mxu1 }
 0x1bc   : > { %4786 = vst [vmem:[#allocation29_spill] sm:$0xff] %v4188_v46  ;;  %v2204_v47 = vpop.f32.mrf.mxu0 }
 0x1bd   : > { %v2317_v48 = vpop.f32.mrf.mxu1 }
 0x1be   : > { %v2206_v43 = vpop.f32.mrf.mxu0 }
 0x1bf   : > { %v2319_v45 = vpop.f32.mrf.mxu1 }
 0x1c0   : > { %v2208_v38 = vpop.f32.mrf.mxu0 }
 0x1c1   : > { %v2321_v42 = vpop.f32.mrf.mxu1 }
 0x1c2   : > { %v2210_v28 = vpop.f32.mrf.mxu0 }
 0x1c3   : > { %v2323_v32 = vpop.f32.mrf.mxu1 }
 0x1c4   : > { %v2214_v34 = vpop.f32.mrf.mxu0 }
 0x1c5   : > { %v4190_v35 = vpop.f32.mrf.mxu1 }
 0x1c6   : > { %v2216_v37 = vpop.f32.mrf.mxu0 }
 0x1c7   : > { %v4192_v31 = vpop.f32.mrf.mxu1 }
 0x1c8   : > { %v4194_v40 = vpop.f32.mrf.mxu0 }
 0x1c9   : > { %v4196_v41 = vpop.f32.mrf.mxu1 }
 0x1ca   : > { %v4198_v44 = vpop.f32.mrf.mxu0 }
 0x1cb   : > { %v4200_v46 = vpop.f32.mrf.mxu1 }
 0x1cc   : > { %4787 = vst [vmem:[#allocation30_spill] sm:$0xff] %v4200_v46  ;;  %v4202_v39 = vpop.f32.mrf.mxu0 }
 0x1cd   : > { %v4204_v23 = vpop.f32.mrf.mxu1 }
 0x1ce   : > { %4788 = vst [vmem:[#allocation31_spill] sm:$0xff] %v4204_v23  ;;  %v4206_v29 = vpop.f32.mrf.mxu0  ;;  %v2165_v23 = vadd.f32 %v2164_v49, %v4068_v3 }
 0x1cf   : > { %4789 = vst [vmem:[#allocation32_spill] sm:$0xff] %v4206_v29  ;;  %v4208_v26 = vpop.f32.mrf.mxu1 }
 0x1d0   : > { %4790 = vst [vmem:[#allocation33_spill] sm:$0xff] %v4208_v26  ;;  %v4210_v36 = vpop.f32.mrf.mxu0  ;;  %v2205_v26 = vadd.f32 %v2204_v47, %v4100_v51  ;;  %v2278_v3 = vadd.f32 %v4132_v50, %v2165_v23  ;;  %v2171_v51 = vadd.f32 %v4138_v58, %v4074_v12  ;;  %v2211_v47 = vadd.f32 %v2210_v28, %v4106_v60  ;;  %v433_v58 = vld [vmem:[%s4759_s3 + $0x8] sm:$0xff] }
 0x1d1   : > { %4791 = vst [vmem:[#allocation34_spill] sm:$0xff] %v4210_v36  ;;  %v4212_v19 = vpop.f32.mrf.mxu1  ;;  %v2175_v12 = vadd.f32 %v4142_v61, %v4076_v15  ;;  %v2177_v15 = vadd.f32 %v4146_v0, %v4078_v18 }
 0x1d2   : > { %4792 = vst [vmem:[#allocation35_spill] sm:$0xff] %v4212_v19  ;;  %v4214_v25 = vpop.f32.mrf.mxu0  ;;  %v2167_v19 = vadd.f32 %v2166_v52, %v4070_v6  ;;  %v2318_v49 = vadd.f32 %v2317_v48, %v2205_v26  ;;  %v432_v6 = vld [vmem:[%s4759_s3] sm:$0xff] }
 0x1d3   : > { %4793 = vst [vmem:[#allocation36_spill] sm:$0xff] %v4214_v25  ;;  %v4216_v22 = vpop.f32.mrf.mxu1 }
 0x1d4   : > { %4794 = vst [vmem:[#allocation37_spill] sm:$0xff] %v4216_v22  ;;  %v4218_v33 = vpop.f32.mrf.mxu0  ;;  %v2207_v22 = vadd.f32 %v2206_v43, %v4102_v54 }
 0x1d5   : > { %4795 = vst [vmem:[#allocation38_spill] sm:$0xff] %v4218_v33  ;;  %v4220_v14 = vpop.f32.mrf.mxu1  ;;  %v2169_v33 = vadd.f32 %v2168_v55, %v4072_v9  ;;  %v448_v9 = vld [vmem:[%s4759_s3 + $0x80] sm:$0xff]  ;;  %v2215_v55 = vadd.f32 %v2214_v34, %v4108_v63  ;;  %v2217_v63 = vadd.f32 %v2216_v37, %v4110_v2  ;;  %v434_v34 = vld [vmem:[%s4759_s3 + $0x10] sm:$0xff]  ;;  %v2179_v37 = vadd.f32 %v4150_v4, %v4080_v21 }
 0x1d6   : > { %4796 = vst [vmem:[#allocation39_spill] sm:$0xff] %v4220_v14  ;;  %v4222_v20 = vpop.f32.mrf.mxu0  ;;  %v2209_v14 = vadd.f32 %v2208_v38, %v4104_v57  ;;  %v2280_v38 = vadd.f32 %v4134_v53, %v2167_v19  ;;  %v2320_v43 = vadd.f32 %v2319_v45, %v2207_v22  ;;  %v449_v53 = vld [vmem:[%s4759_s3 + $0x88] sm:$0xff] }
 0x1d7   : > { %4797 = vst [vmem:[#allocation40_spill] sm:$0xff] %v4222_v20  ;;  %v4224_v46 = vpop.f32.mrf.mxu1  ;;  %v2282_v52 = vadd.f32 %v4136_v56, %v2169_v33  ;;  %v2284_v56 = vadd.f32 %v4140_v59, %v2171_v51  ;;  %v435_v51 = vld [vmem:[%s4759_s3 + $0x18] sm:$0xff] }
 0x1d8   : > { %v4228_v29 = vpop.f32.mrf.mxu0  ;;  %v2322_v60 = vadd.f32 %v2321_v42, %v2209_v14  ;;  %v2324_v42 = vadd.f32 %v2323_v32, %v2211_v47  ;;  %v450_v14 = vld [vmem:[%s4759_s3 + $0x90] sm:$0xff]  ;;  %v2288_v32 = vadd.f32 %v4144_v62, %v2175_v12  ;;  %v2225_v12 = vadd.f32 %v4202_v39, %v4116_v16 }
 0x1d9   : > { %v4230_v36 = vpop.f32.mrf.mxu1 }
 0x1da   : > { %v4236_v25 = vpop.f32.mrf.mxu0 }
 0x1db   : > { %v4238_v20 = vpop.f32.mrf.mxu1 }
 0x1dc   : > { %v2390_v54 = vpop.f32.mrf.mxu0 }
 0x1dd   : > { %v2430_v57 = vpop.f32.mrf.mxu1  ;;  %v2391_v50 = vadd.f32 %v2390_v54, %v2278_v3  ;;  %v2328_v3 = vadd.f32 %v4190_v35, %v2215_v55  ;;  %v2290_v35 = vadd.f32 %v4148_v1, %v2177_v15  ;;  %v454_v15 = vld [vmem:[%s4759_s3 + $0xb0] sm:$0xff] }
 0x1de   : > { %v2431_v48 = vadd.f32 %v2430_v57, %v2318_v49  ;;  %v2392_v23 = vpop.f32.mrf.mxu0  ;;  %v2219_v49 = vadd.f32 %v4194_v40, %v4112_v7  ;;  %v2181_v40 = vadd.f32 %v4154_v8, %v4082_v24  ;;  %v2221_v57 = vadd.f32 %v4198_v44, %v4114_v11 }
 0x1df   : > { %v2432_v45 = vpop.f32.mrf.mxu1  ;;  %v2469_v19 = vadd.f32 %v2391_v50, %v432_v6  ;;  %v2393_v26 = vadd.f32 %v2392_v23, %v2280_v38  ;;  %v451_v6 = vld [vmem:[%s4759_s3 + $0x98] sm:$0xff]  ;;  %v436_v38 = vld [vmem:[%s4759_s3 + $0x20] sm:$0xff]  ;;  %v2185_v44 = vadd.f32 %v4158_v13, %v4084_v27 }
 0x1e0   : > { %v2485_v22 = vadd.f32 %v2431_v48, %v448_v9  ;;  %v2433_v33 = vadd.f32 %v2432_v45, %v2320_v43  ;;  %v2394_v61 = vpop.f32.mrf.mxu0  ;;  %v2330_v9 = vadd.f32 %v4192_v31, %v2217_v63  ;;  %v452_v50 = vld [vmem:[%s4759_s3 + $0xa0] sm:$0xff]  ;;  %v2292_v31 = vadd.f32 %v4152_v5, %v2179_v37 }
 0x1e1   : > { %v2434_v28 = vpop.f32.mrf.mxu1  ;;  %2501 = vst [vmem:[%s4759_s3] sm:$0xff] %v2469_v19  ;;  %v2470_v18 = vadd.f32 %v2393_v26, %v433_v58  ;;  %v2395_v59 = vadd.f32 %v2394_v61, %v2282_v52  ;;  %v2332_v52 = vadd.f32 %v4196_v41, %v2219_v49  ;;  %v453_v58 = vld [vmem:[%s4759_s3 + $0xa8] sm:$0xff]  ;;  %v2294_v13 = vadd.f32 %v4156_v10, %v2181_v40  ;;  %v4799_v19 = vld [vmem:[#allocation9_spill] sm:$0xff] }
 0x1e2   : > { %2517 = vst [vmem:[%s4759_s3 + $0x80] sm:$0xff] %v2485_v22  ;;  %v2486_v2 = vadd.f32 %v2433_v33, %v449_v53  ;;  %v2435_v0 = vadd.f32 %v2434_v28, %v2322_v60  ;;  %v2396_v47 = vpop.f32.mrf.mxu0  ;;  %v437_v60 = vld [vmem:[%s4759_s3 + $0x28] sm:$0xff]  ;;  %v2187_v41 = vadd.f32 %v4162_v17, %v4086_v30  ;;  %v4798_v53 = vld [vmem:[#allocation30_spill] sm:$0xff]  ;;  %v438_v33 = vld [vmem:[%s4759_s3 + $0x30] sm:$0xff] }
 0x1e3   : > { %v2436_v54 = vpop.f32.mrf.mxu1  ;;  %2502 = vst [vmem:[%s4759_s3 + $0x8] sm:$0xff] %v2470_v18  ;;  %v2471_v21 = vadd.f32 %v2395_v59, %v434_v34  ;;  %v2397_v62 = vadd.f32 %v2396_v47, %v2284_v56  ;;  %v2334_v45 = vadd.f32 %v4798_v53, %v2221_v57  ;;  %v4800_v22 = vld [vmem:[#allocation32_spill] sm:$0xff]  ;;  %v4803_v28 = vld [vmem:[#allocation18_spill] sm:$0xff]  ;;  %v4810_v57 = vld [vmem:[#allocation33_spill] sm:$0xff] }
 0x1e4   : > { %2518 = vst [vmem:[%s4759_s3 + $0x88] sm:$0xff] %v2486_v2  ;;  %v2487_v7 = vadd.f32 %v2435_v0, %v450_v14  ;;  %v2437_v4 = vadd.f32 %v2436_v54, %v2324_v42  ;;  %v2400_v43 = vpop.f32.mrf.mxu0  ;;  %v2227_v26 = vadd.f32 %v4800_v22, %v4799_v19  ;;  %v4801_v34 = vld [vmem:[#allocation16_spill] sm:$0xff]  ;;  %v4802_v14 = vld [vmem:[#allocation3_spill] sm:$0xff]  ;;  %v4805_v0 = vld [vmem:[#allocation10_spill] sm:$0xff] }
 0x1e5   : > { %v2440_v48 = vpop.f32.mrf.mxu1  ;;  %2503 = vst [vmem:[%s4759_s3 + $0x10] sm:$0xff] %v2471_v21  ;;  %v2472_v24 = vadd.f32 %v2397_v62, %v435_v51  ;;  %v2401_v1 = vadd.f32 %v2400_v43, %v2288_v32  ;;  %v2298_v61 = vadd.f32 %v4801_v34, %v2185_v44  ;;  %v2189_v18 = vadd.f32 %v4803_v28, %v4802_v14  ;;  %v4804_v2 = vld [vmem:[#allocation31_spill] sm:$0xff]  ;;  %v4806_v32 = vld [vmem:[#allocation34_spill] sm:$0xff]  ;;  %v4807_v62 = vld [vmem:[#allocation17_spill] sm:$0xff] }
 0x1e6   : > { %2519 = vst [vmem:[%s4759_s3 + $0x90] sm:$0xff] %v2487_v7  ;;  %v2488_v11 = vadd.f32 %v2437_v4, %v451_v6  ;;  %v2441_v8 = vadd.f32 %v2440_v48, %v2328_v3  ;;  %v2402_v55 = vpop.f32.mrf.mxu0  ;;  %v2338_v59 = vadd.f32 %v4804_v2, %v2225_v12  ;;  %v2229_v37 = vadd.f32 %v4806_v32, %v4805_v0  ;;  %v439_v3 = vld [vmem:[%s4759_s3 + $0x38] sm:$0xff]  ;;  %v4809_v40 = vld [vmem:[#allocation20_spill] sm:$0xff]  ;;  %v4811_v43 = vld [vmem:[#allocation11_spill] sm:$0xff] }
 0x1e7   : > { %v2442_v23 = vpop.f32.mrf.mxu1  ;;  %2504 = vst [vmem:[%s4759_s3 + $0x18] sm:$0xff] %v2472_v24  ;;  %v2473_v27 = vadd.f32 %v2401_v1, %v436_v38  ;;  %v2403_v16 = vadd.f32 %v2402_v55, %v2290_v35  ;;  %v455_v51 = vld [vmem:[%s4759_s3 + $0xb8] sm:$0xff]  ;;  %v2300_v4 = vadd.f32 %v4807_v62, %v2187_v41  ;;  %v4808_v35 = vld [vmem:[#allocation4_spill] sm:$0xff]  ;;  %v2340_v38 = vadd.f32 %v4810_v57, %v2227_v26  ;;  %v440_v24 = vld [vmem:[%s4759_s3 + $0x40] sm:$0xff] }
 0x1e8   : > { %2520 = vst [vmem:[%s4759_s3 + $0x98] sm:$0xff] %v2488_v11  ;;  %v2489_v39 = vadd.f32 %v2441_v8, %v452_v50  ;;  %v2443_v5 = vadd.f32 %v2442_v23, %v2330_v9  ;;  %v2404_v56 = vpop.f32.mrf.mxu0  ;;  %v2191_v9 = vadd.f32 %v4809_v40, %v4808_v35  ;;  %v4812_v50 = vld [vmem:[#allocation36_spill] sm:$0xff]  ;;  %v456_v1 = vld [vmem:[%s4759_s3 + $0xc0] sm:$0xff]  ;;  %v4815_v23 = vld [vmem:[#allocation22_spill] sm:$0xff] }
 0x1e9   : > { %v2444_v42 = vpop.f32.mrf.mxu1  ;;  %2505 = vst [vmem:[%s4759_s3 + $0x20] sm:$0xff] %v2473_v27  ;;  %v2474_v30 = vadd.f32 %v2403_v16, %v437_v60  ;;  %v2405_v17 = vadd.f32 %v2404_v56, %v2292_v31  ;;  %v2231_v48 = vadd.f32 %v4812_v50, %v4811_v43  ;;  %v4813_v60 = vld [vmem:[#allocation19_spill] sm:$0xff]  ;;  %v441_v53 = vld [vmem:[%s4759_s3 + $0x48] sm:$0xff]  ;;  %v4822_v34 = vld [vmem:[#allocation37_spill] sm:$0xff] }
 0x1ea   : > { %2521 = vst [vmem:[%s4759_s3 + $0xa0] sm:$0xff] %v2489_v39  ;;  %v2490_v10 = vadd.f32 %v2443_v5, %v453_v58  ;;  %v2445_v63 = vadd.f32 %v2444_v42, %v2332_v52  ;;  %v2406_v49 = vpop.f32.mrf.mxu0  ;;  %v2302_v55 = vadd.f32 %v4813_v60, %v2189_v18  ;;  %v4814_v58 = vld [vmem:[#allocation5_spill] sm:$0xff]  ;;  %v4816_v39 = vld [vmem:[#allocation35_spill] sm:$0xff]  ;;  %v4817_v5 = vld [vmem:[#allocation12_spill] sm:$0xff] }
 0x1eb   : > { %v2446_v47 = vpop.f32.mrf.mxu1  ;;  %2506 = vst [vmem:[%s4759_s3 + $0x28] sm:$0xff] %v2474_v30  ;;  %v2475_v6 = vadd.f32 %v2405_v17, %v438_v33  ;;  %v2407_v21 = vadd.f32 %v2406_v49, %v2294_v13  ;;  %v2195_v27 = vadd.f32 %v4815_v23, %v4814_v58  ;;  %v2342_v16 = vadd.f32 %v4816_v39, %v2229_v37  ;;  %v4818_v13 = vld [vmem:[#allocation38_spill] sm:$0xff]  ;;  %v457_v19 = vld [vmem:[%s4759_s3 + $0xc8] sm:$0xff]  ;;  %v4819_v42 = vld [vmem:[#allocation21_spill] sm:$0xff] }
 0x1ec   : > { %2522 = vst [vmem:[%s4759_s3 + $0xa8] sm:$0xff] %v2490_v10  ;;  %v2491_v54 = vadd.f32 %v2445_v63, %v454_v15  ;;  %v2447_v7 = vadd.f32 %v2446_v47, %v2334_v45  ;;  %v2410_v11 = vpop.f32.mrf.mxu0  ;;  %v2235_v41 = vadd.f32 %v4818_v13, %v4817_v5  ;;  %v2304_v30 = vadd.f32 %v4819_v42, %v2191_v9  ;;  %v4820_v10 = vld [vmem:[#allocation6_spill] sm:$0xff]  ;;  %v4821_v17 = vld [vmem:[#allocation24_spill] sm:$0xff]  ;;  %v4823_v14 = vld [vmem:[#allocation13_spill] sm:$0xff] }
 0x1ed   : > { %v2450_v8 = vpop.f32.mrf.mxu1  ;;  %2507 = vst [vmem:[%s4759_s3 + $0x30] sm:$0xff] %v2475_v6  ;;  %v2476_v31 = vadd.f32 %v2407_v21, %v439_v3  ;;  %v2411_v52 = vadd.f32 %v2410_v11, %v2298_v61  ;;  %v2197_v63 = vadd.f32 %v4821_v17, %v4820_v10  ;;  %v2344_v61 = vadd.f32 %v4822_v34, %v2231_v48  ;;  %v4824_v28 = vld [vmem:[#allocation40_spill] sm:$0xff]  ;;  %v442_v2 = vld [vmem:[%s4759_s3 + $0x50] sm:$0xff]  ;;  %v4825_v47 = vld [vmem:[#allocation23_spill] sm:$0xff] }
 0x1ee   : > { %2523 = vst [vmem:[%s4759_s3 + $0xb0] sm:$0xff] %v2491_v54  ;;  %v2492_v44 = vadd.f32 %v2447_v7, %v455_v51  ;;  %v2451_v12 = vadd.f32 %v2450_v8, %v2338_v59  ;;  %v2412_v45 = vpop.f32.mrf.mxu0  ;;  %v2237_v18 = vadd.f32 %v4824_v28, %v4823_v14  ;;  %v458_v0 = vld [vmem:[%s4759_s3 + $0xd0] sm:$0xff]  ;;  %v2308_v6 = vadd.f32 %v4825_v47, %v2195_v27  ;;  %v4826_v54 = vld [vmem:[#allocation7_spill] sm:$0xff]  ;;  %v4827_v21 = vld [vmem:[#allocation26_spill] sm:$0xff] }
 0x1ef   : > { %v2452_v22 = vpop.f32.mrf.mxu1  ;;  %2508 = vst [vmem:[%s4759_s3 + $0x38] sm:$0xff] %v2476_v31  ;;  %v2477_v26 = vadd.f32 %v2411_v52, %v440_v24  ;;  %v2413_v56 = vadd.f32 %v2412_v45, %v2300_v4  ;;  %v2199_v7 = vadd.f32 %v4827_v21, %v4826_v54  ;;  %v4828_v62 = vld [vmem:[#allocation39_spill] sm:$0xff]  ;;  %v4829_v35 = vld [vmem:[#allocation14_spill] sm:$0xff]  ;;  %v4830_v11 = vld [vmem:[#allocation25_spill] sm:$0xff] }
 0x1f0   : > { %2524 = vst [vmem:[%s4759_s3 + $0xb8] sm:$0xff] %v2492_v44  ;;  %v2493_v33 = vadd.f32 %v2451_v12, %v456_v1  ;;  %v2453_v15 = vadd.f32 %v2452_v22, %v2340_v38  ;;  %v2414_v59 = vpop.f32.mrf.mxu0  ;;  %v2348_v4 = vadd.f32 %v4828_v62, %v2235_v41  ;;  %v2239_v40 = vadd.f32 %v4228_v29, %v4829_v35  ;;  %v443_v9 = vld [vmem:[%s4759_s3 + $0x58] sm:$0xff]  ;;  %v4831_v8 = vld [vmem:[#allocation8_spill] sm:$0xff]  ;;  %v4833_v12 = vld [vmem:[#allocation15_spill] sm:$0xff] }
 0x1f1   : > { %v2454_v32 = vpop.f32.mrf.mxu1  ;;  %2509 = vst [vmem:[%s4759_s3 + $0x40] sm:$0xff] %v2477_v26  ;;  %v2478_v37 = vadd.f32 %v2413_v56, %v441_v53  ;;  %v2415_v49 = vadd.f32 %v2414_v59, %v2302_v55  ;;  %v459_v38 = vld [vmem:[%s4759_s3 + $0xd8] sm:$0xff]  ;;  %v2310_v1 = vadd.f32 %v4830_v11, %v2197_v63  ;;  %v4832_v31 = vld [vmem:[#allocation28_spill] sm:$0xff]  ;;  %v2350_v52 = vadd.f32 %v4224_v46, %v2237_v18  ;;  %v444_v55 = vld [vmem:[%s4759_s3 + $0x60] sm:$0xff] }
 0x1f2   : > { %2525 = vst [vmem:[%s4759_s3 + $0xc0] sm:$0xff] %v2493_v33  ;;  %v2494_v3 = vadd.f32 %v2453_v15, %v457_v19  ;;  %v2455_v51 = vadd.f32 %v2454_v32, %v2342_v16  ;;  %v2416_v57 = vpop.f32.mrf.mxu0  ;;  %v2201_v44 = vadd.f32 %v4832_v31, %v4831_v8  ;;  %v2241_v60 = vadd.f32 %v4236_v25, %v4833_v12  ;;  %v460_v23 = vld [vmem:[%s4759_s3 + $0xe0] sm:$0xff]  ;;  %v445_v53 = vld [vmem:[%s4759_s3 + $0x68] sm:$0xff]  ;;  %v4835_v15 = vld [vmem:[#allocation29_spill] sm:$0xff] }
 0x1f3   : > { %v2456_v43 = vpop.f32.mrf.mxu1  ;;  %2510 = vst [vmem:[%s4759_s3 + $0x48] sm:$0xff] %v2478_v37  ;;  %v2479_v50 = vadd.f32 %v2415_v49, %v442_v2  ;;  %v2417_v48 = vadd.f32 %v2416_v57, %v2304_v30  ;;  %v4834_v5 = vld [vmem:[#allocation27_spill] sm:$0xff]  ;;  %v2352_v41 = vadd.f32 %v4230_v36, %v2239_v40  ;;  %v461_v19 = vld [vmem:[%s4759_s3 + $0xe8] sm:$0xff]  ;;  %v446_v10 = vld [vmem:[%s4759_s3 + $0x70] sm:$0xff] }
 0x1f4   : > { %2526 = vst [vmem:[%s4759_s3 + $0xc8] sm:$0xff] %v2494_v3  ;;  %v2495_v29 = vadd.f32 %v2455_v51, %v458_v0  ;;  %v2457_v24 = vadd.f32 %v2456_v43, %v2344_v61  ;;  %v2420_v58 = vpop.f32.mrf.mxu0  ;;  %v2312_v13 = vadd.f32 %v4834_v5, %v2199_v7  ;;  %v2314_v42 = vadd.f32 %v4835_v15, %v2201_v44  ;;  %v462_v63 = vld [vmem:[%s4759_s3 + $0xf0] sm:$0xff]  ;;  %v447_v18 = vld [vmem:[%s4759_s3 + $0x78] sm:$0xff] }
 0x1f5   : > { %v2460_v27 = vpop.f32.mrf.mxu1  ;;  %2511 = vst [vmem:[%s4759_s3 + $0x50] sm:$0xff] %v2479_v50  ;;  %v2480_v46 = vadd.f32 %v2417_v48, %v443_v9  ;;  %v2421_v39 = vadd.f32 %v2420_v58, %v2308_v6  ;;  %v2354_v30 = vadd.f32 %v4238_v20, %v2241_v60  ;;  %v463_v59 = vld [vmem:[%s4759_s3 + $0xf8] sm:$0xff] }
 0x1f6   : > { %2527 = vst [vmem:[%s4759_s3 + $0xd0] sm:$0xff] %v2495_v29  ;;  %v2496_v25 = vadd.f32 %v2457_v24, %v459_v38  ;;  %v2461_v16 = vadd.f32 %v2460_v27, %v2348_v4  ;;  %v2422_v45 = vpop.f32.mrf.mxu0 }
 0x1f7   : > { %v2462_v22 = vpop.f32.mrf.mxu1  ;;  %2512 = vst [vmem:[%s4759_s3 + $0x58] sm:$0xff] %v2480_v46  ;;  %v2481_v26 = vadd.f32 %v2421_v39, %v444_v55  ;;  %v2423_v33 = vadd.f32 %v2422_v45, %v2310_v1 }
 0x1f8   : > { %2528 = vst [vmem:[%s4759_s3 + $0xd8] sm:$0xff] %v2496_v25  ;;  %v2497_v36 = vadd.f32 %v2461_v16, %v460_v23  ;;  %v2463_v56 = vadd.f32 %v2462_v22, %v2350_v52  ;;  %v2424_v17 = vpop.f32.mrf.mxu0 }
 0x1f9   : > { %v2464_v34 = vpop.f32.mrf.mxu1  ;;  %2513 = vst [vmem:[%s4759_s3 + $0x60] sm:$0xff] %v2481_v26  ;;  %v2482_v61 = vadd.f32 %v2423_v33, %v445_v53  ;;  %v2425_v14 = vadd.f32 %v2424_v17, %v2312_v13 }
 0x1fa   : > { %2529 = vst [vmem:[%s4759_s3 + $0xe0] sm:$0xff] %v2497_v36  ;;  %v2498_v20 = vadd.f32 %v2463_v56, %v461_v19  ;;  %v2465_v28 = vadd.f32 %v2464_v34, %v2352_v41  ;;  %v2426_v2 = vpop.f32.mrf.mxu0 }
 0x1fb   : > { %v2466_v0 = vpop.f32.mrf.mxu1  ;;  %2514 = vst [vmem:[%s4759_s3 + $0x68] sm:$0xff] %v2482_v61  ;;  %v2483_v32 = vadd.f32 %v2425_v14, %v446_v10  ;;  %v2427_v3 = vadd.f32 %v2426_v2, %v2314_v42 }
 0x1fc   : > { %2530 = vst [vmem:[%s4759_s3 + $0xe8] sm:$0xff] %v2498_v20  ;;  %v2499_v37 = vadd.f32 %v2465_v28, %v462_v63  ;;  %v2467_v49 = vadd.f32 %v2466_v0, %v2354_v30  ;;  %2536 = sbr.rel (%p3010_p11) target bundleno = 542 (0x21e), region = 63 }
 0x1fd   : > { %2515 = vst [vmem:[%s4759_s3 + $0x70] sm:$0xff] %v2483_v32  ;;  %v2484_v51 = vadd.f32 %v2427_v3, %v447_v18 }
 0x1fe   : > { %2531 = vst [vmem:[%s4759_s3 + $0xf0] sm:$0xff] %v2499_v37  ;;  %v2500_v47 = vadd.f32 %v2467_v49, %v463_v59 }
 0x1ff   : > { %2516 = vst [vmem:[%s4759_s3 + $0x78] sm:$0xff] %v2484_v51 }
 0x200   : > { %2532 = vst [vmem:[%s4759_s3 + $0xf8] sm:$0xff] %v2500_v47 }
 0x201   : > { %v2571_v6 = vlaneseq  ;;  %v2569_v21 = vld [vmem:[%s4758_s2] sm:$0x3]  ;;  %v2538_v4 = vld [vmem:[%s4759_s3 + $0x8] sm:$0xff]  ;;  %v2539_v40 = vld [vmem:[%s4759_s3 + $0x10] sm:$0xff] }
 0x202   : > { %v2537_v7 = vld [vmem:[%s4759_s3] sm:$0xff]  ;;  %v2540_v9 = vld [vmem:[%s4759_s3 + $0x18] sm:$0xff]  ;;  %v2542_v50 = vld [vmem:[%s4759_s3 + $0x28] sm:$0xff] }
 0x203   : > { %v2572_v54 = vshrl.u32 %v2571_v6, 7  ;;  %v2541_v57 = vld [vmem:[%s4759_s3 + $0x20] sm:$0xff]  ;;  %v2543_v29 = vld [vmem:[%s4759_s3 + $0x30] sm:$0xff]  ;;  %v2544_v48 = vld [vmem:[%s4759_s3 + $0x38] sm:$0xff] }
 0x204   : > { %v2545_v31 = vld [vmem:[%s4759_s3 + $0x40] sm:$0xff]  ;;  %v2546_v44 = vld [vmem:[%s4759_s3 + $0x48] sm:$0xff]  ;;  %v2547_v52 = vld [vmem:[%s4759_s3 + $0x50] sm:$0xff] }
 0x205   : > { %v2573_v62 = vsub.s32 0, %v2572_v54  ;;  %v2577_v35 = vsub.s32 1, %v2572_v54  ;;  %v2548_v23 = vld [vmem:[%s4759_s3 + $0x58] sm:$0xff]  ;;  %v2549_v27 = vld [vmem:[%s4759_s3 + $0x60] sm:$0xff]  ;;  %v2550_v46 = vld [vmem:[%s4759_s3 + $0x68] sm:$0xff] }
 0x206   : > { %v2551_v13 = vld [vmem:[%s4759_s3 + $0x70] sm:$0xff]  ;;  %v2552_v41 = vld [vmem:[%s4759_s3 + $0x78] sm:$0xff]  ;;  %v2553_v15 = vld [vmem:[%s4759_s3 + $0x80] sm:$0xff] }
 0x207   : > { %v4528_v38 = vrot.slane %v2569_v21, %v2573_v62  ;;  %v4530_v43 = vrot.slane %v2569_v21, %v2577_v35  ;;  %v2554_v42 = vld [vmem:[%s4759_s3 + $0x88] sm:$0xff]  ;;  %v2555_v30 = vld [vmem:[%s4759_s3 + $0x90] sm:$0xff]  ;;  %v2556_v61 = vld [vmem:[%s4759_s3 + $0x98] sm:$0xff] }
 0x208   : > { %v2557_v20 = vld [vmem:[%s4759_s3 + $0xa0] sm:$0xff]  ;;  %v2558_v14 = vld [vmem:[%s4759_s3 + $0xa8] sm:$0xff]  ;;  %v2559_v0 = vld [vmem:[%s4759_s3 + $0xb0] sm:$0xff] }
 0x209   : > { %v2581_v24 = vadd.f32 %v4528_v38, %v2537_v7  ;;  %v2582_v11 = vadd.f32 %v4530_v43, %v2538_v4  ;;  %v2583_v1 = vadd.f32 %v4528_v38, %v2539_v40  ;;  %v2584_v8 = vadd.f32 %v4530_v43, %v2540_v9  ;;  %v2560_v32 = vld [vmem:[%s4759_s3 + $0xb8] sm:$0xff]  ;;  %v2561_v7 = vld [vmem:[%s4759_s3 + $0xc0] sm:$0xff]  ;;  %v2562_v62 = vld [vmem:[%s4759_s3 + $0xc8] sm:$0xff] }
 0x20a   : > { %v2585_v12 = vadd.f32 %v4528_v38, %v2541_v57  ;;  %v2586_v60 = vadd.f32 %v4530_v43, %v2542_v50  ;;  %v2587_v55 = vadd.f32 %v4528_v38, %v2543_v29  ;;  %v2588_v58 = vadd.f32 %v4530_v43, %v2544_v48  ;;  %v2563_v4 = vld [vmem:[%s4759_s3 + $0xd0] sm:$0xff]  ;;  %v2564_v50 = vld [vmem:[%s4759_s3 + $0xd8] sm:$0xff]  ;;  %v2565_v29 = vld [vmem:[%s4759_s3 + $0xe0] sm:$0xff] }
 0x20b   : > { %v2613_v25 = vmax.f32 %v2581_v24, 0.0  ;;  %v2614_v39 = vmax.f32 %v2582_v11, 0.0  ;;  %v2615_v16 = vmax.f32 %v2583_v1, 0.0  ;;  %v2616_v5 = vmax.f32 %v2584_v8, 0.0  ;;  %v2566_v48 = vld [vmem:[%s4759_s3 + $0xe8] sm:$0xff] }
 0x20c   : > { %v2617_v53 = vmax.f32 %v2585_v12, 0.0  ;;  %v2618_v45 = vmax.f32 %v2586_v60, 0.0  ;;  %v2619_v19 = vmax.f32 %v2587_v55, 0.0  ;;  %v2620_v22 = vmax.f32 %v2588_v58, 0.0 }
 0x20d   : > { %2645 = vst [vmem:[%s4759_s3] sm:$0xff] %v2613_v25  ;;  %2646 = vst [vmem:[%s4759_s3 + $0x8] sm:$0xff] %v2614_v39  ;;  %v2589_v26 = vadd.f32 %v4528_v38, %v2545_v31  ;;  %v2590_v36 = vadd.f32 %v4530_v43, %v2546_v44  ;;  %v2591_v33 = vadd.f32 %v4528_v38, %v2547_v52  ;;  %v2567_v31 = vld [vmem:[%s4759_s3 + $0xf0] sm:$0xff]  ;;  %v2568_v44 = vld [vmem:[%s4759_s3 + $0xf8] sm:$0xff] }
 0x20e   : > { %2647 = vst [vmem:[%s4759_s3 + $0x10] sm:$0xff] %v2615_v16  ;;  %2648 = vst [vmem:[%s4759_s3 + $0x18] sm:$0xff] %v2616_v5  ;;  %v2592_v56 = vadd.f32 %v4530_v43, %v2548_v23  ;;  %v2593_v10 = vadd.f32 %v4528_v38, %v2549_v27  ;;  %v2594_v17 = vadd.f32 %v4530_v43, %v2550_v46 }
 0x20f   : > { %2649 = vst [vmem:[%s4759_s3 + $0x20] sm:$0xff] %v2617_v53  ;;  %2650 = vst [vmem:[%s4759_s3 + $0x28] sm:$0xff] %v2618_v45  ;;  %v2595_v63 = vadd.f32 %v4528_v38, %v2551_v13  ;;  %v2596_v34 = vadd.f32 %v4530_v43, %v2552_v41  ;;  %v2621_v28 = vmax.f32 %v2589_v26, 0.0  ;;  %v2622_v18 = vmax.f32 %v2590_v36, 0.0 }
 0x210   : > { %2651 = vst [vmem:[%s4759_s3 + $0x30] sm:$0xff] %v2619_v19  ;;  %2652 = vst [vmem:[%s4759_s3 + $0x38] sm:$0xff] %v2620_v22  ;;  %v2623_v2 = vmax.f32 %v2591_v33, 0.0  ;;  %v2624_v59 = vmax.f32 %v2592_v56, 0.0  ;;  %v2625_v37 = vmax.f32 %v2593_v10, 0.0  ;;  %v2626_v3 = vmax.f32 %v2594_v17, 0.0 }
 0x211   : > { %v2627_v49 = vmax.f32 %v2595_v63, 0.0  ;;  %v2628_v51 = vmax.f32 %v2596_v34, 0.0  ;;  %2653 = vst [vmem:[%s4759_s3 + $0x40] sm:$0xff] %v2621_v28  ;;  %2654 = vst [vmem:[%s4759_s3 + $0x48] sm:$0xff] %v2622_v18  ;;  %v2597_v47 = vadd.f32 %v4528_v38, %v2553_v15  ;;  %v2598_v6 = vadd.f32 %v4530_v43, %v2554_v42 }
 0x212   : > { %2655 = vst [vmem:[%s4759_s3 + $0x50] sm:$0xff] %v2623_v2  ;;  %2656 = vst [vmem:[%s4759_s3 + $0x58] sm:$0xff] %v2624_v59  ;;  %v2599_v54 = vadd.f32 %v4528_v38, %v2555_v30  ;;  %v2600_v21 = vadd.f32 %v4530_v43, %v2556_v61  ;;  %v2601_v35 = vadd.f32 %v4528_v38, %v2557_v20 }
 0x213   : > { %2657 = vst [vmem:[%s4759_s3 + $0x60] sm:$0xff] %v2625_v37  ;;  %2658 = vst [vmem:[%s4759_s3 + $0x68] sm:$0xff] %v2626_v3  ;;  %v2602_v40 = vadd.f32 %v4530_v43, %v2558_v14  ;;  %v2603_v9 = vadd.f32 %v4528_v38, %v2559_v0  ;;  %v2604_v57 = vadd.f32 %v4530_v43, %v2560_v32  ;;  %v2629_v24 = vmax.f32 %v2597_v47, 0.0 }
 0x214   : > { %2659 = vst [vmem:[%s4759_s3 + $0x70] sm:$0xff] %v2627_v49  ;;  %2660 = vst [vmem:[%s4759_s3 + $0x78] sm:$0xff] %v2628_v51  ;;  %v2630_v11 = vmax.f32 %v2598_v6, 0.0  ;;  %v2631_v1 = vmax.f32 %v2599_v54, 0.0  ;;  %v2632_v8 = vmax.f32 %v2600_v21, 0.0  ;;  %v2633_v52 = vmax.f32 %v2601_v35, 0.0 }
 0x215   : > { %v2634_v12 = vmax.f32 %v2602_v40, 0.0  ;;  %v2635_v60 = vmax.f32 %v2603_v9, 0.0  ;;  %v2636_v55 = vmax.f32 %v2604_v57, 0.0  ;;  %2661 = vst [vmem:[%s4759_s3 + $0x80] sm:$0xff] %v2629_v24  ;;  %v2605_v58 = vadd.f32 %v4528_v38, %v2561_v7 }
 0x216   : > { %2662 = vst [vmem:[%s4759_s3 + $0x88] sm:$0xff] %v2630_v11  ;;  %2663 = vst [vmem:[%s4759_s3 + $0x90] sm:$0xff] %v2631_v1  ;;  %v2606_v23 = vadd.f32 %v4530_v43, %v2562_v62  ;;  %v2607_v27 = vadd.f32 %v4528_v38, %v2563_v4  ;;  %v2608_v46 = vadd.f32 %v4530_v43, %v2564_v50 }
 0x217   : > { %2664 = vst [vmem:[%s4759_s3 + $0x98] sm:$0xff] %v2632_v8  ;;  %2665 = vst [vmem:[%s4759_s3 + $0xa0] sm:$0xff] %v2633_v52  ;;  %v2609_v25 = vadd.f32 %v4528_v38, %v2565_v29  ;;  %v2610_v39 = vadd.f32 %v4530_v43, %v2566_v48  ;;  %v2611_v16 = vadd.f32 %v4528_v38, %v2567_v31  ;;  %v2637_v13 = vmax.f32 %v2605_v58, 0.0 }
 0x218   : > { %2666 = vst [vmem:[%s4759_s3 + $0xa8] sm:$0xff] %v2634_v12  ;;  %2667 = vst [vmem:[%s4759_s3 + $0xb0] sm:$0xff] %v2635_v60  ;;  %v2612_v5 = vadd.f32 %v4530_v43, %v2568_v44  ;;  %v2638_v41 = vmax.f32 %v2606_v23, 0.0  ;;  %v2639_v53 = vmax.f32 %v2607_v27, 0.0  ;;  %v2640_v45 = vmax.f32 %v2608_v46, 0.0 }
 0x219   : > { %2668 = vst [vmem:[%s4759_s3 + $0xb8] sm:$0xff] %v2636_v55  ;;  %v2641_v19 = vmax.f32 %v2609_v25, 0.0  ;;  %v2642_v22 = vmax.f32 %v2610_v39, 0.0  ;;  %v2643_v26 = vmax.f32 %v2611_v16, 0.0  ;;  %2669 = vst [vmem:[%s4759_s3 + $0xc0] sm:$0xff] %v2637_v13 }
 0x21a   : > { %v2644_v36 = vmax.f32 %v2612_v5, 0.0  ;;  %2670 = vst [vmem:[%s4759_s3 + $0xc8] sm:$0xff] %v2638_v41  ;;  %2671 = vst [vmem:[%s4759_s3 + $0xd0] sm:$0xff] %v2639_v53 }
 0x21b   : > { %2672 = vst [vmem:[%s4759_s3 + $0xd8] sm:$0xff] %v2640_v45  ;;  %2673 = vst [vmem:[%s4759_s3 + $0xe0] sm:$0xff] %v2641_v19 }
 0x21c   : > { %2674 = vst [vmem:[%s4759_s3 + $0xe8] sm:$0xff] %v2642_v22  ;;  %2675 = vst [vmem:[%s4759_s3 + $0xf0] sm:$0xff] %v2643_v26 }
 0x21d   : > { %2676 = vst [vmem:[%s4759_s3 + $0xf8] sm:$0xff] %v2644_v36 }
 0x21e PF: > { %s13_s16 = sadd.s32 1, %s3490_s16   ;;  %s4836_s12 = smov %s3478_s13 }
 0x21f   : > { %p10_p12 = scmp.ge.s32.totalorder %s13_s16, 4   ;;  %s4837_s13 = smov %s3548_s20 }
 0x220   : > { %s4838_s14 = smov %s3486_s15  ;;  %s4839_s15 = smov %s4841_s17 }
 0x221   :  { %12 = sbr.rel (!%p10_p12) target bundleno = 3 (0x3), region = 101 }

// kernel: conv_q_network_forward.10
= control target key start
LH: loop header
LB: loop body
LE: loop exit
PB: predicated region body
PF: predicated region fallthrough
CT: control target
= control target key end

     0   :  { %s1754_s1 = inlined_call_operand.vmem [shape: bf16[256,1024], index: 1, kind: input, shape index: {}]   ;;  %s1755_s0 = inlined_call_operand.vmem [shape: bf16[16,256], index: 0, kind: input, shape index: {}]   ;;  %s1756_s2 = inlined_call_operand.vmem [shape: f32[1,1024], index: 2, kind: input, shape index: {}]   ;;  %s1757_s3 = inlined_call_operand.vmem [shape: f32[16,1024], index: 3, kind: output, shape index: {}]  }
   0x1   :  { %v108_v0 = vld [vmem:[%s1754_s1 + $0x1c0] sm:$0xff]  ;;  %v109_v2 = vld [vmem:[%s1754_s1 + $0x1c8] sm:$0xff] }
   0x2   :  { %v112_v1 = vld [vmem:[%s1754_s1 + $0x1e0] sm:$0xff]  ;;  %v113_v4 = vld [vmem:[%s1754_s1 + $0x1e8] sm:$0xff] }
   0x3   :  { %v1206_v3 = vcombine.high %v108_v0, %v112_v1  ;;  %v1205_v5 = vcombine.low %v108_v0, %v112_v1  ;;  %v100_v6 = vld [vmem:[%s1754_s1 + $0x180] sm:$0xff]  ;;  %v1208_v8 = vcombine.high %v109_v2, %v113_v4  ;;  %v1207_v9 = vcombine.low %v109_v2, %v113_v4  ;;  %v101_v11 = vld [vmem:[%s1754_s1 + $0x188] sm:$0xff] }
   0x4   :  { %v104_v7 = vld [vmem:[%s1754_s1 + $0x1a0] sm:$0xff]  ;;  %v105_v12 = vld [vmem:[%s1754_s1 + $0x1a8] sm:$0xff] }
   0x5   :  { %v1198_v10 = vcombine.high %v100_v6, %v104_v7  ;;  %v92_v13 = vld [vmem:[%s1754_s1 + $0x140] sm:$0xff]  ;;  %830 = vmatprep.subr.bf16.mxu0 %v1206_v3  ;;  %v1200_v14 = vcombine.high %v101_v11, %v105_v12  ;;  %v93_v16 = vld [vmem:[%s1754_s1 + $0x148] sm:$0xff]  ;;  %873 = vmatprep.subr.bf16.mxu1 %v1208_v8  ;;  %v1197_v18 = vcombine.low %v100_v6, %v104_v7 }
   0x6   :  { %v96_v15 = vld [vmem:[%s1754_s1 + $0x160] sm:$0xff]  ;;  %v97_v17 = vld [vmem:[%s1754_s1 + $0x168] sm:$0xff]  ;;  %831 = vmatpush1.bf16.msra.mxu0 %v1205_v5  ;;  %874 = vmatpush1.bf16.msra.mxu1 %v1207_v9  ;;  %v1199_v19 = vcombine.low %v101_v11, %v105_v12 }
   0x7   :  { %832 = vmatprep.subr.bf16.mxu0 %v1198_v10  ;;  %v1190_v20 = vcombine.high %v92_v13, %v96_v15  ;;  %875 = vmatprep.subr.bf16.mxu1 %v1200_v14  ;;  %v1192_v21 = vcombine.high %v93_v16, %v97_v17  ;;  %v84_v22 = vld [vmem:[%s1754_s1 + $0x100] sm:$0xff]  ;;  %v85_v24 = vld [vmem:[%s1754_s1 + $0x108] sm:$0xff]  ;;  %v1189_v26 = vcombine.low %v92_v13, %v96_v15 }
   0x8   :  { %v88_v23 = vld [vmem:[%s1754_s1 + $0x120] sm:$0xff]  ;;  %v89_v25 = vld [vmem:[%s1754_s1 + $0x128] sm:$0xff]  ;;  %v1191_v27 = vcombine.low %v93_v16, %v97_v17 }
   0x9   :  { %v1182_v28 = vcombine.high %v84_v22, %v88_v23  ;;  %v1184_v29 = vcombine.high %v85_v24, %v89_v25  ;;  %v76_v30 = vld [vmem:[%s1754_s1 + $0xc0] sm:$0xff]  ;;  %v77_v32 = vld [vmem:[%s1754_s1 + $0xc8] sm:$0xff]  ;;  %v1181_v34 = vcombine.low %v84_v22, %v88_v23  ;;  %v1183_v35 = vcombine.low %v85_v24, %v89_v25 }
   0xa   :  { %833 = vmatpush1.bf16.msra.mxu0 %v1197_v18  ;;  %876 = vmatpush1.bf16.msra.mxu1 %v1199_v19  ;;  %v80_v31 = vld [vmem:[%s1754_s1 + $0xe0] sm:$0xff]  ;;  %v81_v33 = vld [vmem:[%s1754_s1 + $0xe8] sm:$0xff] }
   0xb   :  { %834 = vmatprep.subr.bf16.mxu0 %v1190_v20  ;;  %877 = vmatprep.subr.bf16.mxu1 %v1192_v21  ;;  %v1174_v36 = vcombine.high %v76_v30, %v80_v31  ;;  %v1176_v37 = vcombine.high %v77_v32, %v81_v33  ;;  %v68_v38 = vld [vmem:[%s1754_s1 + $0x80] sm:$0xff]  ;;  %v69_v40 = vld [vmem:[%s1754_s1 + $0x88] sm:$0xff]  ;;  %v1173_v42 = vcombine.low %v76_v30, %v80_v31 }
   0xc   :  { %v72_v39 = vld [vmem:[%s1754_s1 + $0xa0] sm:$0xff]  ;;  %v73_v41 = vld [vmem:[%s1754_s1 + $0xa8] sm:$0xff]  ;;  %v1175_v43 = vcombine.low %v77_v32, %v81_v33 }
   0xd   :  { %v1166_v44 = vcombine.high %v68_v38, %v72_v39  ;;  %v1168_v45 = vcombine.high %v69_v40, %v73_v41  ;;  %v60_v46 = vld [vmem:[%s1754_s1 + $0x40] sm:$0xff]  ;;  %v61_v48 = vld [vmem:[%s1754_s1 + $0x48] sm:$0xff]  ;;  %v1165_v50 = vcombine.low %v68_v38, %v72_v39  ;;  %v1167_v51 = vcombine.low %v69_v40, %v73_v41 }
   0xe   :  { %835 = vmatpush1.bf16.msra.mxu0 %v1189_v26  ;;  %878 = vmatpush1.bf16.msra.mxu1 %v1191_v27  ;;  %v64_v47 = vld [vmem:[%s1754_s1 + $0x60] sm:$0xff]  ;;  %v65_v49 = vld [vmem:[%s1754_s1 + $0x68] sm:$0xff] }
   0xf   :  { %836 = vmatprep.subr.bf16.mxu0 %v1182_v28  ;;  %879 = vmatprep.subr.bf16.mxu1 %v1184_v29  ;;  %v1158_v52 = vcombine.high %v60_v46, %v64_v47  ;;  %v1160_v53 = vcombine.high %v61_v48, %v65_v49  ;;  %v52_v54 = vld [vmem:[%s1754_s1] sm:$0xff]  ;;  %v53_v57 = vld [vmem:[%s1754_s1 + $0x8] sm:$0xff]  ;;  %v1157_v59 = vcombine.low %v60_v46, %v64_v47 }
  0x10   :  { %v56_v55 = vld [vmem:[%s1754_s1 + $0x20] sm:$0xff]  ;;  %v57_v58 = vld [vmem:[%s1754_s1 + $0x28] sm:$0xff]  ;;  %v1159_v60 = vcombine.low %v61_v48, %v65_v49 }
  0x11   :  { %v1394_v56 = vld [vmem:[%s1755_s0 + $0x4] ss:$8 sps:$4 sm:$0xff]   ;;  %v1150_v61 = vcombine.high %v52_v54, %v56_v55  ;;  %v1152_v62 = vcombine.high %v53_v57, %v57_v58  ;;  %v1149_v3 = vcombine.low %v52_v54, %v56_v55  ;;  %v1151_v4 = vcombine.low %v53_v57, %v57_v58 }
  0x12   :  { %837 = vmatpush1.bf16.msra.mxu0 %v1181_v34  ;;  %880 = vmatpush1.bf16.msra.mxu1 %v1183_v35  ;;  %v172_v63 = vld [vmem:[%s1754_s1 + $0x3c0] sm:$0xff]  ;;  %v173_v1 = vld [vmem:[%s1754_s1 + $0x3c8] sm:$0xff] }
  0x13   :  { %838 = vmatprep.subr.bf16.mxu0 %v1174_v36  ;;  %881 = vmatprep.subr.bf16.mxu1 %v1176_v37  ;;  %v176_v0 = vld [vmem:[%s1754_s1 + $0x3e0] sm:$0xff]  ;;  %v177_v2 = vld [vmem:[%s1754_s1 + $0x3e8] sm:$0xff] }
  0x14   :  { %862 = vmatprep.mubr.bf16.mxu0 %v1394_v56  ;;  %905 = vmatprep.mubr.bf16.mxu1 %v1394_v56  ;;  %v1270_v5 = vcombine.high %v172_v63, %v176_v0  ;;  %v1272_v6 = vcombine.high %v173_v1, %v177_v2  ;;  %v164_v7 = vld [vmem:[%s1754_s1 + $0x380] sm:$0xff]  ;;  %v165_v9 = vld [vmem:[%s1754_s1 + $0x388] sm:$0xff]  ;;  %v1269_v11 = vcombine.low %v172_v63, %v176_v0  ;;  %v110_v0 = vld [vmem:[%s1754_s1 + $0x1d0] sm:$0xff] }
  0x15   :  { %v168_v8 = vld [vmem:[%s1754_s1 + $0x3a0] sm:$0xff]  ;;  %v169_v10 = vld [vmem:[%s1754_s1 + $0x3a8] sm:$0xff]  ;;  %v1271_v12 = vcombine.low %v173_v1, %v177_v2  ;;  %v114_v1 = vld [vmem:[%s1754_s1 + $0x1f0] sm:$0xff] }
  0x16   :  { %839 = vmatpush1.bf16.msra.mxu0 %v1173_v42  ;;  %882 = vmatpush1.bf16.msra.mxu1 %v1175_v43  ;;  %v1262_v13 = vcombine.high %v164_v7, %v168_v8  ;;  %v1264_v14 = vcombine.high %v165_v9, %v169_v10  ;;  %v156_v15 = vld [vmem:[%s1754_s1 + $0x340] sm:$0xff]  ;;  %v157_v17 = vld [vmem:[%s1754_s1 + $0x348] sm:$0xff]  ;;  %v1261_v19 = vcombine.low %v164_v7, %v168_v8  ;;  %v111_v2 = vld [vmem:[%s1754_s1 + $0x1d8] sm:$0xff] }
  0x17   :  { %840 = vmatprep.subr.bf16.mxu0 %v1166_v44  ;;  %883 = vmatprep.subr.bf16.mxu1 %v1168_v45  ;;  %v160_v16 = vld [vmem:[%s1754_s1 + $0x360] sm:$0xff]  ;;  %v161_v18 = vld [vmem:[%s1754_s1 + $0x368] sm:$0xff]  ;;  %v1263_v20 = vcombine.low %v165_v9, %v169_v10  ;;  %v102_v8 = vld [vmem:[%s1754_s1 + $0x190] sm:$0xff] }
  0x18   :  { %v1254_v21 = vcombine.high %v156_v15, %v160_v16  ;;  %v1256_v22 = vcombine.high %v157_v17, %v161_v18  ;;  %v148_v23 = vld [vmem:[%s1754_s1 + $0x300] sm:$0xff]  ;;  %v149_v25 = vld [vmem:[%s1754_s1 + $0x308] sm:$0xff]  ;;  %v1253_v27 = vcombine.low %v156_v15, %v160_v16  ;;  %v1255_v28 = vcombine.low %v157_v17, %v161_v18  ;;  %v106_v9 = vld [vmem:[%s1754_s1 + $0x1b0] sm:$0xff] }
  0x19   :  { %v152_v24 = vld [vmem:[%s1754_s1 + $0x320] sm:$0xff]  ;;  %v153_v26 = vld [vmem:[%s1754_s1 + $0x328] sm:$0xff]  ;;  %v1202_v15 = vcombine.high %v102_v8, %v106_v9  ;;  %v94_v17 = vld [vmem:[%s1754_s1 + $0x150] sm:$0xff] }
  0x1a   :  { %841 = vmatpush1.bf16.msra.mxu0 %v1165_v50  ;;  %884 = vmatpush1.bf16.msra.mxu1 %v1167_v51  ;;  %v1246_v29 = vcombine.high %v148_v23, %v152_v24  ;;  %v1248_v30 = vcombine.high %v149_v25, %v153_v26  ;;  %v140_v31 = vld [vmem:[%s1754_s1 + $0x2c0] sm:$0xff]  ;;  %v141_v33 = vld [vmem:[%s1754_s1 + $0x2c8] sm:$0xff]  ;;  %v1245_v35 = vcombine.low %v148_v23, %v152_v24  ;;  %v98_v18 = vld [vmem:[%s1754_s1 + $0x170] sm:$0xff] }
  0x1b   :  { %842 = vmatprep.subr.bf16.mxu0 %v1158_v52  ;;  %885 = vmatprep.subr.bf16.mxu1 %v1160_v53  ;;  %v144_v32 = vld [vmem:[%s1754_s1 + $0x2e0] sm:$0xff]  ;;  %v145_v34 = vld [vmem:[%s1754_s1 + $0x2e8] sm:$0xff]  ;;  %v1247_v36 = vcombine.low %v149_v25, %v153_v26  ;;  %v1194_v23 = vcombine.high %v94_v17, %v98_v18  ;;  %v86_v25 = vld [vmem:[%s1754_s1 + $0x110] sm:$0xff] }
  0x1c   :  { %v1238_v37 = vcombine.high %v140_v31, %v144_v32  ;;  %v1240_v38 = vcombine.high %v141_v33, %v145_v34  ;;  %v132_v39 = vld [vmem:[%s1754_s1 + $0x280] sm:$0xff]  ;;  %v133_v41 = vld [vmem:[%s1754_s1 + $0x288] sm:$0xff]  ;;  %v1237_v43 = vcombine.low %v140_v31, %v144_v32  ;;  %v1239_v44 = vcombine.low %v141_v33, %v145_v34  ;;  %v90_v26 = vld [vmem:[%s1754_s1 + $0x130] sm:$0xff] }
  0x1d   :  { %v136_v40 = vld [vmem:[%s1754_s1 + $0x2a0] sm:$0xff]  ;;  %v137_v42 = vld [vmem:[%s1754_s1 + $0x2a8] sm:$0xff]  ;;  %v1186_v31 = vcombine.high %v86_v25, %v90_v26  ;;  %v78_v33 = vld [vmem:[%s1754_s1 + $0xd0] sm:$0xff] }
  0x1e   :  { %843 = vmatpush1.bf16.msra.mxu0 %v1157_v59  ;;  %886 = vmatpush1.bf16.msra.mxu1 %v1159_v60  ;;  %v1230_v45 = vcombine.high %v132_v39, %v136_v40  ;;  %v1232_v46 = vcombine.high %v133_v41, %v137_v42  ;;  %v124_v47 = vld [vmem:[%s1754_s1 + $0x240] sm:$0xff]  ;;  %v125_v49 = vld [vmem:[%s1754_s1 + $0x248] sm:$0xff]  ;;  %v1229_v51 = vcombine.low %v132_v39, %v136_v40  ;;  %v82_v34 = vld [vmem:[%s1754_s1 + $0xf0] sm:$0xff] }
  0x1f   :  { %844 = vmatprep.subr.bf16.mxu0 %v1150_v61  ;;  %887 = vmatprep.subr.bf16.mxu1 %v1152_v62  ;;  %v128_v48 = vld [vmem:[%s1754_s1 + $0x260] sm:$0xff]  ;;  %v129_v50 = vld [vmem:[%s1754_s1 + $0x268] sm:$0xff]  ;;  %v1231_v52 = vcombine.low %v133_v41, %v137_v42  ;;  %v70_v40 = vld [vmem:[%s1754_s1 + $0x90] sm:$0xff] }
  0x20   :  { %v1222_v53 = vcombine.high %v124_v47, %v128_v48  ;;  %v1224_v54 = vcombine.high %v125_v49, %v129_v50  ;;  %v116_v55 = vld [vmem:[%s1754_s1 + $0x200] sm:$0xff]  ;;  %v117_v58 = vld [vmem:[%s1754_s1 + $0x208] sm:$0xff]  ;;  %v1221_v60 = vcombine.low %v124_v47, %v128_v48  ;;  %v1223_v61 = vcombine.low %v125_v49, %v129_v50  ;;  %v74_v41 = vld [vmem:[%s1754_s1 + $0xb0] sm:$0xff] }
  0x21   :  { %v120_v57 = vld [vmem:[%s1754_s1 + $0x220] sm:$0xff]  ;;  %v121_v59 = vld [vmem:[%s1754_s1 + $0x228] sm:$0xff]  ;;  %v71_v42 = vld [vmem:[%s1754_s1 + $0x98] sm:$0xff] }
  0x22   :  { %845 = vmatpush1.bf16.msra.mxu0 %v1149_v3  ;;  %888 = vmatpush1.bf16.msra.mxu1 %v1151_v4  ;;  %v1214_v62 = vcombine.high %v116_v55, %v120_v57  ;;  %v1216_v63 = vcombine.high %v117_v58, %v121_v59  ;;  %v115_v3 = vld [vmem:[%s1754_s1 + $0x1f8] sm:$0xff]  ;;  %v1213_v4 = vcombine.low %v116_v55, %v120_v57  ;;  %v1521_v10 = vld [vmem:[%s1755_s0] ss:$8 sps:$4 sm:$0xff]   ;;  %v62_v48 = vld [vmem:[%s1754_s1 + $0x50] sm:$0xff] }
  0x23   :  { %846 = vmatprep.subr.bf16.mxu0 %v1270_v5  ;;  %889 = vmatprep.subr.bf16.mxu1 %v1272_v6  ;;  %v1215_v5 = vcombine.low %v117_v58, %v121_v59  ;;  %v1210_v6 = vcombine.high %v110_v0, %v114_v1  ;;  %v1212_v7 = vcombine.high %v111_v2, %v115_v3  ;;  %v66_v49 = vld [vmem:[%s1754_s1 + $0x70] sm:$0xff]  ;;  %v63_v50 = vld [vmem:[%s1754_s1 + $0x58] sm:$0xff] }
  0x24   :  { %v54_v57 = vld [vmem:[%s1754_s1 + $0x10] sm:$0xff]  ;;  %v55_v59 = vld [vmem:[%s1754_s1 + $0x18] sm:$0xff] }
  0x25   :  { %v58_v58 = vld [vmem:[%s1754_s1 + $0x30] sm:$0xff] }
  0x26   :  { %847 = vmatpush2.bf16.msra.mxu0 %v1269_v11  ;;  %890 = vmatpush2.bf16.msra.mxu1 %v1271_v12  ;;  %v103_v11 = vld [vmem:[%s1754_s1 + $0x198] sm:$0xff] }
  0x27   :  { %848 = vmatprep.subr.bf16.mxu0 %v1262_v13  ;;  %891 = vmatprep.subr.bf16.mxu1 %v1264_v14  ;;  %v107_v12 = vld [vmem:[%s1754_s1 + $0x1b8] sm:$0xff]  ;;  %v1209_v13 = vcombine.low %v110_v0, %v114_v1  ;;  %v1211_v14 = vcombine.low %v111_v2, %v115_v3  ;;  %v174_v1 = vld [vmem:[%s1754_s1 + $0x3d0] sm:$0xff] }
  0x28   :  { %v1204_v16 = vcombine.high %v103_v11, %v107_v12  ;;  %v178_v2 = vld [vmem:[%s1754_s1 + $0x3f0] sm:$0xff]  ;;  %v175_v3 = vld [vmem:[%s1754_s1 + $0x3d8] sm:$0xff] }
  0x2a   :  { %849 = vmatpush2.bf16.msra.mxu0 %v1261_v19  ;;  %892 = vmatpush2.bf16.msra.mxu1 %v1263_v20  ;;  %v95_v19 = vld [vmem:[%s1754_s1 + $0x158] sm:$0xff] }
  0x2b   :  { %850 = vmatprep.subr.bf16.mxu0 %v1254_v21  ;;  %893 = vmatprep.subr.bf16.mxu1 %v1256_v22  ;;  %v99_v20 = vld [vmem:[%s1754_s1 + $0x178] sm:$0xff]  ;;  %v1201_v21 = vcombine.low %v102_v8, %v106_v9  ;;  %v1203_v22 = vcombine.low %v103_v11, %v107_v12  ;;  %v166_v9 = vld [vmem:[%s1754_s1 + $0x390] sm:$0xff] }
  0x2c   :  { %v1196_v24 = vcombine.high %v95_v19, %v99_v20  ;;  %v170_v11 = vld [vmem:[%s1754_s1 + $0x3b0] sm:$0xff]  ;;  %v167_v12 = vld [vmem:[%s1754_s1 + $0x398] sm:$0xff] }
  0x2e   :  { %851 = vmatpush2.bf16.msra.mxu0 %v1253_v27  ;;  %894 = vmatpush2.bf16.msra.mxu1 %v1255_v28  ;;  %v87_v27 = vld [vmem:[%s1754_s1 + $0x118] sm:$0xff] }
  0x2f   :  { %852 = vmatprep.subr.bf16.mxu0 %v1246_v29  ;;  %895 = vmatprep.subr.bf16.mxu1 %v1248_v30  ;;  %v91_v28 = vld [vmem:[%s1754_s1 + $0x138] sm:$0xff]  ;;  %v1193_v29 = vcombine.low %v94_v17, %v98_v18  ;;  %v1195_v30 = vcombine.low %v95_v19, %v99_v20  ;;  %v158_v18 = vld [vmem:[%s1754_s1 + $0x350] sm:$0xff] }
  0x30   :  { %v1188_v32 = vcombine.high %v87_v27, %v91_v28  ;;  %v162_v19 = vld [vmem:[%s1754_s1 + $0x370] sm:$0xff]  ;;  %v159_v20 = vld [vmem:[%s1754_s1 + $0x358] sm:$0xff] }
  0x32   :  { %853 = vmatpush2.bf16.msra.mxu0 %v1245_v35  ;;  %896 = vmatpush2.bf16.msra.mxu1 %v1247_v36  ;;  %v83_v35 = vld [vmem:[%s1754_s1 + $0xf8] sm:$0xff]  ;;  %v1185_v36 = vcombine.low %v86_v25, %v90_v26  ;;  %v150_v26 = vld [vmem:[%s1754_s1 + $0x310] sm:$0xff] }
  0x33   :  { %854 = vmatprep.subr.bf16.mxu0 %v1238_v37  ;;  %897 = vmatprep.subr.bf16.mxu1 %v1240_v38  ;;  %v1187_v37 = vcombine.low %v87_v27, %v91_v28  ;;  %v1178_v38 = vcombine.high %v78_v33, %v82_v34  ;;  %v154_v27 = vld [vmem:[%s1754_s1 + $0x330] sm:$0xff]  ;;  %v151_v28 = vld [vmem:[%s1754_s1 + $0x318] sm:$0xff] }
  0x36   :  { %855 = vmatpush2.bf16.msra.mxu0 %v1237_v43  ;;  %898 = vmatpush2.bf16.msra.mxu1 %v1239_v44  ;;  %v75_v43 = vld [vmem:[%s1754_s1 + $0xb8] sm:$0xff]  ;;  %v1177_v44 = vcombine.low %v78_v33, %v82_v34  ;;  %v142_v34 = vld [vmem:[%s1754_s1 + $0x2d0] sm:$0xff] }
  0x37   :  { %856 = vmatprep.subr.bf16.mxu0 %v1230_v45  ;;  %899 = vmatprep.subr.bf16.mxu1 %v1232_v46  ;;  %v1170_v46 = vcombine.high %v70_v40, %v74_v41  ;;  %v1172_v47 = vcombine.high %v71_v42, %v75_v43 }
  0x3a   :  { %857 = vmatpush2.bf16.msra.mxu0 %v1229_v51  ;;  %900 = vmatpush2.bf16.msra.mxu1 %v1231_v52  ;;  %v67_v51 = vld [vmem:[%s1754_s1 + $0x78] sm:$0xff]  ;;  %v1169_v52 = vcombine.low %v70_v40, %v74_v41  ;;  %v134_v41 = vld [vmem:[%s1754_s1 + $0x290] sm:$0xff] }
  0x3b   :  { %858 = vmatprep.subr.bf16.mxu0 %v1222_v53  ;;  %901 = vmatprep.subr.bf16.mxu1 %v1224_v54  ;;  %v1171_v53 = vcombine.low %v71_v42, %v75_v43  ;;  %v1162_v54 = vcombine.high %v62_v48, %v66_v49  ;;  %v1164_v55 = vcombine.high %v63_v50, %v67_v51  ;;  %v138_v42 = vld [vmem:[%s1754_s1 + $0x2b0] sm:$0xff]  ;;  %v135_v43 = vld [vmem:[%s1754_s1 + $0x298] sm:$0xff] }
  0x3e   :  { %859 = vmatpush2.bf16.msra.mxu0 %v1221_v60  ;;  %902 = vmatpush2.bf16.msra.mxu1 %v1223_v61  ;;  %v59_v60 = vld [vmem:[%s1754_s1 + $0x38] sm:$0xff]  ;;  %v1161_v61 = vcombine.low %v62_v48, %v66_v49  ;;  %v126_v49 = vld [vmem:[%s1754_s1 + $0x250] sm:$0xff] }
  0x3f   :  { %860 = vmatprep.subr.bf16.mxu0 %v1214_v62  ;;  %903 = vmatprep.subr.bf16.mxu1 %v1216_v63  ;;  %v1163_v62 = vcombine.low %v63_v50, %v67_v51  ;;  %v1154_v63 = vcombine.high %v54_v57, %v58_v58  ;;  %v1156_v0 = vcombine.high %v55_v59, %v59_v60  ;;  %v130_v50 = vld [vmem:[%s1754_s1 + $0x270] sm:$0xff]  ;;  %v127_v51 = vld [vmem:[%s1754_s1 + $0x258] sm:$0xff] }
  0x42   :  { %861 = vmatpush2.bf16.msra.mxu0 %v1213_v4  ;;  %904 = vmatpush2.bf16.msra.mxu1 %v1215_v5  ;;  %v179_v4 = vld [vmem:[%s1754_s1 + $0x3f8] sm:$0xff]  ;;  %v1153_v5 = vcombine.low %v54_v57, %v58_v58  ;;  %v118_v58 = vld [vmem:[%s1754_s1 + $0x210] sm:$0xff] }
  0x43   :  { %916 = vmatprep.subr.bf16.mxu0 %v1210_v6  ;;  %959 = vmatprep.subr.bf16.mxu1 %v1212_v7  ;;  %v1155_v6 = vcombine.low %v55_v59, %v59_v60  ;;  %v1274_v7 = vcombine.high %v174_v1, %v178_v2  ;;  %v1276_v8 = vcombine.high %v175_v3, %v179_v4  ;;  %v122_v59 = vld [vmem:[%s1754_s1 + $0x230] sm:$0xff]  ;;  %v119_v60 = vld [vmem:[%s1754_s1 + $0x218] sm:$0xff] }
  0x45   :  { %863 = vmatmul.mubr.bf16.vlgmr.msra.gmra.mxu0 %v1521_v10  ;;  %906 = vmatmul.mubr.bf16.vlgmr.msra.gmra.mxu1 %v1521_v10 }
  0x46   :  { %917 = vmatpush1.bf16.msra.mxu0 %v1209_v13  ;;  %960 = vmatpush1.bf16.msra.mxu1 %v1211_v14  ;;  %v171_v13 = vld [vmem:[%s1754_s1 + $0x3b8] sm:$0xff]  ;;  %v1273_v14 = vcombine.low %v174_v1, %v178_v2  ;;  %v1217_v2 = vcombine.low %v118_v58, %v122_v59 }
  0x47   :  { %918 = vmatprep.subr.bf16.mxu0 %v1202_v15  ;;  %961 = vmatprep.subr.bf16.mxu1 %v1204_v16  ;;  %v1275_v15 = vcombine.low %v175_v3, %v179_v4  ;;  %v1266_v16 = vcombine.high %v166_v9, %v170_v11  ;;  %v1268_v17 = vcombine.high %v167_v12, %v171_v13  ;;  %v1055_v4 = vlaneseq }
  0x48   :  { %948 = vmatprep.mubr.bf16.mxu0 %v1394_v56  ;;  %991 = vmatprep.mubr.bf16.mxu1 %v1394_v56  ;;  %v79_v56 = vld [vmem:[%s1754_s1 + $0xd8] sm:$0xff] }
  0x49   :  { %v1180_v39 = vcombine.high %v79_v56, %v83_v35  ;;  %v1179_v45 = vcombine.low %v79_v56, %v83_v35  ;;  %v146_v56 = vld [vmem:[%s1754_s1 + $0x2f0] sm:$0xff]  ;;  %v143_v35 = vld [vmem:[%s1754_s1 + $0x2d8] sm:$0xff] }
  0x4a   :  { %919 = vmatpush1.bf16.msra.mxu0 %v1201_v21  ;;  %962 = vmatpush1.bf16.msra.mxu1 %v1203_v22  ;;  %v163_v21 = vld [vmem:[%s1754_s1 + $0x378] sm:$0xff]  ;;  %v1265_v22 = vcombine.low %v166_v9, %v170_v11 }
  0x4b   :  { %920 = vmatprep.subr.bf16.mxu0 %v1194_v23  ;;  %963 = vmatprep.subr.bf16.mxu1 %v1196_v24  ;;  %v1267_v23 = vcombine.low %v167_v12, %v171_v13  ;;  %v1258_v24 = vcombine.high %v158_v18, %v162_v19  ;;  %v1260_v25 = vcombine.high %v159_v20, %v163_v21 }
  0x4e   :  { %921 = vmatpush1.bf16.msra.mxu0 %v1193_v29  ;;  %964 = vmatpush1.bf16.msra.mxu1 %v1195_v30  ;;  %v155_v29 = vld [vmem:[%s1754_s1 + $0x338] sm:$0xff]  ;;  %v1257_v30 = vcombine.low %v158_v18, %v162_v19 }
  0x4f   :  { %922 = vmatprep.subr.bf16.mxu0 %v1186_v31  ;;  %965 = vmatprep.subr.bf16.mxu1 %v1188_v32  ;;  %v1259_v31 = vcombine.low %v159_v20, %v163_v21  ;;  %v1250_v32 = vcombine.high %v150_v26, %v154_v27  ;;  %v1252_v33 = vcombine.high %v151_v28, %v155_v29 }
  0x52   :  { %923 = vmatpush1.bf16.msra.mxu0 %v1185_v36  ;;  %966 = vmatpush1.bf16.msra.mxu1 %v1187_v37  ;;  %v147_v36 = vld [vmem:[%s1754_s1 + $0x2f8] sm:$0xff]  ;;  %v1249_v37 = vcombine.low %v150_v26, %v154_v27 }
  0x53   :  { %924 = vmatprep.subr.bf16.mxu0 %v1178_v38  ;;  %967 = vmatprep.subr.bf16.mxu1 %v1180_v39  ;;  %v1251_v38 = vcombine.low %v151_v28, %v155_v29  ;;  %v1242_v39 = vcombine.high %v142_v34, %v146_v56  ;;  %v1244_v40 = vcombine.high %v143_v35, %v147_v36 }
  0x56   :  { %925 = vmatpush1.bf16.msra.mxu0 %v1177_v44  ;;  %968 = vmatpush1.bf16.msra.mxu1 %v1179_v45  ;;  %v139_v44 = vld [vmem:[%s1754_s1 + $0x2b8] sm:$0xff]  ;;  %v1241_v45 = vcombine.low %v142_v34, %v146_v56 }
  0x57   :  { %926 = vmatprep.subr.bf16.mxu0 %v1170_v46  ;;  %969 = vmatprep.subr.bf16.mxu1 %v1172_v47  ;;  %v1243_v46 = vcombine.low %v143_v35, %v147_v36  ;;  %v1234_v47 = vcombine.high %v134_v41, %v138_v42  ;;  %v1236_v48 = vcombine.high %v135_v43, %v139_v44 }
  0x5a   :  { %927 = vmatpush1.bf16.msra.mxu0 %v1169_v52  ;;  %970 = vmatpush1.bf16.msra.mxu1 %v1171_v53  ;;  %v131_v52 = vld [vmem:[%s1754_s1 + $0x278] sm:$0xff]  ;;  %v1233_v53 = vcombine.low %v134_v41, %v138_v42 }
  0x5b   :  { %928 = vmatprep.subr.bf16.mxu0 %v1162_v54  ;;  %971 = vmatprep.subr.bf16.mxu1 %v1164_v55  ;;  %v1235_v54 = vcombine.low %v135_v43, %v139_v44  ;;  %v1226_v55 = vcombine.high %v126_v49, %v130_v50  ;;  %v1228_v57 = vcombine.high %v127_v51, %v131_v52 }
  0x5e   :  { %929 = vmatpush1.bf16.msra.mxu0 %v1161_v61  ;;  %972 = vmatpush1.bf16.msra.mxu1 %v1163_v62  ;;  %v123_v61 = vld [vmem:[%s1754_s1 + $0x238] sm:$0xff]  ;;  %v1225_v62 = vcombine.low %v126_v49, %v130_v50 }
  0x5f   :  { %930 = vmatprep.subr.bf16.mxu0 %v1154_v63  ;;  %973 = vmatprep.subr.bf16.mxu1 %v1156_v0  ;;  %v1227_v63 = vcombine.low %v127_v51, %v131_v52  ;;  %v1218_v0 = vcombine.high %v118_v58, %v122_v59  ;;  %v1220_v1 = vcombine.high %v119_v60, %v123_v61 }
  0x60   :  { %v1219_v3 = vcombine.low %v119_v60, %v123_v61 }
  0x62   :  { %931 = vmatpush1.bf16.msra.mxu0 %v1153_v5  ;;  %974 = vmatpush1.bf16.msra.mxu1 %v1155_v6  ;;  %v1056_v5 = vshrl.u32 %v1055_v4, 7 }
  0x63   :  { %932 = vmatprep.subr.bf16.mxu0 %v1274_v7  ;;  %975 = vmatprep.subr.bf16.mxu1 %v1276_v8  ;;  %v1053_v7 = vld [vmem:[%s1756_s2] sm:$0xff] }
  0x64   :  { %v1057_v6 = vsub.s32 0, %v1056_v5  ;;  %v1065_v8 = vsub.s32 2, %v1056_v5  ;;  %v1061_v9 = vsub.s32 1, %v1056_v5  ;;  %v1069_v11 = vsub.s32 3, %v1056_v5 }
  0x65   :  { %v1085_v41 = vsub.s32 7, %v1056_v5 }
  0x66   :  { %933 = vmatpush2.bf16.msra.mxu0 %v1273_v14  ;;  %976 = vmatpush2.bf16.msra.mxu1 %v1275_v15  ;;  %v1058_v12 = vrot.slane %v1053_v7, %v1057_v6  ;;  %v1066_v14 = vrot.slane %v1053_v7, %v1065_v8  ;;  %v1070_v18 = vrot.slane %v1053_v7, %v1069_v11 }
  0x67   :  { %934 = vmatprep.subr.bf16.mxu0 %v1266_v16  ;;  %977 = vmatprep.subr.bf16.mxu1 %v1268_v17  ;;  %v1062_v16 = vrot.slane %v1053_v7, %v1061_v9 }
  0x6a   :  { %935 = vmatpush2.bf16.msra.mxu0 %v1265_v22  ;;  %978 = vmatpush2.bf16.msra.mxu1 %v1267_v23 }
  0x6b   :  { %936 = vmatprep.subr.bf16.mxu0 %v1258_v24  ;;  %979 = vmatprep.subr.bf16.mxu1 %v1260_v25 }
  0x6e   :  { %937 = vmatpush2.bf16.msra.mxu0 %v1257_v30  ;;  %980 = vmatpush2.bf16.msra.mxu1 %v1259_v31 }
  0x6f   :  { %938 = vmatprep.subr.bf16.mxu0 %v1250_v32  ;;  %981 = vmatprep.subr.bf16.mxu1 %v1252_v33 }
  0x72   :  { %939 = vmatpush2.bf16.msra.mxu0 %v1249_v37  ;;  %982 = vmatpush2.bf16.msra.mxu1 %v1251_v38  ;;  %v1073_v38 = vsub.s32 4, %v1056_v5 }
  0x73   :  { %940 = vmatprep.subr.bf16.mxu0 %v1242_v39  ;;  %983 = vmatprep.subr.bf16.mxu1 %v1244_v40  ;;  %v1081_v39 = vsub.s32 6, %v1056_v5  ;;  %v1077_v40 = vsub.s32 5, %v1056_v5 }
  0x74   :  { %v1074_v42 = vrot.slane %v1053_v7, %v1073_v38 }
  0x75   :  { %v1082_v44 = vrot.slane %v1053_v7, %v1081_v39 }
  0x76   :  { %941 = vmatpush2.bf16.msra.mxu0 %v1241_v45  ;;  %984 = vmatpush2.bf16.msra.mxu1 %v1243_v46  ;;  %v1078_v46 = vrot.slane %v1053_v7, %v1077_v40 }
  0x77   :  { %942 = vmatprep.subr.bf16.mxu0 %v1234_v47  ;;  %985 = vmatprep.subr.bf16.mxu1 %v1236_v48  ;;  %v1086_v48 = vrot.slane %v1053_v7, %v1085_v41 }
  0x7a   :  { %943 = vmatpush2.bf16.msra.mxu0 %v1233_v53  ;;  %986 = vmatpush2.bf16.msra.mxu1 %v1235_v54 }
  0x7b   :  { %944 = vmatprep.subr.bf16.mxu0 %v1226_v55  ;;  %987 = vmatprep.subr.bf16.mxu1 %v1228_v57 }
  0x7e   :  { %945 = vmatpush2.bf16.msra.mxu0 %v1225_v62  ;;  %988 = vmatpush2.bf16.msra.mxu1 %v1227_v63 }
  0x7f   :  { %946 = vmatprep.subr.bf16.mxu0 %v1218_v0  ;;  %989 = vmatprep.subr.bf16.mxu1 %v1220_v1 }
  0x82   :  { %947 = vmatpush2.bf16.msra.mxu0 %v1217_v2  ;;  %990 = vmatpush2.bf16.msra.mxu1 %v1219_v3 }
  0x85   :  { %949 = vmatmul.mubr.bf16.vlgmr.msra.gmra.mxu0 %v1521_v10  ;;  %992 = vmatmul.mubr.bf16.vlgmr.msra.gmra.mxu1 %v1521_v10 }
 0x105   :  { %v864_v13 = vpop.f32.mrf.mxu0  ;;  %v907_v15 = vpop.f32.mrf.mxu1 }
 0x106   :  { %v1095_v19 = vadd.f32 %v1058_v12, %v864_v13  ;;  %v1097_v10 = vadd.f32 %v1066_v14, %v907_v15 }
 0x107   :  { %v866_v17 = vpop.f32.mrf.mxu0  ;;  %v909_v20 = vpop.f32.mrf.mxu1 }
 0x108   :  { %v1111_v22 = vmax.f32 %v1095_v19, 0.0  ;;  %v1096_v23 = vadd.f32 %v1062_v16, %v866_v17  ;;  %v1113_v25 = vmax.f32 %v1097_v10, 0.0  ;;  %v1098_v26 = vadd.f32 %v1070_v18, %v909_v20 }
 0x109   :  { %v868_v21 = vpop.f32.mrf.mxu0  ;;  %v911_v24 = vpop.f32.mrf.mxu1 }
 0x10a   :  { %1127 = vst [vmem:[%s1757_s3] sm:$0xff] %v1111_v22  ;;  %v1112_v28 = vmax.f32 %v1096_v23, 0.0  ;;  %v1103_v29 = vadd.f32 %v1058_v12, %v868_v21  ;;  %1129 = vst [vmem:[%s1757_s3 + $0x10] sm:$0xff] %v1113_v25  ;;  %v1114_v31 = vmax.f32 %v1098_v26, 0.0  ;;  %v1105_v32 = vadd.f32 %v1066_v14, %v911_v24 }
 0x10b   :  { %v870_v27 = vpop.f32.mrf.mxu0  ;;  %v913_v30 = vpop.f32.mrf.mxu1 }
 0x10c   :  { %1128 = vst [vmem:[%s1757_s3 + $0x8] sm:$0xff] %v1112_v28  ;;  %v1119_v33 = vmax.f32 %v1103_v29, 0.0  ;;  %v1104_v34 = vadd.f32 %v1062_v16, %v870_v27  ;;  %1130 = vst [vmem:[%s1757_s3 + $0x18] sm:$0xff] %v1114_v31  ;;  %v1121_v56 = vmax.f32 %v1105_v32, 0.0  ;;  %v1106_v35 = vadd.f32 %v1070_v18, %v913_v30 }
 0x10e   :  { %1135 = vst [vmem:[%s1757_s3 + $0x40] sm:$0xff] %v1119_v33  ;;  %v1120_v36 = vmax.f32 %v1104_v34, 0.0  ;;  %1137 = vst [vmem:[%s1757_s3 + $0x50] sm:$0xff] %v1121_v56  ;;  %v1122_v37 = vmax.f32 %v1106_v35, 0.0 }
 0x110   :  { %1136 = vst [vmem:[%s1757_s3 + $0x48] sm:$0xff] %v1120_v36  ;;  %1138 = vst [vmem:[%s1757_s3 + $0x58] sm:$0xff] %v1122_v37 }
 0x145   :  { %v950_v43 = vpop.f32.mrf.mxu0  ;;  %v993_v45 = vpop.f32.mrf.mxu1 }
 0x146   :  { %v1099_v49 = vadd.f32 %v1074_v42, %v950_v43  ;;  %v1101_v51 = vadd.f32 %v1082_v44, %v993_v45 }
 0x147   :  { %v952_v47 = vpop.f32.mrf.mxu0  ;;  %v995_v50 = vpop.f32.mrf.mxu1 }
 0x148   :  { %v1115_v53 = vmax.f32 %v1099_v49, 0.0  ;;  %v1100_v54 = vadd.f32 %v1078_v46, %v952_v47  ;;  %v1117_v57 = vmax.f32 %v1101_v51, 0.0  ;;  %v1102_v58 = vadd.f32 %v1086_v48, %v995_v50 }
 0x149   :  { %v954_v52 = vpop.f32.mrf.mxu0  ;;  %v997_v55 = vpop.f32.mrf.mxu1 }
 0x14a   :  { %1131 = vst [vmem:[%s1757_s3 + $0x20] sm:$0xff] %v1115_v53  ;;  %v1116_v60 = vmax.f32 %v1100_v54, 0.0  ;;  %v1107_v61 = vadd.f32 %v1074_v42, %v954_v52  ;;  %1133 = vst [vmem:[%s1757_s3 + $0x30] sm:$0xff] %v1117_v57  ;;  %v1118_v63 = vmax.f32 %v1102_v58, 0.0  ;;  %v1109_v0 = vadd.f32 %v1082_v44, %v997_v55 }
 0x14b   :  { %v956_v59 = vpop.f32.mrf.mxu0  ;;  %v999_v62 = vpop.f32.mrf.mxu1 }
 0x14c   :  { %1132 = vst [vmem:[%s1757_s3 + $0x28] sm:$0xff] %v1116_v60  ;;  %v1123_v1 = vmax.f32 %v1107_v61, 0.0  ;;  %v1108_v2 = vadd.f32 %v1078_v46, %v956_v59  ;;  %1134 = vst [vmem:[%s1757_s3 + $0x38] sm:$0xff] %v1118_v63  ;;  %v1125_v3 = vmax.f32 %v1109_v0, 0.0  ;;  %v1110_v4 = vadd.f32 %v1086_v48, %v999_v62 }
 0x14e   :  { %1139 = vst [vmem:[%s1757_s3 + $0x60] sm:$0xff] %v1123_v1  ;;  %v1124_v5 = vmax.f32 %v1108_v2, 0.0  ;;  %1141 = vst [vmem:[%s1757_s3 + $0x70] sm:$0xff] %v1125_v3  ;;  %v1126_v6 = vmax.f32 %v1110_v4, 0.0 }
 0x150   :  { %1140 = vst [vmem:[%s1757_s3 + $0x68] sm:$0xff] %v1124_v5  ;;  %1142 = vst [vmem:[%s1757_s3 + $0x78] sm:$0xff] %v1126_v6 }

// kernel: conv_q_network_forward.11
= control target key start
LH: loop header
LB: loop body
LE: loop exit
PB: predicated region body
PF: predicated region fallthrough
CT: control target
= control target key end

     0   :  { %s1242_s1 = inlined_call_operand.vmem [shape: bf16[1024,128], index: 1, kind: input, shape index: {}]   ;;  %s1243_s0 = inlined_call_operand.vmem [shape: bf16[16,1024], index: 0, kind: input, shape index: {}]   ;;  %s1244_s2 = inlined_call_operand.vmem [shape: f32[1,128], index: 2, kind: input, shape index: {}]   ;;  %s1245_s3 = inlined_call_operand.vmem [shape: f32[16,128], index: 3, kind: output, shape index: {}]  }
   0x1   :  { %v933_v0 = vld [vmem:[%s1242_s1 + $0x78] sm:$0xff]   ;;  %v937_v4 = vld [vmem:[%s1242_s1 + $0x70] sm:$0xff]   ;;  %v941_v8 = vld [vmem:[%s1242_s1 + $0x68] sm:$0xff]  }
   0x2   :  { %v934_v1 = vld [vmem:[%s1242_s1 + $0xf8] sm:$0xff]   ;;  %844 = vmatprep.subr.bf16.mxu0 %v933_v0  ;;  %v938_v5 = vld [vmem:[%s1242_s1 + $0xf0] sm:$0xff]   ;;  %v942_v9 = vld [vmem:[%s1242_s1 + $0xe8] sm:$0xff]  }
   0x3   :  { %v935_v2 = vld [vmem:[%s1242_s1 + $0x38] sm:$0xff]   ;;  %866 = vmatprep.subr.bf16.mxu1 %v934_v1  ;;  %v939_v6 = vld [vmem:[%s1242_s1 + $0x30] sm:$0xff]   ;;  %v943_v10 = vld [vmem:[%s1242_s1 + $0x28] sm:$0xff]  }
   0x4   :  { %v936_v3 = vld [vmem:[%s1242_s1 + $0xb8] sm:$0xff]   ;;  %845 = vmatpush3.bf16.msra.mxu0 %v935_v2  ;;  %v940_v7 = vld [vmem:[%s1242_s1 + $0xb0] sm:$0xff]   ;;  %v944_v11 = vld [vmem:[%s1242_s1 + $0xa8] sm:$0xff]  }
   0x5   :  { %867 = vmatpush3.bf16.msra.mxu1 %v936_v3  ;;  %846 = vmatprep.subr.bf16.mxu0 %v937_v4  ;;  %v945_v12 = vld [vmem:[%s1242_s1 + $0x60] sm:$0xff]   ;;  %v949_v16 = vld [vmem:[%s1242_s1 + $0x58] sm:$0xff]   ;;  %v953_v20 = vld [vmem:[%s1242_s1 + $0x50] sm:$0xff]  }
   0x6   :  { %868 = vmatprep.subr.bf16.mxu1 %v938_v5  ;;  %v946_v13 = vld [vmem:[%s1242_s1 + $0xe0] sm:$0xff]   ;;  %v950_v17 = vld [vmem:[%s1242_s1 + $0xd8] sm:$0xff]   ;;  %v954_v21 = vld [vmem:[%s1242_s1 + $0xd0] sm:$0xff]  }
   0x7   :  { %v947_v14 = vld [vmem:[%s1242_s1 + $0x20] sm:$0xff]   ;;  %v951_v18 = vld [vmem:[%s1242_s1 + $0x18] sm:$0xff]   ;;  %v955_v22 = vld [vmem:[%s1242_s1 + $0x10] sm:$0xff]  }
   0x8   :  { %847 = vmatpush3.bf16.msra.mxu0 %v939_v6  ;;  %v948_v15 = vld [vmem:[%s1242_s1 + $0xa0] sm:$0xff]   ;;  %v952_v19 = vld [vmem:[%s1242_s1 + $0x98] sm:$0xff]   ;;  %v956_v23 = vld [vmem:[%s1242_s1 + $0x90] sm:$0xff]  }
   0x9   :  { %869 = vmatpush3.bf16.msra.mxu1 %v940_v7  ;;  %848 = vmatprep.subr.bf16.mxu0 %v941_v8  ;;  %v957_v24 = vld [vmem:[%s1242_s1 + $0x48] sm:$0xff]   ;;  %v961_v28 = vld [vmem:[%s1242_s1 + $0x40] sm:$0xff]   ;;  %v965_v40 = vld [vmem:[%s1242_s1 + $0x178] sm:$0xff]  }
   0xa   :  { %870 = vmatprep.subr.bf16.mxu1 %v942_v9  ;;  %v958_v25 = vld [vmem:[%s1242_s1 + $0xc8] sm:$0xff]   ;;  %v962_v29 = vld [vmem:[%s1242_s1 + $0xc0] sm:$0xff]   ;;  %v966_v41 = vld [vmem:[%s1242_s1 + $0x1f8] sm:$0xff]  }
   0xb   :  { %v959_v26 = vld [vmem:[%s1242_s1 + $0x8] sm:$0xff]   ;;  %v963_v30 = vld [vmem:[%s1242_s1] sm:$0xff]   ;;  %v967_v42 = vld [vmem:[%s1242_s1 + $0x138] sm:$0xff]  }
   0xc   :  { %849 = vmatpush3.bf16.msra.mxu0 %v943_v10  ;;  %v960_v27 = vld [vmem:[%s1242_s1 + $0x88] sm:$0xff]   ;;  %v964_v31 = vld [vmem:[%s1242_s1 + $0x80] sm:$0xff]   ;;  %v968_v43 = vld [vmem:[%s1242_s1 + $0x1b8] sm:$0xff]  }
   0xd   :  { %871 = vmatpush3.bf16.msra.mxu1 %v944_v11  ;;  %850 = vmatprep.subr.bf16.mxu0 %v945_v12  ;;  %v23_v32 = vld [vmem:[%s1243_s0] sm:$0xff]  ;;  %v24_v34 = vld [vmem:[%s1243_s0 + $0x8] sm:$0xff]  ;;  %v969_v44 = vld [vmem:[%s1242_s1 + $0x170] sm:$0xff]  }
   0xe   :  { %872 = vmatprep.subr.bf16.mxu1 %v946_v13  ;;  %v27_v33 = vld [vmem:[%s1243_s0 + $0x20] sm:$0xff]  ;;  %v28_v37 = vld [vmem:[%s1243_s0 + $0x28] sm:$0xff]  ;;  %v970_v45 = vld [vmem:[%s1242_s1 + $0x1f0] sm:$0xff]  }
   0xf   :  { %v771_v35 = vcombine.low %v23_v32, %v27_v33  ;;  %v772_v36 = vcombine.high %v23_v32, %v27_v33  ;;  %v773_v38 = vcombine.low %v24_v34, %v28_v37  ;;  %v774_v39 = vcombine.high %v24_v34, %v28_v37  ;;  %v971_v46 = vld [vmem:[%s1242_s1 + $0x130] sm:$0xff]   ;;  %v973_v48 = vld [vmem:[%s1242_s1 + $0x168] sm:$0xff]   ;;  %v977_v52 = vld [vmem:[%s1242_s1 + $0x160] sm:$0xff]  }
  0x10   :  { %851 = vmatpush3.bf16.msra.mxu0 %v947_v14  ;;  %v972_v47 = vld [vmem:[%s1242_s1 + $0x1b0] sm:$0xff]   ;;  %v974_v49 = vld [vmem:[%s1242_s1 + $0x1e8] sm:$0xff]   ;;  %v978_v53 = vld [vmem:[%s1242_s1 + $0x1e0] sm:$0xff]  }
  0x11   :  { %873 = vmatpush3.bf16.msra.mxu1 %v948_v15  ;;  %852 = vmatprep.subr.bf16.mxu0 %v949_v16  ;;  %v975_v50 = vld [vmem:[%s1242_s1 + $0x128] sm:$0xff]   ;;  %v979_v54 = vld [vmem:[%s1242_s1 + $0x120] sm:$0xff]   ;;  %v981_v56 = vld [vmem:[%s1242_s1 + $0x158] sm:$0xff]  }
  0x12   :  { %874 = vmatprep.subr.bf16.mxu1 %v950_v17  ;;  %615 = vmatprep.mubr.bf16.mxu0 %v772_v36  ;;  %v976_v51 = vld [vmem:[%s1242_s1 + $0x1a8] sm:$0xff]   ;;  %v980_v55 = vld [vmem:[%s1242_s1 + $0x1a0] sm:$0xff]   ;;  %v982_v57 = vld [vmem:[%s1242_s1 + $0x1d8] sm:$0xff]  }
  0x13   :  { %656 = vmatprep.mubr.bf16.mxu1 %v774_v39  ;;  %v983_v58 = vld [vmem:[%s1242_s1 + $0x118] sm:$0xff]   ;;  %v985_v60 = vld [vmem:[%s1242_s1 + $0x150] sm:$0xff]   ;;  %v989_v0 = vld [vmem:[%s1242_s1 + $0x148] sm:$0xff]  }
  0x14   :  { %853 = vmatpush3.bf16.msra.mxu0 %v951_v18  ;;  %v984_v59 = vld [vmem:[%s1242_s1 + $0x198] sm:$0xff]   ;;  %v986_v61 = vld [vmem:[%s1242_s1 + $0x1d0] sm:$0xff]   ;;  %v990_v1 = vld [vmem:[%s1242_s1 + $0x1c8] sm:$0xff]  }
  0x15   :  { %875 = vmatpush3.bf16.msra.mxu1 %v952_v19  ;;  %854 = vmatprep.subr.bf16.mxu0 %v953_v20  ;;  %v987_v62 = vld [vmem:[%s1242_s1 + $0x110] sm:$0xff]   ;;  %v991_v2 = vld [vmem:[%s1242_s1 + $0x108] sm:$0xff]   ;;  %v993_v4 = vld [vmem:[%s1242_s1 + $0x140] sm:$0xff]  }
  0x16   :  { %876 = vmatprep.subr.bf16.mxu1 %v954_v21  ;;  %v988_v63 = vld [vmem:[%s1242_s1 + $0x190] sm:$0xff]   ;;  %v992_v3 = vld [vmem:[%s1242_s1 + $0x188] sm:$0xff]   ;;  %v994_v5 = vld [vmem:[%s1242_s1 + $0x1c0] sm:$0xff]  }
  0x17   :  { %v995_v6 = vld [vmem:[%s1242_s1 + $0x100] sm:$0xff]   ;;  %v25_v8 = vld [vmem:[%s1243_s0 + $0x10] sm:$0xff]  ;;  %v26_v12 = vld [vmem:[%s1243_s0 + $0x18] sm:$0xff] }
  0x18   :  { %855 = vmatpush3.bf16.msra.mxu0 %v955_v22  ;;  %v996_v7 = vld [vmem:[%s1242_s1 + $0x180] sm:$0xff]   ;;  %v29_v9 = vld [vmem:[%s1243_s0 + $0x30] sm:$0xff]  ;;  %v30_v13 = vld [vmem:[%s1243_s0 + $0x38] sm:$0xff] }
  0x19   :  { %877 = vmatpush3.bf16.msra.mxu1 %v956_v23  ;;  %856 = vmatprep.subr.bf16.mxu0 %v957_v24  ;;  %v775_v10 = vcombine.low %v25_v8, %v29_v9  ;;  %v776_v11 = vcombine.high %v25_v8, %v29_v9  ;;  %v777_v14 = vcombine.low %v26_v12, %v30_v13 }
  0x1a   :  { %878 = vmatprep.subr.bf16.mxu1 %v958_v25  ;;  %v778_v15 = vcombine.high %v26_v12, %v30_v13 }
  0x1c   :  { %857 = vmatpush3.bf16.msra.mxu0 %v959_v26 }
  0x1d   :  { %879 = vmatpush3.bf16.msra.mxu1 %v960_v27  ;;  %858 = vmatprep.subr.bf16.mxu0 %v961_v28 }
  0x1e   :  { %880 = vmatprep.subr.bf16.mxu1 %v962_v29 }
  0x20   :  { %859 = vmatpush3.bf16.msra.mxu0 %v963_v30 }
  0x21   :  { %881 = vmatpush3.bf16.msra.mxu1 %v964_v31  ;;  %888 = vmatprep.subr.bf16.mxu0 %v965_v40 }
  0x22   :  { %910 = vmatprep.subr.bf16.mxu1 %v966_v41 }
  0x23   :  { %616 = vmatmul.mubr.bf16.vlgmr.msra.gmra.mxu0 %v771_v35 }
  0x24   :  { %657 = vmatmul.mubr.bf16.vlgmr.msra.gmra.mxu1 %v773_v38  ;;  %889 = vmatpush3.bf16.msra.mxu0 %v967_v42 }
  0x25   :  { %911 = vmatpush3.bf16.msra.mxu1 %v968_v43  ;;  %890 = vmatprep.subr.bf16.mxu0 %v969_v44  ;;  %v843_v43 = vld [vmem:[%s1244_s2] ss:$0 sm:$0xff] }
  0x26   :  { %912 = vmatprep.subr.bf16.mxu1 %v970_v45  ;;  %697 = vmatprep.mubr.bf16.mxu0 %v776_v11 }
  0x27   :  { %738 = vmatprep.mubr.bf16.mxu1 %v778_v15 }
  0x28   :  { %891 = vmatpush3.bf16.msra.mxu0 %v971_v46 }
  0x29   :  { %913 = vmatpush3.bf16.msra.mxu1 %v972_v47  ;;  %892 = vmatprep.subr.bf16.mxu0 %v973_v48 }
  0x2a   :  { %914 = vmatprep.subr.bf16.mxu1 %v974_v49 }
  0x2c   :  { %893 = vmatpush3.bf16.msra.mxu0 %v975_v50 }
  0x2d   :  { %915 = vmatpush3.bf16.msra.mxu1 %v976_v51  ;;  %894 = vmatprep.subr.bf16.mxu0 %v977_v52 }
  0x2e   :  { %916 = vmatprep.subr.bf16.mxu1 %v978_v53 }
  0x30   :  { %895 = vmatpush3.bf16.msra.mxu0 %v979_v54 }
  0x31   :  { %917 = vmatpush3.bf16.msra.mxu1 %v980_v55  ;;  %896 = vmatprep.subr.bf16.mxu0 %v981_v56 }
  0x32   :  { %918 = vmatprep.subr.bf16.mxu1 %v982_v57 }
  0x34   :  { %897 = vmatpush3.bf16.msra.mxu0 %v983_v58 }
  0x35   :  { %919 = vmatpush3.bf16.msra.mxu1 %v984_v59  ;;  %898 = vmatprep.subr.bf16.mxu0 %v985_v60 }
  0x36   :  { %920 = vmatprep.subr.bf16.mxu1 %v986_v61 }
  0x38   :  { %899 = vmatpush3.bf16.msra.mxu0 %v987_v62 }
  0x39   :  { %921 = vmatpush3.bf16.msra.mxu1 %v988_v63  ;;  %900 = vmatprep.subr.bf16.mxu0 %v989_v0 }
  0x3a   :  { %922 = vmatprep.subr.bf16.mxu1 %v990_v1 }
  0x3c   :  { %901 = vmatpush3.bf16.msra.mxu0 %v991_v2 }
  0x3d   :  { %923 = vmatpush3.bf16.msra.mxu1 %v992_v3  ;;  %902 = vmatprep.subr.bf16.mxu0 %v993_v4 }
  0x3e   :  { %924 = vmatprep.subr.bf16.mxu1 %v994_v5 }
  0x40   :  { %903 = vmatpush3.bf16.msra.mxu0 %v995_v6 }
  0x41   :  { %925 = vmatpush3.bf16.msra.mxu1 %v996_v7 }
  0x43   :  { %698 = vmatmul.mubr.bf16.vlgmr.msra.gmra.mxu0 %v775_v10 }
  0x44   :  { %739 = vmatmul.mubr.bf16.vlgmr.msra.gmra.mxu1 %v777_v14 }
  0xe3   :  { %v860_v16 = vpop.f32.mrf.mxu0 }
  0xe4   :  { %v882_v17 = vpop.f32.mrf.mxu1 }
  0xe5   :  { %v861_v18 = vpop.f32.mrf.mxu0 }
  0xe6   :  { %v883_v19 = vpop.f32.mrf.mxu1  ;;  %v862_v23 = vadd.f32 %v861_v18, %v860_v16 }
  0xe7   :  { %v863_v20 = vpop.f32.mrf.mxu0  ;;  %v884_v24 = vadd.f32 %v883_v19, %v882_v17 }
  0xe8   :  { %v885_v21 = vpop.f32.mrf.mxu1 }
  0xe9   :  { %v864_v22 = vpop.f32.mrf.mxu0  ;;  %v659_v29 = vadd.f32 %v884_v24, %v862_v23 }
  0xea   :  { %v886_v25 = vpop.f32.mrf.mxu1  ;;  %v865_v30 = vadd.f32 %v864_v22, %v863_v20 }
  0xeb   :  { %v887_v31 = vadd.f32 %v886_v25, %v885_v21 }
  0xed   :  { %v662_v39 = vadd.f32 %v887_v31, %v865_v30 }
 0x103   :  { %v904_v26 = vpop.f32.mrf.mxu0 }
 0x104   :  { %v926_v27 = vpop.f32.mrf.mxu1 }
 0x105   :  { %v905_v28 = vpop.f32.mrf.mxu0 }
 0x106   :  { %v906_v32 = vadd.f32 %v905_v28, %v904_v26  ;;  %v927_v33 = vpop.f32.mrf.mxu1 }
 0x107   :  { %v907_v34 = vpop.f32.mrf.mxu0  ;;  %v928_v36 = vadd.f32 %v927_v33, %v926_v27 }
 0x108   :  { %v700_v35 = vadd.f32 %v906_v32, %v659_v29  ;;  %v929_v37 = vpop.f32.mrf.mxu1 }
 0x109   :  { %v908_v38 = vpop.f32.mrf.mxu0 }
 0x10a   :  { %v741_v40 = vadd.f32 %v928_v36, %v700_v35  ;;  %v909_v41 = vadd.f32 %v908_v38, %v907_v34  ;;  %v930_v42 = vpop.f32.mrf.mxu1 }
 0x10b   :  { %v931_v45 = vadd.f32 %v930_v42, %v929_v37 }
 0x10c   :  { %v703_v44 = vadd.f32 %v909_v41, %v662_v39  ;;  %v763_v46 = vadd.f32 %v843_v43, %v741_v40 }
 0x10e   :  { %v744_v47 = vadd.f32 %v931_v45, %v703_v44  ;;  %765 = vst [vmem:[%s1245_s3] sm:$0xff] %v763_v46 }
 0x110   :  { %v764_v48 = vadd.f32 %v843_v43, %v744_v47 }
 0x112   :  { %766 = vst [vmem:[%s1245_s3 + $0x8] sm:$0xff] %v764_v48 }

// kernel: conv_q_network_forward.9
= control target key start
LH: loop header
LB: loop body
LE: loop exit
PB: predicated region body
PF: predicated region fallthrough
CT: control target
= control target key end

     0   :  { %s2394_s12 = smov 0   ;;  %s2396_s13 = smov 0   ;;  %s2660_s0 = inlined_call_operand.vmem [shape: bf16[16,16384], index: 0, kind: input, shape index: {}]   ;;  %s2661_s1 = inlined_call_operand.vmem [shape: bf16[16384,128], index: 1, kind: input, shape index: {}]   ;;  %s2662_s2 = inlined_call_operand.vmem [shape: f32[1,128], index: 2, kind: input, shape index: {}]   ;;  %s2663_s3 = inlined_call_operand.vmem [shape: f32[16,128], index: 3, kind: output, shape index: {}]  }
   0x1   :  { %s2398_s14 = smov 0   ;;  %s2400_s15 = smov 0  }
   0x2   :  { %s2402_s16 = smov 0  }
   0x3 LB: > { %s22_s17 = sadd.s32 1, %s2367_s15  ;;  %p41_p1 = scmp.ne.s32.totalorder %s2359_s13, %s2355_s12  ;;  %s2371_s16 = sphi %s2402_s16, %s13_s16   ;;  %s2367_s15 = sphi %s2400_s15, %s2667_s15   ;;  %s2363_s14 = sphi %s2398_s14, %s2666_s14   ;;  %s2359_s13 = sphi %s2396_s13, %s2665_s13   ;;  %s2355_s12 = sphi %s2394_s12, %s2664_s12  }
   0x4   : > { %p23_p0 = scmp.ge.s32.totalorder %s22_s17, 8  ;;  %p42_p2 = scmp.eq.s32.totalorder %s2371_s16, 0 }
   0x5   : > { %s34_s19 = sadd.s32 1, %s2359_s13  ;;  %p1828_p5 = scmp.ge.s32.totalorder %s2371_s16, 8 }
   0x6   : > { %s2669_s17 = smov (%p23_p0, %s22_s17), 0  ;;  %p43_p3 = por %p42_p2, %p41_p1 }
   0x7   : > { %s30_s18 = ssub.s32 %s2367_s15, %s2669_s17  ;;  %143 = sbr.rel (%p1828_p5) target bundleno = 24 (0x18), region = 20 }
   0x8   : > { %p32_p4 = scmp.eq.s32.totalorder %s30_s18, 0 }
   0xa   : > { %s2429_s20 = scalar_select %p32_p4, %s2359_s13, %s34_s19  }
   0xc   : > { %146 = sbr.rel (!%p43_p3) target bundleno = 24 (0x18), region = 24  ;;  %s148_s21 = sand.u32 (%p43_p3), 1, %s2359_s13  }
   0xd   : > { %s1987_s22 = sshll.u32 (%p43_p3), %s2367_s15, 6  ;;  %s1829_s23 = sshll.u32 (%p43_p3), %s148_s21, 7 }
   0xe   : > { %s2437_s26 = scalar_lea.vmem (%p43_p3), %s2660_s0, %s1987_s22  ;;  %s150_s27 = scalar_lea.vmem (%p43_p3), [#allocation2], %s1829_s23 }
   0xf   : > { %v169_v0 = vld [vmem:[%s2437_s26] sm:$0xff] (%p43_p3)  ;;  %v171_v1 = vld [vmem:[%s2437_s26 + $0x8] sm:$0xff] (%p43_p3)  ;;  %v173_v2 = vld [vmem:[%s2437_s26 + $0x10] sm:$0xff] (%p43_p3) }
  0x10   : > { %170 = vst [vmem:[%s150_s27] sm:$0xff] (%p43_p3), %v169_v0  ;;  %172 = vst [vmem:[%s150_s27 + $0x8] sm:$0xff] (%p43_p3), %v171_v1  ;;  %v175_v3 = vld [vmem:[%s2437_s26 + $0x18] sm:$0xff] (%p43_p3)  ;;  %v177_v4 = vld [vmem:[%s2437_s26 + $0x20] sm:$0xff] (%p43_p3) }
  0x11   : > { %174 = vst [vmem:[%s150_s27 + $0x10] sm:$0xff] %v173_v2  ;;  %v179_v5 = vld [vmem:[%s2437_s26 + $0x28] sm:$0xff]  ;;  %176 = vst [vmem:[%s150_s27 + $0x18] sm:$0xff] %v175_v3  ;;  %v181_v6 = vld [vmem:[%s2437_s26 + $0x30] sm:$0xff] }
  0x12   : > { %178 = vst [vmem:[%s150_s27 + $0x20] sm:$0xff] %v177_v4  ;;  %180 = vst [vmem:[%s150_s27 + $0x28] sm:$0xff] %v179_v5  ;;  %v183_v7 = vld [vmem:[%s2437_s26 + $0x38] sm:$0xff]  ;;  %v185_v8 = vld [vmem:[%s2437_s26 + $0x200] sm:$0xff] }
  0x13   : > { %182 = vst [vmem:[%s150_s27 + $0x30] sm:$0xff] %v181_v6  ;;  %184 = vst [vmem:[%s150_s27 + $0x38] sm:$0xff] %v183_v7  ;;  %v187_v9 = vld [vmem:[%s2437_s26 + $0x208] sm:$0xff]  ;;  %v189_v10 = vld [vmem:[%s2437_s26 + $0x210] sm:$0xff] }
  0x14   : > { %186 = vst [vmem:[%s150_s27 + $0x40] sm:$0xff] %v185_v8  ;;  %v191_v11 = vld [vmem:[%s2437_s26 + $0x218] sm:$0xff]  ;;  %188 = vst [vmem:[%s150_s27 + $0x48] sm:$0xff] %v187_v9  ;;  %v193_v12 = vld [vmem:[%s2437_s26 + $0x220] sm:$0xff] }
  0x15   : > { %190 = vst [vmem:[%s150_s27 + $0x50] sm:$0xff] %v189_v10  ;;  %192 = vst [vmem:[%s150_s27 + $0x58] sm:$0xff] %v191_v11  ;;  %v195_v13 = vld [vmem:[%s2437_s26 + $0x228] sm:$0xff]  ;;  %v197_v14 = vld [vmem:[%s2437_s26 + $0x230] sm:$0xff] }
  0x16   : > { %194 = vst [vmem:[%s150_s27 + $0x60] sm:$0xff] %v193_v12  ;;  %196 = vst [vmem:[%s150_s27 + $0x68] sm:$0xff] %v195_v13  ;;  %v199_v15 = vld [vmem:[%s2437_s26 + $0x238] sm:$0xff] }
  0x17   : > { %198 = vst [vmem:[%s150_s27 + $0x70] sm:$0xff] %v197_v14  ;;  %200 = vst [vmem:[%s150_s27 + $0x78] sm:$0xff] %v199_v15 }
  0x18 PF: > { %p1832_p6 = scmp.ge.s32.totalorder %s2371_s16, 1  ;;  %p214_p7 = scmp.lt.s32.totalorder %s2371_s16, 9 }
  0x1a   : > { %p215_p8 = pnand %p1832_p6, %p214_p7 }
  0x1b   : > { %s221_s28 = sand.u32 (!%p215_p8), 1, %s2355_s12   ;;  %s1834_s29 = sshll.u32 (!%p215_p8), %s2363_s14, 8 }
  0x1c   : > { %218 = sbr.rel (%p215_p8) target bundleno = 390 (0x186), region = 51  ;;  %s1833_s30 = sshll.u32 (!%p215_p8), %s221_s28, 7 }
  0x1d   : > { %p252_p9 = scmp.lt.s32.totalorder (!%p215_p8), %s1834_s29, 2047  ;;  %s2464_s8 = scalar_lea.vmem (!%p215_p8), [#allocation2], %s1833_s30 }
  0x1e   : > { %p1836_p10 = scmp.ne.s32.totalorder (!%p215_p8), %s2363_s14, 0 }
  0x21   : > { %s2671_s29 = smov (!%p252_p9, %s1834_s29), 2047  ;;  %267 = sbr.rel (%p1836_p10) target bundleno = 40 (0x28), region = 59 }
  0x22   : > { %s1835_s4 = sshll.u32 %s2671_s29, 2 }
  0x23   : > { %s2462_s7 = scalar_lea.vmem %s2661_s1, %s1835_s4 }
  0x26   : > { %v2373_v16 = vmov 0.0  }
  0x27   : > { %268 = vst [vmem:[%s2663_s3] sm:$0xff] %v2373_v16  ;;  %269 = vst [vmem:[%s2663_s3 + $0x8] sm:$0xff] %v2373_v16 }
  0x28 PF: > { %v2205_v17 = vld [vmem:[%s2462_s7 + $0x78] sm:$0xff]   ;;  %v2209_v21 = vld [vmem:[%s2462_s7 + $0x70] sm:$0xff]   ;;  %v2213_v25 = vld [vmem:[%s2462_s7 + $0x68] sm:$0xff]   ;;  %p1981_p11 = scmp.ne.s32.totalorder %s2363_s14, 7 }
  0x29   : > { %v2206_v18 = vld [vmem:[%s2462_s7 + $0xf8] sm:$0xff]   ;;  %1988 = vmatprep.subr.bf16.mxu0 %v2205_v17  ;;  %v2210_v22 = vld [vmem:[%s2462_s7 + $0xf0] sm:$0xff]   ;;  %v2214_v26 = vld [vmem:[%s2462_s7 + $0xe8] sm:$0xff]  }
  0x2a   : > { %v2207_v19 = vld [vmem:[%s2462_s7 + $0x38] sm:$0xff]   ;;  %2010 = vmatprep.subr.bf16.mxu1 %v2206_v18  ;;  %v2211_v23 = vld [vmem:[%s2462_s7 + $0x30] sm:$0xff]   ;;  %v2215_v27 = vld [vmem:[%s2462_s7 + $0x28] sm:$0xff]  }
  0x2b   : > { %v2208_v20 = vld [vmem:[%s2462_s7 + $0xb8] sm:$0xff]   ;;  %1989 = vmatpush3.bf16.msra.mxu0 %v2207_v19  ;;  %v2212_v24 = vld [vmem:[%s2462_s7 + $0xb0] sm:$0xff]   ;;  %v2216_v28 = vld [vmem:[%s2462_s7 + $0xa8] sm:$0xff]  }
  0x2c   : > { %2011 = vmatpush3.bf16.msra.mxu1 %v2208_v20  ;;  %1990 = vmatprep.subr.bf16.mxu0 %v2209_v21  ;;  %v2217_v29 = vld [vmem:[%s2462_s7 + $0x60] sm:$0xff]   ;;  %v2221_v33 = vld [vmem:[%s2462_s7 + $0x58] sm:$0xff]   ;;  %v2225_v37 = vld [vmem:[%s2462_s7 + $0x50] sm:$0xff]  }
  0x2d   : > { %2012 = vmatprep.subr.bf16.mxu1 %v2210_v22  ;;  %v2218_v30 = vld [vmem:[%s2462_s7 + $0xe0] sm:$0xff]   ;;  %v2222_v34 = vld [vmem:[%s2462_s7 + $0xd8] sm:$0xff]   ;;  %v2226_v38 = vld [vmem:[%s2462_s7 + $0xd0] sm:$0xff]  }
  0x2e   : > { %v2219_v31 = vld [vmem:[%s2462_s7 + $0x20] sm:$0xff]   ;;  %v2223_v35 = vld [vmem:[%s2462_s7 + $0x18] sm:$0xff]   ;;  %v2227_v39 = vld [vmem:[%s2462_s7 + $0x10] sm:$0xff]  }
  0x2f   : > { %1991 = vmatpush3.bf16.msra.mxu0 %v2211_v23  ;;  %v2220_v32 = vld [vmem:[%s2462_s7 + $0xa0] sm:$0xff]   ;;  %v2224_v36 = vld [vmem:[%s2462_s7 + $0x98] sm:$0xff]   ;;  %v2228_v40 = vld [vmem:[%s2462_s7 + $0x90] sm:$0xff]  }
  0x30   : > { %2013 = vmatpush3.bf16.msra.mxu1 %v2212_v24  ;;  %1992 = vmatprep.subr.bf16.mxu0 %v2213_v25  ;;  %v2229_v41 = vld [vmem:[%s2462_s7 + $0x48] sm:$0xff]   ;;  %v2233_v45 = vld [vmem:[%s2462_s7 + $0x40] sm:$0xff]   ;;  %v2237_v57 = vld [vmem:[%s2462_s7 + $0x178] sm:$0xff]  }
  0x31   : > { %2014 = vmatprep.subr.bf16.mxu1 %v2214_v26  ;;  %v2230_v42 = vld [vmem:[%s2462_s7 + $0xc8] sm:$0xff]   ;;  %v2234_v46 = vld [vmem:[%s2462_s7 + $0xc0] sm:$0xff]   ;;  %v2238_v58 = vld [vmem:[%s2462_s7 + $0x1f8] sm:$0xff]  }
  0x32   : > { %v2231_v43 = vld [vmem:[%s2462_s7 + $0x8] sm:$0xff]   ;;  %v2235_v47 = vld [vmem:[%s2462_s7] sm:$0xff]   ;;  %v2239_v59 = vld [vmem:[%s2462_s7 + $0x138] sm:$0xff]  }
  0x33   : > { %1993 = vmatpush3.bf16.msra.mxu0 %v2215_v27  ;;  %v2232_v44 = vld [vmem:[%s2462_s7 + $0x88] sm:$0xff]   ;;  %v2236_v48 = vld [vmem:[%s2462_s7 + $0x80] sm:$0xff]   ;;  %v2240_v60 = vld [vmem:[%s2462_s7 + $0x1b8] sm:$0xff]  }
  0x34   : > { %2015 = vmatpush3.bf16.msra.mxu1 %v2216_v28  ;;  %1994 = vmatprep.subr.bf16.mxu0 %v2217_v29  ;;  %v272_v49 = vld [vmem:[%s2464_s8] sm:$0xff]  ;;  %v273_v51 = vld [vmem:[%s2464_s8 + $0x8] sm:$0xff]  ;;  %v2241_v61 = vld [vmem:[%s2462_s7 + $0x170] sm:$0xff]  }
  0x35   : > { %2016 = vmatprep.subr.bf16.mxu1 %v2218_v30  ;;  %v280_v50 = vld [vmem:[%s2464_s8 + $0x40] sm:$0xff]  ;;  %v281_v54 = vld [vmem:[%s2464_s8 + $0x48] sm:$0xff]  ;;  %v2242_v62 = vld [vmem:[%s2462_s7 + $0x1f0] sm:$0xff]  }
  0x36   : > { %v1837_v52 = vcombine.low %v272_v49, %v280_v50  ;;  %v1838_v53 = vcombine.high %v272_v49, %v280_v50  ;;  %v1839_v55 = vcombine.low %v273_v51, %v281_v54  ;;  %v1840_v56 = vcombine.high %v273_v51, %v281_v54  ;;  %v2243_v63 = vld [vmem:[%s2462_s7 + $0x130] sm:$0xff]   ;;  %v2245_v1 = vld [vmem:[%s2462_s7 + $0x168] sm:$0xff]   ;;  %v2249_v5 = vld [vmem:[%s2462_s7 + $0x160] sm:$0xff]  }
  0x37   : > { %1995 = vmatpush3.bf16.msra.mxu0 %v2219_v31  ;;  %v2244_v0 = vld [vmem:[%s2462_s7 + $0x1b0] sm:$0xff]   ;;  %v2246_v2 = vld [vmem:[%s2462_s7 + $0x1e8] sm:$0xff]   ;;  %v2250_v6 = vld [vmem:[%s2462_s7 + $0x1e0] sm:$0xff]  }
  0x38   : > { %2017 = vmatpush3.bf16.msra.mxu1 %v2220_v32  ;;  %1996 = vmatprep.subr.bf16.mxu0 %v2221_v33  ;;  %v2247_v3 = vld [vmem:[%s2462_s7 + $0x128] sm:$0xff]   ;;  %v2251_v7 = vld [vmem:[%s2462_s7 + $0x120] sm:$0xff]   ;;  %v2253_v9 = vld [vmem:[%s2462_s7 + $0x158] sm:$0xff]  }
  0x39   : > { %2018 = vmatprep.subr.bf16.mxu1 %v2222_v34  ;;  %1424 = vmatprep.mubr.bf16.mxu0 %v1838_v53  ;;  %v2248_v4 = vld [vmem:[%s2462_s7 + $0x1a8] sm:$0xff]   ;;  %v2252_v8 = vld [vmem:[%s2462_s7 + $0x1a0] sm:$0xff]   ;;  %v2254_v10 = vld [vmem:[%s2462_s7 + $0x1d8] sm:$0xff]  }
  0x3a   : > { %1465 = vmatprep.mubr.bf16.mxu1 %v1840_v56  ;;  %v2255_v11 = vld [vmem:[%s2462_s7 + $0x118] sm:$0xff]   ;;  %v2257_v13 = vld [vmem:[%s2462_s7 + $0x150] sm:$0xff]   ;;  %v2261_v17 = vld [vmem:[%s2462_s7 + $0x148] sm:$0xff]  }
  0x3b   : > { %1997 = vmatpush3.bf16.msra.mxu0 %v2223_v35  ;;  %v2256_v12 = vld [vmem:[%s2462_s7 + $0x198] sm:$0xff]   ;;  %v2258_v14 = vld [vmem:[%s2462_s7 + $0x1d0] sm:$0xff]   ;;  %v2262_v18 = vld [vmem:[%s2462_s7 + $0x1c8] sm:$0xff]  }
  0x3c   : > { %2019 = vmatpush3.bf16.msra.mxu1 %v2224_v36  ;;  %1998 = vmatprep.subr.bf16.mxu0 %v2225_v37  ;;  %v2259_v15 = vld [vmem:[%s2462_s7 + $0x110] sm:$0xff]   ;;  %v2263_v19 = vld [vmem:[%s2462_s7 + $0x108] sm:$0xff]   ;;  %v2265_v21 = vld [vmem:[%s2462_s7 + $0x140] sm:$0xff]  }
  0x3d   : > { %2020 = vmatprep.subr.bf16.mxu1 %v2226_v38  ;;  %v2260_v16 = vld [vmem:[%s2462_s7 + $0x190] sm:$0xff]   ;;  %v2264_v20 = vld [vmem:[%s2462_s7 + $0x188] sm:$0xff]   ;;  %v2266_v22 = vld [vmem:[%s2462_s7 + $0x1c0] sm:$0xff]  }
  0x3e   : > { %v2267_v23 = vld [vmem:[%s2462_s7 + $0x100] sm:$0xff]   ;;  %v274_v25 = vld [vmem:[%s2464_s8 + $0x10] sm:$0xff]  ;;  %v275_v29 = vld [vmem:[%s2464_s8 + $0x18] sm:$0xff] }
  0x3f   : > { %1999 = vmatpush3.bf16.msra.mxu0 %v2227_v39  ;;  %v2268_v24 = vld [vmem:[%s2462_s7 + $0x180] sm:$0xff]   ;;  %v282_v26 = vld [vmem:[%s2464_s8 + $0x50] sm:$0xff]  ;;  %v283_v30 = vld [vmem:[%s2464_s8 + $0x58] sm:$0xff] }
  0x40   : > { %2021 = vmatpush3.bf16.msra.mxu1 %v2228_v40  ;;  %2000 = vmatprep.subr.bf16.mxu0 %v2229_v41  ;;  %v1841_v27 = vcombine.low %v274_v25, %v282_v26  ;;  %v1842_v28 = vcombine.high %v274_v25, %v282_v26  ;;  %v1843_v31 = vcombine.low %v275_v29, %v283_v30  ;;  %v2269_v33 = vld [vmem:[%s2462_s7 + $0x278] sm:$0xff]   ;;  %v2273_v37 = vld [vmem:[%s2462_s7 + $0x270] sm:$0xff]   ;;  %v2277_v41 = vld [vmem:[%s2462_s7 + $0x268] sm:$0xff]  }
  0x41   : > { %2022 = vmatprep.subr.bf16.mxu1 %v2230_v42  ;;  %v1844_v32 = vcombine.high %v275_v29, %v283_v30  ;;  %v2270_v34 = vld [vmem:[%s2462_s7 + $0x2f8] sm:$0xff]   ;;  %v2274_v38 = vld [vmem:[%s2462_s7 + $0x2f0] sm:$0xff]   ;;  %v2278_v42 = vld [vmem:[%s2462_s7 + $0x2e8] sm:$0xff]  }
  0x42   : > { %v2271_v35 = vld [vmem:[%s2462_s7 + $0x238] sm:$0xff]   ;;  %v2275_v39 = vld [vmem:[%s2462_s7 + $0x230] sm:$0xff]  }
  0x43   : > { %2001 = vmatpush3.bf16.msra.mxu0 %v2231_v43  ;;  %v2272_v36 = vld [vmem:[%s2462_s7 + $0x2b8] sm:$0xff]   ;;  %v2276_v40 = vld [vmem:[%s2462_s7 + $0x2b0] sm:$0xff]   ;;  %v2279_v43 = vld [vmem:[%s2462_s7 + $0x228] sm:$0xff]  }
  0x44   : > { %2023 = vmatpush3.bf16.msra.mxu1 %v2232_v44  ;;  %2002 = vmatprep.subr.bf16.mxu0 %v2233_v45  ;;  %v2280_v44 = vld [vmem:[%s2462_s7 + $0x2a8] sm:$0xff]   ;;  %v2281_v45 = vld [vmem:[%s2462_s7 + $0x260] sm:$0xff]   ;;  %v2285_v49 = vld [vmem:[%s2462_s7 + $0x258] sm:$0xff]  }
  0x45   : > { %2024 = vmatprep.subr.bf16.mxu1 %v2234_v46  ;;  %v2282_v46 = vld [vmem:[%s2462_s7 + $0x2e0] sm:$0xff]   ;;  %v2286_v50 = vld [vmem:[%s2462_s7 + $0x2d8] sm:$0xff]   ;;  %v2289_v53 = vld [vmem:[%s2462_s7 + $0x250] sm:$0xff]  }
  0x46   : > { %v2287_v51 = vld [vmem:[%s2462_s7 + $0x218] sm:$0xff]   ;;  %v2290_v54 = vld [vmem:[%s2462_s7 + $0x2d0] sm:$0xff]  }
  0x47   : > { %2003 = vmatpush3.bf16.msra.mxu0 %v2235_v47  ;;  %v2283_v47 = vld [vmem:[%s2462_s7 + $0x220] sm:$0xff]   ;;  %v2292_v56 = vld [vmem:[%s2462_s7 + $0x290] sm:$0xff]   ;;  %v2317_v25 = vld [vmem:[%s2462_s7 + $0x358] sm:$0xff]  }
  0x48   : > { %2025 = vmatpush3.bf16.msra.mxu1 %v2236_v48  ;;  %2032 = vmatprep.subr.bf16.mxu0 %v2237_v57  ;;  %v2284_v48 = vld [vmem:[%s2462_s7 + $0x2a0] sm:$0xff]   ;;  %v2293_v57 = vld [vmem:[%s2462_s7 + $0x248] sm:$0xff]   ;;  %v2318_v26 = vld [vmem:[%s2462_s7 + $0x3d8] sm:$0xff]  }
  0x49   : > { %2054 = vmatprep.subr.bf16.mxu1 %v2238_v58  ;;  %v2294_v58 = vld [vmem:[%s2462_s7 + $0x2c8] sm:$0xff]   ;;  %v2321_v29 = vld [vmem:[%s2462_s7 + $0x350] sm:$0xff]  }
  0x4a   : > { %1425 = vmatmul.mubr.bf16.vlgmr.msra.gmra.mxu0 %v1837_v52  ;;  %v2288_v52 = vld [vmem:[%s2462_s7 + $0x298] sm:$0xff]   ;;  %v2322_v30 = vld [vmem:[%s2462_s7 + $0x3d0] sm:$0xff]  }
  0x4b   : > { %1466 = vmatmul.mubr.bf16.vlgmr.msra.gmra.mxu1 %v1839_v55  ;;  %2033 = vmatpush3.bf16.msra.mxu0 %v2239_v59  ;;  %v2291_v55 = vld [vmem:[%s2462_s7 + $0x210] sm:$0xff]   ;;  %v2295_v59 = vld [vmem:[%s2462_s7 + $0x208] sm:$0xff]  }
  0x4c   : > { %2055 = vmatpush3.bf16.msra.mxu1 %v2240_v60  ;;  %2034 = vmatprep.subr.bf16.mxu0 %v2241_v61  ;;  %v2296_v60 = vld [vmem:[%s2462_s7 + $0x288] sm:$0xff]   ;;  %v2297_v61 = vld [vmem:[%s2462_s7 + $0x240] sm:$0xff]  }
  0x4d   : > { %2056 = vmatprep.subr.bf16.mxu1 %v2242_v62  ;;  %1506 = vmatprep.mubr.bf16.mxu0 %v1842_v28  ;;  %v2298_v62 = vld [vmem:[%s2462_s7 + $0x2c0] sm:$0xff]   ;;  %v2320_v28 = vld [vmem:[%s2462_s7 + $0x398] sm:$0xff]  }
  0x4e   : > { %1547 = vmatprep.mubr.bf16.mxu1 %v1844_v32  ;;  %v2324_v32 = vld [vmem:[%s2462_s7 + $0x390] sm:$0xff]  }
  0x4f   : > { %2035 = vmatpush3.bf16.msra.mxu0 %v2243_v63  ;;  %v2299_v63 = vld [vmem:[%s2462_s7 + $0x200] sm:$0xff]  }
  0x50   : > { %2057 = vmatpush3.bf16.msra.mxu1 %v2244_v0  ;;  %2036 = vmatprep.subr.bf16.mxu0 %v2245_v1  ;;  %v2300_v0 = vld [vmem:[%s2462_s7 + $0x280] sm:$0xff]  }
  0x51   : > { %2058 = vmatprep.subr.bf16.mxu1 %v2246_v2  ;;  %v276_v1 = vld [vmem:[%s2464_s8 + $0x20] sm:$0xff] }
  0x52   : > { %v284_v2 = vld [vmem:[%s2464_s8 + $0x60] sm:$0xff] }
  0x53   : > { %2037 = vmatpush3.bf16.msra.mxu0 %v2247_v3  ;;  %v277_v3 = vld [vmem:[%s2464_s8 + $0x28] sm:$0xff] }
  0x54   : > { %2059 = vmatpush3.bf16.msra.mxu1 %v2248_v4  ;;  %2038 = vmatprep.subr.bf16.mxu0 %v2249_v5  ;;  %v285_v4 = vld [vmem:[%s2464_s8 + $0x68] sm:$0xff]  ;;  %v1845_v5 = vcombine.low %v276_v1, %v284_v2 }
  0x55   : > { %2060 = vmatprep.subr.bf16.mxu1 %v2250_v6  ;;  %v1846_v6 = vcombine.high %v276_v1, %v284_v2 }
  0x57   : > { %2039 = vmatpush3.bf16.msra.mxu0 %v2251_v7  ;;  %v1847_v7 = vcombine.low %v277_v3, %v285_v4 }
  0x58   : > { %2061 = vmatpush3.bf16.msra.mxu1 %v2252_v8  ;;  %2040 = vmatprep.subr.bf16.mxu0 %v2253_v9  ;;  %v1848_v8 = vcombine.high %v277_v3, %v285_v4  ;;  %v2301_v9 = vld [vmem:[%s2462_s7 + $0x378] sm:$0xff]  }
  0x59   : > { %2062 = vmatprep.subr.bf16.mxu1 %v2254_v10  ;;  %v2302_v10 = vld [vmem:[%s2462_s7 + $0x3f8] sm:$0xff]  }
  0x5b   : > { %2041 = vmatpush3.bf16.msra.mxu0 %v2255_v11  ;;  %v2303_v11 = vld [vmem:[%s2462_s7 + $0x338] sm:$0xff]  }
  0x5c   : > { %2063 = vmatpush3.bf16.msra.mxu1 %v2256_v12  ;;  %2042 = vmatprep.subr.bf16.mxu0 %v2257_v13  ;;  %v2304_v12 = vld [vmem:[%s2462_s7 + $0x3b8] sm:$0xff]   ;;  %v2305_v13 = vld [vmem:[%s2462_s7 + $0x370] sm:$0xff]  }
  0x5d   : > { %2064 = vmatprep.subr.bf16.mxu1 %v2258_v14  ;;  %v2306_v14 = vld [vmem:[%s2462_s7 + $0x3f0] sm:$0xff]  }
  0x5f   : > { %2043 = vmatpush3.bf16.msra.mxu0 %v2259_v15  ;;  %v2307_v15 = vld [vmem:[%s2462_s7 + $0x330] sm:$0xff]  }
  0x60   : > { %2065 = vmatpush3.bf16.msra.mxu1 %v2260_v16  ;;  %2044 = vmatprep.subr.bf16.mxu0 %v2261_v17  ;;  %v2308_v16 = vld [vmem:[%s2462_s7 + $0x3b0] sm:$0xff]   ;;  %v2309_v17 = vld [vmem:[%s2462_s7 + $0x368] sm:$0xff]  }
  0x61   : > { %2066 = vmatprep.subr.bf16.mxu1 %v2262_v18  ;;  %v2310_v18 = vld [vmem:[%s2462_s7 + $0x3e8] sm:$0xff]  }
  0x63   : > { %2045 = vmatpush3.bf16.msra.mxu0 %v2263_v19  ;;  %v2311_v19 = vld [vmem:[%s2462_s7 + $0x328] sm:$0xff]  }
  0x64   : > { %2067 = vmatpush3.bf16.msra.mxu1 %v2264_v20  ;;  %2046 = vmatprep.subr.bf16.mxu0 %v2265_v21  ;;  %v2312_v20 = vld [vmem:[%s2462_s7 + $0x3a8] sm:$0xff]   ;;  %v2313_v21 = vld [vmem:[%s2462_s7 + $0x360] sm:$0xff]  }
  0x65   : > { %2068 = vmatprep.subr.bf16.mxu1 %v2266_v22  ;;  %v2314_v22 = vld [vmem:[%s2462_s7 + $0x3e0] sm:$0xff]  }
  0x67   : > { %2047 = vmatpush3.bf16.msra.mxu0 %v2267_v23  ;;  %v2315_v23 = vld [vmem:[%s2462_s7 + $0x320] sm:$0xff]  }
  0x68   : > { %2069 = vmatpush3.bf16.msra.mxu1 %v2268_v24  ;;  %2076 = vmatprep.subr.bf16.mxu0 %v2269_v33  ;;  %v2316_v24 = vld [vmem:[%s2462_s7 + $0x3a0] sm:$0xff]   ;;  %v2325_v33 = vld [vmem:[%s2462_s7 + $0x348] sm:$0xff]  }
  0x69   : > { %2098 = vmatprep.subr.bf16.mxu1 %v2270_v34  ;;  %v2326_v34 = vld [vmem:[%s2462_s7 + $0x3c8] sm:$0xff]  }
  0x6a   : > { %1507 = vmatmul.mubr.bf16.vlgmr.msra.gmra.mxu0 %v1841_v27  ;;  %v2319_v27 = vld [vmem:[%s2462_s7 + $0x318] sm:$0xff]  }
  0x6b   : > { %1548 = vmatmul.mubr.bf16.vlgmr.msra.gmra.mxu1 %v1843_v31  ;;  %2077 = vmatpush3.bf16.msra.mxu0 %v2271_v35  ;;  %v2323_v31 = vld [vmem:[%s2462_s7 + $0x310] sm:$0xff]   ;;  %v2327_v35 = vld [vmem:[%s2462_s7 + $0x308] sm:$0xff]  }
  0x6c   : > { %2099 = vmatpush3.bf16.msra.mxu1 %v2272_v36  ;;  %2078 = vmatprep.subr.bf16.mxu0 %v2273_v37  ;;  %v2328_v36 = vld [vmem:[%s2462_s7 + $0x388] sm:$0xff]   ;;  %v2329_v37 = vld [vmem:[%s2462_s7 + $0x340] sm:$0xff]  }
  0x6d   : > { %2100 = vmatprep.subr.bf16.mxu1 %v2274_v38  ;;  %1588 = vmatprep.mubr.bf16.mxu0 %v1846_v6  ;;  %v2330_v38 = vld [vmem:[%s2462_s7 + $0x3c0] sm:$0xff]  }
  0x6e   : > { %1629 = vmatprep.mubr.bf16.mxu1 %v1848_v8 }
  0x6f   : > { %2079 = vmatpush3.bf16.msra.mxu0 %v2275_v39  ;;  %v2331_v39 = vld [vmem:[%s2462_s7 + $0x300] sm:$0xff]  }
  0x70   : > { %2101 = vmatpush3.bf16.msra.mxu1 %v2276_v40  ;;  %2080 = vmatprep.subr.bf16.mxu0 %v2277_v41  ;;  %v2332_v40 = vld [vmem:[%s2462_s7 + $0x380] sm:$0xff]   ;;  %v278_v41 = vld [vmem:[%s2464_s8 + $0x30] sm:$0xff] }
  0x71   : > { %2102 = vmatprep.subr.bf16.mxu1 %v2278_v42  ;;  %v286_v42 = vld [vmem:[%s2464_s8 + $0x70] sm:$0xff] }
  0x73   : > { %2081 = vmatpush3.bf16.msra.mxu0 %v2279_v43  ;;  %v279_v43 = vld [vmem:[%s2464_s8 + $0x38] sm:$0xff] }
  0x74   : > { %2103 = vmatpush3.bf16.msra.mxu1 %v2280_v44  ;;  %2082 = vmatprep.subr.bf16.mxu0 %v2281_v45  ;;  %v1849_v44 = vcombine.low %v278_v41, %v286_v42  ;;  %v1850_v45 = vcombine.high %v278_v41, %v286_v42 }
  0x75   : > { %2104 = vmatprep.subr.bf16.mxu1 %v2282_v46  ;;  %v287_v46 = vld [vmem:[%s2464_s8 + $0x78] sm:$0xff] }
  0x77   : > { %2083 = vmatpush3.bf16.msra.mxu0 %v2283_v47  ;;  %v1851_v47 = vcombine.low %v279_v43, %v287_v46 }
  0x78   : > { %2105 = vmatpush3.bf16.msra.mxu1 %v2284_v48  ;;  %2084 = vmatprep.subr.bf16.mxu0 %v2285_v49  ;;  %v1852_v48 = vcombine.high %v279_v43, %v287_v46 }
  0x79   : > { %2106 = vmatprep.subr.bf16.mxu1 %v2286_v50 }
  0x7b   : > { %2085 = vmatpush3.bf16.msra.mxu0 %v2287_v51 }
  0x7c   : > { %2107 = vmatpush3.bf16.msra.mxu1 %v2288_v52  ;;  %2086 = vmatprep.subr.bf16.mxu0 %v2289_v53 }
  0x7d   : > { %2108 = vmatprep.subr.bf16.mxu1 %v2290_v54 }
  0x7f   : > { %2087 = vmatpush3.bf16.msra.mxu0 %v2291_v55 }
  0x80   : > { %2109 = vmatpush3.bf16.msra.mxu1 %v2292_v56  ;;  %2088 = vmatprep.subr.bf16.mxu0 %v2293_v57 }
  0x81   : > { %2110 = vmatprep.subr.bf16.mxu1 %v2294_v58 }
  0x83   : > { %2089 = vmatpush3.bf16.msra.mxu0 %v2295_v59 }
  0x84   : > { %2111 = vmatpush3.bf16.msra.mxu1 %v2296_v60  ;;  %2090 = vmatprep.subr.bf16.mxu0 %v2297_v61 }
  0x85   : > { %2112 = vmatprep.subr.bf16.mxu1 %v2298_v62 }
  0x87   : > { %2091 = vmatpush3.bf16.msra.mxu0 %v2299_v63 }
  0x88   : > { %2113 = vmatpush3.bf16.msra.mxu1 %v2300_v0  ;;  %2120 = vmatprep.subr.bf16.mxu0 %v2301_v9 }
  0x89   : > { %2142 = vmatprep.subr.bf16.mxu1 %v2302_v10 }
  0x8a   : > { %1589 = vmatmul.mubr.bf16.vlgmr.msra.gmra.mxu0 %v1845_v5 }
  0x8b   : > { %1630 = vmatmul.mubr.bf16.vlgmr.msra.gmra.mxu1 %v1847_v7  ;;  %2121 = vmatpush3.bf16.msra.mxu0 %v2303_v11 }
  0x8c   : > { %2143 = vmatpush3.bf16.msra.mxu1 %v2304_v12  ;;  %2122 = vmatprep.subr.bf16.mxu0 %v2305_v13 }
  0x8d   : > { %2144 = vmatprep.subr.bf16.mxu1 %v2306_v14  ;;  %1670 = vmatprep.mubr.bf16.mxu0 %v1850_v45 }
  0x8e   : > { %1711 = vmatprep.mubr.bf16.mxu1 %v1852_v48  ;;  %v271_v48 = vld [vmem:[%s2663_s3 + $0x8] sm:$0xff] }
  0x8f   : > { %2123 = vmatpush3.bf16.msra.mxu0 %v2307_v15 }
  0x90   : > { %2145 = vmatpush3.bf16.msra.mxu1 %v2308_v16  ;;  %2124 = vmatprep.subr.bf16.mxu0 %v2309_v17 }
  0x91   : > { %2146 = vmatprep.subr.bf16.mxu1 %v2310_v18 }
  0x93   : > { %2125 = vmatpush3.bf16.msra.mxu0 %v2311_v19 }
  0x94   : > { %2147 = vmatpush3.bf16.msra.mxu1 %v2312_v20  ;;  %2126 = vmatprep.subr.bf16.mxu0 %v2313_v21 }
  0x95   : > { %2148 = vmatprep.subr.bf16.mxu1 %v2314_v22 }
  0x97   : > { %2127 = vmatpush3.bf16.msra.mxu0 %v2315_v23 }
  0x98   : > { %2149 = vmatpush3.bf16.msra.mxu1 %v2316_v24  ;;  %2128 = vmatprep.subr.bf16.mxu0 %v2317_v25 }
  0x99   : > { %2150 = vmatprep.subr.bf16.mxu1 %v2318_v26 }
  0x9b   : > { %2129 = vmatpush3.bf16.msra.mxu0 %v2319_v27 }
  0x9c   : > { %2151 = vmatpush3.bf16.msra.mxu1 %v2320_v28  ;;  %2130 = vmatprep.subr.bf16.mxu0 %v2321_v29 }
  0x9d   : > { %2152 = vmatprep.subr.bf16.mxu1 %v2322_v30 }
  0x9f   : > { %2131 = vmatpush3.bf16.msra.mxu0 %v2323_v31 }
  0xa0   : > { %2153 = vmatpush3.bf16.msra.mxu1 %v2324_v32  ;;  %2132 = vmatprep.subr.bf16.mxu0 %v2325_v33 }
  0xa1   : > { %2154 = vmatprep.subr.bf16.mxu1 %v2326_v34 }
  0xa3   : > { %2133 = vmatpush3.bf16.msra.mxu0 %v2327_v35 }
  0xa4   : > { %2155 = vmatpush3.bf16.msra.mxu1 %v2328_v36  ;;  %2134 = vmatprep.subr.bf16.mxu0 %v2329_v37 }
  0xa5   : > { %2156 = vmatprep.subr.bf16.mxu1 %v2330_v38 }
  0xa7   : > { %2135 = vmatpush3.bf16.msra.mxu0 %v2331_v39  ;;  %v270_v39 = vld [vmem:[%s2663_s3] sm:$0xff] }
  0xa8   : > { %2157 = vmatpush3.bf16.msra.mxu1 %v2332_v40 }
  0xaa   : > { %1671 = vmatmul.mubr.bf16.vlgmr.msra.gmra.mxu0 %v1849_v44 }
  0xab   : > { %1712 = vmatmul.mubr.bf16.vlgmr.msra.gmra.mxu1 %v1851_v47 }
 0x10a   : > { %v2004_v49 = vpop.f32.mrf.mxu0 }
 0x10b   : > { %v2026_v50 = vpop.f32.mrf.mxu1 }
 0x10c   : > { %v2005_v51 = vpop.f32.mrf.mxu0 }
 0x10d   : > { %v2027_v52 = vpop.f32.mrf.mxu1  ;;  %v2006_v2 = vadd.f32 %v2005_v51, %v2004_v49 }
 0x10e   : > { %v2007_v53 = vpop.f32.mrf.mxu0  ;;  %v2028_v3 = vadd.f32 %v2027_v52, %v2026_v50 }
 0x10f   : > { %v2029_v54 = vpop.f32.mrf.mxu1 }
 0x110   : > { %v2008_v55 = vpop.f32.mrf.mxu0  ;;  %v1468_v7 = vadd.f32 %v2028_v3, %v2006_v2 }
 0x111   : > { %v2030_v57 = vpop.f32.mrf.mxu1  ;;  %v2009_v8 = vadd.f32 %v2008_v55, %v2007_v53 }
 0x112   : > { %v2031_v9 = vadd.f32 %v2030_v57, %v2029_v54 }
 0x114   : > { %v1471_v15 = vadd.f32 %v2031_v9, %v2009_v8 }
 0x12a   : > { %v2048_v56 = vpop.f32.mrf.mxu0 }
 0x12b   : > { %v2070_v58 = vpop.f32.mrf.mxu1 }
 0x12c   : > { %v2049_v59 = vpop.f32.mrf.mxu0 }
 0x12d   : > { %v2071_v60 = vpop.f32.mrf.mxu1  ;;  %v2050_v6 = vadd.f32 %v2049_v59, %v2048_v56 }
 0x12e   : > { %v2051_v61 = vpop.f32.mrf.mxu0  ;;  %v2072_v13 = vadd.f32 %v2071_v60, %v2070_v58 }
 0x12f   : > { %v2073_v62 = vpop.f32.mrf.mxu1  ;;  %v1509_v12 = vadd.f32 %v2050_v6, %v1468_v7 }
 0x130   : > { %v2052_v63 = vpop.f32.mrf.mxu0 }
 0x131   : > { %v2074_v1 = vpop.f32.mrf.mxu1  ;;  %v2053_v14 = vadd.f32 %v2052_v63, %v2051_v61  ;;  %v1550_v19 = vadd.f32 %v2072_v13, %v1509_v12 }
 0x132   : > { %v2075_v21 = vadd.f32 %v2074_v1, %v2073_v62 }
 0x133   : > { %v1512_v20 = vadd.f32 %v2053_v14, %v1471_v15 }
 0x135   : > { %v1553_v27 = vadd.f32 %v2075_v21, %v1512_v20 }
 0x14a   : > { %v2092_v0 = vpop.f32.mrf.mxu0 }
 0x14b   : > { %v2114_v4 = vpop.f32.mrf.mxu1 }
 0x14c   : > { %v2093_v5 = vpop.f32.mrf.mxu0 }
 0x14d   : > { %v2115_v10 = vpop.f32.mrf.mxu1  ;;  %v2094_v16 = vadd.f32 %v2093_v5, %v2092_v0 }
 0x14e   : > { %v2095_v11 = vpop.f32.mrf.mxu0  ;;  %v2116_v23 = vadd.f32 %v2115_v10, %v2114_v4 }
 0x14f   : > { %v2117_v17 = vpop.f32.mrf.mxu1  ;;  %v1591_v22 = vadd.f32 %v2094_v16, %v1550_v19 }
 0x150   : > { %v2096_v18 = vpop.f32.mrf.mxu0 }
 0x151   : > { %v2097_v24 = vadd.f32 %v2096_v18, %v2095_v11  ;;  %v2118_v25 = vpop.f32.mrf.mxu1  ;;  %v1632_v30 = vadd.f32 %v2116_v23, %v1591_v22 }
 0x152   : > { %v2119_v35 = vadd.f32 %v2118_v25, %v2117_v17 }
 0x153   : > { %v1594_v31 = vadd.f32 %v2097_v24, %v1553_v27 }
 0x155   : > { %v1635_v41 = vadd.f32 %v2119_v35, %v1594_v31 }
 0x16a   : > { %v2136_v26 = vpop.f32.mrf.mxu0 }
 0x16b   : > { %v2158_v28 = vpop.f32.mrf.mxu1 }
 0x16c   : > { %v2137_v29 = vpop.f32.mrf.mxu0 }
 0x16d   : > { %v2138_v32 = vadd.f32 %v2137_v29, %v2136_v26  ;;  %v2159_v33 = vpop.f32.mrf.mxu1 }
 0x16e   : > { %v2139_v34 = vpop.f32.mrf.mxu0  ;;  %v2160_v37 = vadd.f32 %v2159_v33, %v2158_v28 }
 0x16f   : > { %v1673_v36 = vadd.f32 %v2138_v32, %v1632_v30  ;;  %v2161_v38 = vpop.f32.mrf.mxu1 }
 0x170   : > { %v2140_v40 = vpop.f32.mrf.mxu0 }
 0x171   : > { %v1714_v42 = vadd.f32 %v2160_v37, %v1673_v36  ;;  %v2141_v43 = vadd.f32 %v2140_v40, %v2139_v34  ;;  %v2162_v44 = vpop.f32.mrf.mxu1 }
 0x172   : > { %v2163_v47 = vadd.f32 %v2162_v44, %v2161_v38 }
 0x173   : > { %v1720_v45 = vadd.f32 %v1714_v42, %v270_v39  ;;  %v1676_v46 = vadd.f32 %v2141_v43, %v1635_v41 }
 0x175   : > { %1722 = vst [vmem:[%s2663_s3] sm:$0xff] %v1720_v45  ;;  %v1717_v49 = vadd.f32 %v2163_v47, %v1676_v46  ;;  %1727 = sbr.rel (%p1981_p11) target bundleno = 390 (0x186), region = 63 }
 0x177   : > { %v1721_v50 = vadd.f32 %v1717_v49, %v271_v48 }
 0x179   : > { %1723 = vst [vmem:[%s2663_s3 + $0x8] sm:$0xff] %v1721_v50 }
 0x17a   : > { %v1982_v52 = vld [vmem:[%s2662_s2] ss:$0 sm:$0xff] }
 0x17c   : > { %v1728_v51 = vld [vmem:[%s2663_s3] sm:$0xff] }
 0x17d   : > { %v1737_v54 = vadd.f32 %v1982_v52, %v1728_v51 }
 0x17f   : > { %v1739_v56 = vmax.f32 %v1737_v54, 0.0 }
 0x180   : > { %v1729_v53 = vld [vmem:[%s2663_s3 + $0x8] sm:$0xff] }
 0x181   : > { %v1738_v55 = vadd.f32 %v1982_v52, %v1729_v53  ;;  %1741 = vst [vmem:[%s2663_s3] sm:$0xff] %v1739_v56 }
 0x183   : > { %v1740_v57 = vmax.f32 %v1738_v55, 0.0 }
 0x185   : > { %1742 = vst [vmem:[%s2663_s3 + $0x8] sm:$0xff] %v1740_v57 }
 0x186 PF: > { %s13_s16 = sadd.s32 1, %s2371_s16   ;;  %s2664_s12 = smov %s2359_s13 }
 0x187   : > { %p10_p12 = scmp.ge.s32.totalorder %s13_s16, 10   ;;  %s2665_s13 = smov %s2429_s20 }
 0x188   : > { %s2666_s14 = smov %s2367_s15  ;;  %s2667_s15 = smov %s2669_s17 }
 0x189   :  { %12 = sbr.rel (!%p10_p12) target bundleno = 3 (0x3), region = 101 }

</bundles_post_ra>
